<compile_context>
chip_gen: v7x
topology: tpu7x:2x2x1
jax: 0.10.0
libtpu: 0.0.40
codegen_flags: <defaults>
</compile_context>

<pallas_src>
import functools

import jax
import jax.numpy as jnp
from jax.experimental import pallas as pl
from jax.experimental.pallas import tpu as pltpu

LANES = 128      # channel padding target -> lane-dense vld/vst
BN_EPS = 1e-5


# ----------------------------------------------------------------------------
# Fused DoubleConv kernel (single invocation, everything VMEM-resident)
# ----------------------------------------------------------------------------
def _double_conv_kernel(x_ref, w1_ref, w2_ref, g1_ref, b1_ref, g2_ref, b2_ref,
                        o_ref, im2col_ref, acc_ref, *, n, h, w, cin, cp, eps):
    m = n * h * w
    inv_m = 1.0 / float(m)
    kc = 3 * cp                      # contraction length per kernel-row matmul

    zrow = jnp.zeros((n, 1, w, kc), jnp.bfloat16)
    zcol = jnp.zeros((n, h, 1, cp), jnp.bfloat16)

    def stage(a):
        """Stage activation a:(n,h,w,cp) bf16 into the width-im2col slab.

        im2col[b,i,j, dj*cp:(dj+1)*cp] = padded(a)[b,i,j+dj,:], so each kernel
        row di is a free slice on the (outer) h axis and the MXU sees K=3*cp.
        Only 3 sublane-shift passes per conv; halo rows/cols zeroed explicitly
        (interior is fully overwritten -> no full-slab zero pass).
        """
        im2col_ref[:, 0:1, :, :] = zrow                     # top halo row
        im2col_ref[:, h + 1:h + 2, :, :] = zrow             # bottom halo row
        # dj = 1 : center column, lane-dense unshifted store
        im2col_ref[:, 1:1 + h, :, cp:2 * cp] = a
        # dj = 0 : left neighbour (column j-1); zero border column 0
        im2col_ref[:, 1:1 + h, 0:1, 0:cp] = zcol
        im2col_ref[:, 1:1 + h, 1:, 0:cp] = a[:, :, :w - 1, :]
        # dj = 2 : right neighbour (column j+1); zero border column w-1
        im2col_ref[:, 1:1 + h, :w - 1, 2 * cp:3 * cp] = a[:, :, 1:, :]
        im2col_ref[:, 1:1 + h, w - 1:w, 2 * cp:3 * cp] = zcol

    def conv3x3(w_ref):
        """3 MXU matmuls (K = 3*cp), accumulated in the f32 VMEM scratch."""
        for di in range(3):
            lhs = im2col_ref[:, di:di + h, :, :].reshape(m, kc)   # bf16
            rhs = w_ref[di * kc:(di + 1) * kc, :]                 # (kc, cp) bf16
            part = jnp.dot(lhs, rhs, preferred_element_type=jnp.float32)
            if di == 0:
                acc_ref[...] = part        # init with first dot (no zeros+add)
            else:
                acc_ref[...] += part

    def bn_relu(g_ref, b_ref):
        """Training-mode BatchNorm2d (batch stats, biased var) + ReLU.

        Single-pass statistics: var = E[y^2] - mean^2, all f32.
        Padded channels rely on gamma == beta == 0 to stay exactly zero.
        """
        y = acc_ref[...]                                          # (m, cp) f32
        mean = jnp.sum(y, axis=0, keepdims=True) * inv_m          # (1, cp)
        ex2 = jnp.sum(y * y, axis=0, keepdims=True) * inv_m
        var = jnp.maximum(ex2 - mean * mean, 0.0)
        scale = g_ref[...] * jax.lax.rsqrt(var + eps)             # EUP rsqrt
        shift = b_ref[...] - mean * scale
        return jnp.maximum(acc_ref[...] * scale + shift, 0.0)     # f32 VPU

    # ---- conv1: cast to bf16 + channel-pad to cp lanes inside VMEM ----------
    x = x_ref[...].astype(jnp.bfloat16)                           # (n,h,w,cin)
    if cin < cp:
        x = jnp.concatenate(
            [x, jnp.zeros((n, h, w, cp - cin), jnp.bfloat16)], axis=-1)
    stage(x)
    conv3x3(w1_ref)
    a1 = bn_relu(g1_ref, b1_ref).astype(jnp.bfloat16)             # (m, cp)

    # ---- conv2: reuse the same im2col + accumulator scratch -----------------
    stage(a1.reshape(n, h, w, cp))
    conv3x3(w2_ref)
    o_ref[...] = bn_relu(g2_ref, b2_ref).reshape(n, h, w, cp)


# ----------------------------------------------------------------------------
# One-time parameter packing (hoisted out of the per-call path)
# ----------------------------------------------------------------------------
def pack_double_conv_params(params, cp=LANES):
    """(Cout,Cin,3,3) -> (9*cp, cp) bf16 rows ordered (di, dj, cin); BN -> (1,cp)."""
    def pack_w(w):
        cout, cin, kh, kw = w.shape
        assert kh == 3 and kw == 3 and cin <= cp and cout <= cp
        wt = jnp.transpose(w, (2, 3, 1, 0))                       # (di,dj,ci,co)
        wt = jnp.pad(wt, ((0, 0), (0, 0), (0, cp - cin), (0, cp - cout)))
        return wt.reshape(9 * cp, cp).astype(jnp.bfloat16)

    def pack_v(v):
        # Zero padding is load-bearing: padded BN channels have var = 0 and
        # rely on gamma = 0 / beta = 0 to stay exactly zero through rsqrt(eps).
        return jnp.pad(v, (0, cp - v.shape[0])).reshape(1, cp).astype(jnp.float32)

    return dict(w1=pack_w(params["w1"]), w2=pack_w(params["w2"]),
                g1=pack_v(params["g1"]), b1=pack_v(params["b1"]),
                g2=pack_v(params["g2"]), b2=pack_v(params["b2"]))


# ----------------------------------------------------------------------------
# Forward wrappers
# ----------------------------------------------------------------------------
@functools.partial(jax.jit, static_argnames=("cp",))
def double_conv_forward_nhwc(x_nhwc, packed, *, cp=LANES):
    """Primary API: NHWC in, NHWC lane-padded (n,h,w,cp) f32 out (no epilogue)."""
    n, h, w, cin = x_nhwc.shape
    assert w % 8 == 0, "kernel requires W % 8 == 0 (sublane-aligned tap slices)"
    assert cin <= cp
    m = n * h * w

    kernel = functools.partial(_double_conv_kernel,
                               n=n, h=h, w=w, cin=cin, cp=cp, eps=BN_EPS)

    vmem = pl.BlockSpec(memory_space=pltpu.MemorySpace.VMEM)
    in_bytes = (n * h * w * cin * 4           # raw NHWC input (f32)
                + 2 * 9 * cp * cp * 2         # packed weights (bf16)
                + 4 * cp * 4)                 # BN gamma/beta vectors
    out_bytes = m * cp * 4
    scratch_bytes = n * (h + 2) * w * 3 * cp * 2 + m * cp * 4
    vmem_limit = min(int(1.5 * (in_bytes + out_bytes + scratch_bytes))
                     + (2 << 20), 128 * 1024 * 1024)

    return pl.pallas_call(
        kernel,
        out_shape=jax.ShapeDtypeStruct((n, h, w, cp), jnp.float32),
        in_specs=[vmem] * 7,
        out_specs=vmem,
        scratch_shapes=[
            pltpu.VMEM((n, h + 2, w, 3 * cp), jnp.bfloat16),   # width-im2col slab
            pltpu.VMEM((m, cp), jnp.float32),                  # conv accumulator
        ],
        compiler_params=pltpu.CompilerParams(vmem_limit_bytes=vmem_limit),
    )(x_nhwc.astype(jnp.float32), packed["w1"], packed["w2"],
      packed["g1"], packed["b1"], packed["g2"], packed["b2"])


@functools.partial(jax.jit, static_argnames=("out_channels", "cp"))
def double_conv_forward_nchw(x_nchw, packed, *, out_channels, cp=LANES):
    """NCHW compatibility wrapper (used for the reference check only).

    Production consumers should keep the NHWC lane-padded output from
    double_conv_forward_nhwc; this slice+transpose costs an extra output-sized
    HBM round trip.
    """
    x = jnp.transpose(x_nchw, (0, 2, 3, 1))
    y = double_conv_forward_nhwc(x, packed, cp=cp)
    return jnp.transpose(y[..., :out_channels], (0, 3, 1, 2))


# ----------------------------------------------------------------------------
# Plain-JAX reference (PyTorch training-mode forward semantics)
# ----------------------------------------------------------------------------
def _double_conv_ref(x_nchw, p, eps=BN_EPS):
    x = jnp.transpose(x_nchw, (0, 2, 3, 1)).astype(jnp.float32)

    def conv(x, w):
        return jax.lax.conv_general_dilated(
            x, jnp.transpose(w, (2, 3, 1, 0)), window_strides=(1, 1),
            padding=((1, 1), (1, 1)),
            dimension_numbers=("NHWC", "HWIO", "NHWC"))

    def bn_relu(x, g, b):
        mean = jnp.mean(x, axis=(0, 1, 2))
        var = jnp.mean((x - mean) ** 2, axis=(0, 1, 2))
        return jnp.maximum((x - mean) * (g / jnp.sqrt(var + eps)) + b, 0.0)

    x = bn_relu(conv(x, p["w1"]), p["g1"], p["b1"])
    x = bn_relu(conv(x, p["w2"]), p["g2"], p["b2"])
    return jnp.transpose(x, (0, 3, 1, 2))


if __name__ == "__main__":
    key = jax.random.PRNGKey(0)
    k1, k2, kx = jax.random.split(key, 3)

    n, in_ch, out_ch, hw = 2, 4, 8, 16
    params = dict(
        w1=(1.0 / (9 * in_ch) ** 0.5)
        * jax.random.normal(k1, (out_ch, in_ch, 3, 3), jnp.float32),
        g1=jnp.ones((out_ch,), jnp.float32),
        b1=jnp.zeros((out_ch,), jnp.float32),
        w2=(1.0 / (9 * out_ch) ** 0.5)
        * jax.random.normal(k2, (out_ch, out_ch, 3, 3), jnp.float32),
        g2=jnp.ones((out_ch,), jnp.float32),
        b2=jnp.zeros((out_ch,), jnp.float32),
    )
    x = jax.random.normal(kx, (n, in_ch, hw, hw), jnp.float32)     # NCHW

    packed = pack_double_conv_params(params)       # one-time weight re-layout
    y = double_conv_forward_nchw(x, packed, out_channels=out_ch)
    y = jax.block_until_ready(y)

    assert y.shape == (n, out_ch, hw, hw), y.shape
    assert bool(jnp.all(jnp.isfinite(y)))
    assert bool(jnp.all(y >= 0.0))                 # ReLU output is non-negative

    y_ref = _double_conv_ref(x, params)
    err = float(jnp.max(jnp.abs(y - y_ref)))
    assert err < 1e-1, f"max abs error vs reference: {err}"

    print("KERNEL_OK")
</pallas_src>

<mosaic_0001>
module attributes {stable_mosaic.version = 11 : i64} {
  func.func @_double_conv_kernel(%arg0: memref<2x16x16x4xf32, #tpu.memory_space<vmem>>, %arg1: memref<1152x128xbf16, #tpu.memory_space<vmem>>, %arg2: memref<1152x128xbf16, #tpu.memory_space<vmem>>, %arg3: memref<1x128xf32, #tpu.memory_space<vmem>>, %arg4: memref<1x128xf32, #tpu.memory_space<vmem>>, %arg5: memref<1x128xf32, #tpu.memory_space<vmem>>, %arg6: memref<1x128xf32, #tpu.memory_space<vmem>>, %arg7: memref<2x16x16x128xf32, #tpu.memory_space<vmem>>, %arg8: memref<2x18x16x384xbf16, #tpu.memory_space<vmem>>, %arg9: memref<512x128xf32, #tpu.memory_space<vmem>>) attributes {dimension_semantics = [], scalar_prefetch = 0 : i64, scratch_operands = 2 : i64, tpu.core_type = #tpu.core_type<tc>} {
    %cst = arith.constant 0.000000e+00 : bf16
    %0 = vector.broadcast %cst : bf16 to vector<2x1x16x384xbf16>
    %cst_0 = arith.constant 0.000000e+00 : bf16
    %1 = vector.broadcast %cst_0 : bf16 to vector<2x16x1x128xbf16>
    %c0 = arith.constant 0 : index
    %c0_1 = arith.constant 0 : index
    %c0_2 = arith.constant 0 : index
    %c0_3 = arith.constant 0 : index
    %2 = vector.load %arg0[%c0, %c0_1, %c0_2, %c0_3] : memref<2x16x16x4xf32, #tpu.memory_space<vmem>>, vector<2x16x16x4xf32>
    %3 = arith.truncf %2 : vector<2x16x16x4xf32> to vector<2x16x16x4xbf16>
    %cst_4 = arith.constant 0.000000e+00 : bf16
    %4 = vector.broadcast %cst_4 : bf16 to vector<2x16x16x124xbf16>
    %5 = tpu.concatenate %3, %4 in 3 : vector<2x16x16x4xbf16>, vector<2x16x16x124xbf16> -> vector<2x16x16x128xbf16>
    %c0_5 = arith.constant 0 : index
    %c0_6 = arith.constant 0 : index
    %c0_7 = arith.constant 0 : index
    %c0_8 = arith.constant 0 : index
    %6 = vector.load %arg8[%c0_5, %c0_6, %c0_7, %c0_8] : memref<2x18x16x384xbf16, #tpu.memory_space<vmem>>, vector<2x1x16x384xbf16>
    tpu.vector_store %arg8[%c0_5, %c0_6, %c0_7, %c0_8], %0 {strides = array<i32>} : memref<2x18x16x384xbf16, #tpu.memory_space<vmem>>, vector<2x1x16x384xbf16>,
    %c0_9 = arith.constant 0 : index
    %c17 = arith.constant 17 : index
    %c0_10 = arith.constant 0 : index
    %c0_11 = arith.constant 0 : index
    %7 = vector.load %arg8[%c0_9, %c17, %c0_10, %c0_11] : memref<2x18x16x384xbf16, #tpu.memory_space<vmem>>, vector<2x1x16x384xbf16>
    tpu.vector_store %arg8[%c0_9, %c17, %c0_10, %c0_11], %0 {strides = array<i32>} : memref<2x18x16x384xbf16, #tpu.memory_space<vmem>>, vector<2x1x16x384xbf16>,
    %c0_12 = arith.constant 0 : index
    %c1 = arith.constant 1 : index
    %c0_13 = arith.constant 0 : index
    %c128 = arith.constant 128 : index
    %8 = vector.load %arg8[%c0_12, %c1, %c0_13, %c128] : memref<2x18x16x384xbf16, #tpu.memory_space<vmem>>, vector<2x16x16x128xbf16>
    tpu.vector_store %arg8[%c0_12, %c1, %c0_13, %c128], %5 {strides = array<i32>} : memref<2x18x16x384xbf16, #tpu.memory_space<vmem>>, vector<2x16x16x128xbf16>,
    %c0_14 = arith.constant 0 : index
    %c1_15 = arith.constant 1 : index
    %c0_16 = arith.constant 0 : index
    %c0_17 = arith.constant 0 : index
    %9 = vector.load %arg8[%c0_14, %c1_15, %c0_16, %c0_17] : memref<2x18x16x384xbf16, #tpu.memory_space<vmem>>, vector<2x16x1x128xbf16>
    tpu.vector_store %arg8[%c0_14, %c1_15, %c0_16, %c0_17], %1 {strides = array<i32>} : memref<2x18x16x384xbf16, #tpu.memory_space<vmem>>, vector<2x16x1x128xbf16>,
    %10 = vector.extract_strided_slice %5 {offsets = [0, 0, 0, 0], sizes = [2, 16, 15, 128], strides = [1, 1, 1, 1]} : vector<2x16x16x128xbf16> to vector<2x16x15x128xbf16>
    %c0_18 = arith.constant 0 : index
    %c1_19 = arith.constant 1 : index
    %c1_20 = arith.constant 1 : index
    %c0_21 = arith.constant 0 : index
    %11 = vector.load %arg8[%c0_18, %c1_19, %c1_20, %c0_21] : memref<2x18x16x384xbf16, #tpu.memory_space<vmem>>, vector<2x16x15x128xbf16>
    tpu.vector_store %arg8[%c0_18, %c1_19, %c1_20, %c0_21], %10 {strides = array<i32>} : memref<2x18x16x384xbf16, #tpu.memory_space<vmem>>, vector<2x16x15x128xbf16>,
    %12 = vector.extract_strided_slice %5 {offsets = [0, 0, 1, 0], sizes = [2, 16, 15, 128], strides = [1, 1, 1, 1]} : vector<2x16x16x128xbf16> to vector<2x16x15x128xbf16>
    %c0_22 = arith.constant 0 : index
    %c1_23 = arith.constant 1 : index
    %c0_24 = arith.constant 0 : index
    %c256 = arith.constant 256 : index
    %13 = vector.load %arg8[%c0_22, %c1_23, %c0_24, %c256] : memref<2x18x16x384xbf16, #tpu.memory_space<vmem>>, vector<2x16x15x128xbf16>
    tpu.vector_store %arg8[%c0_22, %c1_23, %c0_24, %c256], %12 {strides = array<i32>} : memref<2x18x16x384xbf16, #tpu.memory_space<vmem>>, vector<2x16x15x128xbf16>,
    %c0_25 = arith.constant 0 : index
    %c1_26 = arith.constant 1 : index
    %c15 = arith.constant 15 : index
    %c256_27 = arith.constant 256 : index
    %14 = vector.load %arg8[%c0_25, %c1_26, %c15, %c256_27] : memref<2x18x16x384xbf16, #tpu.memory_space<vmem>>, vector<2x16x1x128xbf16>
    tpu.vector_store %arg8[%c0_25, %c1_26, %c15, %c256_27], %1 {strides = array<i32>} : memref<2x18x16x384xbf16, #tpu.memory_space<vmem>>, vector<2x16x1x128xbf16>,
    %c0_28 = arith.constant 0 : index
    %c0_29 = arith.constant 0 : index
    %c0_30 = arith.constant 0 : index
    %c0_31 = arith.constant 0 : index
    %15 = vector.load %arg8[%c0_28, %c0_29, %c0_30, %c0_31] : memref<2x18x16x384xbf16, #tpu.memory_space<vmem>>, vector<2x16x16x384xbf16>
    %16 = vector.shape_cast %15 : vector<2x16x16x384xbf16> to vector<512x384xbf16>
    %c0_32 = arith.constant 0 : index
    %c0_33 = arith.constant 0 : index
    %17 = vector.load %arg1[%c0_32, %c0_33] : memref<1152x128xbf16, #tpu.memory_space<vmem>>, vector<384x128xbf16>
    %cst_34 = arith.constant dense<0.000000e+00> : vector<512x128xf32>
    %18 = tpu.matmul %16, %17, %cst_34 {dimension_numbers = #tpu.dot_dimension_numbers<[1], [0], [0], [1], [0, 0, 1, 1], [], []>} : vector<512x384xbf16>, vector<384x128xbf16>, vector<512x128xf32> -> vector<512x128xf32>
    %c0_35 = arith.constant 0 : index
    %c0_36 = arith.constant 0 : index
    %19 = vector.load %arg9[%c0_35, %c0_36] : memref<512x128xf32, #tpu.memory_space<vmem>>, vector<512x128xf32>
    tpu.vector_store %arg9[%c0_35, %c0_36], %18 {strides = array<i32>} : memref<512x128xf32, #tpu.memory_space<vmem>>, vector<512x128xf32>,
    %c0_37 = arith.constant 0 : index
    %c1_38 = arith.constant 1 : index
    %c0_39 = arith.constant 0 : index
    %c0_40 = arith.constant 0 : index
    %20 = vector.load %arg8[%c0_37, %c1_38, %c0_39, %c0_40] : memref<2x18x16x384xbf16, #tpu.memory_space<vmem>>, vector<2x16x16x384xbf16>
    %21 = vector.shape_cast %20 : vector<2x16x16x384xbf16> to vector<512x384xbf16>
    %c384 = arith.constant 384 : index
    %c0_41 = arith.constant 0 : index
    %22 = vector.load %arg1[%c384, %c0_41] : memref<1152x128xbf16, #tpu.memory_space<vmem>>, vector<384x128xbf16>
    %cst_42 = arith.constant dense<0.000000e+00> : vector<512x128xf32>
    %23 = tpu.matmul %21, %22, %cst_42 {dimension_numbers = #tpu.dot_dimension_numbers<[1], [0], [0], [1], [0, 0, 1, 1], [], []>} : vector<512x384xbf16>, vector<384x128xbf16>, vector<512x128xf32> -> vector<512x128xf32>
    %c0_43 = arith.constant 0 : index
    %c0_44 = arith.constant 0 : index
    %24 = vector.load %arg9[%c0_43, %c0_44] : memref<512x128xf32, #tpu.memory_space<vmem>>, vector<512x128xf32>
    %25 = arith.addf %24, %23 : vector<512x128xf32>
    %c0_45 = arith.constant 0 : index
    %c0_46 = arith.constant 0 : index
    %26 = vector.load %arg9[%c0_45, %c0_46] : memref<512x128xf32, #tpu.memory_space<vmem>>, vector<512x128xf32>
    tpu.vector_store %arg9[%c0_45, %c0_46], %25 {strides = array<i32>} : memref<512x128xf32, #tpu.memory_space<vmem>>, vector<512x128xf32>,
    %c0_47 = arith.constant 0 : index
    %c2 = arith.constant 2 : index
    %c0_48 = arith.constant 0 : index
    %c0_49 = arith.constant 0 : index
    %27 = vector.load %arg8[%c0_47, %c2, %c0_48, %c0_49] : memref<2x18x16x384xbf16, #tpu.memory_space<vmem>>, vector<2x16x16x384xbf16>
    %28 = vector.shape_cast %27 : vector<2x16x16x384xbf16> to vector<512x384xbf16>
    %c768 = arith.constant 768 : index
    %c0_50 = arith.constant 0 : index
    %29 = vector.load %arg1[%c768, %c0_50] : memref<1152x128xbf16, #tpu.memory_space<vmem>>, vector<384x128xbf16>
    %cst_51 = arith.constant dense<0.000000e+00> : vector<512x128xf32>
    %30 = tpu.matmul %28, %29, %cst_51 {dimension_numbers = #tpu.dot_dimension_numbers<[1], [0], [0], [1], [0, 0, 1, 1], [], []>} : vector<512x384xbf16>, vector<384x128xbf16>, vector<512x128xf32> -> vector<512x128xf32>
    %c0_52 = arith.constant 0 : index
    %c0_53 = arith.constant 0 : index
    %31 = vector.load %arg9[%c0_52, %c0_53] : memref<512x128xf32, #tpu.memory_space<vmem>>, vector<512x128xf32>
    %32 = arith.addf %31, %30 : vector<512x128xf32>
    %c0_54 = arith.constant 0 : index
    %c0_55 = arith.constant 0 : index
    %33 = vector.load %arg9[%c0_54, %c0_55] : memref<512x128xf32, #tpu.memory_space<vmem>>, vector<512x128xf32>
    tpu.vector_store %arg9[%c0_54, %c0_55], %32 {strides = array<i32>} : memref<512x128xf32, #tpu.memory_space<vmem>>, vector<512x128xf32>,
    %c0_56 = arith.constant 0 : index
    %c0_57 = arith.constant 0 : index
    %34 = vector.load %arg9[%c0_56, %c0_57] : memref<512x128xf32, #tpu.memory_space<vmem>>, vector<512x128xf32>
    %cst_58 = arith.constant dense<0.000000e+00> : vector<128xf32>
    %35 = vector.multi_reduction <add>, %34, %cst_58 [0] : vector<512x128xf32> to vector<128xf32>
    %36 = vector.shape_cast %35 : vector<128xf32> to vector<1x128xf32>
    %cst_59 = arith.constant 0.001953125 : f32
    %37 = vector.broadcast %cst_59 : f32 to vector<1x128xf32>
    %38 = arith.mulf %36, %37 : vector<1x128xf32>
    %39 = arith.mulf %34, %34 : vector<512x128xf32>
    %cst_60 = arith.constant dense<0.000000e+00> : vector<128xf32>
    %40 = vector.multi_reduction <add>, %39, %cst_60 [0] : vector<512x128xf32> to vector<128xf32>
    %41 = vector.shape_cast %40 : vector<128xf32> to vector<1x128xf32>
    %cst_61 = arith.constant 0.001953125 : f32
    %42 = vector.broadcast %cst_61 : f32 to vector<1x128xf32>
    %43 = arith.mulf %41, %42 : vector<1x128xf32>
    %44 = arith.mulf %38, %38 : vector<1x128xf32>
    %45 = arith.subf %43, %44 : vector<1x128xf32>
    %cst_62 = arith.constant 0.000000e+00 : f32
    %46 = vector.broadcast %cst_62 : f32 to vector<1x128xf32>
    %47 = arith.maximumf %45, %46 : vector<1x128xf32>
    %c0_63 = arith.constant 0 : index
    %c0_64 = arith.constant 0 : index
    %48 = vector.load %arg3[%c0_63, %c0_64] : memref<1x128xf32, #tpu.memory_space<vmem>>, vector<1x128xf32>
    %cst_65 = arith.constant 9.99999974E-6 : f32
    %49 = vector.broadcast %cst_65 : f32 to vector<1x128xf32>
    %50 = arith.addf %47, %49 : vector<1x128xf32>
    %51 = math.rsqrt %50 : vector<1x128xf32>
    %52 = arith.mulf %48, %51 : vector<1x128xf32>
    %c0_66 = arith.constant 0 : index
    %c0_67 = arith.constant 0 : index
    %53 = vector.load %arg4[%c0_66, %c0_67] : memref<1x128xf32, #tpu.memory_space<vmem>>, vector<1x128xf32>
    %54 = arith.mulf %38, %52 : vector<1x128xf32>
    %55 = arith.subf %53, %54 : vector<1x128xf32>
    %c0_68 = arith.constant 0 : index
    %c0_69 = arith.constant 0 : index
    %56 = vector.load %arg9[%c0_68, %c0_69] : memref<512x128xf32, #tpu.memory_space<vmem>>, vector<512x128xf32>
    %57 = vector.broadcast %52 : vector<1x128xf32> to vector<512x128xf32>
    %58 = arith.mulf %56, %57 : vector<512x128xf32>
    %59 = vector.broadcast %55 : vector<1x128xf32> to vector<512x128xf32>
    %60 = arith.addf %58, %59 : vector<512x128xf32>
    %cst_70 = arith.constant 0.000000e+00 : f32
    %61 = vector.broadcast %cst_70 : f32 to vector<512x128xf32>
    %62 = arith.maximumf %60, %61 : vector<512x128xf32>
    %63 = arith.truncf %62 : vector<512x128xf32> to vector<512x128xbf16>
    %64 = vector.shape_cast %63 : vector<512x128xbf16> to vector<2x16x16x128xbf16>
    %c0_71 = arith.constant 0 : index
    %c0_72 = arith.constant 0 : index
    %c0_73 = arith.constant 0 : index
    %c0_74 = arith.constant 0 : index
    %65 = vector.load %arg8[%c0_71, %c0_72, %c0_73, %c0_74] : memref<2x18x16x384xbf16, #tpu.memory_space<vmem>>, vector<2x1x16x384xbf16>
    tpu.vector_store %arg8[%c0_71, %c0_72, %c0_73, %c0_74], %0 {strides = array<i32>} : memref<2x18x16x384xbf16, #tpu.memory_space<vmem>>, vector<2x1x16x384xbf16>,
    %c0_75 = arith.constant 0 : index
    %c17_76 = arith.constant 17 : index
    %c0_77 = arith.constant 0 : index
    %c0_78 = arith.constant 0 : index
    %66 = vector.load %arg8[%c0_75, %c17_76, %c0_77, %c0_78] : memref<2x18x16x384xbf16, #tpu.memory_space<vmem>>, vector<2x1x16x384xbf16>
    tpu.vector_store %arg8[%c0_75, %c17_76, %c0_77, %c0_78], %0 {strides = array<i32>} : memref<2x18x16x384xbf16, #tpu.memory_space<vmem>>, vector<2x1x16x384xbf16>,
    %c0_79 = arith.constant 0 : index
    %c1_80 = arith.constant 1 : index
    %c0_81 = arith.constant 0 : index
    %c128_82 = arith.constant 128 : index
    %67 = vector.load %arg8[%c0_79, %c1_80, %c0_81, %c128_82] : memref<2x18x16x384xbf16, #tpu.memory_space<vmem>>, vector<2x16x16x128xbf16>
    tpu.vector_store %arg8[%c0_79, %c1_80, %c0_81, %c128_82], %64 {strides = array<i32>} : memref<2x18x16x384xbf16, #tpu.memory_space<vmem>>, vector<2x16x16x128xbf16>,
    %c0_83 = arith.constant 0 : index
    %c1_84 = arith.constant 1 : index
    %c0_85 = arith.constant 0 : index
    %c0_86 = arith.constant 0 : index
    %68 = vector.load %arg8[%c0_83, %c1_84, %c0_85, %c0_86] : memref<2x18x16x384xbf16, #tpu.memory_space<vmem>>, vector<2x16x1x128xbf16>
    tpu.vector_store %arg8[%c0_83, %c1_84, %c0_85, %c0_86], %1 {strides = array<i32>} : memref<2x18x16x384xbf16, #tpu.memory_space<vmem>>, vector<2x16x1x128xbf16>,
    %69 = vector.extract_strided_slice %64 {offsets = [0, 0, 0, 0], sizes = [2, 16, 15, 128], strides = [1, 1, 1, 1]} : vector<2x16x16x128xbf16> to vector<2x16x15x128xbf16>
    %c0_87 = arith.constant 0 : index
    %c1_88 = arith.constant 1 : index
    %c1_89 = arith.constant 1 : index
    %c0_90 = arith.constant 0 : index
    %70 = vector.load %arg8[%c0_87, %c1_88, %c1_89, %c0_90] : memref<2x18x16x384xbf16, #tpu.memory_space<vmem>>, vector<2x16x15x128xbf16>
    tpu.vector_store %arg8[%c0_87, %c1_88, %c1_89, %c0_90], %69 {strides = array<i32>} : memref<2x18x16x384xbf16, #tpu.memory_space<vmem>>, vector<2x16x15x128xbf16>,
    %71 = vector.extract_strided_slice %64 {offsets = [0, 0, 1, 0], sizes = [2, 16, 15, 128], strides = [1, 1, 1, 1]} : vector<2x16x16x128xbf16> to vector<2x16x15x128xbf16>
    %c0_91 = arith.constant 0 : index
    %c1_92 = arith.constant 1 : index
    %c0_93 = arith.constant 0 : index
    %c256_94 = arith.constant 256 : index
    %72 = vector.load %arg8[%c0_91, %c1_92, %c0_93, %c256_94] : memref<2x18x16x384xbf16, #tpu.memory_space<vmem>>, vector<2x16x15x128xbf16>
    tpu.vector_store %arg8[%c0_91, %c1_92, %c0_93, %c256_94], %71 {strides = array<i32>} : memref<2x18x16x384xbf16, #tpu.memory_space<vmem>>, vector<2x16x15x128xbf16>,
    %c0_95 = arith.constant 0 : index
    %c1_96 = arith.constant 1 : index
    %c15_97 = arith.constant 15 : index
    %c256_98 = arith.constant 256 : index
    %73 = vector.load %arg8[%c0_95, %c1_96, %c15_97, %c256_98] : memref<2x18x16x384xbf16, #tpu.memory_space<vmem>>, vector<2x16x1x128xbf16>
    tpu.vector_store %arg8[%c0_95, %c1_96, %c15_97, %c256_98], %1 {strides = array<i32>} : memref<2x18x16x384xbf16, #tpu.memory_space<vmem>>, vector<2x16x1x128xbf16>,
    %c0_99 = arith.constant 0 : index
    %c0_100 = arith.constant 0 : index
    %c0_101 = arith.constant 0 : index
    %c0_102 = arith.constant 0 : index
    %74 = vector.load %arg8[%c0_99, %c0_100, %c0_101, %c0_102] : memref<2x18x16x384xbf16, #tpu.memory_space<vmem>>, vector<2x16x16x384xbf16>
    %75 = vector.shape_cast %74 : vector<2x16x16x384xbf16> to vector<512x384xbf16>
    %c0_103 = arith.constant 0 : index
    %c0_104 = arith.constant 0 : index
    %76 = vector.load %arg2[%c0_103, %c0_104] : memref<1152x128xbf16, #tpu.memory_space<vmem>>, vector<384x128xbf16>
    %cst_105 = arith.constant dense<0.000000e+00> : vector<512x128xf32>
    %77 = tpu.matmul %75, %76, %cst_105 {dimension_numbers = #tpu.dot_dimension_numbers<[1], [0], [0], [1], [0, 0, 1, 1], [], []>} : vector<512x384xbf16>, vector<384x128xbf16>, vector<512x128xf32> -> vector<512x128xf32>
    %c0_106 = arith.constant 0 : index
    %c0_107 = arith.constant 0 : index
    %78 = vector.load %arg9[%c0_106, %c0_107] : memref<512x128xf32, #tpu.memory_space<vmem>>, vector<512x128xf32>
    tpu.vector_store %arg9[%c0_106, %c0_107], %77 {strides = array<i32>} : memref<512x128xf32, #tpu.memory_space<vmem>>, vector<512x128xf32>,
    %c0_108 = arith.constant 0 : index
    %c1_109 = arith.constant 1 : index
    %c0_110 = arith.constant 0 : index
    %c0_111 = arith.constant 0 : index
    %79 = vector.load %arg8[%c0_108, %c1_109, %c0_110, %c0_111] : memref<2x18x16x384xbf16, #tpu.memory_space<vmem>>, vector<2x16x16x384xbf16>
    %80 = vector.shape_cast %79 : vector<2x16x16x384xbf16> to vector<512x384xbf16>
    %c384_112 = arith.constant 384 : index
    %c0_113 = arith.constant 0 : index
    %81 = vector.load %arg2[%c384_112, %c0_113] : memref<1152x128xbf16, #tpu.memory_space<vmem>>, vector<384x128xbf16>
    %cst_114 = arith.constant dense<0.000000e+00> : vector<512x128xf32>
    %82 = tpu.matmul %80, %81, %cst_114 {dimension_numbers = #tpu.dot_dimension_numbers<[1], [0], [0], [1], [0, 0, 1, 1], [], []>} : vector<512x384xbf16>, vector<384x128xbf16>, vector<512x128xf32> -> vector<512x128xf32>
    %c0_115 = arith.constant 0 : index
    %c0_116 = arith.constant 0 : index
    %83 = vector.load %arg9[%c0_115, %c0_116] : memref<512x128xf32, #tpu.memory_space<vmem>>, vector<512x128xf32>
    %84 = arith.addf %83, %82 : vector<512x128xf32>
    %c0_117 = arith.constant 0 : index
    %c0_118 = arith.constant 0 : index
    %85 = vector.load %arg9[%c0_117, %c0_118] : memref<512x128xf32, #tpu.memory_space<vmem>>, vector<512x128xf32>
    tpu.vector_store %arg9[%c0_117, %c0_118], %84 {strides = array<i32>} : memref<512x128xf32, #tpu.memory_space<vmem>>, vector<512x128xf32>,
    %c0_119 = arith.constant 0 : index
    %c2_120 = arith.constant 2 : index
    %c0_121 = arith.constant 0 : index
    %c0_122 = arith.constant 0 : index
    %86 = vector.load %arg8[%c0_119, %c2_120, %c0_121, %c0_122] : memref<2x18x16x384xbf16, #tpu.memory_space<vmem>>, vector<2x16x16x384xbf16>
    %87 = vector.shape_cast %86 : vector<2x16x16x384xbf16> to vector<512x384xbf16>
    %c768_123 = arith.constant 768 : index
    %c0_124 = arith.constant 0 : index
    %88 = vector.load %arg2[%c768_123, %c0_124] : memref<1152x128xbf16, #tpu.memory_space<vmem>>, vector<384x128xbf16>
    %cst_125 = arith.constant dense<0.000000e+00> : vector<512x128xf32>
    %89 = tpu.matmul %87, %88, %cst_125 {dimension_numbers = #tpu.dot_dimension_numbers<[1], [0], [0], [1], [0, 0, 1, 1], [], []>} : vector<512x384xbf16>, vector<384x128xbf16>, vector<512x128xf32> -> vector<512x128xf32>
    %c0_126 = arith.constant 0 : index
    %c0_127 = arith.constant 0 : index
    %90 = vector.load %arg9[%c0_126, %c0_127] : memref<512x128xf32, #tpu.memory_space<vmem>>, vector<512x128xf32>
    %91 = arith.addf %90, %89 : vector<512x128xf32>
    %c0_128 = arith.constant 0 : index
    %c0_129 = arith.constant 0 : index
    %92 = vector.load %arg9[%c0_128, %c0_129] : memref<512x128xf32, #tpu.memory_space<vmem>>, vector<512x128xf32>
    tpu.vector_store %arg9[%c0_128, %c0_129], %91 {strides = array<i32>} : memref<512x128xf32, #tpu.memory_space<vmem>>, vector<512x128xf32>,
    %c0_130 = arith.constant 0 : index
    %c0_131 = arith.constant 0 : index
    %93 = vector.load %arg9[%c0_130, %c0_131] : memref<512x128xf32, #tpu.memory_space<vmem>>, vector<512x128xf32>
    %cst_132 = arith.constant dense<0.000000e+00> : vector<128xf32>
    %94 = vector.multi_reduction <add>, %93, %cst_132 [0] : vector<512x128xf32> to vector<128xf32>
    %95 = vector.shape_cast %94 : vector<128xf32> to vector<1x128xf32>
    %cst_133 = arith.constant 0.001953125 : f32
    %96 = vector.broadcast %cst_133 : f32 to vector<1x128xf32>
    %97 = arith.mulf %95, %96 : vector<1x128xf32>
    %98 = arith.mulf %93, %93 : vector<512x128xf32>
    %cst_134 = arith.constant dense<0.000000e+00> : vector<128xf32>
    %99 = vector.multi_reduction <add>, %98, %cst_134 [0] : vector<512x128xf32> to vector<128xf32>
    %100 = vector.shape_cast %99 : vector<128xf32> to vector<1x128xf32>
    %cst_135 = arith.constant 0.001953125 : f32
    %101 = vector.broadcast %cst_135 : f32 to vector<1x128xf32>
    %102 = arith.mulf %100, %101 : vector<1x128xf32>
    %103 = arith.mulf %97, %97 : vector<1x128xf32>
    %104 = arith.subf %102, %103 : vector<1x128xf32>
    %cst_136 = arith.constant 0.000000e+00 : f32
    %105 = vector.broadcast %cst_136 : f32 to vector<1x128xf32>
    %106 = arith.maximumf %104, %105 : vector<1x128xf32>
    %c0_137 = arith.constant 0 : index
    %c0_138 = arith.constant 0 : index
    %107 = vector.load %arg5[%c0_137, %c0_138] : memref<1x128xf32, #tpu.memory_space<vmem>>, vector<1x128xf32>
    %cst_139 = arith.constant 9.99999974E-6 : f32
    %108 = vector.broadcast %cst_139 : f32 to vector<1x128xf32>
    %109 = arith.addf %106, %108 : vector<1x128xf32>
    %110 = math.rsqrt %109 : vector<1x128xf32>
    %111 = arith.mulf %107, %110 : vector<1x128xf32>
    %c0_140 = arith.constant 0 : index
    %c0_141 = arith.constant 0 : index
    %112 = vector.load %arg6[%c0_140, %c0_141] : memref<1x128xf32, #tpu.memory_space<vmem>>, vector<1x128xf32>
    %113 = arith.mulf %97, %111 : vector<1x128xf32>
    %114 = arith.subf %112, %113 : vector<1x128xf32>
    %c0_142 = arith.constant 0 : index
    %c0_143 = arith.constant 0 : index
    %115 = vector.load %arg9[%c0_142, %c0_143] : memref<512x128xf32, #tpu.memory_space<vmem>>, vector<512x128xf32>
    %116 = vector.broadcast %111 : vector<1x128xf32> to vector<512x128xf32>
    %117 = arith.mulf %115, %116 : vector<512x128xf32>
    %118 = vector.broadcast %114 : vector<1x128xf32> to vector<512x128xf32>
    %119 = arith.addf %117, %118 : vector<512x128xf32>
    %cst_144 = arith.constant 0.000000e+00 : f32
    %120 = vector.broadcast %cst_144 : f32 to vector<512x128xf32>
    %121 = arith.maximumf %119, %120 : vector<512x128xf32>
    %122 = vector.shape_cast %121 : vector<512x128xf32> to vector<2x16x16x128xf32>
    %c0_145 = arith.constant 0 : index
    %c0_146 = arith.constant 0 : index
    %c0_147 = arith.constant 0 : index
    %c0_148 = arith.constant 0 : index
    %123 = vector.load %arg7[%c0_145, %c0_146, %c0_147, %c0_148] : memref<2x16x16x128xf32, #tpu.memory_space<vmem>>, vector<2x16x16x128xf32>
    tpu.vector_store %arg7[%c0_145, %c0_146, %c0_147, %c0_148], %122 {strides = array<i32>} : memref<2x16x16x128xf32, #tpu.memory_space<vmem>>, vector<2x16x16x128xf32>,
    return
  }
}

</mosaic_0001>

<bundles_post_ra>
// kernel: double_conv_forward_nhwc.1
= control target key start
LH: loop header
LB: loop body
LE: loop exit
PB: predicated region body
PF: predicated region fallthrough
CT: control target
= control target key end

     0   :  { %12 = vsyncpa [#allocation5], 0  ;;  %s16298_s0 = inlined_call_operand.vmem [shape: f32[2,16,16,4], index: 0, kind: input, shape index: {}]   ;;  %s16299_s1 = inlined_call_operand.vmem [shape: bf16[1152,128], index: 1, kind: input, shape index: {}]   ;;  %s16300_s2 = inlined_call_operand.hbm [shape: bf16[1152,128], index: 2, kind: input, shape index: {}]   ;;  %s16301_s3 = inlined_call_operand.vmem [shape: f32[1,128], index: 3, kind: input, shape index: {}]   ;;  %s16302_s4 = inlined_call_operand.vmem [shape: f32[1,128], index: 4, kind: input, shape index: {}]   ;;  %s16303_s5 = inlined_call_operand.vmem [shape: f32[1,128], index: 5, kind: input, shape index: {}]   ;;  %s16304_s6 = inlined_call_operand.vmem [shape: f32[1,128], index: 6, kind: input, shape index: {}]   ;;  %s16305_s7 = inlined_call_operand.hbm [shape: f32[2,16,16,128], index: 7, kind: output, shape index: {}]  }
   0x1   :  { %13 = vsyncpa [#allocation6], 0  ;;  %s10087_s24 = smov [#allocation4]   ;;  %s10039_s28 = scalar_lea.hbm %s16300_s2, 9216 }
   0x2   :  { %s23_s25 = sshll.u32 %s10087_s24, 4  ;;  %p10040_p0 = scmp.ne.s32.totalorder %s16300_s2, %s10039_s28  ;;  %s24_s25 = int_to_ptr.vmem [resolvable:$true] %s23_s25 }
   0x3   :  { %p10043_p1 = scmp.lt.u32.totalorder %s10039_s28, %s16300_s2 }
   0x5   :  { %p10045_p2 = pnand %p10043_p1, %p10040_p0 }
   0x7   :  { %10048 = shalt.err (!%p10045_p2)
}
   0x8   :  { %s10049_s10 = scalar_lea.vmem %s24_s25, 9216  ;;  %p10054_p4 = scmp.lt.s32.totalorder %s24_s25, %s24_s25 }
   0x9   :  { %p10050_p3 = scmp.ne.s32.totalorder %s24_s25, %s10049_s10  ;;  %p10055_p5 = scmp.lt.s32.totalorder %s10049_s10, %s10049_s10 }
   0xb   :  { %p10056_p6 = por %p10055_p5, %p10054_p4 }
   0xd   :  { %p10057_p7 = pnand %p10056_p6, %p10050_p3 }
   0xf   :  { %10060 = shalt.err (!%p10057_p7)
}
  0x10   :  { %s10088_s11 = smov 64   ;;  %s10089_s12 = smov 4  }
  0x11   :  { %29 = dma.hbm_to_vmem [thread:$0]  %s16300_s2, 9216, %s24_s25, [#allocation5], %s10088_s11, %s10088_s11, %s10089_s12  }
  0x12   :  { %10083 = dma.done.wait [#allocation5], 9216  }
  0x13   :  { %10084 = vsyncadd [#allocation5], 4294958080  ;;  %v10090_v0 = vmov 0   ;;  %v9818_v1 = vld [vmem:[%s16299_s1] sm:$0xff]   ;;  %v9820_v3 = vld [vmem:[%s16299_s1 + $0x8] sm:$0xff]   ;;  %vm138_vm0 = vcmask 31744  }
  0x14   :  { %1285 = vmatprep.subr.bf16.mxu0 %v10090_v0  ;;  %9347 = vmatprep.mubr.bf16.mxu1 %v10090_v0  ;;  %4560 = vst [vmem:[#allocation2 + $0x10] sm:$0xff] %v10090_v0  ;;  %v9819_v2 = vld [vmem:[%s16299_s1 + $0x80] sm:$0xff]   ;;  %v9821_v4 = vld [vmem:[%s16299_s1 + $0x88] sm:$0xff]   ;;  %v9823_v5 = vld [vmem:[%s16299_s1 + $0x90] sm:$0xff]   ;;  %vm605_vm1 = vcmask 1047552   ;;  %v16526_v27 = vmov 0 }
  0x15   :  { %1317 = vmatprep.mubr.bf16.mxu0 %v10090_v0  ;;  %1286 = vmatpush1.bf16.msra.mxu0 %v9818_v1  ;;  %v9822_v6 = vld [vmem:[%s16299_s1 + $0x10] sm:$0xff]   ;;  %v9825_v7 = vld [vmem:[%s16299_s1 + $0x98] sm:$0xff]   ;;  %v9827_v9 = vld [vmem:[%s16299_s1 + $0xa0] sm:$0xff]   ;;  %vm800_vm2 = vsmask.f32 7424  ;;  %vm898_vm4 = vcmask 1047559  }
  0x16   :  { %9331 = vmatprep.subr.bf16.mxu1 %v9819_v2  ;;  %1287 = vmatprep.subr.bf16.mxu0 %v10090_v0  ;;  %v9824_v8 = vld [vmem:[%s16299_s1 + $0x18] sm:$0xff]   ;;  %v9826_v10 = vld [vmem:[%s16299_s1 + $0x20] sm:$0xff]   ;;  %v9829_v11 = vld [vmem:[%s16299_s1 + $0xa8] sm:$0xff]   ;;  %vm899_vm5 = vsmask.f32 7966  ;;  %v16529_v60 = vmov 0 }
  0x17   :  { %9332 = vmatpush3.bf16.msra.mxu1 %v9819_v2  ;;  %v42_v12 = vld [vmem:[%s16298_s0] sm:$0xff]  ;;  %v43_v13 = vld [vmem:[%s16298_s0 + $0x8] sm:$0xff]  ;;  %v9831_v16 = vld [vmem:[%s16299_s1 + $0xb0] sm:$0xff]   ;;  %vm282_vm7 = vcmask 1040384   ;;  %vm283_vm8 = vsmask.f32 256 }
  0x18   :  { %9333 = vmatprep.subr.bf16.mxu1 %v9821_v4  ;;  %v9828_v14 = vld [vmem:[%s16299_s1 + $0x28] sm:$0xff]   ;;  %v10196_v15 = vpack.c.bf16 %v43_v13, %v42_v12  ;;  %v44_v18 = vld [vmem:[%s16298_s0 + $0x10] sm:$0xff]  ;;  %v45_v19 = vld [vmem:[%s16298_s0 + $0x18] sm:$0xff]  ;;  %vm606_vm10 = vsmask.f32 7938 }
  0x19   :  { %1288 = vmatpush1.bf16.msra.mxu0 %v9820_v3  ;;  %v10215_v22 = vpack.c.bf16 %v45_v19, %v44_v18  ;;  %v9830_v23 = vld [vmem:[%s16299_s1 + $0x30] sm:$0xff]   ;;  %v46_v24 = vld [vmem:[%s16298_s0 + $0x20] sm:$0xff]  ;;  %v47_v25 = vld [vmem:[%s16298_s0 + $0x28] sm:$0xff] }
  0x1a   :  { %1289 = vmatprep.subr.bf16.mxu0 %v10090_v0  ;;  %v10204_v17 = vsel %vm138_vm0, %v10196_v15, 0  ;;  %vm10230_vm3 = vmand %vm605_vm1, %vm800_vm2  ;;  %v10238_v29 = vpack.c.bf16 %v47_v25, %v46_v24  ;;  %v9833_v30 = vld [vmem:[%s16299_s1 + $0xb8] sm:$0xff]   ;;  %v802_v31 = vld [vmem:[#allocation2 + $0x28] sm:$0xff] }
  0x1b   :  { %9334 = vmatpush3.bf16.msra.mxu1 %v9821_v4  ;;  %v381_v20 = vshrl.u32 %v10204_v17, 16  ;;  %v384_v21 = vshll.u32 %v10204_v17, 16  ;;  %250 = vst [vmem:[#allocation2 + $0x20] sm:$0xff] %v10204_v17  ;;  %v16527_v27 = vsel %vm10230_vm3, 4294967295, %v16526_v27  ;;  %v10236_v28 = vsel %vm138_vm0, %v10215_v22, 0  ;;  %v48_v36 = vld [vmem:[%s16298_s0 + $0x30] sm:$0xff]  ;;  %vm10307_vm6 = vmand %vm898_vm4, %vm899_vm5 }
  0x1c   :  { %9335 = vmatprep.subr.bf16.mxu1 %v9823_v5  ;;  %16528 = vst [vmem:[#allocation10_spill] sm:$0xff] %v16527_v27  ;;  %v387_v32 = vshrl.u32 %v10236_v28, 16  ;;  %v390_v33 = vshll.u32 %v10236_v28, 16  ;;  %251 = vst [vmem:[#allocation2 + $0x38] sm:$0xff] %v10236_v28  ;;  %v10250_v35 = vsel %vm138_vm0, %v10238_v29, 0  ;;  %v9832_v37 = vld [vmem:[%s16299_s1 + $0x38] sm:$0xff]  }
  0x1d   :  { %1290 = vmatpush1.bf16.msra.mxu0 %v9822_v6  ;;  %v704_v26 = vrot.slane %v384_v21, 1  ;;  %v393_v39 = vshrl.u32 %v10250_v35, 16  ;;  %v396_v40 = vshll.u32 %v10250_v35, 16  ;;  %252 = vst [vmem:[#allocation2 + $0x50] sm:$0xff] %v10250_v35  ;;  %v49_v41 = vld [vmem:[%s16298_s0 + $0x38] sm:$0xff]  ;;  %v805_v43 = vld [vmem:[#allocation2 + $0x40] sm:$0xff]  ;;  %vm10361_vm9 = vmand %vm282_vm7, %vm283_vm8 }
  0x1e   :  { %1291 = vmatprep.subr.bf16.mxu0 %v10090_v0  ;;  %v706_v38 = vrot.slane %v390_v33, 1  ;;  %v10269_v44 = vpack.c.bf16 %v49_v41, %v48_v36  ;;  %v9834_v45 = vld [vmem:[%s16299_s1 + $0x40] sm:$0xff]   ;;  %v51_v49 = vld [vmem:[%s16298_s0 + $0x48] sm:$0xff]  ;;  %v808_v50 = vld [vmem:[#allocation2 + $0x58] sm:$0xff]  ;;  %v16530_v60 = vsel %vm10307_vm6, 4294967295, %v16529_v60 }
  0x1f   :  { %9336 = vmatpush3.bf16.msra.mxu1 %v9823_v5  ;;  %v705_v34 = vor.u32 %v704_v26, %v381_v20  ;;  %v708_v47 = vrot.slane %v396_v40, 1  ;;  %v50_v48 = vld [vmem:[%s16298_s0 + $0x40] sm:$0xff]  ;;  %v52_v58 = vld [vmem:[%s16298_s0 + $0x50] sm:$0xff]  ;;  %v53_v59 = vld [vmem:[%s16298_s0 + $0x58] sm:$0xff]  ;;  %16531 = vst [vmem:[#allocation11_spill] sm:$0xff] %v16530_v60 }
  0x20   :  { %9337 = vmatprep.subr.bf16.mxu1 %v9825_v7  ;;  %v707_v46 = vor.u32 %v706_v38, %v387_v32  ;;  %v10286_v51 = vsel %vm138_vm0, %v10269_v44, 0  ;;  %v110_v52 = vpack.c.bf16 %v51_v49, %v50_v48  ;;  %v811_v63 = vld [vmem:[#allocation2 + $0x70] sm:$0xff]  ;;  %v111_v3 = vpack.c.bf16 %v53_v59, %v52_v58  ;;  %v54_v4 = vld [vmem:[%s16298_s0 + $0x60] sm:$0xff]  ;;  %v9836_v5 = vld [vmem:[%s16299_s1 + $0x48] sm:$0xff]  }
  0x21   :  { %1292 = vmatpush1.bf16.msra.mxu0 %v9824_v8  ;;  %v803_v42 = vsel %vm10230_vm3, %v705_v34, %v802_v31  ;;  %v709_v54 = vor.u32 %v708_v47, %v393_v39  ;;  %v399_v55 = vshrl.u32 %v10286_v51, 16  ;;  %v402_v56 = vshll.u32 %v10286_v51, 16  ;;  %253 = vst [vmem:[#allocation2 + $0x68] sm:$0xff] %v10286_v51  ;;  %v56_v24 = vld [vmem:[%s16298_s0 + $0x70] sm:$0xff]  ;;  %v817_v41 = vld [vmem:[#allocation2 + $0xa0] sm:$0xff]  ;;  %v9839_v47 = vld [vmem:[%s16299_s1 + $0x58] sm:$0xff]  }
  0x22   :  { %1293 = vmatprep.subr.bf16.mxu0 %v10090_v0  ;;  %804 = vst [vmem:[#allocation2 + $0x28] sm:$0xff] %v803_v42  ;;  %v806_v53 = vsel %vm10230_vm3, %v707_v46, %v805_v43  ;;  %v10297_v57 = vsel %vm138_vm0, %v110_v52, 0  ;;  %v9837_v26 = vld [vmem:[%s16299_s1 + $0x50] sm:$0xff]   ;;  %v57_v42 = vld [vmem:[%s16298_s0 + $0x78] sm:$0xff]  ;;  %v58_v43 = vld [vmem:[%s16298_s0 + $0x80] sm:$0xff]  ;;  %v383_v59 = vrot.slane %v381_v20, 7 }
  0x23   :  { %9338 = vmatpush3.bf16.msra.mxu1 %v9825_v7  ;;  %807 = vst [vmem:[#allocation2 + $0x40] sm:$0xff] %v806_v53  ;;  %v809_v61 = vsel %vm10230_vm3, %v709_v54, %v808_v50  ;;  %v710_v62 = vrot.slane %v402_v56, 1  ;;  %254 = vst [vmem:[#allocation2 + $0x80] sm:$0xff] %v10297_v57  ;;  %v405_v1 = vshrl.u32 %v10297_v57, 16  ;;  %v408_v2 = vshll.u32 %v10297_v57, 16  ;;  %v55_v7 = vld [vmem:[%s16298_s0 + $0x68] sm:$0xff] }
  0x24   :  { %9339 = vmatprep.subr.bf16.mxu1 %v9827_v9  ;;  %810 = vst [vmem:[#allocation2 + $0x58] sm:$0xff] %v809_v61  ;;  %v113_v50 = vpack.c.bf16 %v57_v42, %v56_v24  ;;  %v59_v52 = vld [vmem:[%s16298_s0 + $0x88] sm:$0xff]  ;;  %v820_v54 = vld [vmem:[#allocation2 + $0xb8] sm:$0xff]  ;;  %v823_v42 = vld [vmem:[#allocation2 + $0xd0] sm:$0xff] }
  0x25   :  { %1294 = vmatpush1.bf16.msra.mxu0 %v9826_v10  ;;  %v711_v6 = vor.u32 %v710_v62, %v399_v55  ;;  %v10334_v10 = vsel %vm138_vm0, %v111_v3, 0  ;;  %v114_v58 = vpack.c.bf16 %v59_v52, %v58_v43  ;;  %v285_v3 = vld [vmem:[#allocation2 + $0x18] sm:$0x1]  ;;  %vm10455_vm11 = vmand %vm605_vm1, %vm606_vm10  ;;  %v9843_v28 = vld [vmem:[%s16299_s1 + $0x70] sm:$0xff]  }
  0x26   :  { %1295 = vmatprep.subr.bf16.mxu0 %v10090_v0  ;;  %v414_v18 = vshll.u32 %v10334_v10, 16  ;;  %255 = vst [vmem:[#allocation2 + $0x98] sm:$0xff] %v10334_v10  ;;  %v61_v20 = vld [vmem:[%s16298_s0 + $0x98] sm:$0xff]  ;;  %v74_v35 = vld [vmem:[%s16298_s0 + $0x100] sm:$0xff] }
  0x27   :  { %9340 = vmatpush3.bf16.msra.mxu1 %v9827_v9  ;;  %v712_v9 = vrot.slane %v408_v2, 1  ;;  %v812_v13 = vsel %vm10230_vm3, %v711_v6, %v811_v63  ;;  %v10398_v63 = vsel %vm138_vm0, %v113_v50, 0  ;;  %v9849_v57 = vld [vmem:[%s16299_s1 + $0xf8] sm:$0xff]  }
  0x28   :  { %9341 = vmatprep.subr.bf16.mxu1 %v9829_v11  ;;  %813 = vst [vmem:[#allocation2 + $0x70] sm:$0xff] %v812_v13  ;;  %v426_v6 = vshll.u32 %v10398_v63, 16  ;;  %257 = vst [vmem:[#allocation2 + $0xc8] sm:$0xff] %v10398_v63 }
  0x29   :  { %1296 = vmatpush1.bf16.msra.mxu0 %v9828_v14  ;;  %v901_v8 = vld [vmem:[#allocation2 + $0x28] sm:$0x80]  ;;  %v713_v19 = vor.u32 %v712_v9, %v405_v1  ;;  %v62_v9 = vld [vmem:[%s16298_s0 + $0xa0] sm:$0xff] }
  0x2a   :  { %1297 = vmatprep.subr.bf16.mxu0 %v10090_v0  ;;  %v902_v12 = vsel %vm10307_vm6, 0, %v901_v8  ;;  %v814_v14 = vld [vmem:[#allocation2 + $0x88] sm:$0xff]  ;;  %v904_v25 = vld [vmem:[#allocation2 + $0x40] sm:$0x80]  ;;  %v286_v8 = vsel %vm10361_vm9, 0, %v285_v3 }
  0x2b   :  { %9342 = vmatpush3.bf16.msra.mxu1 %v9829_v11  ;;  %v112_v11 = vpack.c.bf16 %v55_v7, %v54_v4  ;;  %903 = vst [vmem:[#allocation2 + $0x28] sm:$0x80] %v902_v12  ;;  %v815_v38 = vsel %vm10230_vm3, %v713_v19, %v814_v14  ;;  %v907_v46 = vld [vmem:[#allocation2 + $0x58] sm:$0x80]  ;;  %v60_v4 = vld [vmem:[%s16298_s0 + $0x90] sm:$0xff]  ;;  %v10411_v7 = vsel %vm138_vm0, %v114_v58, 0 }
  0x2c   :  { %9343 = vmatprep.subr.bf16.mxu1 %v9831_v16  ;;  %816 = vst [vmem:[#allocation2 + $0x88] sm:$0xff] %v815_v38  ;;  %v908_v53 = vsel %vm10307_vm6, 0, %v907_v46  ;;  %v429_v14 = vshrl.u32 %v10411_v7, 16  ;;  %v432_v19 = vshll.u32 %v10411_v7, 16  ;;  %258 = vst [vmem:[#allocation2 + $0xe0] sm:$0xff] %v10411_v7  ;;  %v115_v24 = vpack.c.bf16 %v61_v20, %v60_v4  ;;  %v826_v46 = vld [vmem:[#allocation2 + $0xe8] sm:$0xff] }
  0x2d   :  { %1298 = vmatpush1.bf16.msra.mxu0 %v9830_v23  ;;  %v10346_v23 = vsel %vm138_vm0, %v112_v11, 0  ;;  %909 = vst [vmem:[#allocation2 + $0x58] sm:$0x80] %v908_v53  ;;  %287 = vst [vmem:[#allocation2 + $0x18] sm:$0x1] %v286_v8  ;;  %v718_v38 = vrot.slane %v426_v6, 1 }
  0x2e   :  { %1299 = vmatprep.subr.bf16.mxu0 %v10090_v0  ;;  %v417_v31 = vshrl.u32 %v10346_v23, 16  ;;  %v420_v34 = vshll.u32 %v10346_v23, 16  ;;  %256 = vst [vmem:[#allocation2 + $0xb0] sm:$0xff] %v10346_v23  ;;  %v720_v43 = vrot.slane %v432_v19, 1  ;;  %v9841_v58 = vld [vmem:[%s16299_s1 + $0xd0] sm:$0xff]   ;;  %v9842_v8 = vld [vmem:[%s16299_s1 + $0x68] sm:$0xff]  }
  0x2f   :  { %9344 = vmatpush3.bf16.msra.mxu1 %v9831_v16  ;;  %v411_v16 = vshrl.u32 %v10334_v10, 16  ;;  %v910_v12 = vld [vmem:[#allocation2 + $0x70] sm:$0x80]  ;;  %v288_v3 = vld [vmem:[#allocation2 + $0x30] sm:$0x1] }
  0x30   :  { %9345 = vmatprep.subr.bf16.mxu1 %v9833_v30  ;;  %v716_v49 = vrot.slane %v420_v34, 1  ;;  %v64_v4 = vld [vmem:[%s16298_s0 + $0xb0] sm:$0xff] }
  0x31   :  { %1300 = vmatpush1.bf16.msra.mxu0 %v9832_v37  ;;  %v905_v37 = vsel %vm10307_vm6, 0, %v904_v25  ;;  %v63_v25 = vld [vmem:[%s16298_s0 + $0xa8] sm:$0xff]  ;;  %v88_v23 = vld [vmem:[%s16298_s0 + $0x170] sm:$0xff] }
  0x32   :  { %1301 = vmatprep.subr.bf16.mxu0 %v10090_v0  ;;  %906 = vst [vmem:[#allocation2 + $0x40] sm:$0x80] %v905_v37  ;;  %v717_v62 = vor.u32 %v716_v49, %v417_v31  ;;  %v1002_v11 = vld [vmem:[#allocation2 + $0x28] sm:$0xff]  ;;  %v9840_v37 = vld [vmem:[%s16299_s1 + $0x60] sm:$0xff]   ;;  %v10441_v49 = vsel %vm138_vm0, %v115_v24, 0  ;;  %v65_v24 = vld [vmem:[%s16298_s0 + $0xb8] sm:$0xff] }
  0x33   :  { %9346 = vmatpush3.bf16.msra.mxu1 %v9833_v30  ;;  %v714_v30 = vrot.slane %v414_v18, 1  ;;  %v913_v52 = vld [vmem:[#allocation2 + $0x88] sm:$0x80]  ;;  %v438_v53 = vshll.u32 %v10441_v49, 16  ;;  %259 = vst [vmem:[#allocation2 + $0xf8] sm:$0xff] %v10441_v49 }
  0x34   :  { %2215 = vmatprep.subr.bf16.mxu1 %v10090_v0  ;;  %v821_v13 = vsel %vm10230_vm3, %v717_v62, %v820_v54  ;;  %v914_v54 = vsel %vm10307_vm6, 0, %v913_v52  ;;  %v1008_v20 = vld [vmem:[#allocation2 + $0x58] sm:$0xff] }
  0x35   :  { %1302 = vmatpush1.bf16.msra.mxu0 %v9834_v45  ;;  %v9835_v45 = vld [vmem:[%s16299_s1 + $0xc0] sm:$0xff]   ;;  %v715_v48 = vor.u32 %v714_v30, %v411_v16  ;;  %v911_v30 = vsel %vm10307_vm6, 0, %v910_v12  ;;  %822 = vst [vmem:[#allocation2 + $0xb8] sm:$0xff] %v821_v13  ;;  %915 = vst [vmem:[#allocation2 + $0x88] sm:$0x80] %v914_v54  ;;  %v289_v13 = vsel %vm10361_vm9, 0, %v288_v3 }
  0x36   :  { %1303 = vmatprep.subr.bf16.mxu0 %v10090_v0  ;;  %9348 = vmatmul.mubr.bf16.vlgmr.msra.gmra.mrb[0].mxu1 %v1002_v11  ;;  %912 = vst [vmem:[#allocation2 + $0x70] sm:$0x80] %v911_v30  ;;  %v722_v11 = vrot.slane %v438_v53, 1  ;;  %v829_v12 = vld [vmem:[#allocation2 + $0x100] sm:$0xff]  ;;  %290 = vst [vmem:[#allocation2 + $0x30] sm:$0x1] %v289_v13 }
  0x37   :  { %v818_v61 = vsel %vm10230_vm3, %v715_v48, %v817_v41  ;;  %v116_v41 = vpack.c.bf16 %v63_v25, %v62_v9  ;;  %2216 = vmatpush1.bf16.msra.mxu1 %v9835_v45  ;;  %v386_v48 = vor.u32 %v384_v21, %v383_v59  ;;  %v16534_v21 = vmov 0 }
  0x38   :  { %819 = vst [vmem:[#allocation2 + $0xa0] sm:$0xff] %v818_v61  ;;  %2217 = vmatprep.subr.bf16.mxu1 %v10090_v0  ;;  %v16535_v21 = vsel %vm10455_vm11, 4294967295, %v16534_v21  ;;  %v721_v59 = vor.u32 %v720_v43, %v429_v14  ;;  %v389_v25 = vrot.slane %v387_v32, 7  ;;  %v66_v43 = vld [vmem:[%s16298_s0 + $0xc0] sm:$0xff]  ;;  %v67_v32 = vld [vmem:[%s16298_s0 + $0xc8] sm:$0xff] }
  0x39   :  { %1304 = vmatpush1.bf16.msra.mxu0 %v9836_v5  ;;  %v423_v5 = vshrl.u32 %v10398_v63, 16  ;;  %v1005_v50 = vld [vmem:[#allocation2 + $0x40] sm:$0xff]  ;;  %v10451_v17 = vsel %vm138_vm0, %v116_v41, 0  ;;  %16536 = vst [vmem:[#allocation12_spill] sm:$0xff] %v16535_v21  ;;  %v118_v52 = vpack.c.bf16 %v67_v32, %v66_v43  ;;  %v71_v32 = vld [vmem:[%s16298_s0 + $0xe8] sm:$0xff] }
  0x3a   :  { %1305 = vmatprep.subr.bf16.mxu0 %v10090_v0  ;;  %9351 = vmatprep.mubr.bf16.mxu1 %v1005_v50  ;;  %v441_v61 = vshrl.u32 %v10451_v17, 16  ;;  %v444_v62 = vshll.u32 %v10451_v17, 16  ;;  %260 = vst [vmem:[#allocation2 + $0x110] sm:$0xff] %v10451_v17  ;;  %v832_v50 = vld [vmem:[#allocation2 + $0x118] sm:$0xff] }
  0x3b   :  { %v719_v45 = vor.u32 %v718_v38, %v423_v5  ;;  %v827_v38 = vsel %vm10230_vm3, %v721_v59, %v826_v46 }
  0x3c   :  { %v724_v41 = vrot.slane %v444_v62, 1  ;;  %828 = vst [vmem:[#allocation2 + $0xe8] sm:$0xff] %v827_v38  ;;  %v919_v54 = vld [vmem:[#allocation2 + $0xb8] sm:$0x80]  ;;  %v10529_v38 = vsel %vm138_vm0, %v118_v52, 0 }
  0x3d   :  { %1306 = vmatpush1.bf16.msra.mxu0 %v9837_v26  ;;  %v9838_v26 = vld [vmem:[%s16299_s1 + $0xc8] sm:$0xff]   ;;  %v824_v9 = vsel %vm10230_vm3, %v719_v45, %v823_v42  ;;  %v117_v42 = vpack.c.bf16 %v65_v24, %v64_v4  ;;  %v395_v45 = vrot.slane %v393_v39, 7  ;;  %v16306_v43 = vshll.u32 %v10529_v38, 16  ;;  %262 = vst [vmem:[#allocation2 + $0x140] sm:$0xff] %v10529_v38 }
  0x3e   :  { %1307 = vmatprep.subr.bf16.mxu0 %v10090_v0  ;;  %2218 = vmatpush1.bf16.msra.mxu1 %v9838_v26  ;;  %825 = vst [vmem:[#allocation2 + $0xd0] sm:$0xff] %v824_v9  ;;  %v725_v3 = vor.u32 %v724_v41, %v441_v61  ;;  %v1011_v9 = vld [vmem:[#allocation2 + $0x70] sm:$0xff]  ;;  %v291_v24 = vld [vmem:[#allocation2 + $0x48] sm:$0x1] }
  0x3f   :  { %v916_v30 = vld [vmem:[#allocation2 + $0xa0] sm:$0x80]  ;;  %2219 = vmatprep.subr.bf16.mxu1 %v10090_v0  ;;  %v10511_v4 = vsel %vm138_vm0, %v117_v42, 0  ;;  %9352 = vmatmul.mubr.bf16.gmra.mrb[4].mxu1 %v1008_v20  ;;  %v9844_v20 = vld [vmem:[%s16299_s1 + $0xd8] sm:$0xff]   ;;  %v292_v41 = vsel %vm10361_vm9, 0, %v291_v24  ;;  %v728_v24 = vrot.slane %v16306_v43, 1 }
  0x40   :  { %v917_v26 = vsel %vm10307_vm6, 0, %v916_v30  ;;  %v447_v13 = vshrl.u32 %v10511_v4, 16  ;;  %261 = vst [vmem:[#allocation2 + $0x128] sm:$0xff] %v10511_v4  ;;  %9355 = vmatprep.mubr.bf16.mxu1 %v1011_v9  ;;  %v833_v30 = vsel %vm10230_vm3, %v725_v3, %v832_v50  ;;  %v69_v42 = vld [vmem:[%s16298_s0 + $0xd8] sm:$0xff]  ;;  %293 = vst [vmem:[#allocation2 + $0x48] sm:$0x1] %v292_v41 }
  0x41   :  { %1308 = vmatpush1.bf16.msra.mxu0 %v9839_v47  ;;  %v435_v47 = vshrl.u32 %v10441_v49, 16  ;;  %918 = vst [vmem:[#allocation2 + $0xa0] sm:$0x80] %v917_v26  ;;  %834 = vst [vmem:[#allocation2 + $0x118] sm:$0xff] %v833_v30  ;;  %v9846_v26 = vld [vmem:[%s16299_s1 + $0xe0] sm:$0xff]   ;;  %v9845_v3 = vld [vmem:[%s16299_s1 + $0x78] sm:$0xff]   ;;  %v398_v30 = vor.u32 %v396_v40, %v395_v45 }
  0x42   :  { %1309 = vmatprep.subr.bf16.mxu0 %v10090_v0  ;;  %2220 = vmatpush1.bf16.msra.mxu1 %v9841_v58  ;;  %v68_v58 = vld [vmem:[%s16298_s0 + $0xd0] sm:$0xff]  ;;  %v401_v40 = vrot.slane %v399_v55, 7  ;;  %v75_v55 = vld [vmem:[%s16298_s0 + $0x108] sm:$0xff]  ;;  %v844_v43 = vld [vmem:[#allocation2 + $0x178] sm:$0xff] }
  0x43   :  { %v723_v46 = vor.u32 %v722_v11, %v435_v47  ;;  %v920_v11 = vsel %vm10307_vm6, 0, %v919_v54  ;;  %2221 = vmatprep.subr.bf16.mxu1 %v10090_v0  ;;  %v119_v50 = vpack.c.bf16 %v69_v42, %v68_v58  ;;  %v1014_v54 = vld [vmem:[#allocation2 + $0x88] sm:$0xff]  ;;  %v9856_v49 = vld [vmem:[%s16299_s1 + $0x130] sm:$0xff]  }
  0x44   :  { %921 = vst [vmem:[#allocation2 + $0xb8] sm:$0x80] %v920_v11  ;;  %v611_v11 = vld [vmem:[#allocation2 + $0x30] sm:$0xff]  ;;  %v925_v58 = vld [vmem:[#allocation2 + $0xe8] sm:$0x80] }
  0x45   :  { %1310 = vmatpush1.bf16.msra.mxu0 %v9840_v37  ;;  %v608_v37 = vld [vmem:[#allocation2 + $0x18] sm:$0xff]  ;;  %v830_v39 = vsel %vm10230_vm3, %v723_v46, %v829_v12  ;;  %v392_v12 = vor.u32 %v390_v33, %v389_v25  ;;  %v453_v25 = vshrl.u32 %v10529_v38, 16  ;;  %v838_v46 = vld [vmem:[#allocation2 + $0x148] sm:$0xff]  ;;  %v922_v9 = vld [vmem:[#allocation2 + $0xd0] sm:$0x80] }
  0x46   :  { %1311 = vmatprep.subr.bf16.mxu0 %v10090_v0  ;;  %v10506_v59 = vsel %vm10455_vm11, %v386_v48, %v608_v37  ;;  %v450_v48 = vshll.u32 %v10511_v4, 16  ;;  %831 = vst [vmem:[#allocation2 + $0x100] sm:$0xff] %v830_v39  ;;  %v835_v37 = vld [vmem:[#allocation2 + $0x130] sm:$0xff]  ;;  %2222 = vmatpush1.bf16.msra.mxu1 %v9844_v20  ;;  %v923_v41 = vsel %vm10307_vm6, 0, %v922_v9  ;;  %v926_v20 = vsel %vm10307_vm6, 0, %v925_v58 }
  0x47   :  { %610 = vst [vmem:[#allocation2 + $0x18] sm:$0xff] %v10506_v59  ;;  %v10571_v42 = vsel %vm10455_vm11, %v392_v12, %v611_v11  ;;  %924 = vst [vmem:[#allocation2 + $0xd0] sm:$0x80] %v923_v41  ;;  %2223 = vmatprep.subr.bf16.mxu1 %v10090_v0  ;;  %v122_v9 = vpack.c.bf16 %v75_v55, %v74_v35  ;;  %9356 = vmatmul.mubr.bf16.gmra.mrb[8].mxu1 %v1014_v54  ;;  %v841_v41 = vld [vmem:[#allocation2 + $0x160] sm:$0xff] }
  0x48   :  { %v726_v33 = vrot.slane %v450_v48, 1  ;;  %v1017_v45 = vld [vmem:[#allocation2 + $0xa0] sm:$0xff]  ;;  %613 = vst [vmem:[#allocation2 + $0x30] sm:$0xff] %v10571_v42  ;;  %927 = vst [vmem:[#allocation2 + $0xe8] sm:$0x80] %v926_v20 }
  0x49   :  { %1312 = vmatpush1.bf16.msra.mxu0 %v9842_v8  ;;  %v70_v8 = vld [vmem:[%s16298_s0 + $0xe0] sm:$0xff]  ;;  %9359 = vmatprep.mubr.bf16.mxu1 %v1017_v45  ;;  %v931_v54 = vld [vmem:[#allocation2 + $0x118] sm:$0x80] }
  0x4a   :  { %1313 = vmatprep.subr.bf16.mxu0 %v10090_v0  ;;  %v120_v52 = vpack.c.bf16 %v71_v32, %v70_v8  ;;  %v727_v39 = vor.u32 %v726_v33, %v447_v13  ;;  %v10574_v8 = vsel %vm138_vm0, %v119_v50, 0  ;;  %v729_v32 = vor.u32 %v728_v24, %v453_v25  ;;  %2224 = vmatpush1.bf16.msra.mxu1 %v9846_v26  ;;  %v11632_v21 = vld [vmem:[#allocation2 + $0xa0] sm:$0xff] }
  0x4b   :  { %263 = vst [vmem:[#allocation2 + $0x158] sm:$0xff] %v10574_v8  ;;  %v16308_v50 = vshll.u32 %v10574_v8, 16  ;;  %2225 = vmatprep.subr.bf16.mxu1 %v10090_v0  ;;  %v16537_v4 = vshrl.u32 %v10574_v8, 16 }
  0x4c   :  { %v10577_v33 = vsel %vm138_vm0, %v120_v52, 0  ;;  %v836_v12 = vsel %vm10230_vm3, %v727_v39, %v835_v37  ;;  %v294_v52 = vld [vmem:[#allocation2 + $0x60] sm:$0x1]  ;;  %v9847_v39 = vld [vmem:[%s16299_s1 + $0xe8] sm:$0xff]   ;;  %v839_v24 = vsel %vm10230_vm3, %v729_v32, %v838_v46  ;;  %v932_v46 = vsel %vm10307_vm6, 0, %v931_v54 }
  0x4d   :  { %1314 = vmatpush1.bf16.msra.mxu0 %v9843_v28  ;;  %264 = vst [vmem:[#allocation2 + $0x170] sm:$0xff] %v10577_v33  ;;  %837 = vst [vmem:[#allocation2 + $0x130] sm:$0xff] %v836_v12  ;;  %v16310_v28 = vshrl.u32 %v10574_v8, 16  ;;  %v16307_v37 = vshll.u32 %v10577_v33, 16  ;;  %v928_v11 = vld [vmem:[#allocation2 + $0x100] sm:$0x80] }
  0x4e   :  { %1315 = vmatprep.subr.bf16.mxu0 %v10090_v0  ;;  %v16309_v58 = vshrl.u32 %v10577_v33, 16  ;;  %v295_v20 = vsel %vm10361_vm9, 0, %v294_v52  ;;  %v929_v35 = vsel %vm10307_vm6, 0, %v928_v11  ;;  %840 = vst [vmem:[#allocation2 + $0x148] sm:$0xff] %v839_v24  ;;  %v614_v12 = vld [vmem:[#allocation2 + $0x48] sm:$0xff]  ;;  %v730_v55 = vrot.slane %v16308_v50, 1  ;;  %2226 = vmatpush1.bf16.msra.mxu1 %v9847_v39 }
  0x4f   :  { %296 = vst [vmem:[#allocation2 + $0x60] sm:$0x1] %v295_v20  ;;  %930 = vst [vmem:[#allocation2 + $0x100] sm:$0x80] %v929_v35  ;;  %v10618_v26 = vsel %vm10455_vm11, %v398_v30, %v614_v12  ;;  %v732_v45 = vrot.slane %v16307_v37, 1  ;;  %v10623_v32 = vsel %vm138_vm0, %v122_v9, 0  ;;  %2227 = vmatprep.subr.bf16.mxu1 %v10090_v0 }
  0x50   :  { %933 = vst [vmem:[#allocation2 + $0x118] sm:$0x80] %v932_v46  ;;  %616 = vst [vmem:[#allocation2 + $0x48] sm:$0xff] %v10618_v26  ;;  %v731_v52 = vor.u32 %v730_v55, %v16310_v28  ;;  %v477_v11 = vshrl.u32 %v10623_v32, 16  ;;  %v480_v30 = vshll.u32 %v10623_v32, 16  ;;  %v407_v9 = vrot.slane %v405_v1, 7 }
  0x51   :  { %1316 = vmatpush1.bf16.msra.mxu0 %v9845_v3  ;;  %v76_v3 = vld [vmem:[%s16298_s0 + $0x110] sm:$0xff]  ;;  %266 = vst [vmem:[#allocation2 + $0x1d0] sm:$0xff] %v10623_v32  ;;  %v297_v24 = vld [vmem:[#allocation2 + $0x78] sm:$0x1]  ;;  %v733_v35 = vor.u32 %v732_v45, %v16309_v58  ;;  %v78_v55 = vld [vmem:[%s16298_s0 + $0x120] sm:$0xff]  ;;  %v404_v45 = vor.u32 %v402_v56, %v401_v40 }
  0x52   :  { %v9848_v20 = vld [vmem:[%s16299_s1 + $0xf0] sm:$0xff]   ;;  %v298_v54 = vsel %vm10361_vm9, 0, %v297_v24  ;;  %v77_v12 = vld [vmem:[%s16298_s0 + $0x118] sm:$0xff]  ;;  %v842_v1 = vsel %vm10230_vm3, %v731_v52, %v841_v41  ;;  %v736_v24 = vrot.slane %v480_v30, 1  ;;  %v79_v58 = vld [vmem:[%s16298_s0 + $0x128] sm:$0xff] }
  0x53   :  { %v1020_v46 = vld [vmem:[#allocation2 + $0xb8] sm:$0xff]  ;;  %299 = vst [vmem:[#allocation2 + $0x78] sm:$0x1] %v298_v54  ;;  %v123_v50 = vpack.c.bf16 %v77_v12, %v76_v3  ;;  %v1023_v28 = vld [vmem:[#allocation2 + $0xd0] sm:$0xff]  ;;  %843 = vst [vmem:[#allocation2 + $0x160] sm:$0xff] %v842_v1  ;;  %v845_v51 = vsel %vm10230_vm3, %v733_v35, %v844_v43  ;;  %v124_v56 = vpack.c.bf16 %v79_v58, %v78_v55  ;;  %v413_v12 = vrot.slane %v411_v16, 7 }
  0x54   :  { %1318 = vmatmul.mubr.bf16.vlgmr.msra.gmra.mrb[0].mxu0 %v10090_v0  ;;  %v850_v37 = vld [vmem:[#allocation2 + $0x1d8] sm:$0xff]  ;;  %v934_v39 = vld [vmem:[#allocation2 + $0x130] sm:$0x80]  ;;  %846 = vst [vmem:[#allocation2 + $0x178] sm:$0xff] %v845_v51  ;;  %v737_v41 = vor.u32 %v736_v24, %v477_v11  ;;  %9360 = vmatmul.mubr.bf16.gmra.mrb[12].mxu1 %v1020_v46  ;;  %v410_v43 = vor.u32 %v408_v2, %v407_v9  ;;  %v300_v46 = vld [vmem:[#allocation2 + $0x90] sm:$0x1] }
  0x55   :  { %10033 = vmatprep.mubr.msk.bf16.mxu0 %vm138_vm0, %v10196_v15  ;;  %v935_v40 = vsel %vm10307_vm6, 0, %v934_v39  ;;  %v10669_v3 = vsel %vm138_vm0, %v123_v50, 0  ;;  %v80_v15 = vld [vmem:[%s16298_s0 + $0x130] sm:$0xff]  ;;  %v937_v52 = vld [vmem:[#allocation2 + $0x148] sm:$0x80]  ;;  %v10680_v50 = vsel %vm138_vm0, %v124_v56, 0  ;;  %9363 = vmatprep.mubr.bf16.mxu1 %v1023_v28 }
  0x56   :  { %936 = vst [vmem:[#allocation2 + $0x130] sm:$0x80] %v935_v40  ;;  %v617_v54 = vld [vmem:[#allocation2 + $0x60] sm:$0xff]  ;;  %v483_v58 = vshrl.u32 %v10669_v3, 16  ;;  %v486_v35 = vshll.u32 %v10669_v3, 16  ;;  %267 = vst [vmem:[#allocation2 + $0x1e8] sm:$0xff] %v10669_v3  ;;  %2228 = vmatpush1.bf16.msra.mxu1 %v9848_v20  ;;  %v851_v9 = vsel %vm10230_vm3, %v737_v41, %v850_v37 }
  0x57   :  { %v938_v55 = vsel %vm10307_vm6, 0, %v937_v52  ;;  %v10691_v2 = vsel %vm10455_vm11, %v404_v45, %v617_v54  ;;  %268 = vst [vmem:[#allocation2 + $0x200] sm:$0xff] %v10680_v50  ;;  %v81_v16 = vld [vmem:[%s16298_s0 + $0x138] sm:$0xff]  ;;  %2229 = vmatprep.subr.bf16.mxu1 %v10090_v0  ;;  %852 = vst [vmem:[#allocation2 + $0x1d8] sm:$0xff] %v851_v9  ;;  %v853_v20 = vld [vmem:[#allocation2 + $0x1f0] sm:$0xff]  ;;  %v489_v1 = vshrl.u32 %v10680_v50, 16 }
  0x58   :  { %939 = vst [vmem:[#allocation2 + $0x148] sm:$0x80] %v938_v55  ;;  %619 = vst [vmem:[#allocation2 + $0x60] sm:$0xff] %v10691_v2  ;;  %v738_v28 = vrot.slane %v486_v35, 1  ;;  %v16313_v37 = vshll.u32 %v10680_v50, 16  ;;  %v301_v45 = vsel %vm10361_vm9, 0, %v300_v46  ;;  %v125_v56 = vpack.c.bf16 %v81_v16, %v80_v15 }
  0x59   :  { %v419_v24 = vrot.slane %v417_v31, 7  ;;  %v1026_v39 = vld [vmem:[#allocation2 + $0xe8] sm:$0xff]  ;;  %v9850_v0 = vld [vmem:[%s16299_s1 + $0x100] sm:$0xff]   ;;  %302 = vst [vmem:[#allocation2 + $0x90] sm:$0x1] %v301_v45  ;;  %v416_v16 = vor.u32 %v414_v18, %v413_v12  ;;  %v85_v12 = vld [vmem:[%s16298_s0 + $0x158] sm:$0xff] }
  0x5a   :  { %v856_v51 = vld [vmem:[#allocation2 + $0x208] sm:$0xff]  ;;  %v82_v40 = vld [vmem:[%s16298_s0 + $0x140] sm:$0xff]  ;;  %v620_v52 = vld [vmem:[#allocation2 + $0x78] sm:$0xff]  ;;  %v739_v31 = vor.u32 %v738_v28, %v483_v58  ;;  %v740_v54 = vrot.slane %v16313_v37, 1  ;;  %2230 = vmatpush1.bf16.msra.mxu1 %v9849_v57  ;;  %v10730_v45 = vsel %vm138_vm0, %v125_v56, 0 }
  0x5b   :  { %v83_v41 = vld [vmem:[%s16298_s0 + $0x148] sm:$0xff]  ;;  %v1029_v9 = vld [vmem:[#allocation2 + $0x100] sm:$0xff]  ;;  %v10725_v46 = vsel %vm10455_vm11, %v410_v43, %v620_v52  ;;  %v16315_v43 = vshrl.u32 %v10730_v45, 16  ;;  %269 = vst [vmem:[#allocation2 + $0x218] sm:$0xff] %v10730_v45  ;;  %v11058_v17 = vld [vmem:[#allocation2 + $0x18] sm:$0xff]  ;;  %v16542_v32 = vshrl.u32 %v10730_v45, 16 }
  0x5c   :  { %v126_v55 = vpack.c.bf16 %v83_v41, %v82_v40  ;;  %1326 = vmatmul.mubr.bf16.gmra.mrb[4].mxu0 %v10506_v59  ;;  %v940_v15 = vld [vmem:[#allocation2 + $0x160] sm:$0x80]  ;;  %v303_v28 = vld [vmem:[#allocation2 + $0xa8] sm:$0x1]  ;;  %v943_v40 = vld [vmem:[#allocation2 + $0x178] sm:$0x80]  ;;  %v854_v10 = vsel %vm10230_vm3, %v739_v31, %v853_v20  ;;  %v741_v18 = vor.u32 %v740_v54, %v489_v1  ;;  %9364 = vmatmul.mubr.bf16.gmra.mrb[16].mxu1 %v1026_v39 }
  0x5d   :  { %10034 = vmatprep.mubr.msk.bf16.mxu0 %vm138_vm0, %v10215_v22  ;;  %v941_v59 = vsel %vm10307_vm6, 0, %v940_v15  ;;  %v10736_v41 = vld [vmem:[#allocation2 + $0x10] sm:$0xff]  ;;  %622 = vst [vmem:[#allocation2 + $0x78] sm:$0xff] %v10725_v46  ;;  %v944_v57 = vsel %vm10307_vm6, 0, %v943_v40  ;;  %855 = vst [vmem:[#allocation2 + $0x1f0] sm:$0xff] %v854_v10  ;;  %v16312_v20 = vshll.u32 %v10730_v45, 16  ;;  %9367 = vmatprep.mubr.bf16.mxu1 %v1029_v9  ;;  %v422_v9 = vor.u32 %v420_v34, %v419_v24 }
  0x5e   :  { %2231 = vmatprep.subr.bf16.mxu1 %v10736_v41  ;;  %v84_v22 = vld [vmem:[%s16298_s0 + $0x150] sm:$0xff]  ;;  %942 = vst [vmem:[#allocation2 + $0x160] sm:$0x80] %v941_v59  ;;  %v10756_v56 = vsel %vm138_vm0, %v126_v55, 0  ;;  %v304_v52 = vsel %vm10361_vm9, 0, %v303_v28  ;;  %v10762_v31 = vrot.slane %v423_v5, 7  ;;  %v857_v54 = vsel %vm10230_vm3, %v741_v18, %v856_v51 }
  0x5f   :  { %945 = vst [vmem:[#allocation2 + $0x178] sm:$0x80] %v944_v57  ;;  %v16314_v15 = vshrl.u32 %v10756_v56, 16  ;;  %v16311_v59 = vshll.u32 %v10756_v56, 16  ;;  %270 = vst [vmem:[#allocation2 + $0x230] sm:$0xff] %v10756_v56  ;;  %v86_v55 = vld [vmem:[%s16298_s0 + $0x160] sm:$0xff]  ;;  %2232 = vmatpush1.bf16.msra.mxu1 %v9850_v0  ;;  %v127_v40 = vpack.c.bf16 %v85_v12, %v84_v22 }
  0x60   :  { %305 = vst [vmem:[#allocation2 + $0xa8] sm:$0x1] %v304_v52  ;;  %v87_v5 = vld [vmem:[%s16298_s0 + $0x168] sm:$0xff]  ;;  %v949_v39 = vld [vmem:[#allocation2 + $0x1d8] sm:$0x80]  ;;  %858 = vst [vmem:[#allocation2 + $0x208] sm:$0xff] %v857_v54  ;;  %2233 = vmatprep.subr.bf16.mxu1 %v10736_v41 }
  0x61   :  { %v9851_v51 = vld [vmem:[%s16299_s1 + $0x108] sm:$0xff]   ;;  %v742_v28 = vrot.slane %v16312_v20, 1  ;;  %v128_v10 = vpack.c.bf16 %v87_v5, %v86_v55  ;;  %v950_v18 = vsel %vm10307_vm6, 0, %v949_v39  ;;  %v623_v57 = vld [vmem:[#allocation2 + $0x90] sm:$0xff]  ;;  %v859_v52 = vld [vmem:[#allocation2 + $0x220] sm:$0xff]  ;;  %v744_v0 = vrot.slane %v16311_v59, 1 }
  0x62   :  { %951 = vst [vmem:[#allocation2 + $0x1d8] sm:$0x80] %v950_v18  ;;  %v10789_v54 = vsel %vm10455_vm11, %v416_v16, %v623_v57  ;;  %v862_v12 = vld [vmem:[#allocation2 + $0x238] sm:$0xff]  ;;  %v10794_v55 = vsel %vm138_vm0, %v127_v40, 0  ;;  %v306_v39 = vld [vmem:[#allocation2 + $0xc0] sm:$0x1] }
  0x63   :  { %v743_v22 = vor.u32 %v742_v28, %v16315_v43  ;;  %v10797_v5 = vsel %vm138_vm0, %v128_v10, 0  ;;  %v1032_v34 = vld [vmem:[#allocation2 + $0x118] sm:$0xff]  ;;  %625 = vst [vmem:[#allocation2 + $0x90] sm:$0xff] %v10789_v54  ;;  %v745_v24 = vor.u32 %v744_v0, %v16314_v15  ;;  %v507_v16 = vshrl.u32 %v10794_v55, 16  ;;  %271 = vst [vmem:[#allocation2 + $0x248] sm:$0xff] %v10794_v55  ;;  %v90_v18 = vld [vmem:[%s16298_s0 + $0x180] sm:$0xff]  ;;  %2234 = vmatpush1.bf16.msra.mxu1 %v9851_v51 }
  0x64   :  { %v16317_v28 = vshll.u32 %v10794_v55, 16  ;;  %v16319_v40 = vshrl.u32 %v10797_v5, 16  ;;  %272 = vst [vmem:[#allocation2 + $0x260] sm:$0xff] %v10797_v5  ;;  %v89_v10 = vld [vmem:[%s16298_s0 + $0x178] sm:$0xff]  ;;  %1334 = vmatmul.mubr.bf16.gmra.mrb[8].mxu0 %v10571_v42  ;;  %v9852_v0 = vld [vmem:[%s16299_s1 + $0x110] sm:$0xff]   ;;  %v16316_v59 = vshll.u32 %v10797_v5, 16  ;;  %2235 = vmatprep.subr.bf16.mxu1 %v10736_v41 }
  0x65   :  { %v860_v57 = vsel %vm10230_vm3, %v743_v22, %v859_v52  ;;  %v307_v20 = vsel %vm10361_vm9, 0, %v306_v39  ;;  %v129_v37 = vpack.c.bf16 %v89_v10, %v88_v23  ;;  %v91_v15 = vld [vmem:[%s16298_s0 + $0x188] sm:$0xff]  ;;  %v10830_v42 = vrot.slane %v429_v14, 7  ;;  %v1035_v51 = vld [vmem:[#allocation2 + $0x130] sm:$0xff]  ;;  %10035 = vmatprep.mubr.msk.bf16.mxu0 %vm138_vm0, %v10238_v29  ;;  %9368 = vmatmul.mubr.bf16.gmra.mrb[20].mxu1 %v1032_v34  ;;  %v309_v34 = vld [vmem:[#allocation2 + $0xd8] sm:$0x1] }
  0x66   :  { %v952_v52 = vld [vmem:[#allocation2 + $0x1f0] sm:$0x80]  ;;  %861 = vst [vmem:[#allocation2 + $0x220] sm:$0xff] %v860_v57  ;;  %v863_v22 = vsel %vm10230_vm3, %v745_v24, %v862_v12  ;;  %v746_v39 = vrot.slane %v16317_v28, 1  ;;  %308 = vst [vmem:[#allocation2 + $0xc0] sm:$0x1] %v307_v20  ;;  %v130_v57 = vpack.c.bf16 %v91_v15, %v90_v18  ;;  %9371 = vmatprep.mubr.bf16.mxu1 %v1035_v51 }
  0x67   :  { %v865_v23 = vld [vmem:[#allocation2 + $0x250] sm:$0xff]  ;;  %v953_v14 = vsel %vm10307_vm6, 0, %v952_v52  ;;  %864 = vst [vmem:[#allocation2 + $0x238] sm:$0xff] %v863_v22  ;;  %v626_v10 = vld [vmem:[#allocation2 + $0xa8] sm:$0xff]  ;;  %v748_v29 = vrot.slane %v16316_v59, 1  ;;  %v9853_v12 = vld [vmem:[%s16299_s1 + $0x118] sm:$0xff]   ;;  %2236 = vmatpush1.bf16.msra.mxu1 %v9852_v0 }
  0x68   :  { %v868_v43 = vld [vmem:[#allocation2 + $0x268] sm:$0xff]  ;;  %v10847_v24 = vsel %vm138_vm0, %v129_v37, 0  ;;  %954 = vst [vmem:[#allocation2 + $0x1f0] sm:$0x80] %v953_v14  ;;  %v10851_v52 = vsel %vm10455_vm11, %v422_v9, %v626_v10  ;;  %v747_v22 = vor.u32 %v746_v39, %v507_v16  ;;  %v10864_v9 = vsel %vm138_vm0, %v130_v57, 0  ;;  %v92_v18 = vld [vmem:[%s16298_s0 + $0x190] sm:$0xff]  ;;  %2237 = vmatprep.subr.bf16.mxu1 %v10736_v41 }
  0x69   :  { %v955_v20 = vld [vmem:[#allocation2 + $0x208] sm:$0x80]  ;;  %v519_v59 = vshrl.u32 %v10847_v24, 16  ;;  %v16318_v28 = vshll.u32 %v10847_v24, 16  ;;  %273 = vst [vmem:[#allocation2 + $0x278] sm:$0xff] %v10847_v24  ;;  %628 = vst [vmem:[#allocation2 + $0xa8] sm:$0xff] %v10851_v52  ;;  %v749_v15 = vor.u32 %v748_v29, %v16319_v40  ;;  %v428_v39 = vor.u32 %v426_v6, %v10762_v31 }
  0x6a   :  { %v956_v37 = vsel %vm10307_vm6, 0, %v955_v20  ;;  %v93_v51 = vld [vmem:[%s16298_s0 + $0x198] sm:$0xff]  ;;  %v866_v0 = vsel %vm10230_vm3, %v747_v22, %v865_v23  ;;  %v525_v10 = vshrl.u32 %v10864_v9, 16  ;;  %274 = vst [vmem:[#allocation2 + $0x290] sm:$0xff] %v10864_v9  ;;  %v94_v29 = vld [vmem:[%s16298_s0 + $0x1a0] sm:$0xff]  ;;  %v1038_v57 = vld [vmem:[#allocation2 + $0x148] sm:$0xff] }
  0x6b   :  { %957 = vst [vmem:[#allocation2 + $0x208] sm:$0x80] %v956_v37  ;;  %v750_v14 = vrot.slane %v16318_v28, 1  ;;  %867 = vst [vmem:[#allocation2 + $0x250] sm:$0xff] %v866_v0  ;;  %v869_v23 = vsel %vm10230_vm3, %v749_v15, %v868_v43  ;;  %v871_v20 = vld [vmem:[#allocation2 + $0x280] sm:$0xff]  ;;  %v528_v63 = vshll.u32 %v10864_v9, 16  ;;  %v131_v31 = vpack.c.bf16 %v93_v51, %v92_v18  ;;  %2238 = vmatpush1.bf16.msra.mxu1 %v9853_v12 }
  0x6c   :  { %v310_v6 = vsel %vm10361_vm9, 0, %v309_v34  ;;  %v95_v22 = vld [vmem:[%s16298_s0 + $0x1a8] sm:$0xff]  ;;  %v437_v37 = vrot.slane %v435_v47, 7  ;;  %v1041_v28 = vld [vmem:[#allocation2 + $0x160] sm:$0xff]  ;;  %870 = vst [vmem:[#allocation2 + $0x268] sm:$0xff] %v869_v23  ;;  %v874_v43 = vld [vmem:[#allocation2 + $0x298] sm:$0xff]  ;;  %1342 = vmatmul.mubr.bf16.gmra.mrb[12].mxu0 %v10618_v26  ;;  %2239 = vmatprep.subr.bf16.mxu1 %v10736_v41 }
  0x6d   :  { %v751_v0 = vor.u32 %v750_v14, %v519_v59  ;;  %v9854_v15 = vld [vmem:[%s16299_s1 + $0x120] sm:$0xff]   ;;  %311 = vst [vmem:[#allocation2 + $0xd8] sm:$0x1] %v310_v6  ;;  %v132_v34 = vpack.c.bf16 %v95_v22, %v94_v29  ;;  %v312_v18 = vld [vmem:[#allocation2 + $0xf0] sm:$0x1]  ;;  %v752_v47 = vrot.slane %v528_v63, 1  ;;  %10036 = vmatprep.mubr.msk.bf16.mxu0 %vm138_vm0, %v10269_v44  ;;  %9372 = vmatmul.mubr.bf16.gmra.mrb[24].mxu1 %v1038_v57 }
  0x6e   :  { %v958_v51 = vld [vmem:[#allocation2 + $0x220] sm:$0x80]  ;;  %v10904_v23 = vsel %vm138_vm0, %v131_v31, 0  ;;  %v313_v14 = vsel %vm10361_vm9, 0, %v312_v18  ;;  %v961_v6 = vld [vmem:[#allocation2 + $0x238] sm:$0x80]  ;;  %9375 = vmatprep.mubr.bf16.mxu1 %v1041_v28  ;;  %v440_v28 = vor.u32 %v438_v53, %v437_v37 }
  0x6f   :  { %v629_v40 = vld [vmem:[#allocation2 + $0xc0] sm:$0xff]  ;;  %v959_v29 = vsel %vm10307_vm6, 0, %v958_v51  ;;  %v872_v12 = vsel %vm10230_vm3, %v751_v0, %v871_v20  ;;  %v16324_v31 = vshrl.u32 %v10904_v23, 16  ;;  %275 = vst [vmem:[#allocation2 + $0x2a8] sm:$0xff] %v10904_v23  ;;  %314 = vst [vmem:[#allocation2 + $0xf0] sm:$0x1] %v313_v14  ;;  %v434_v51 = vor.u32 %v432_v19, %v10830_v42  ;;  %2240 = vmatpush1.bf16.msra.mxu1 %v9854_v15 }
  0x70   :  { %v10914_v26 = vsel %vm10455_vm11, %v428_v39, %v629_v40  ;;  %v96_v44 = vld [vmem:[%s16298_s0 + $0x1b0] sm:$0xff]  ;;  %v97_v22 = vld [vmem:[%s16298_s0 + $0x1b8] sm:$0xff]  ;;  %960 = vst [vmem:[#allocation2 + $0x220] sm:$0x80] %v959_v29  ;;  %v962_v40 = vsel %vm10307_vm6, 0, %v961_v6  ;;  %873 = vst [vmem:[#allocation2 + $0x280] sm:$0xff] %v872_v12  ;;  %v753_v39 = vor.u32 %v752_v47, %v525_v10  ;;  %2241 = vmatprep.subr.bf16.mxu1 %v10736_v41 }
  0x71   :  { %631 = vst [vmem:[#allocation2 + $0xc0] sm:$0xff] %v10914_v26  ;;  %v16321_v20 = vshll.u32 %v10904_v23, 16  ;;  %v10934_v0 = vsel %vm138_vm0, %v132_v34, 0  ;;  %v98_v18 = vld [vmem:[%s16298_s0 + $0x1c0] sm:$0xff]  ;;  %963 = vst [vmem:[#allocation2 + $0x238] sm:$0x80] %v962_v40  ;;  %v133_v47 = vpack.c.bf16 %v97_v22, %v96_v44 }
  0x72   :  { %v16323_v14 = vshrl.u32 %v10934_v0, 16  ;;  %v16320_v29 = vshll.u32 %v10934_v0, 16  ;;  %276 = vst [vmem:[#allocation2 + $0x2c0] sm:$0xff] %v10934_v0  ;;  %v99_v34 = vld [vmem:[%s16298_s0 + $0x1c8] sm:$0xff]  ;;  %v875_v57 = vsel %vm10230_vm3, %v753_v39, %v874_v43  ;;  %v964_v6 = vld [vmem:[#allocation2 + $0x250] sm:$0x80] }
  0x73   :  { %v754_v7 = vrot.slane %v16321_v20, 1  ;;  %v9855_v19 = vld [vmem:[%s16299_s1 + $0x128] sm:$0xff]   ;;  %v134_v42 = vpack.c.bf16 %v99_v34, %v98_v18  ;;  %876 = vst [vmem:[#allocation2 + $0x298] sm:$0xff] %v875_v57  ;;  %v877_v12 = vld [vmem:[#allocation2 + $0x2b0] sm:$0xff]  ;;  %v10961_v43 = vsel %vm138_vm0, %v133_v47, 0  ;;  %v1044_v15 = vld [vmem:[#allocation2 + $0x178] sm:$0xff] }
  0x74   :  { %v756_v44 = vrot.slane %v16320_v29, 1  ;;  %v880_v22 = vld [vmem:[#allocation2 + $0x2c8] sm:$0xff]  ;;  %v965_v40 = vsel %vm10307_vm6, 0, %v964_v6  ;;  %v632_v18 = vld [vmem:[#allocation2 + $0xd8] sm:$0xff]  ;;  %v543_v57 = vshrl.u32 %v10961_v43, 16  ;;  %v16322_v29 = vshll.u32 %v10961_v43, 16  ;;  %1350 = vmatmul.mubr.bf16.gmra.mrb[16].mxu0 %v10691_v2  ;;  %2242 = vmatpush1.bf16.msra.mxu1 %v9855_v19 }
  0x75   :  { %v967_v39 = vld [vmem:[#allocation2 + $0x268] sm:$0x80]  ;;  %v755_v34 = vor.u32 %v754_v7, %v16324_v31  ;;  %277 = vst [vmem:[#allocation2 + $0x2d8] sm:$0xff] %v10961_v43  ;;  %966 = vst [vmem:[#allocation2 + $0x250] sm:$0x80] %v965_v40  ;;  %v10977_v37 = vsel %vm10455_vm11, %v434_v51, %v632_v18  ;;  %v10982_v7 = vsel %vm138_vm0, %v134_v42, 0  ;;  %2243 = vmatprep.subr.bf16.mxu1 %v10736_v41  ;;  %9376 = vmatmul.mubr.bf16.gmra.mrb[28].mxu1 %v1044_v15 }
  0x76   :  { %v968_v53 = vsel %vm10307_vm6, 0, %v967_v39  ;;  %v757_v47 = vor.u32 %v756_v44, %v16323_v14  ;;  %v315_v6 = vld [vmem:[#allocation2 + $0x108] sm:$0x1]  ;;  %v100_v20 = vld [vmem:[%s16298_s0 + $0x1d0] sm:$0xff]  ;;  %v101_v40 = vld [vmem:[%s16298_s0 + $0x1d8] sm:$0xff]  ;;  %634 = vst [vmem:[#allocation2 + $0xd8] sm:$0xff] %v10977_v37  ;;  %9379 = vmatprep.mubr.bf16.mxu1 %v10736_v41 }
  0x77   :  { %969 = vst [vmem:[#allocation2 + $0x268] sm:$0x80] %v968_v53  ;;  %v878_v51 = vsel %vm10230_vm3, %v755_v34, %v877_v12  ;;  %v635_v42 = vld [vmem:[#allocation2 + $0xf0] sm:$0xff]  ;;  %v758_v44 = vrot.slane %v16322_v29, 1  ;;  %v549_v39 = vshrl.u32 %v10982_v7, 16  ;;  %278 = vst [vmem:[#allocation2 + $0x2f0] sm:$0xff] %v10982_v7 }
  0x78   :  { %v102_v18 = vld [vmem:[%s16298_s0 + $0x1e0] sm:$0xff]  ;;  %v103_v2 = vld [vmem:[%s16298_s0 + $0x1e8] sm:$0xff]  ;;  %879 = vst [vmem:[#allocation2 + $0x2b0] sm:$0xff] %v878_v51  ;;  %v881_v19 = vsel %vm10230_vm3, %v757_v47, %v880_v22  ;;  %v11008_v34 = vsel %vm10455_vm11, %v440_v28, %v635_v42  ;;  %v552_v14 = vshll.u32 %v10982_v7, 16  ;;  %v316_v31 = vsel %vm10361_vm9, 0, %v315_v6  ;;  %v886_v28 = vld [vmem:[#allocation2 + $0x2f8] sm:$0xff]  ;;  %2244 = vmatpush1.bf16.msra.mxu1 %v9856_v49 }
  0x79   :  { %v9967_v53 = vld [vmem:[#allocation2 + $0x80] sm:$0xff]  ;;  %882 = vst [vmem:[#allocation2 + $0x2c8] sm:$0xff] %v881_v19  ;;  %637 = vst [vmem:[#allocation2 + $0xf0] sm:$0xff] %v11008_v34  ;;  %v759_v22 = vor.u32 %v758_v44, %v543_v57  ;;  %v135_v47 = vpack.c.bf16 %v101_v40, %v100_v20  ;;  %v136_v42 = vpack.c.bf16 %v103_v2, %v102_v18  ;;  %v9857_v20 = vld [vmem:[%s16299_s1 + $0x138] sm:$0xff]   ;;  %2245 = vmatprep.subr.bf16.mxu1 %v10736_v41 }
  0x7a   :  { %1357 = vmatprep.mubr.bf16.mxu0 %v9967_v53  ;;  %v970_v12 = vld [vmem:[#allocation2 + $0x280] sm:$0x80]  ;;  %v443_v53 = vrot.slane %v441_v61, 7  ;;  %317 = vst [vmem:[#allocation2 + $0x108] sm:$0x1] %v316_v31  ;;  %v760_v6 = vrot.slane %v552_v14, 1 }
  0x7b   :  { %v883_v29 = vld [vmem:[#allocation2 + $0x2e0] sm:$0xff]  ;;  %v971_v51 = vsel %vm10307_vm6, 0, %v970_v12  ;;  %v973_v12 = vld [vmem:[#allocation2 + $0x298] sm:$0x80]  ;;  %v11030_v31 = vsel %vm138_vm0, %v135_v47, 0  ;;  %v449_v49 = vrot.slane %v447_v13, 7 }
  0x7c   :  { %972 = vst [vmem:[#allocation2 + $0x280] sm:$0x80] %v971_v51  ;;  %v9858_v61 = vld [vmem:[%s16299_s1 + $0x140] sm:$0xff]   ;;  %v884_v19 = vsel %vm10230_vm3, %v759_v22, %v883_v29  ;;  %v974_v15 = vsel %vm10307_vm6, 0, %v973_v12  ;;  %v761_v40 = vor.u32 %v760_v6, %v549_v39  ;;  %v555_v44 = vshrl.u32 %v11030_v31, 16  ;;  %279 = vst [vmem:[#allocation2 + $0x308] sm:$0xff] %v11030_v31  ;;  %1358 = vmatmul.mubr.bf16.gmra.mrb[20].mxu0 %v10725_v46 }
  0x7d   :  { %885 = vst [vmem:[#allocation2 + $0x2e0] sm:$0xff] %v884_v19  ;;  %v16325_v18 = vshll.u32 %v11030_v31, 16  ;;  %9411 = vmatprep.subr.bf16.mxu0 %v9858_v61  ;;  %v318_v29 = vld [vmem:[#allocation2 + $0x120] sm:$0x1]  ;;  %v1050_v2 = vld [vmem:[#allocation2 + $0x1d8] sm:$0xff]  ;;  %v446_v51 = vor.u32 %v444_v62, %v443_v53  ;;  %v11048_v22 = vsel %vm138_vm0, %v136_v42, 0  ;;  %2246 = vmatpush1.bf16.msra.mxu1 %v9857_v20 }
  0x7e   :  { %975 = vst [vmem:[#allocation2 + $0x298] sm:$0x80] %v974_v15  ;;  %9412 = vmatpush3.bf16.msra.mxu0 %v9858_v61  ;;  %v319_v47 = vsel %vm10361_vm9, 0, %v318_v29  ;;  %v4602_v6 = vld [vmem:[#allocation2 + $0x18] sm:$0x1]  ;;  %v887_v12 = vsel %vm10230_vm3, %v761_v40, %v886_v28  ;;  %v889_v13 = vld [vmem:[#allocation2 + $0x310] sm:$0xff]  ;;  %3274 = vmatprep.subr.bf16.mxu1 %v10736_v41 }
  0x7f   :  { %v762_v19 = vrot.slane %v16325_v18, 1  ;;  %v561_v15 = vshrl.u32 %v11048_v22, 16  ;;  %280 = vst [vmem:[#allocation2 + $0x320] sm:$0xff] %v11048_v22  ;;  %320 = vst [vmem:[#allocation2 + $0x120] sm:$0x1] %v319_v47  ;;  %v564_v53 = vshll.u32 %v11048_v22, 16  ;;  %9380 = vmatmul.mubr.bf16.gmra.mrb[32].mxu1 %v1050_v2 }
  0x80   :  { %v976_v62 = vld [vmem:[#allocation2 + $0x2b0] sm:$0x80]  ;;  %888 = vst [vmem:[#allocation2 + $0x2f8] sm:$0xff] %v887_v12  ;;  %v4603_v28 = vsel %vm10361_vm9, 0, %v4602_v6  ;;  %v9968_v61 = vld [vmem:[#allocation2 + $0x98] sm:$0xff]  ;;  %v892_v41 = vld [vmem:[#allocation2 + $0x328] sm:$0xff] }
  0x81   :  { %v1053_v42 = vld [vmem:[#allocation2 + $0x1f0] sm:$0xff]  ;;  %1365 = vmatprep.mubr.bf16.mxu0 %v9968_v61  ;;  %v977_v40 = vsel %vm10307_vm6, 0, %v976_v62  ;;  %v979_v29 = vld [vmem:[#allocation2 + $0x2c8] sm:$0x80]  ;;  %v763_v18 = vor.u32 %v762_v19, %v555_v44  ;;  %4604 = vst [vmem:[#allocation2 + $0x18] sm:$0x1] %v4603_v28  ;;  %v452_v62 = vor.u32 %v450_v48, %v449_v49 }
  0x82   :  { %v638_v47 = vld [vmem:[#allocation2 + $0x108] sm:$0xff]  ;;  %978 = vst [vmem:[#allocation2 + $0x2b0] sm:$0x80] %v977_v40  ;;  %v980_v46 = vsel %vm10307_vm6, 0, %v979_v29  ;;  %v764_v6 = vrot.slane %v564_v53, 1  ;;  %v455_v61 = vrot.slane %v453_v25, 7  ;;  %9383 = vmatprep.mubr.bf16.mxu1 %v1053_v42 }
  0x83   :  { %v11073_v20 = vsel %vm10455_vm11, %v446_v51, %v638_v47  ;;  %v321_v12 = vld [vmem:[#allocation2 + $0x138] sm:$0x1]  ;;  %981 = vst [vmem:[#allocation2 + $0x2c8] sm:$0x80] %v980_v46  ;;  %v890_v19 = vsel %vm10230_vm3, %v763_v18, %v889_v13  ;;  %v324_v51 = vld [vmem:[#allocation2 + $0x150] sm:$0x1] }
  0x84   :  { %640 = vst [vmem:[#allocation2 + $0x108] sm:$0xff] %v11073_v20  ;;  %v322_v28 = vsel %vm10361_vm9, 0, %v321_v12  ;;  %v982_v40 = vld [vmem:[#allocation2 + $0x2e0] sm:$0x80]  ;;  %891 = vst [vmem:[#allocation2 + $0x310] sm:$0xff] %v890_v19  ;;  %v765_v2 = vor.u32 %v764_v6, %v561_v15  ;;  %v325_v18 = vsel %vm10361_vm9, 0, %v324_v51  ;;  %1366 = vmatmul.mubr.bf16.gmra.mrb[24].mxu0 %v10789_v54 }
  0x85   :  { %323 = vst [vmem:[#allocation2 + $0x138] sm:$0x1] %v322_v28  ;;  %v461_v48 = vrot.slane %v16537_v4, 7  ;;  %v983_v49 = vsel %vm10307_vm6, 0, %v982_v40  ;;  %326 = vst [vmem:[#allocation2 + $0x150] sm:$0x1] %v325_v18 }
  0x86   :  { %v327_v13 = vld [vmem:[#allocation2 + $0x168] sm:$0x1]  ;;  %984 = vst [vmem:[#allocation2 + $0x2e0] sm:$0x80] %v983_v49  ;;  %v893_v25 = vsel %vm10230_vm3, %v765_v2, %v892_v41  ;;  %v641_v42 = vld [vmem:[#allocation2 + $0x120] sm:$0xff]  ;;  %v16538_v47 = vshrl.u32 %v10577_v33, 16 }
  0x87   :  { %v328_v29 = vsel %vm10361_vm9, 0, %v327_v13  ;;  %v985_v6 = vld [vmem:[#allocation2 + $0x2f8] sm:$0x80]  ;;  %894 = vst [vmem:[#allocation2 + $0x328] sm:$0xff] %v893_v25  ;;  %v11102_v12 = vsel %vm10455_vm11, %v452_v62, %v641_v42  ;;  %v9861_v19 = vld [vmem:[%s16299_s1 + $0x148] sm:$0xff]   ;;  %v16539_v51 = vshll.u32 %v10529_v38, 16 }
  0x88   :  { %v467_v46 = vrot.slane %v16538_v47, 7  ;;  %329 = vst [vmem:[#allocation2 + $0x168] sm:$0x1] %v328_v29  ;;  %v1056_v28 = vld [vmem:[#allocation2 + $0x208] sm:$0xff]  ;;  %v986_v41 = vsel %vm10307_vm6, 0, %v985_v6  ;;  %643 = vst [vmem:[#allocation2 + $0x120] sm:$0xff] %v11102_v12  ;;  %9413 = vmatprep.subr.bf16.mxu0 %v9861_v19 }
  0x89   :  { %v458_v40 = vor.u32 %v16539_v51, %v455_v61  ;;  %v1059_v2 = vld [vmem:[#allocation2 + $0x220] sm:$0xff]  ;;  %v9969_v18 = vld [vmem:[#allocation2 + $0xb0] sm:$0xff]  ;;  %987 = vst [vmem:[#allocation2 + $0x2f8] sm:$0x80] %v986_v41  ;;  %v16540_v62 = vshll.u32 %v10574_v8, 16  ;;  %v479_v54 = vrot.slane %v477_v11, 7  ;;  %9414 = vmatpush3.bf16.msra.mxu0 %v9861_v19  ;;  %9384 = vmatmul.mubr.bf16.gmra.mrb[36].mxu1 %v1056_v28 }
  0x8a   :  { %1373 = vmatprep.mubr.bf16.mxu0 %v9969_v18  ;;  %v333_v49 = vld [vmem:[#allocation2 + $0x1c8] sm:$0x1]  ;;  %v336_v25 = vld [vmem:[#allocation2 + $0x1e0] sm:$0x1]  ;;  %v16541_v42 = vshll.u32 %v10577_v33, 16  ;;  %9387 = vmatprep.mubr.bf16.mxu1 %v1059_v2  ;;  %v491_v33 = vrot.slane %v489_v1, 7 }
  0x8b   :  { %v464_v4 = vor.u32 %v16540_v62, %v461_v48  ;;  %v334_v13 = vsel %vm10361_vm9, 0, %v333_v49  ;;  %v988_v38 = vld [vmem:[#allocation2 + $0x310] sm:$0x80]  ;;  %v337_v8 = vsel %vm10361_vm9, 0, %v336_v25  ;;  %v485_v48 = vrot.slane %v483_v58, 7  ;;  %v1062_v62 = vld [vmem:[#allocation2 + $0x238] sm:$0xff] }
  0x8c   :  { %v644_v61 = vld [vmem:[#allocation2 + $0x138] sm:$0xff]  ;;  %v470_v29 = vor.u32 %v16541_v42, %v467_v46  ;;  %335 = vst [vmem:[#allocation2 + $0x1c8] sm:$0x1] %v334_v13  ;;  %v989_v11 = vsel %vm10307_vm6, 0, %v988_v38  ;;  %v647_v6 = vld [vmem:[#allocation2 + $0x150] sm:$0xff]  ;;  %1374 = vmatmul.mubr.bf16.gmra.mrb[28].mxu0 %v10851_v52  ;;  %v9970_v13 = vld [vmem:[#allocation2 + $0xc8] sm:$0xff] }
  0x8d   :  { %v11129_v47 = vsel %vm10455_vm11, %v458_v40, %v644_v61  ;;  %338 = vst [vmem:[#allocation2 + $0x1e0] sm:$0x1] %v337_v8  ;;  %990 = vst [vmem:[#allocation2 + $0x310] sm:$0x80] %v989_v11  ;;  %v11136_v46 = vsel %vm10455_vm11, %v464_v4, %v647_v6  ;;  %v339_v58 = vld [vmem:[#allocation2 + $0x1f8] sm:$0x1]  ;;  %v482_v40 = vor.u32 %v480_v30, %v479_v54  ;;  %1381 = vmatprep.mubr.bf16.mxu0 %v9970_v13 }
  0x8e   :  { %646 = vst [vmem:[#allocation2 + $0x138] sm:$0xff] %v11129_v47  ;;  %v991_v19 = vld [vmem:[#allocation2 + $0x328] sm:$0x80]  ;;  %649 = vst [vmem:[#allocation2 + $0x150] sm:$0xff] %v11136_v46  ;;  %v340_v41 = vsel %vm10361_vm9, 0, %v339_v58  ;;  %v9864_v2 = vld [vmem:[%s16299_s1 + $0x150] sm:$0xff]   ;;  %v488_v4 = vor.u32 %v486_v35, %v485_v48 }
  0x8f   :  { %v650_v28 = vld [vmem:[#allocation2 + $0x168] sm:$0xff]  ;;  %v992_v51 = vsel %vm10307_vm6, 0, %v991_v19  ;;  %341 = vst [vmem:[#allocation2 + $0x1f8] sm:$0x1] %v340_v41  ;;  %v342_v18 = vld [vmem:[#allocation2 + $0x210] sm:$0x1]  ;;  %9415 = vmatprep.subr.bf16.mxu0 %v9864_v2 }
  0x90   :  { %v11145_v1 = vsel %vm10455_vm11, %v470_v29, %v650_v28  ;;  %993 = vst [vmem:[#allocation2 + $0x328] sm:$0x80] %v992_v51  ;;  %v343_v49 = vsel %vm10361_vm9, 0, %v342_v18  ;;  %v497_v30 = vrot.slane %v16542_v32, 7  ;;  %v1065_v54 = vld [vmem:[#allocation2 + $0x250] sm:$0xff]  ;;  %9416 = vmatpush3.bf16.msra.mxu0 %v9864_v2  ;;  %v16543_v3 = vshrl.u32 %v10756_v56, 16 }
  0x91   :  { %652 = vst [vmem:[#allocation2 + $0x168] sm:$0xff] %v11145_v1  ;;  %344 = vst [vmem:[#allocation2 + $0x210] sm:$0x1] %v343_v49  ;;  %v345_v25 = vld [vmem:[#allocation2 + $0x228] sm:$0x1]  ;;  %9388 = vmatmul.mubr.bf16.gmra.mrb[40].mxu1 %v1062_v62  ;;  %v16544_v8 = vshll.u32 %v10680_v50, 16 }
  0x92   :  { %v346_v52 = vsel %vm10361_vm9, 0, %v345_v25  ;;  %v348_v61 = vld [vmem:[#allocation2 + $0x240] sm:$0x1]  ;;  %v503_v35 = vrot.slane %v16543_v3, 7  ;;  %v509_v6 = vrot.slane %v507_v16, 7  ;;  %9391 = vmatprep.mubr.bf16.mxu1 %v1065_v54  ;;  %v16545_v50 = vshll.u32 %v10730_v45, 16 }
  0x93   :  { %v656_v38 = vld [vmem:[#allocation2 + $0x1c8] sm:$0xff]  ;;  %v494_v48 = vor.u32 %v16544_v8, %v491_v33  ;;  %347 = vst [vmem:[#allocation2 + $0x228] sm:$0x1] %v346_v52  ;;  %v349_v11 = vsel %vm10361_vm9, 0, %v348_v61  ;;  %v351_v19 = vld [vmem:[#allocation2 + $0x258] sm:$0x1] }
  0x94   :  { %v11166_v42 = vsel %vm10455_vm11, %v482_v40, %v656_v38  ;;  %v659_v29 = vld [vmem:[#allocation2 + $0x1e0] sm:$0xff]  ;;  %350 = vst [vmem:[#allocation2 + $0x240] sm:$0x1] %v349_v11  ;;  %v500_v33 = vor.u32 %v16545_v50, %v497_v30  ;;  %v352_v41 = vsel %vm10361_vm9, 0, %v351_v19  ;;  %v16546_v16 = vshrl.u32 %v10797_v5, 16  ;;  %v1068_v40 = vld [vmem:[#allocation2 + $0x268] sm:$0xff]  ;;  %1382 = vmatmul.mubr.bf16.gmra.mrb[32].mxu0 %v10914_v26 }
  0x95   :  { %658 = vst [vmem:[#allocation2 + $0x1c8] sm:$0xff] %v11166_v42  ;;  %v11177_v58 = vsel %vm10455_vm11, %v488_v4, %v659_v29  ;;  %v16547_v18 = vshll.u32 %v10756_v56, 16  ;;  %353 = vst [vmem:[#allocation2 + $0x258] sm:$0x1] %v352_v41  ;;  %v354_v4 = vld [vmem:[#allocation2 + $0x270] sm:$0x1] }
  0x96   :  { %661 = vst [vmem:[#allocation2 + $0x1e0] sm:$0xff] %v11177_v58  ;;  %v662_v28 = vld [vmem:[#allocation2 + $0x1f8] sm:$0xff]  ;;  %v515_v51 = vrot.slane %v16546_v16, 7  ;;  %v16548_v49 = vshll.u32 %v10794_v55, 16  ;;  %v355_v30 = vsel %vm10361_vm9, 0, %v354_v4  ;;  %v1071_v54 = vld [vmem:[#allocation2 + $0x280] sm:$0xff] }
  0x97   :  { %v11188_v2 = vsel %vm10455_vm11, %v494_v48, %v662_v28  ;;  %v506_v62 = vor.u32 %v16547_v18, %v503_v35  ;;  %v9971_v13 = vld [vmem:[#allocation2 + $0xe0] sm:$0xff]  ;;  %356 = vst [vmem:[#allocation2 + $0x270] sm:$0x1] %v355_v30  ;;  %v521_v25 = vrot.slane %v519_v59, 7  ;;  %v16549_v52 = vshll.u32 %v10797_v5, 16  ;;  %v1074_v35 = vld [vmem:[#allocation2 + $0x298] sm:$0xff] }
  0x98   :  { %664 = vst [vmem:[#allocation2 + $0x1f8] sm:$0xff] %v11188_v2  ;;  %v665_v45 = vld [vmem:[#allocation2 + $0x210] sm:$0xff]  ;;  %v512_v32 = vor.u32 %v16548_v49, %v509_v6  ;;  %1389 = vmatprep.mubr.bf16.mxu0 %v9971_v13  ;;  %v9867_v59 = vld [vmem:[%s16299_s1 + $0x158] sm:$0xff]   ;;  %v16550_v5 = vshll.u32 %v10847_v24, 16  ;;  %v357_v11 = vld [vmem:[#allocation2 + $0x288] sm:$0x1] }
  0x99   :  { %v11200_v56 = vsel %vm10455_vm11, %v500_v33, %v665_v45  ;;  %9392 = vmatmul.mubr.bf16.gmra.mrb[44].mxu1 %v1068_v40  ;;  %v518_v61 = vor.u32 %v16549_v52, %v515_v51  ;;  %9417 = vmatprep.subr.bf16.mxu0 %v9867_v59  ;;  %v358_v50 = vsel %vm10361_vm9, 0, %v357_v11  ;;  %v1077_v33 = vld [vmem:[#allocation2 + $0x2b0] sm:$0xff]  ;;  %v9972_v19 = vld [vmem:[#allocation2 + $0xf8] sm:$0xff]  ;;  %v527_v24 = vrot.slane %v525_v10, 7  ;;  %v360_v16 = vld [vmem:[#allocation2 + $0x2a0] sm:$0x1] }
  0x9a   :  { %667 = vst [vmem:[#allocation2 + $0x210] sm:$0xff] %v11200_v56  ;;  %v668_v26 = vld [vmem:[#allocation2 + $0x228] sm:$0xff]  ;;  %9395 = vmatprep.mubr.bf16.mxu1 %v1071_v54  ;;  %v524_v48 = vor.u32 %v16550_v5, %v521_v25  ;;  %9418 = vmatpush3.bf16.msra.mxu0 %v9867_v59  ;;  %359 = vst [vmem:[#allocation2 + $0x288] sm:$0x1] %v358_v50  ;;  %v361_v40 = vsel %vm10361_vm9, 0, %v360_v16  ;;  %v16551_v18 = vshrl.u32 %v10904_v23, 16 }
  0x9b   :  { %v11207_v55 = vsel %vm10455_vm11, %v506_v62, %v668_v26  ;;  %v671_v38 = vld [vmem:[#allocation2 + $0x240] sm:$0xff]  ;;  %v530_v41 = vor.u32 %v528_v63, %v527_v24  ;;  %v9973_v45 = vld [vmem:[#allocation2 + $0x110] sm:$0xff]  ;;  %362 = vst [vmem:[#allocation2 + $0x2a0] sm:$0x1] %v361_v40  ;;  %v1086_v9 = vld [vmem:[#allocation2 + $0x2f8] sm:$0xff]  ;;  %v16552_v63 = vshll.u32 %v10904_v23, 16 }
  0x9c   :  { %670 = vst [vmem:[#allocation2 + $0x228] sm:$0xff] %v11207_v55  ;;  %v11214_v3 = vsel %vm10455_vm11, %v512_v32, %v671_v38  ;;  %v674_v29 = vld [vmem:[#allocation2 + $0x258] sm:$0xff]  ;;  %1390 = vmatmul.mubr.bf16.gmra.mrb[36].mxu0 %v10977_v37  ;;  %v1080_v37 = vld [vmem:[#allocation2 + $0x2c8] sm:$0xff]  ;;  %v533_v62 = vrot.slane %v16551_v18, 7  ;;  %v1083_v4 = vld [vmem:[#allocation2 + $0x2e0] sm:$0xff] }
  0x9d   :  { %673 = vst [vmem:[#allocation2 + $0x240] sm:$0xff] %v11214_v3  ;;  %v11222_v8 = vsel %vm10455_vm11, %v518_v61, %v674_v29  ;;  %1397 = vmatprep.mubr.bf16.mxu0 %v9972_v19  ;;  %v363_v49 = vld [vmem:[#allocation2 + $0x2b8] sm:$0x1]  ;;  %v72_v54 = vld [vmem:[%s16298_s0 + $0xf0] sm:$0xff]  ;;  %v9974_v25 = vld [vmem:[#allocation2 + $0x128] sm:$0xff]  ;;  %v16553_v61 = vshrl.u32 %v10934_v0, 16 }
  0x9e   :  { %676 = vst [vmem:[#allocation2 + $0x258] sm:$0xff] %v11222_v8  ;;  %v677_v6 = vld [vmem:[#allocation2 + $0x270] sm:$0xff]  ;;  %v364_v30 = vsel %vm10361_vm9, 0, %v363_v49  ;;  %v73_v13 = vld [vmem:[%s16298_s0 + $0xf8] sm:$0xff]  ;;  %v330_v38 = vld [vmem:[#allocation2 + $0x180] sm:$0x1] }
  0x9f   :  { %v11232_v28 = vsel %vm10455_vm11, %v524_v48, %v677_v6  ;;  %v1089_v26 = vld [vmem:[#allocation2 + $0x310] sm:$0xff]  ;;  %365 = vst [vmem:[#allocation2 + $0x2b8] sm:$0x1] %v364_v30  ;;  %v331_v52 = vsel %vm10361_vm9, 0, %v330_v38  ;;  %v1092_v5 = vld [vmem:[#allocation2 + $0x328] sm:$0xff]  ;;  %v16554_v6 = vshll.u32 %v10934_v0, 16 }
  0xa0   :  { %679 = vst [vmem:[#allocation2 + $0x270] sm:$0xff] %v11232_v28  ;;  %332 = vst [vmem:[#allocation2 + $0x180] sm:$0x1] %v331_v52  ;;  %v9975_v16 = vld [vmem:[#allocation2 + $0x140] sm:$0xff]  ;;  %v545_v0 = vrot.slane %v543_v57, 7  ;;  %v9976_v30 = vld [vmem:[#allocation2 + $0x158] sm:$0xff] }
  0xa1   :  { %9396 = vmatmul.mubr.bf16.gmra.mrb[48].mxu1 %v1074_v35  ;;  %v680_v51 = vld [vmem:[#allocation2 + $0x288] sm:$0xff]  ;;  %v539_v35 = vrot.slane %v16553_v61, 7  ;;  %v9870_v57 = vld [vmem:[%s16299_s1 + $0x160] sm:$0xff]   ;;  %v11316_v38 = vld [vmem:[#allocation2 + $0x10] sm:$0xff] }
  0xa2   :  { %9399 = vmatprep.mubr.bf16.mxu1 %v1077_v33  ;;  %v11246_v10 = vsel %vm10455_vm11, %v530_v41, %v680_v51  ;;  %v683_v32 = vld [vmem:[#allocation2 + $0x2a0] sm:$0xff]  ;;  %v366_v33 = vld [vmem:[#allocation2 + $0x2d0] sm:$0x1]  ;;  %9419 = vmatprep.subr.bf16.mxu0 %v9870_v57  ;;  %v9869_v22 = vld [vmem:[%s16299_s1 + $0x1b8] sm:$0xff]  }
  0xa3   :  { %682 = vst [vmem:[#allocation2 + $0x288] sm:$0xff] %v11246_v10  ;;  %v542_v50 = vor.u32 %v16554_v6, %v539_v35  ;;  %v1928_v41 = vld [vmem:[#allocation2 + $0x20] sm:$0xff]  ;;  %9420 = vmatpush3.bf16.msra.mxu0 %v9870_v57  ;;  %v1930_v52 = vld [vmem:[#allocation2 + $0x30] sm:$0xff]  ;;  %v375_v6 = vld [vmem:[#allocation2 + $0x318] sm:$0x1] }
  0xa4   :  { %1398 = vmatmul.mubr.bf16.gmra.mrb[40].mxu0 %v11008_v34  ;;  %v536_v34 = vor.u32 %v16552_v63, %v533_v62  ;;  %v369_v63 = vld [vmem:[#allocation2 + $0x2e8] sm:$0x1]  ;;  %v372_v61 = vld [vmem:[#allocation2 + $0x300] sm:$0x1]  ;;  %v11628_v60 = vld [vmem:[#allocation2 + $0x90] sm:$0xff] }
  0xa5   :  { %1405 = vmatprep.mubr.bf16.mxu0 %v9973_v45  ;;  %v16555_v45 = vshll.u32 %v10961_v43, 16  ;;  %v370_v49 = vsel %vm10361_vm9, 0, %v369_v63  ;;  %v551_v43 = vrot.slane %v549_v39, 7  ;;  %v9862_v39 = vld [vmem:[%s16299_s1 + $0x190] sm:$0xff]   ;;  %v1943_v63 = vld [vmem:[#allocation2 + $0x98] sm:$0xff] }
  0xa6   :  { %v11262_v23 = vsel %vm10455_vm11, %v536_v34, %v683_v32  ;;  %v686_v19 = vld [vmem:[#allocation2 + $0x2b8] sm:$0xff]  ;;  %371 = vst [vmem:[#allocation2 + $0x2e8] sm:$0x1] %v370_v49 }
  0xa7   :  { %685 = vst [vmem:[#allocation2 + $0x2a0] sm:$0xff] %v11262_v23  ;;  %v11280_v51 = vsel %vm10455_vm11, %v542_v50, %v686_v19  ;;  %v1931_v32 = vld [vmem:[#allocation2 + $0x38] sm:$0xff]  ;;  %v1937_v19 = vld [vmem:[#allocation2 + $0x68] sm:$0xff] }
  0xa8   :  { %688 = vst [vmem:[#allocation2 + $0x2b8] sm:$0xff] %v11280_v51  ;;  %v9983_v49 = vld [vmem:[#allocation2 + $0x78] sm:$0xff] }
  0xa9   :  { %9400 = vmatmul.mubr.bf16.gmra.mrb[52].mxu1 %v1080_v37  ;;  %v367_v37 = vsel %vm10361_vm9, 0, %v366_v33  ;;  %v376_v33 = vsel %vm10361_vm9, 0, %v375_v6  ;;  %v9994_v6 = vld [vmem:[#allocation2 + $0x278] sm:$0xff] }
  0xaa   :  { %9403 = vmatprep.mubr.bf16.mxu1 %v1083_v4  ;;  %368 = vst [vmem:[#allocation2 + $0x2d0] sm:$0x1] %v367_v37  ;;  %v9859_v4 = vld [vmem:[%s16299_s1 + $0x180] sm:$0xff]   ;;  %377 = vst [vmem:[#allocation2 + $0x318] sm:$0x1] %v376_v33  ;;  %v9866_v37 = vld [vmem:[%s16299_s1 + $0x1a8] sm:$0xff]  }
  0xac   :  { %1406 = vmatmul.mubr.bf16.gmra.mrb[44].mxu0 %v11073_v20  ;;  %v11264_v20 = vpack.c.bf16 %v73_v13, %v72_v54  ;;  %v4650_v13 = vld [vmem:[#allocation2 + $0x1c8] sm:$0x1] }
  0xad   :  { %1413 = vmatprep.mubr.bf16.mxu0 %v9974_v25  ;;  %v4651_v25 = vsel %vm10361_vm9, 0, %v4650_v13  ;;  %v692_v35 = vld [vmem:[#allocation2 + $0x2e8] sm:$0xff]  ;;  %v9984_v13 = vld [vmem:[#allocation2 + $0x200] sm:$0xff] }
  0xae   :  { %v186_v29 = vsel %vm138_vm0, %v11264_v20, 0  ;;  %4652 = vst [vmem:[#allocation2 + $0x1c8] sm:$0x1] %v4651_v25  ;;  %v1949_v25 = vld [vmem:[#allocation2 + $0xc8] sm:$0xff] }
  0xaf   :  { %265 = vst [vmem:[#allocation2 + $0x188] sm:$0xff] %v186_v29  ;;  %v471_v59 = vshrl.u32 %v186_v29, 16  ;;  %v474_v11 = vshll.u32 %v186_v29, 16  ;;  %v373_v29 = vsel %vm10361_vm9, 0, %v372_v61  ;;  %v9988_v61 = vld [vmem:[#allocation2 + $0x230] sm:$0xff] }
  0xb0   :  { %374 = vst [vmem:[#allocation2 + $0x300] sm:$0x1] %v373_v29  ;;  %v9990_v29 = vld [vmem:[#allocation2 + $0x248] sm:$0xff] }
  0xb1   :  { %9404 = vmatmul.mubr.bf16.gmra.mrb[56].mxu1 %v1086_v9  ;;  %v473_v48 = vrot.slane %v471_v59, 7  ;;  %v734_v40 = vrot.slane %v474_v11, 1  ;;  %v548_v9 = vor.u32 %v16555_v45, %v545_v0  ;;  %v689_v34 = vld [vmem:[#allocation2 + $0x2d0] sm:$0xff]  ;;  %v9875_v45 = vld [vmem:[%s16299_s1 + $0x178] sm:$0xff]  }
  0xb2   :  { %9407 = vmatprep.mubr.bf16.mxu1 %v1089_v26  ;;  %v9860_v26 = vld [vmem:[%s16299_s1 + $0x188] sm:$0xff]   ;;  %v9874_v0 = vld [vmem:[%s16299_s1 + $0x170] sm:$0xff]  }
  0xb3   :  { %v476_v24 = vor.u32 %v474_v11, %v473_v48  ;;  %v11285_v18 = vor.u32 %v734_v40, %v471_v59  ;;  %v11305_v54 = vsel %vm10455_vm11, %v548_v9, %v689_v34  ;;  %v557_v59 = vrot.slane %v555_v44, 7  ;;  %v9978_v48 = vld [vmem:[#allocation2 + $0x170] sm:$0xff]  ;;  %v9865_v44 = vld [vmem:[%s16299_s1 + $0x1a0] sm:$0xff]   ;;  %v698_v40 = vld [vmem:[#allocation2 + $0x318] sm:$0xff] }
  0xb4   :  { %1414 = vmatmul.mubr.bf16.gmra.mrb[48].mxu0 %v11102_v12  ;;  %v653_v12 = vld [vmem:[#allocation2 + $0x180] sm:$0xff]  ;;  %691 = vst [vmem:[#allocation2 + $0x2d0] sm:$0xff] %v11305_v54  ;;  %v9982_v34 = vld [vmem:[#allocation2 + $0x1e8] sm:$0xff] }
  0xb5   :  { %1421 = vmatprep.mubr.bf16.mxu0 %v9975_v16  ;;  %v11289_v62 = vsel %vm10455_vm11, %v476_v24, %v653_v12  ;;  %v9868_v16 = vld [vmem:[%s16299_s1 + $0x1b0] sm:$0xff]   ;;  %v1940_v12 = vld [vmem:[#allocation2 + $0x80] sm:$0xff] }
  0xb6   :  { %655 = vst [vmem:[#allocation2 + $0x180] sm:$0xff] %v11289_v62  ;;  %v9871_v9 = vld [vmem:[%s16299_s1 + $0x1c0] sm:$0xff]  }
  0xb7   :  { %v695_v50 = vld [vmem:[#allocation2 + $0x300] sm:$0xff] }
  0xb9   :  { %9408 = vmatmul.mubr.bf16.gmra.mrb[60].mxu1 %v1092_v5  ;;  %v1934_v5 = vld [vmem:[#allocation2 + $0x50] sm:$0xff] }
  0xba   :  { %2247 = vmatprep.mubr.bf16.mxu1 %v1928_v41  ;;  %v9873_v41 = vld [vmem:[%s16299_s1 + $0x168] sm:$0xff]  }
  0xbb   :  { %9421 = vmatprep.subr.bf16.mxu0 %v9873_v41 }
  0xbc   :  { %1422 = vmatmul.mubr.bf16.gmra.mrb[52].mxu0 %v11129_v47 }
  0xbd   :  { %1429 = vmatprep.mubr.bf16.mxu0 %v9976_v30  ;;  %9422 = vmatpush3.bf16.msra.mxu0 %v9873_v41  ;;  %v9876_v30 = vld [vmem:[%s16299_s1 + $0x1d0] sm:$0xff]   ;;  %v9997_v41 = vld [vmem:[#allocation2 + $0x120] sm:$0xff] }
  0xbe   :  { %9423 = vmatprep.subr.bf16.mxu0 %v9874_v0 }
  0xc1   :  { %2248 = vmatmul.mubr.bf16.vlgmr.msra.gmra.mrb[64].mxu1 %v11058_v17  ;;  %v554_v17 = vor.u32 %v552_v14, %v551_v43  ;;  %v9863_v14 = vld [vmem:[%s16299_s1 + $0x198] sm:$0xff]   ;;  %9424 = vmatpush3.bf16.msra.mxu0 %v9874_v0  ;;  %v1946_v43 = vld [vmem:[#allocation2 + $0xb0] sm:$0xff] }
  0xc2   :  { %3275 = vmatpush1.bf16.msra.mxu1 %v9859_v4  ;;  %2255 = vmatprep.mubr.bf16.mxu1 %v1931_v32  ;;  %v9980_v4 = vld [vmem:[#allocation2 + $0x1d0] sm:$0xff]  ;;  %v9872_v32 = vld [vmem:[%s16299_s1 + $0x1c8] sm:$0xff]  }
  0xc3   :  { %3276 = vmatprep.subr.bf16.mxu1 %v11316_v38  ;;  %v11332_v7 = vsel %vm10455_vm11, %v554_v17, %v692_v35  ;;  %9425 = vmatprep.subr.bf16.mxu0 %v9875_v45  ;;  %v1952_v17 = vld [vmem:[#allocation2 + $0xe0] sm:$0xff] }
  0xc4   :  { %1430 = vmatmul.mubr.bf16.gmra.mrb[56].mxu0 %v11136_v46  ;;  %694 = vst [vmem:[#allocation2 + $0x2e8] sm:$0xff] %v11332_v7  ;;  %v16556_v46 = vshll.u32 %v11030_v31, 16  ;;  %v563_v31 = vrot.slane %v561_v15, 7  ;;  %v9989_v35 = vld [vmem:[#allocation2 + $0xc0] sm:$0xff] }
  0xc5   :  { %1437 = vmatprep.mubr.bf16.mxu0 %v9978_v48  ;;  %9426 = vmatpush3.bf16.msra.mxu0 %v9875_v45  ;;  %v1958_v48 = vld [vmem:[#allocation2 + $0x110] sm:$0xff] }
  0xc6   :  { %3277 = vmatpush1.bf16.msra.mxu1 %v9860_v26  ;;  %v560_v11 = vor.u32 %v16556_v46, %v557_v59  ;;  %v566_v15 = vor.u32 %v564_v53, %v563_v31  ;;  %v9981_v53 = vld [vmem:[#allocation2 + $0x60] sm:$0xff]  ;;  %v9985_v26 = vld [vmem:[#allocation2 + $0x90] sm:$0xff]  ;;  %v9991_v59 = vld [vmem:[#allocation2 + $0xd8] sm:$0xff] }
  0xc7   :  { %3278 = vmatprep.subr.bf16.mxu1 %v11316_v38 }
  0xc8   :  { %v11351_v24 = vsel %vm10455_vm11, %v560_v11, %v695_v50  ;;  %v11375_v57 = vsel %vm10455_vm11, %v566_v15, %v698_v40  ;;  %v1961_v11 = vld [vmem:[#allocation2 + $0x128] sm:$0xff] }
  0xc9   :  { %2256 = vmatmul.mubr.bf16.gmra.mrb[68].mxu1 %v1930_v52  ;;  %697 = vst [vmem:[#allocation2 + $0x300] sm:$0xff] %v11351_v24  ;;  %700 = vst [vmem:[#allocation2 + $0x318] sm:$0xff] %v11375_v57  ;;  %v9987_v52 = vld [vmem:[#allocation2 + $0xa8] sm:$0xff] }
  0xca   :  { %2263 = vmatprep.mubr.bf16.mxu1 %v1934_v5  ;;  %3279 = vmatpush1.bf16.msra.mxu1 %v9862_v39  ;;  %v9877_v39 = vld [vmem:[%s16299_s1 + $0x1d8] sm:$0xff]   ;;  %v9878_v5 = vld [vmem:[%s16299_s1 + $0x1e0] sm:$0xff]   ;;  %v9995_v50 = vld [vmem:[#allocation2 + $0x108] sm:$0xff] }
  0xcb   :  { %3280 = vmatprep.subr.bf16.mxu1 %v11316_v38 }
  0xcc   :  { %1438 = vmatmul.mubr.bf16.gmra.mrb[60].mxu0 %v11145_v1  ;;  %v9979_v1 = vld [vmem:[#allocation2 + $0x48] sm:$0xff] }
  0xcd   :  { %1445 = vmatprep.mubr.bf16.mxu0 %v11316_v38 }
  0xce   :  { %3281 = vmatpush1.bf16.msra.mxu1 %v9863_v14  ;;  %v9992_v14 = vld [vmem:[#allocation2 + $0x260] sm:$0xff] }
  0xcf   :  { %3282 = vmatprep.subr.bf16.mxu1 %v11316_v38 }
  0xd1   :  { %2264 = vmatmul.mubr.bf16.gmra.mrb[72].mxu1 %v9979_v1  ;;  %v1964_v1 = vld [vmem:[#allocation2 + $0x140] sm:$0xff] }
  0xd2   :  { %2271 = vmatprep.mubr.bf16.mxu1 %v1937_v19  ;;  %3283 = vmatpush1.bf16.msra.mxu1 %v9865_v44  ;;  %v9993_v44 = vld [vmem:[#allocation2 + $0xf0] sm:$0xff] }
  0xd3   :  { %3284 = vmatprep.subr.bf16.mxu1 %v11316_v38 }
  0xd4   :  { %1446 = vmatmul.mubr.bf16.gmra.mrb[64].mxu0 %v11316_v38 }
  0xd5   :  { %1453 = vmatprep.mubr.bf16.mxu0 %v9980_v4  ;;  %v9998_v4 = vld [vmem:[#allocation2 + $0x2a8] sm:$0xff] }
  0xd6   :  { %3285 = vmatpush1.bf16.msra.mxu1 %v9866_v37  ;;  %v9996_v37 = vld [vmem:[#allocation2 + $0x290] sm:$0xff] }
  0xd7   :  { %3286 = vmatprep.subr.bf16.mxu1 %v11316_v38 }
  0xd9   :  { %2272 = vmatmul.mubr.bf16.gmra.mrb[76].mxu1 %v9981_v53 }
  0xda   :  { %2279 = vmatprep.mubr.bf16.mxu1 %v1940_v12  ;;  %3287 = vmatpush1.bf16.msra.mxu1 %v9868_v16  ;;  %v1967_v12 = vld [vmem:[#allocation2 + $0x158] sm:$0xff] }
  0xdb   :  { %3288 = vmatprep.subr.bf16.mxu1 %v11316_v38 }
  0xdc   :  { %1454 = vmatmul.mubr.bf16.gmra.mrb[68].mxu0 %v11166_v42 }
  0xdd   :  { %1461 = vmatprep.mubr.bf16.mxu0 %v9982_v34 }
  0xde   :  { %3289 = vmatpush1.bf16.msra.mxu1 %v9869_v22 }
  0xdf   :  { %3290 = vmatprep.subr.bf16.mxu1 %v11316_v38 }
  0xe1   :  { %2280 = vmatmul.mubr.bf16.gmra.mrb[80].mxu1 %v9983_v49 }
  0xe2   :  { %2287 = vmatprep.mubr.bf16.mxu1 %v1943_v63  ;;  %3291 = vmatpush1.bf16.msra.mxu1 %v9871_v9  ;;  %v1970_v9 = vld [vmem:[#allocation2 + $0x170] sm:$0xff] }
  0xe3   :  { %3292 = vmatprep.subr.bf16.mxu1 %v11316_v38  ;;  %v10000_v63 = vld [vmem:[#allocation2 + $0x150] sm:$0xff] }
  0xe4   :  { %1462 = vmatmul.mubr.bf16.gmra.mrb[72].mxu0 %v11177_v58  ;;  %v9986_v58 = vld [vmem:[#allocation2 + $0x218] sm:$0xff] }
  0xe5   :  { %1469 = vmatprep.mubr.bf16.mxu0 %v9984_v13 }
  0xe6   :  { %3293 = vmatpush1.bf16.msra.mxu1 %v9872_v32 }
  0xe7   :  { %3294 = vmatprep.subr.bf16.mxu1 %v11316_v38 }
  0xe9   :  { %2288 = vmatmul.mubr.bf16.gmra.mrb[84].mxu1 %v9985_v26 }
  0xea   :  { %2295 = vmatprep.mubr.bf16.mxu1 %v1946_v43  ;;  %3295 = vmatpush1.bf16.msra.mxu1 %v9876_v30 }
  0xeb   :  { %3296 = vmatprep.subr.bf16.mxu1 %v11316_v38 }
  0xec   :  { %1470 = vmatmul.mubr.bf16.gmra.mrb[76].mxu0 %v11188_v2  ;;  %v1955_v2 = vld [vmem:[#allocation2 + $0xf8] sm:$0xff] }
  0xed   :  { %1477 = vmatprep.mubr.bf16.mxu0 %v9986_v58  ;;  %v104_v58 = vld [vmem:[%s16298_s0 + $0x1f0] sm:$0xff] }
  0xee   :  { %3297 = vmatpush1.bf16.msra.mxu1 %v9877_v39 }
  0xef   :  { %3298 = vmatprep.subr.bf16.mxu1 %v11316_v38 }
  0xf1   :  { %2296 = vmatmul.mubr.bf16.gmra.mrb[88].mxu1 %v9987_v52  ;;  %v105_v52 = vld [vmem:[%s16298_s0 + $0x1f8] sm:$0xff] }
  0xf2   :  { %2303 = vmatprep.mubr.bf16.mxu1 %v1949_v25  ;;  %3299 = vmatpush1.bf16.msra.mxu1 %v9878_v5 }
  0xf3   :  { %3300 = vmatprep.subr.bf16.mxu1 %v11316_v38 }
  0xf4   :  { %1478 = vmatmul.mubr.bf16.gmra.mrb[80].mxu0 %v11200_v56  ;;  %v847_v56 = vld [vmem:[#allocation2 + $0x190] sm:$0xff] }
  0xf5   :  { %1485 = vmatprep.mubr.bf16.mxu0 %v9988_v61  ;;  %v11467_v61 = vpack.c.bf16 %v105_v52, %v104_v58  ;;  %v4605_v58 = vld [vmem:[#allocation2 + $0x30] sm:$0x1] }
  0xf7   :  { %v234_v5 = vsel %vm138_vm0, %v11467_v61, 0 }
  0xf8   :  { %281 = vst [vmem:[#allocation2 + $0x338] sm:$0xff] %v234_v5 }
  0xf9   :  { %2304 = vmatmul.mubr.bf16.gmra.mrb[92].mxu1 %v9989_v35  ;;  %v378_v35 = vld [vmem:[#allocation2 + $0x330] sm:$0x1] }
  0xfa   :  { %2311 = vmatprep.mubr.bf16.mxu1 %v1952_v17  ;;  %v10001_v17 = vld [vmem:[#allocation2 + $0x2d8] sm:$0xff] }
  0xfc   :  { %1486 = vmatmul.mubr.bf16.gmra.mrb[84].mxu0 %v11207_v55  ;;  %v848_v55 = vsel %vm10230_vm3, %v11285_v18, %v847_v56  ;;  %v9879_v18 = vld [vmem:[%s16299_s1 + $0x1e8] sm:$0xff]  }
  0xfd   :  { %1493 = vmatprep.mubr.bf16.mxu0 %v9990_v29  ;;  %849 = vst [vmem:[#allocation2 + $0x190] sm:$0xff] %v848_v55  ;;  %3301 = vmatpush1.bf16.msra.mxu1 %v9879_v18  ;;  %v10002_v29 = vld [vmem:[#allocation2 + $0x168] sm:$0xff] }
  0xfe   :  { %3302 = vmatprep.subr.bf16.mxu1 %v11316_v38 }
 0x101   :  { %2312 = vmatmul.mubr.bf16.gmra.mrb[96].mxu1 %v9991_v59  ;;  %v9881_v59 = vld [vmem:[%s16299_s1 + $0x1f8] sm:$0xff]  }
 0x102   :  { %2319 = vmatprep.mubr.bf16.mxu1 %v1955_v2  ;;  %v379_v2 = vsel %vm10361_vm9, 0, %v378_v35 }
 0x103   :  { %380 = vst [vmem:[#allocation2 + $0x330] sm:$0x1] %v379_v2  ;;  %v11525_v2 = vld [vmem:[#allocation2 + $0x30] sm:$0xff] }
 0x104   :  { %1494 = vmatmul.mubr.bf16.gmra.mrb[88].mxu0 %v11214_v3  ;;  %v946_v46 = vld [vmem:[#allocation2 + $0x190] sm:$0x80] }
 0x105   :  { %1501 = vmatprep.mubr.bf16.mxu0 %v9992_v14  ;;  %v947_v3 = vsel %vm10307_vm6, 0, %v946_v46 }
 0x106   :  { %948 = vst [vmem:[#allocation2 + $0x190] sm:$0x80] %v947_v3  ;;  %v570_v3 = vshll.u32 %v234_v5, 16 }
 0x109   :  { %2320 = vmatmul.mubr.bf16.gmra.mrb[100].mxu1 %v9993_v44  ;;  %v9349_v33 = vpop.f32.mrb[0].mxu1 }
 0x10a   :  { %2327 = vmatprep.mubr.bf16.mxu1 %v1958_v48  ;;  %v567_v48 = vshrl.u32 %v234_v5, 16 }
 0x10c   :  { %1502 = vmatmul.mubr.bf16.gmra.mrb[92].mxu0 %v11222_v8  ;;  %v1608_v8 = vpop.f32.mrb[1].mxu1 }
 0x10d   :  { %1509 = vmatprep.mubr.bf16.mxu0 %v9994_v6  ;;  %v11422_v19 = vpop.f32.mrb[2].mxu1  ;;  %v569_v6 = vrot.slane %v567_v48, 7 }
 0x10e   :  { %v1611_v31 = vpop.f32.mrb[3].mxu1 }
 0x111   :  { %2328 = vmatmul.mubr.bf16.gmra.mrb[104].mxu1 %v9995_v50 }
 0x112   :  { %2335 = vmatprep.mubr.bf16.mxu1 %v1961_v11  ;;  %v11425_v16 = vpop.f32.mrb[4].mxu1 }
 0x113   :  { %v11427_v15 = vpop.f32.mrb[5].mxu1 }
 0x114   :  { %1510 = vmatmul.mubr.bf16.gmra.mrb[96].mxu0 %v11232_v28  ;;  %v11429_v40 = vpop.f32.mrb[6].mxu1  ;;  %v9880_v28 = vld [vmem:[%s16299_s1 + $0x1f0] sm:$0xff]  }
 0x115   :  { %1517 = vmatprep.mubr.bf16.mxu0 %v9996_v37  ;;  %v11432_v0 = vpop.f32.mrb[7].mxu1  ;;  %3303 = vmatpush1.bf16.msra.mxu1 %v9880_v28 }
 0x116   :  { %3304 = vmatprep.subr.bf16.mxu1 %v11316_v38 }
 0x119   :  { %2336 = vmatmul.mubr.bf16.gmra.mrb[108].mxu1 %v9997_v41 }
 0x11a   :  { %2343 = vmatprep.mubr.bf16.mxu1 %v1964_v1  ;;  %v11438_v22 = vpop.f32.mrb[8].mxu1  ;;  %3305 = vmatpush1.bf16.msra.mxu1 %v9881_v59  ;;  %v701_v1 = vld [vmem:[#allocation2 + $0x330] sm:$0xff] }
 0x11b   :  { %v11441_v53 = vpop.f32.mrb[9].mxu1 }
 0x11c   :  { %1518 = vmatmul.mubr.bf16.gmra.mrb[100].mxu0 %v11246_v10  ;;  %v11443_v10 = vpop.f32.mrb[10].mxu1 }
 0x11d   :  { %1525 = vmatprep.mubr.bf16.mxu0 %v9998_v4  ;;  %v11446_v45 = vpop.f32.mrb[11].mxu1 }
 0x121   :  { %2344 = vmatmul.mubr.bf16.gmra.mrb[112].mxu1 %v11129_v47  ;;  %v9999_v47 = vld [vmem:[#allocation2 + $0x2c0] sm:$0xff] }
 0x122   :  { %2351 = vmatprep.mubr.bf16.mxu1 %v1967_v12 }
 0x124   :  { %1526 = vmatmul.mubr.bf16.gmra.mrb[104].mxu0 %v11262_v23 }
 0x125   :  { %1533 = vmatprep.mubr.bf16.mxu0 %v9999_v47 }
 0x127   :  { %v1319_v34 = vpop.f32.mrb[0].mxu0  ;;  %v11450_v43 = vpop.f32.mrb[12].mxu1 }
 0x128   :  { %v11448_v49 = vadd.f32 %v1608_v8, %v1319_v34  ;;  %v1321_v32 = vpop.f32.mrb[1].mxu0  ;;  %v11454_v25 = vpop.f32.mrb[13].mxu1  ;;  %v1976_v8 = vld [vmem:[#allocation2 + $0x1d0] sm:$0xff] }
 0x129   :  { %2352 = vmatmul.mubr.bf16.gmra.mrb[116].mxu1 %v10000_v63  ;;  %v1322_v30 = vpop.f32.mrb[2].mxu0  ;;  %v11456_v23 = vpop.f32.mrb[14].mxu1  ;;  %v1979_v32 = vld [vmem:[#allocation2 + $0x1e8] sm:$0xff] }
 0x12a   :  { %2359 = vmatprep.mubr.bf16.mxu1 %v1970_v9  ;;  %16557 = vst [vmem:[#allocation13_spill] sm:$0xff] %v11448_v49  ;;  %v11452_v13 = vadd.f32 %v1611_v31, %v1322_v30  ;;  %v1324_v26 = vpop.f32.mrb[3].mxu0  ;;  %v11465_v39 = vpop.f32.mrb[15].mxu1  ;;  %v10003_v31 = vld [vmem:[#allocation2 + $0x2f0] sm:$0xff] }
 0x12c   :  { %16558 = vst [vmem:[#allocation14_spill] sm:$0xff] %v11452_v13  ;;  %1534 = vmatmul.mubr.bf16.gmra.mrb[108].mxu0 %v11280_v51  ;;  %v11696_v13 = vld [vmem:[#allocation2 + $0x118] sm:$0xff] }
 0x12d   :  { %1541 = vmatprep.mubr.bf16.mxu0 %v10001_v17 }
 0x12f   :  { %v1327_v51 = vpop.f32.mrb[4].mxu0  ;;  %v11480_v44 = vpop.f32.mrb[16].mxu1 }
 0x130   :  { %v11478_v56 = vadd.f32 %v9349_v33, %v1327_v51  ;;  %v1329_v55 = vpop.f32.mrb[5].mxu0  ;;  %v11485_v50 = vpop.f32.mrb[17].mxu1 }
 0x131   :  { %2360 = vmatmul.mubr.bf16.gmra.mrb[120].mxu1 %v10002_v29  ;;  %v1330_v14 = vpop.f32.mrb[6].mxu0  ;;  %v11487_v18 = vpop.f32.mrb[18].mxu1  ;;  %v4606_v29 = vsel %vm10361_vm9, 0, %v4605_v58  ;;  %v895_v55 = vld [vmem:[#allocation2 + $0x340] sm:$0xff]  ;;  %v1985_v58 = vld [vmem:[#allocation2 + $0x218] sm:$0xff] }
 0x132   :  { %10037 = vmatprep.mubr.msk.bf16.mxu1 %vm138_vm0, %v11264_v20  ;;  %16559 = vst [vmem:[#allocation15_spill] sm:$0xff] %v11478_v56  ;;  %v11483_v46 = vadd.f32 %v11422_v19, %v1330_v14  ;;  %v1332_v11 = vpop.f32.mrb[7].mxu0  ;;  %v572_v20 = vor.u32 %v570_v3, %v569_v6  ;;  %v11490_v33 = vpop.f32.mrb[19].mxu1  ;;  %4607 = vst [vmem:[#allocation2 + $0x30] sm:$0x1] %v4606_v29  ;;  %v1982_v6 = vld [vmem:[#allocation2 + $0x200] sm:$0xff] }
 0x134   :  { %16560 = vst [vmem:[#allocation16_spill] sm:$0xff] %v11483_v46  ;;  %1542 = vmatmul.mubr.bf16.gmra.mrb[112].mxu0 %v11305_v54  ;;  %v11495_v37 = vsel %vm10455_vm11, %v572_v20, %v701_v1  ;;  %v10006_v20 = vld [vmem:[#allocation2 + $0x1e0] sm:$0xff]  ;;  %v11714_v46 = vld [vmem:[#allocation2 + $0x130] sm:$0xff] }
 0x135   :  { %1549 = vmatprep.mubr.bf16.mxu0 %v10003_v31  ;;  %16561 = vst [vmem:[#allocation17_spill] sm:$0xff] %v11495_v37  ;;  %703 = vst [vmem:[#allocation2 + $0x330] sm:$0xff] %v11495_v37 }
 0x137   :  { %v1335_v19 = vpop.f32.mrb[8].mxu0 }
 0x138   :  { %v11498_v41 = vadd.f32 %v11427_v15, %v1335_v19  ;;  %v1337_v12 = vpop.f32.mrb[9].mxu0  ;;  %v11501_v4 = vpop.f32.mrb[20].mxu1  ;;  %v766_v15 = vrot.slane %v570_v3, 1  ;;  %v10005_v3 = vld [vmem:[#allocation2 + $0x320] sm:$0xff]  ;;  %v11546_v19 = vld [vmem:[#allocation2 + $0x48] sm:$0xff] }
 0x139   :  { %2368 = vmatmul.mubr.bf16.gmra.mrb[124].mxu1 %v11289_v62  ;;  %v1338_v54 = vpop.f32.mrb[10].mxu0  ;;  %v11509_v62 = vld [vmem:[%s16299_s1 + $0x200] sm:$0xff]   ;;  %v11511_v47 = vpop.f32.mrb[21].mxu1 }
 0x13a   :  { %2375 = vmatprep.mubr.bf16.mxu1 %v1976_v8  ;;  %16562 = vst [vmem:[#allocation18_spill] sm:$0xff] %v11498_v41  ;;  %v11504_v28 = vadd.f32 %v11432_v0, %v1338_v54  ;;  %v1340_v9 = vpop.f32.mrb[11].mxu0  ;;  %v11513_v63 = vpop.f32.mrb[22].mxu1  ;;  %9491 = vmatprep.subr.bf16.mxu0 %v11509_v62  ;;  %v10004_v0 = vld [vmem:[#allocation2 + $0x308] sm:$0xff]  ;;  %v767_v35 = vor.u32 %v766_v15, %v567_v48 }
 0x13b   :  { %v11517_v34 = vpop.f32.mrb[23].mxu1  ;;  %v4608_v8 = vld [vmem:[#allocation2 + $0x48] sm:$0x1] }
 0x13c   :  { %16563 = vst [vmem:[#allocation19_spill] sm:$0xff] %v11504_v28  ;;  %1550 = vmatmul.mubr.bf16.gmra.mrb[116].mxu0 %v11332_v7  ;;  %v4695_v26 = vld [vmem:[#allocation2 + $0x330] sm:$0x1]  ;;  %v896_v14 = vsel %vm10230_vm3, %v767_v35, %v895_v55  ;;  %v10007_v35 = vld [vmem:[#allocation2 + $0x1f8] sm:$0xff]  ;;  %v11669_v28 = vld [vmem:[#allocation2 + $0xe8] sm:$0xff] }
 0x13d   :  { %1557 = vmatprep.mubr.bf16.mxu0 %v10004_v0  ;;  %v4696_v7 = vsel %vm10361_vm9, 0, %v4695_v26  ;;  %897 = vst [vmem:[#allocation2 + $0x340] sm:$0xff] %v896_v14  ;;  %v11571_v14 = vld [vmem:[#allocation2 + $0x40] sm:$0xff] }
 0x13e   :  { %4697 = vst [vmem:[#allocation2 + $0x330] sm:$0x1] %v4696_v7  ;;  %v4611_v7 = vld [vmem:[#allocation2 + $0x60] sm:$0x1] }
 0x13f   :  { %v1343_v30 = vpop.f32.mrb[12].mxu0 }
 0x140   :  { %v11521_v52 = vadd.f32 %v11425_v16, %v1343_v30  ;;  %v1345_v17 = vpop.f32.mrb[13].mxu0 }
 0x141   :  { %2376 = vmatmul.mubr.bf16.gmra.mrb[128].mxu1 %v11166_v42  ;;  %v1346_v51 = vpop.f32.mrb[14].mxu0  ;;  %v11529_v42 = vpop.f32.mrb[24].mxu1 }
 0x142   :  { %2383 = vmatprep.mubr.bf16.mxu1 %v1979_v32  ;;  %16564 = vst [vmem:[#allocation20_spill] sm:$0xff] %v11521_v52  ;;  %v11532_v59 = vadd.f32 %v11429_v40, %v1346_v51  ;;  %v1348_v16 = vpop.f32.mrb[15].mxu0  ;;  %v11534_v5 = vpop.f32.mrb[25].mxu1  ;;  %v1929_v32 = vld [vmem:[#allocation2 + $0x28] sm:$0xff]  ;;  %v11689_v52 = vld [vmem:[#allocation2 + $0x100] sm:$0xff] }
 0x143   :  { %v11536_v48 = vpop.f32.mrb[26].mxu1  ;;  %v11567_v16 = vld [vmem:[#allocation2 + $0x60] sm:$0xff] }
 0x144   :  { %16565 = vst [vmem:[#allocation21_spill] sm:$0xff] %v11532_v59  ;;  %1558 = vmatmul.mubr.bf16.gmra.mrb[120].mxu0 %v11351_v24  ;;  %v11541_v11 = vpop.f32.mrb[27].mxu1  ;;  %v4609_v24 = vsel %vm10361_vm9, 0, %v4608_v8 }
 0x145   :  { %1565 = vmatprep.mubr.bf16.mxu0 %v10005_v3  ;;  %4610 = vst [vmem:[#allocation2 + $0x48] sm:$0x1] %v4609_v24 }
 0x147   :  { %v1351_v40 = vpop.f32.mrb[16].mxu0 }
 0x148   :  { %v11544_v31 = vadd.f32 %v11441_v53, %v1351_v40  ;;  %v1353_v1 = vpop.f32.mrb[17].mxu0  ;;  %v11550_v54 = vpop.f32.mrb[28].mxu1  ;;  %v994_v53 = vld [vmem:[#allocation2 + $0x340] sm:$0x80]  ;;  %v11578_v40 = vld [vmem:[#allocation2 + $0x58] sm:$0xff] }
 0x149   :  { %2384 = vmatmul.mubr.bf16.gmra.mrb[132].mxu1 %v10006_v20  ;;  %v1354_v12 = vpop.f32.mrb[18].mxu0  ;;  %v11555_v0 = vpop.f32.mrb[29].mxu1  ;;  %v995_v17 = vsel %vm10307_vm6, 0, %v994_v53  ;;  %v4614_v53 = vld [vmem:[#allocation2 + $0x78] sm:$0x1] }
 0x14a   :  { %2391 = vmatprep.mubr.bf16.mxu1 %v1982_v6  ;;  %16566 = vst [vmem:[#allocation22_spill] sm:$0xff] %v11544_v31  ;;  %v11553_v9 = vadd.f32 %v11446_v45, %v1354_v12  ;;  %v1356_v15 = vpop.f32.mrb[19].mxu0  ;;  %v11557_v30 = vpop.f32.mrb[30].mxu1  ;;  %996 = vst [vmem:[#allocation2 + $0x340] sm:$0x80] %v995_v17  ;;  %v1988_v12 = vld [vmem:[#allocation2 + $0x230] sm:$0xff] }
 0x14b   :  { %v11560_v26 = vpop.f32.mrb[31].mxu1  ;;  %v10008_v15 = vld [vmem:[#allocation2 + $0x210] sm:$0xff] }
 0x14c   :  { %16567 = vst [vmem:[#allocation23_spill] sm:$0xff] %v11553_v9  ;;  %1566 = vmatmul.mubr.bf16.gmra.mrb[124].mxu0 %v11375_v57  ;;  %v4612_v57 = vsel %vm10361_vm9, 0, %v4611_v7  ;;  %v11602_v7 = vld [vmem:[#allocation2 + $0x70] sm:$0xff]  ;;  %v11658_v9 = vld [vmem:[#allocation2 + $0xa8] sm:$0xff] }
 0x14d   :  { %9427 = vmatprep.mubr.bf16.mxu0 %v1929_v32  ;;  %4613 = vst [vmem:[#allocation2 + $0x60] sm:$0x1] %v4612_v57  ;;  %v11662_v31 = vld [vmem:[#allocation2 + $0xd0] sm:$0xff] }
 0x14f   :  { %v1359_v45 = vpop.f32.mrb[20].mxu0 }
 0x150   :  { %v11565_v29 = vadd.f32 %v11438_v22, %v1359_v45  ;;  %v1361_v51 = vpop.f32.mrb[21].mxu0  ;;  %v9883_v22 = vld [vmem:[%s16299_s1 + $0x208] sm:$0xff]   ;;  %v4615_v45 = vsel %vm10361_vm9, 0, %v4614_v53 }
 0x151   :  { %2392 = vmatmul.mubr.bf16.gmra.mrb[136].mxu1 %v10007_v35  ;;  %v1362_v55 = vpop.f32.mrb[22].mxu0  ;;  %v11598_v35 = vld [vmem:[#allocation2 + $0x78] sm:$0xff]  ;;  %v10009_v53 = vld [vmem:[#allocation2 + $0x228] sm:$0xff] }
 0x152   :  { %2399 = vmatprep.mubr.bf16.mxu1 %v1985_v58  ;;  %16568 = vst [vmem:[#allocation24_spill] sm:$0xff] %v11565_v29  ;;  %v11573_v6 = vpop.f32.mrb[32].mxu1  ;;  %v11576_v3 = vadd.f32 %v11443_v10, %v1362_v55  ;;  %v1364_v20 = vpop.f32.mrb[23].mxu0  ;;  %v9884_v10 = vld [vmem:[%s16299_s1 + $0x210] sm:$0xff]   ;;  %4616 = vst [vmem:[#allocation2 + $0x78] sm:$0x1] %v4615_v45 }
 0x153   :  { %v11583_v8 = vpop.f32.mrb[33].mxu1  ;;  %v11609_v20 = vld [vmem:[#allocation2 + $0x88] sm:$0xff]  ;;  %v4617_v45 = vld [vmem:[#allocation2 + $0x90] sm:$0x1] }
 0x154   :  { %16569 = vst [vmem:[#allocation25_spill] sm:$0xff] %v11576_v3  ;;  %v11585_v1 = vpop.f32.mrb[34].mxu1  ;;  %9428 = vmatmul.mubr.bf16.vlgmr.msra.gmra.mrb[128].mxu0 %v11571_v14  ;;  %v4618_v27 = vsel %vm10361_vm9, 0, %v4617_v45 }
 0x155   :  { %v11588_v24 = vpop.f32.mrb[35].mxu1  ;;  %9431 = vmatprep.mubr.bf16.mxu0 %v11578_v40  ;;  %9492 = vmatpush3.bf16.msra.mxu0 %v11509_v62  ;;  %4619 = vst [vmem:[#allocation2 + $0x90] sm:$0x1] %v4618_v27 }
 0x156   :  { %9493 = vmatprep.subr.bf16.mxu0 %v9883_v22 }
 0x157   :  { %v1367_v32 = vpop.f32.mrb[24].mxu0 }
 0x158   :  { %v11596_v58 = vadd.f32 %v11454_v25, %v1367_v32  ;;  %v1369_v17 = vpop.f32.mrb[25].mxu0  ;;  %v9885_v25 = vld [vmem:[%s16299_s1 + $0x218] sm:$0xff]   ;;  %v1991_v32 = vld [vmem:[#allocation2 + $0x248] sm:$0xff] }
 0x159   :  { %2400 = vmatmul.mubr.bf16.gmra.mrb[140].mxu1 %v10008_v15  ;;  %v1370_v62 = vpop.f32.mrb[26].mxu0  ;;  %9494 = vmatpush3.bf16.msra.mxu0 %v9883_v22 }
 0x15a   :  { %2407 = vmatprep.mubr.bf16.mxu1 %v1988_v12  ;;  %16570 = vst [vmem:[#allocation26_spill] sm:$0xff] %v11596_v58  ;;  %v11607_v57 = vadd.f32 %v11465_v39, %v1370_v62  ;;  %v1372_v55 = vpop.f32.mrb[27].mxu0  ;;  %9495 = vmatprep.subr.bf16.mxu0 %v9884_v10  ;;  %v9886_v39 = vld [vmem:[%s16299_s1 + $0x220] sm:$0xff]   ;;  %v11639_v58 = vld [vmem:[#allocation2 + $0xb8] sm:$0xff] }
 0x15c   :  { %v11604_v51 = vpop.f32.mrb[36].mxu1  ;;  %16571 = vst [vmem:[#allocation27_spill] sm:$0xff] %v11607_v57  ;;  %9432 = vmatmul.mubr.bf16.gmra.mrb[132].mxu0 %v11602_v7 }
 0x15d   :  { %v11614_v12 = vpop.f32.mrb[37].mxu1  ;;  %9435 = vmatprep.mubr.bf16.mxu0 %v11609_v20  ;;  %9496 = vmatpush3.bf16.msra.mxu0 %v9884_v10 }
 0x15e   :  { %v11616_v15 = vpop.f32.mrb[38].mxu1  ;;  %9497 = vmatprep.subr.bf16.mxu0 %v9885_v25 }
 0x15f   :  { %v11619_v22 = vpop.f32.mrb[39].mxu1  ;;  %v1375_v17 = vpop.f32.mrb[28].mxu0 }
 0x160   :  { %v11626_v62 = vadd.f32 %v11450_v43, %v1375_v17  ;;  %v1377_v55 = vpop.f32.mrb[29].mxu0  ;;  %v9887_v43 = vld [vmem:[%s16299_s1 + $0x228] sm:$0xff]  }
 0x161   :  { %2408 = vmatmul.mubr.bf16.gmra.mrb[144].mxu1 %v10009_v53  ;;  %v1378_v10 = vpop.f32.mrb[30].mxu0  ;;  %9498 = vmatpush3.bf16.msra.mxu0 %v9885_v25  ;;  %v1994_v25 = vld [vmem:[#allocation2 + $0x260] sm:$0xff] }
 0x162   :  { %2415 = vmatprep.mubr.bf16.mxu1 %v1991_v32  ;;  %16572 = vst [vmem:[#allocation28_spill] sm:$0xff] %v11626_v62  ;;  %v11637_v53 = vadd.f32 %v11456_v23, %v1378_v10  ;;  %v1380_v32 = vpop.f32.mrb[31].mxu0  ;;  %9499 = vmatprep.subr.bf16.mxu0 %v9886_v39  ;;  %v9888_v23 = vld [vmem:[%s16299_s1 + $0x230] sm:$0xff]   ;;  %v10010_v55 = vld [vmem:[#allocation2 + $0x240] sm:$0xff] }
 0x163   :  { %v4620_v32 = vld [vmem:[#allocation2 + $0xa8] sm:$0x1] }
 0x164   :  { %v11634_v57 = vpop.f32.mrb[40].mxu1  ;;  %16573 = vst [vmem:[#allocation29_spill] sm:$0xff] %v11637_v53  ;;  %9436 = vmatmul.mubr.bf16.gmra.mrb[136].mxu0 %v11632_v21  ;;  %v4621_v3 = vsel %vm10361_vm9, 0, %v4620_v32 }
 0x165   :  { %v11644_v17 = vpop.f32.mrb[41].mxu1  ;;  %9439 = vmatprep.mubr.bf16.mxu0 %v11639_v58  ;;  %9500 = vmatpush3.bf16.msra.mxu0 %v9886_v39  ;;  %4622 = vst [vmem:[#allocation2 + $0xa8] sm:$0x1] %v4621_v3 }
 0x166   :  { %v11646_v45 = vpop.f32.mrb[42].mxu1  ;;  %9501 = vmatprep.subr.bf16.mxu0 %v9887_v43 }
 0x167   :  { %v11649_v27 = vpop.f32.mrb[43].mxu1  ;;  %v1383_v10 = vpop.f32.mrb[32].mxu0 }
 0x168   :  { %v11656_v53 = vadd.f32 %v11485_v50, %v1383_v10  ;;  %v1385_v62 = vpop.f32.mrb[33].mxu0  ;;  %v9889_v50 = vld [vmem:[%s16299_s1 + $0x238] sm:$0xff]  }
 0x169   :  { %2416 = vmatmul.mubr.bf16.gmra.mrb[148].mxu1 %v10010_v55  ;;  %v1386_v39 = vpop.f32.mrb[34].mxu0  ;;  %9502 = vmatpush3.bf16.msra.mxu0 %v9887_v43  ;;  %v1997_v43 = vld [vmem:[#allocation2 + $0x278] sm:$0xff] }
 0x16a   :  { %2423 = vmatprep.mubr.bf16.mxu1 %v1994_v25  ;;  %16574 = vst [vmem:[#allocation30_spill] sm:$0xff] %v11656_v53  ;;  %v11667_v55 = vadd.f32 %v11490_v33, %v1386_v39  ;;  %v1388_v25 = vpop.f32.mrb[35].mxu0  ;;  %9503 = vmatprep.subr.bf16.mxu0 %v9888_v23  ;;  %v10011_v33 = vld [vmem:[#allocation2 + $0x258] sm:$0xff]  ;;  %v4623_v39 = vld [vmem:[#allocation2 + $0xc0] sm:$0x1] }
 0x16b   :  { %v11685_v53 = vld [vmem:[#allocation2 + $0xc0] sm:$0xff]  ;;  %v4624_v59 = vsel %vm10361_vm9, 0, %v4623_v39 }
 0x16c   :  { %v11664_v29 = vpop.f32.mrb[44].mxu1  ;;  %16575 = vst [vmem:[#allocation31_spill] sm:$0xff] %v11667_v55  ;;  %9440 = vmatmul.mubr.bf16.gmra.mrb[140].mxu0 %v11662_v31  ;;  %4625 = vst [vmem:[#allocation2 + $0xc0] sm:$0x1] %v4624_v59  ;;  %v10012_v59 = vld [vmem:[#allocation2 + $0x270] sm:$0xff] }
 0x16d   :  { %v11674_v62 = vpop.f32.mrb[45].mxu1  ;;  %9443 = vmatprep.mubr.bf16.mxu0 %v11669_v28  ;;  %9504 = vmatpush3.bf16.msra.mxu0 %v9888_v23 }
 0x16e   :  { %v11676_v10 = vpop.f32.mrb[46].mxu1  ;;  %9505 = vmatprep.subr.bf16.mxu0 %v9889_v50 }
 0x16f   :  { %v11679_v3 = vpop.f32.mrb[47].mxu1  ;;  %v1391_v32 = vpop.f32.mrb[36].mxu0 }
 0x170   :  { %v11683_v25 = vadd.f32 %v11480_v44, %v1391_v32  ;;  %v1393_v55 = vpop.f32.mrb[37].mxu0 }
 0x171   :  { %2424 = vmatmul.mubr.bf16.gmra.mrb[152].mxu1 %v10011_v33  ;;  %v1394_v41 = vpop.f32.mrb[38].mxu0  ;;  %9506 = vmatpush3.bf16.msra.mxu0 %v9889_v50  ;;  %v2000_v50 = vld [vmem:[#allocation2 + $0x290] sm:$0xff] }
 0x172   :  { %2431 = vmatprep.mubr.bf16.mxu1 %v1997_v43  ;;  %16576 = vst [vmem:[#allocation32_spill] sm:$0xff] %v11683_v25  ;;  %v11694_v33 = vadd.f32 %v11487_v18, %v1394_v41  ;;  %v1396_v43 = vpop.f32.mrb[39].mxu0  ;;  %5626 = vmatprep.subr.bf16.mxu0 %v11316_v38  ;;  %v4626_v41 = vld [vmem:[#allocation2 + $0xd8] sm:$0x1] }
 0x173   :  { %v11710_v43 = vld [vmem:[#allocation2 + $0xd8] sm:$0xff] }
 0x174   :  { %v11691_v23 = vpop.f32.mrb[48].mxu1  ;;  %16577 = vst [vmem:[#allocation33_spill] sm:$0xff] %v11694_v33  ;;  %9444 = vmatmul.mubr.bf16.gmra.mrb[144].mxu0 %v11689_v52  ;;  %v4627_v33 = vsel %vm10361_vm9, 0, %v4626_v41  ;;  %v2003_v41 = vld [vmem:[#allocation2 + $0x2a8] sm:$0xff] }
 0x175   :  { %v11699_v44 = vpop.f32.mrb[49].mxu1  ;;  %9447 = vmatprep.mubr.bf16.mxu0 %v11696_v13  ;;  %4628 = vst [vmem:[#allocation2 + $0xd8] sm:$0x1] %v4627_v33  ;;  %v10013_v33 = vld [vmem:[#allocation2 + $0x288] sm:$0xff] }
 0x176   :  { %v11701_v55 = vpop.f32.mrb[50].mxu1 }
 0x177   :  { %v11704_v32 = vpop.f32.mrb[51].mxu1  ;;  %v1399_v18 = vpop.f32.mrb[40].mxu0 }
 0x178   :  { %v11708_v39 = vadd.f32 %v11511_v47, %v1399_v18  ;;  %v1401_v38 = vpop.f32.mrb[41].mxu0 }
 0x179   :  { %2432 = vmatmul.mubr.bf16.gmra.mrb[156].mxu1 %v10012_v59  ;;  %v1402_v25 = vpop.f32.mrb[42].mxu0 }
 0x17a   :  { %2439 = vmatprep.mubr.bf16.mxu1 %v2000_v50  ;;  %16578 = vst [vmem:[#allocation34_spill] sm:$0xff] %v11708_v39  ;;  %v11719_v59 = vadd.f32 %v11517_v34, %v1402_v25  ;;  %v1404_v56 = vpop.f32.mrb[43].mxu0  ;;  %v11721_v50 = vld [vmem:[#allocation2 + $0x148] sm:$0xff]  ;;  %v11734_v25 = vld [vmem:[#allocation2 + $0xf0] sm:$0xff] }
 0x17b   :  { %16581 = vst [vmem:[#allocation37_spill] sm:$0xff] %v11721_v50  ;;  %16586 = vst [vmem:[#allocation42_spill] sm:$0xff] %v11734_v25 }
 0x17c   :  { %v11716_v49 = vpop.f32.mrb[52].mxu1  ;;  %16580 = vst [vmem:[#allocation36_spill] sm:$0xff] %v11719_v59  ;;  %9448 = vmatmul.mubr.bf16.gmra.mrb[148].mxu0 %v11714_v46 }
 0x17d   :  { %16579 = vst [vmem:[#allocation35_spill] sm:$0xff] %v11716_v49  ;;  %v11723_v47 = vpop.f32.mrb[53].mxu1  ;;  %9451 = vmatprep.mubr.bf16.mxu0 %v11721_v50  ;;  %v4629_v49 = vld [vmem:[#allocation2 + $0xf0] sm:$0x1] }
 0x17e   :  { %16582 = vst [vmem:[#allocation38_spill] sm:$0xff] %v11723_v47  ;;  %v11725_v18 = vpop.f32.mrb[54].mxu1  ;;  %v4630_v59 = vsel %vm10361_vm9, 0, %v4629_v49  ;;  %v11738_v47 = vld [vmem:[#allocation2 + $0x160] sm:$0xff] }
 0x17f   :  { %16583 = vst [vmem:[#allocation39_spill] sm:$0xff] %v11725_v18  ;;  %v11728_v38 = vpop.f32.mrb[55].mxu1  ;;  %v1407_v39 = vpop.f32.mrb[44].mxu0  ;;  %4631 = vst [vmem:[#allocation2 + $0xf0] sm:$0x1] %v4630_v59  ;;  %v2006_v49 = vld [vmem:[#allocation2 + $0x2c0] sm:$0xff] }
 0x180   :  { %16584 = vst [vmem:[#allocation40_spill] sm:$0xff] %v11728_v38  ;;  %v11732_v56 = vadd.f32 %v11501_v4, %v1407_v39  ;;  %v1409_v34 = vpop.f32.mrb[45].mxu0  ;;  %v10014_v59 = vld [vmem:[#allocation2 + $0x2a0] sm:$0xff] }
 0x181   :  { %2440 = vmatmul.mubr.bf16.gmra.mrb[160].mxu1 %v10013_v33  ;;  %v1410_v18 = vpop.f32.mrb[46].mxu0 }
 0x182   :  { %2447 = vmatprep.mubr.bf16.mxu1 %v2003_v41  ;;  %16585 = vst [vmem:[#allocation41_spill] sm:$0xff] %v11732_v56  ;;  %v11743_v33 = vadd.f32 %v11513_v63, %v1410_v18  ;;  %v1412_v50 = vpop.f32.mrb[47].mxu0  ;;  %v11745_v41 = vld [vmem:[#allocation2 + $0x178] sm:$0xff]  ;;  %v11758_v18 = vld [vmem:[#allocation2 + $0x108] sm:$0xff] }
 0x183   :  { %16589 = vst [vmem:[#allocation45_spill] sm:$0xff] %v11745_v41 }
 0x184   :  { %v11740_v38 = vpop.f32.mrb[56].mxu1  ;;  %16588 = vst [vmem:[#allocation44_spill] sm:$0xff] %v11743_v33  ;;  %9452 = vmatmul.mubr.bf16.gmra.mrb[152].mxu0 %v11738_v47 }
 0x185   :  { %16587 = vst [vmem:[#allocation43_spill] sm:$0xff] %v11740_v38  ;;  %v11747_v4 = vpop.f32.mrb[57].mxu1  ;;  %9455 = vmatprep.mubr.bf16.mxu0 %v11745_v41  ;;  %v4632_v38 = vld [vmem:[#allocation2 + $0x108] sm:$0x1] }
 0x186   :  { %16590 = vst [vmem:[#allocation46_spill] sm:$0xff] %v11747_v4  ;;  %v11749_v39 = vpop.f32.mrb[58].mxu1  ;;  %v4633_v33 = vsel %vm10361_vm9, 0, %v4632_v38  ;;  %v11762_v4 = vld [vmem:[#allocation2 + $0x190] sm:$0xff]  ;;  %v2009_v38 = vld [vmem:[#allocation2 + $0x2d8] sm:$0xff] }
 0x187   :  { %16591 = vst [vmem:[#allocation47_spill] sm:$0xff] %v11749_v39  ;;  %v11752_v34 = vpop.f32.mrb[59].mxu1  ;;  %v1415_v56 = vpop.f32.mrb[48].mxu0  ;;  %4634 = vst [vmem:[#allocation2 + $0x108] sm:$0x1] %v4633_v33 }
 0x188   :  { %16592 = vst [vmem:[#allocation48_spill] sm:$0xff] %v11752_v34  ;;  %v11756_v63 = vadd.f32 %v11534_v5, %v1415_v56  ;;  %v1417_v50 = vpop.f32.mrb[49].mxu0 }
 0x189   :  { %2448 = vmatmul.mubr.bf16.gmra.mrb[164].mxu1 %v10014_v59  ;;  %v1418_v39 = vpop.f32.mrb[50].mxu0  ;;  %v10015_v50 = vld [vmem:[#allocation2 + $0x2b8] sm:$0xff] }
 0x18a   :  { %2455 = vmatprep.mubr.bf16.mxu1 %v2006_v49  ;;  %16593 = vst [vmem:[#allocation49_spill] sm:$0xff] %v11756_v63  ;;  %v11767_v59 = vadd.f32 %v11541_v11, %v1418_v39  ;;  %v1420_v41 = vpop.f32.mrb[51].mxu0  ;;  %v1977_v49 = vld [vmem:[#allocation2 + $0x1d8] sm:$0xff]  ;;  %v4635_v63 = vld [vmem:[#allocation2 + $0x120] sm:$0x1] }
 0x18b   :  { %v11779_v39 = vld [vmem:[#allocation2 + $0x120] sm:$0xff] }
 0x18c   :  { %v11764_v34 = vpop.f32.mrb[60].mxu1  ;;  %16595 = vst [vmem:[#allocation51_spill] sm:$0xff] %v11767_v59  ;;  %9456 = vmatmul.mubr.bf16.gmra.mrb[156].mxu0 %v11762_v4  ;;  %v4636_v59 = vsel %vm10361_vm9, 0, %v4635_v63  ;;  %v10016_v63 = vld [vmem:[#allocation2 + $0x2d0] sm:$0xff] }
 0x18d   :  { %16594 = vst [vmem:[#allocation50_spill] sm:$0xff] %v11764_v34  ;;  %v11769_v25 = vpop.f32.mrb[61].mxu1  ;;  %9459 = vmatprep.mubr.bf16.mxu0 %v1977_v49  ;;  %v11783_v34 = vld [vmem:[#allocation2 + $0x1f0] sm:$0xff]  ;;  %4637 = vst [vmem:[#allocation2 + $0x120] sm:$0x1] %v4636_v59 }
 0x18e   :  { %16596 = vst [vmem:[#allocation52_spill] sm:$0xff] %v11769_v25  ;;  %v11771_v5 = vpop.f32.mrb[62].mxu1  ;;  %v4638_v25 = vld [vmem:[#allocation2 + $0x138] sm:$0x1] }
 0x18f   :  { %16597 = vst [vmem:[#allocation53_spill] sm:$0xff] %v11771_v5  ;;  %v11774_v56 = vpop.f32.mrb[63].mxu1  ;;  %v1423_v33 = vpop.f32.mrb[52].mxu0 }
 0x190   :  { %16598 = vst [vmem:[#allocation54_spill] sm:$0xff] %v11774_v56  ;;  %v11777_v11 = vadd.f32 %v11529_v42, %v1423_v33  ;;  %v1425_v41 = vpop.f32.mrb[53].mxu0 }
 0x191   :  { %2456 = vmatmul.mubr.bf16.gmra.mrb[168].mxu1 %v10015_v50  ;;  %v1426_v5 = vpop.f32.mrb[54].mxu0 }
 0x192   :  { %2463 = vmatprep.mubr.bf16.mxu1 %v2009_v38  ;;  %16599 = vst [vmem:[#allocation55_spill] sm:$0xff] %v11777_v11  ;;  %v11788_v49 = vadd.f32 %v11536_v48, %v1426_v5  ;;  %v1428_v50 = vpop.f32.mrb[55].mxu0  ;;  %v11790_v38 = vld [vmem:[#allocation2 + $0x208] sm:$0xff]  ;;  %v2012_v11 = vld [vmem:[#allocation2 + $0x2f0] sm:$0xff] }
 0x193   :  { %v11799_v50 = vld [vmem:[#allocation2 + $0x138] sm:$0xff] }
 0x194   :  { %v11785_v56 = vpop.f32.mrb[64].mxu1  ;;  %16601 = vst [vmem:[#allocation57_spill] sm:$0xff] %v11788_v49  ;;  %9460 = vmatmul.mubr.bf16.gmra.mrb[160].mxu0 %v11783_v34  ;;  %16604 = vst [vmem:[#allocation60_spill] sm:$0xff] %v11799_v50  ;;  %v4641_v50 = vld [vmem:[#allocation2 + $0x150] sm:$0x1] }
 0x195   :  { %16600 = vst [vmem:[#allocation56_spill] sm:$0xff] %v11785_v56  ;;  %v2251_v42 = vpop.f32.mrb[65].mxu1  ;;  %9463 = vmatprep.mubr.bf16.mxu0 %v11790_v38 }
 0x196   :  { %v11792_v33 = vpop.f32.mrb[66].mxu1  ;;  %v4639_v42 = vsel %vm10361_vm9, 0, %v4638_v25  ;;  %v10017_v25 = vld [vmem:[#allocation2 + $0x2e8] sm:$0xff] }
 0x197   :  { %16602 = vst [vmem:[#allocation58_spill] sm:$0xff] %v11792_v33  ;;  %v2254_v41 = vpop.f32.mrb[67].mxu1  ;;  %v1431_v59 = vpop.f32.mrb[56].mxu0  ;;  %v11803_v33 = vld [vmem:[#allocation2 + $0x220] sm:$0xff]  ;;  %4640 = vst [vmem:[#allocation2 + $0x138] sm:$0x1] %v4639_v42 }
 0x198   :  { %v11797_v48 = vadd.f32 %v11555_v0, %v1431_v59  ;;  %v1433_v5 = vpop.f32.mrb[57].mxu0  ;;  %16605 = vst [vmem:[#allocation61_spill] sm:$0xff] %v11803_v33 }
 0x199   :  { %2464 = vmatmul.mubr.bf16.gmra.mrb[172].mxu1 %v10016_v63  ;;  %v1434_v49 = vpop.f32.mrb[58].mxu0 }
 0x19a   :  { %2471 = vmatprep.mubr.bf16.mxu1 %v2012_v11  ;;  %16603 = vst [vmem:[#allocation59_spill] sm:$0xff] %v11797_v48  ;;  %v11808_v63 = vadd.f32 %v11560_v26, %v1434_v49  ;;  %v1436_v56 = vpop.f32.mrb[59].mxu0  ;;  %v11810_v11 = vld [vmem:[#allocation2 + $0x238] sm:$0xff]  ;;  %v2015_v48 = vld [vmem:[#allocation2 + $0x308] sm:$0xff]  ;;  %v11819_v49 = vld [vmem:[#allocation2 + $0x150] sm:$0xff] }
 0x19b   :  { %16608 = vst [vmem:[#allocation64_spill] sm:$0xff] %v11810_v11 }
 0x19c   :  { %v11805_v41 = vpop.f32.mrb[68].mxu1  ;;  %16607 = vst [vmem:[#allocation63_spill] sm:$0xff] %v11808_v63  ;;  %9464 = vmatmul.mubr.bf16.gmra.mrb[164].mxu0 %v11803_v33 }
 0x19d   :  { %16606 = vst [vmem:[#allocation62_spill] sm:$0xff] %v11805_v41  ;;  %v2259_v0 = vpop.f32.mrb[69].mxu1  ;;  %9467 = vmatprep.mubr.bf16.mxu0 %v11810_v11  ;;  %v1995_v11 = vld [vmem:[#allocation2 + $0x268] sm:$0xff] }
 0x19e   :  { %v11812_v59 = vpop.f32.mrb[70].mxu1  ;;  %v4642_v0 = vsel %vm10361_vm9, 0, %v4641_v50  ;;  %v16674_v36 = vld [vmem:[#allocation58_spill] sm:$0xff] }
 0x19f   :  { %16609 = vst [vmem:[#allocation65_spill] sm:$0xff] %v11812_v59  ;;  %v2262_v5 = vpop.f32.mrb[71].mxu1  ;;  %v1439_v42 = vpop.f32.mrb[60].mxu0  ;;  %v1992_v59 = vld [vmem:[#allocation2 + $0x250] sm:$0xff]  ;;  %4643 = vst [vmem:[#allocation2 + $0x150] sm:$0x1] %v4642_v0 }
 0x1a0   :  { %v11817_v26 = vadd.f32 %v11550_v54, %v1439_v42  ;;  %v1441_v56 = vpop.f32.mrb[61].mxu0  ;;  %v2018_v42 = vld [vmem:[#allocation2 + $0x320] sm:$0xff] }
 0x1a1   :  { %2472 = vmatmul.mubr.bf16.gmra.mrb[176].mxu1 %v10017_v25  ;;  %v1442_v63 = vpop.f32.mrb[62].mxu0  ;;  %v10018_v56 = vld [vmem:[#allocation2 + $0x300] sm:$0xff] }
 0x1a2   :  { %2479 = vmatprep.mubr.bf16.mxu1 %v2015_v48  ;;  %16610 = vst [vmem:[#allocation66_spill] sm:$0xff] %v11817_v26  ;;  %v11826_v41 = vadd.f32 %v11557_v30, %v1442_v63  ;;  %v1444_v25 = vpop.f32.mrb[63].mxu0  ;;  %v4644_v26 = vld [vmem:[#allocation2 + $0x168] sm:$0x1] }
 0x1a3   :  { %v11833_v30 = vld [vmem:[#allocation2 + $0x168] sm:$0xff]  ;;  %v4645_v63 = vsel %vm10361_vm9, 0, %v4644_v26  ;;  %v4647_v26 = vld [vmem:[#allocation2 + $0x180] sm:$0x1] }
 0x1a4   :  { %v11823_v5 = vpop.f32.mrb[72].mxu1  ;;  %16612 = vst [vmem:[#allocation68_spill] sm:$0xff] %v11826_v41  ;;  %9468 = vmatmul.mubr.bf16.gmra.mrb[168].mxu0 %v1992_v59  ;;  %4646 = vst [vmem:[#allocation2 + $0x168] sm:$0x1] %v4645_v63 }
 0x1a5   :  { %16611 = vst [vmem:[#allocation67_spill] sm:$0xff] %v11823_v5  ;;  %v2267_v48 = vpop.f32.mrb[73].mxu1  ;;  %9471 = vmatprep.mubr.bf16.mxu0 %v1995_v11 }
 0x1a6   :  { %v11828_v33 = vpop.f32.mrb[74].mxu1  ;;  %v1998_v48 = vld [vmem:[#allocation2 + $0x280] sm:$0xff] }
 0x1a7   :  { %v2270_v54 = vpop.f32.mrb[75].mxu1  ;;  %v1447_v50 = vpop.f32.mrb[64].mxu0 }
 0x1a8   :  { %v11831_v0 = vadd.f32 %v11583_v8, %v1447_v50  ;;  %v1449_v5 = vpop.f32.mrb[65].mxu0 }
 0x1a9   :  { %2480 = vmatmul.mubr.bf16.gmra.mrb[180].mxu1 %v10018_v56  ;;  %v1450_v25 = vpop.f32.mrb[66].mxu0  ;;  %v2001_v56 = vld [vmem:[#allocation2 + $0x298] sm:$0xff] }
 0x1aa   :  { %2487 = vmatprep.mubr.bf16.mxu1 %v2018_v42  ;;  %16613 = vst [vmem:[#allocation69_spill] sm:$0xff] %v11831_v0  ;;  %v11840_v11 = vadd.f32 %v11588_v24, %v1450_v25  ;;  %v1452_v54 = vpop.f32.mrb[67].mxu0  ;;  %v10019_v5 = vld [vmem:[#allocation2 + $0x318] sm:$0xff]  ;;  %v11849_v25 = vld [vmem:[#allocation2 + $0x180] sm:$0xff] }
 0x1ab   :  { %v4648_v54 = vsel %vm10361_vm9, 0, %v4647_v26 }
 0x1ac   :  { %v11837_v59 = vpop.f32.mrb[76].mxu1  ;;  %16614 = vst [vmem:[#allocation70_spill] sm:$0xff] %v11840_v11  ;;  %9472 = vmatmul.mubr.bf16.gmra.mrb[172].mxu0 %v1998_v48  ;;  %v2004_v48 = vld [vmem:[#allocation2 + $0x2b0] sm:$0xff]  ;;  %4649 = vst [vmem:[#allocation2 + $0x180] sm:$0x1] %v4648_v54  ;;  %v2007_v11 = vld [vmem:[#allocation2 + $0x2c8] sm:$0xff] }
 0x1ad   :  { %v2275_v42 = vpop.f32.mrb[77].mxu1  ;;  %9475 = vmatprep.mubr.bf16.mxu0 %v2001_v56 }
 0x1ae   :  { %v11842_v41 = vpop.f32.mrb[78].mxu1 }
 0x1af   :  { %v2278_v8 = vpop.f32.mrb[79].mxu1  ;;  %v1455_v50 = vpop.f32.mrb[68].mxu0 }
 0x1b0   :  { %v11847_v63 = vadd.f32 %v11573_v6, %v1455_v50  ;;  %v1457_v24 = vpop.f32.mrb[69].mxu0  ;;  %v2987_v50 = vld [vmem:[#allocation2 + $0x38] sm:$0xff] }
 0x1b1   :  { %2488 = vmatmul.mubr.bf16.gmra.mrb[184].mxu1 %v10019_v5  ;;  %v1458_v42 = vpop.f32.mrb[70].mxu0 }
 0x1b2   :  { %10038 = vmatprep.mubr.msk.bf16.mxu1 %vm138_vm0, %v11467_v61  ;;  %16615 = vst [vmem:[#allocation71_spill] sm:$0xff] %v11847_v63  ;;  %v11856_v8 = vadd.f32 %v11585_v1, %v1458_v42  ;;  %v1460_v5 = vpop.f32.mrb[71].mxu0  ;;  %v2010_v1 = vld [vmem:[#allocation2 + $0x2e0] sm:$0xff] }
 0x1b4   :  { %v11853_v56 = vpop.f32.mrb[80].mxu1  ;;  %16616 = vst [vmem:[#allocation72_spill] sm:$0xff] %v11856_v8  ;;  %9476 = vmatmul.mubr.bf16.gmra.mrb[176].mxu0 %v2004_v48  ;;  %v2013_v48 = vld [vmem:[#allocation2 + $0x2f8] sm:$0xff] }
 0x1b5   :  { %v2283_v61 = vpop.f32.mrb[81].mxu1  ;;  %9479 = vmatprep.mubr.bf16.mxu0 %v2007_v11 }
 0x1b6   :  { %v11858_v0 = vpop.f32.mrb[82].mxu1 }
 0x1b7   :  { %v2286_v6 = vpop.f32.mrb[83].mxu1  ;;  %v1463_v26 = vpop.f32.mrb[72].mxu0 }
 0x1b8   :  { %v11862_v24 = vadd.f32 %v11614_v12, %v1463_v26  ;;  %v1465_v54 = vpop.f32.mrb[73].mxu0 }
 0x1b9   :  { %2496 = vmatmul.mubr.bf16.gmra.mrb[188].mxu1 %v11495_v37  ;;  %v1466_v63 = vpop.f32.mrb[74].mxu0  ;;  %v2990_v37 = vld [vmem:[#allocation2 + $0x50] sm:$0xff] }
 0x1ba   :  { %3306 = vmatprep.mubr.bf16.mxu1 %v2987_v50  ;;  %16617 = vst [vmem:[#allocation73_spill] sm:$0xff] %v11862_v24  ;;  %v11867_v5 = vadd.f32 %v11619_v22, %v1466_v63  ;;  %v1468_v61 = vpop.f32.mrb[75].mxu0  ;;  %v4653_v50 = vld [vmem:[#allocation2 + $0x1e0] sm:$0x1] }
 0x1bb   :  { %v11875_v22 = vld [vmem:[#allocation2 + $0x1e0] sm:$0xff]  ;;  %v4654_v63 = vsel %vm10361_vm9, 0, %v4653_v50 }
 0x1bc   :  { %v11864_v42 = vpop.f32.mrb[84].mxu1  ;;  %16618 = vst [vmem:[#allocation74_spill] sm:$0xff] %v11867_v5  ;;  %9480 = vmatmul.mubr.bf16.gmra.mrb[180].mxu0 %v2010_v1  ;;  %4655 = vst [vmem:[#allocation2 + $0x1e0] sm:$0x1] %v4654_v63 }
 0x1bd   :  { %v2291_v6 = vpop.f32.mrb[85].mxu1  ;;  %9483 = vmatprep.mubr.bf16.mxu0 %v2013_v48 }
 0x1be   :  { %v11869_v8 = vpop.f32.mrb[86].mxu1  ;;  %v2016_v6 = vld [vmem:[#allocation2 + $0x310] sm:$0xff] }
 0x1bf   :  { %v2294_v11 = vpop.f32.mrb[87].mxu1  ;;  %v1471_v12 = vpop.f32.mrb[76].mxu0 }
 0x1c0   :  { %v11873_v26 = vadd.f32 %v11604_v51, %v1471_v12  ;;  %v1473_v54 = vpop.f32.mrb[77].mxu0  ;;  %v2019_v11 = vld [vmem:[#allocation2 + $0x328] sm:$0xff] }
 0x1c1   :  { %3307 = vmatmul.mubr.bf16.vlgmr.msra.gmra.mrb[192].mxu1 %v11525_v2  ;;  %v1474_v61 = vpop.f32.mrb[78].mxu0  ;;  %v2993_v12 = vld [vmem:[#allocation2 + $0x68] sm:$0xff]  ;;  %v4656_v54 = vld [vmem:[#allocation2 + $0x1f8] sm:$0x1] }
 0x1c2   :  { %3314 = vmatprep.mubr.bf16.mxu1 %v2990_v37  ;;  %v11882_v48 = vadd.f32 %v11616_v15, %v1474_v61  ;;  %v1476_v2 = vpop.f32.mrb[79].mxu0  ;;  %v11890_v15 = vld [vmem:[#allocation2 + $0x1f8] sm:$0xff]  ;;  %v4657_v61 = vsel %vm10361_vm9, 0, %v4656_v54  ;;  %v4659_v54 = vld [vmem:[#allocation2 + $0x210] sm:$0x1] }
 0x1c3   :  { %4658 = vst [vmem:[#allocation2 + $0x1f8] sm:$0x1] %v4657_v61 }
 0x1c4   :  { %v11879_v1 = vpop.f32.mrb[88].mxu1  ;;  %16619 = vst [vmem:[#allocation75_spill] sm:$0xff] %v11882_v48  ;;  %9484 = vmatmul.mubr.bf16.gmra.mrb[184].mxu0 %v2016_v6  ;;  %v16677_v48 = vld [vmem:[#allocation14_spill] sm:$0xff] }
 0x1c5   :  { %v2299_v37 = vpop.f32.mrb[89].mxu1  ;;  %9487 = vmatprep.mubr.bf16.mxu0 %v2019_v11 }
 0x1c6   :  { %v11884_v5 = vpop.f32.mrb[90].mxu1  ;;  %v2022_v37 = vld [vmem:[#allocation2 + $0x340] sm:$0xff] }
 0x1c7   :  { %v2302_v51 = vpop.f32.mrb[91].mxu1  ;;  %v1479_v50 = vpop.f32.mrb[80].mxu0 }
 0x1c8   :  { %v11888_v63 = vadd.f32 %v11644_v17, %v1479_v50  ;;  %v1481_v24 = vpop.f32.mrb[81].mxu0 }
 0x1c9   :  { %3315 = vmatmul.mubr.bf16.gmra.mrb[196].mxu1 %v11546_v19  ;;  %v1482_v2 = vpop.f32.mrb[82].mxu0  ;;  %v2996_v24 = vld [vmem:[#allocation2 + $0x80] sm:$0xff] }
 0x1ca   :  { %3322 = vmatprep.mubr.bf16.mxu1 %v2993_v12  ;;  %16620 = vst [vmem:[#allocation76_spill] sm:$0xff] %v11888_v63  ;;  %v11897_v11 = vadd.f32 %v11649_v27, %v1482_v2  ;;  %v1484_v19 = vpop.f32.mrb[83].mxu0  ;;  %v11906_v27 = vld [vmem:[#allocation2 + $0x210] sm:$0xff]  ;;  %v4660_v2 = vsel %vm10361_vm9, 0, %v4659_v54 }
 0x1cb   :  { %4661 = vst [vmem:[#allocation2 + $0x210] sm:$0x1] %v4660_v2  ;;  %v11923_v2 = vld [vmem:[#allocation2 + $0x228] sm:$0xff] }
 0x1cc   :  { %v11894_v6 = vpop.f32.mrb[92].mxu1  ;;  %16621 = vst [vmem:[#allocation77_spill] sm:$0xff] %v11897_v11  ;;  %9488 = vmatmul.mubr.bf16.gmra.mrb[188].mxu0 %v2022_v37  ;;  %v12090_v11 = vld [vmem:[#allocation2 + $0x318] sm:$0xff] }
 0x1cd   :  { %v2307_v51 = vpop.f32.mrb[93].mxu1  ;;  %9507 = vmatprep.mubr.bf16.mxu0 %v11571_v14 }
 0x1ce   :  { %v11899_v12 = vpop.f32.mrb[94].mxu1 }
 0x1cf   :  { %v2310_v17 = vpop.f32.mrb[95].mxu1  ;;  %v1487_v50 = vpop.f32.mrb[84].mxu0 }
 0x1d0   :  { %v11904_v61 = vadd.f32 %v11634_v57, %v1487_v50  ;;  %v1489_v63 = vpop.f32.mrb[85].mxu0  ;;  %v4662_v50 = vld [vmem:[#allocation2 + $0x228] sm:$0x1] }
 0x1d1   :  { %3323 = vmatmul.mubr.bf16.gmra.mrb[200].mxu1 %v11567_v16  ;;  %v1490_v19 = vpop.f32.mrb[86].mxu0  ;;  %v2999_v63 = vld [vmem:[#allocation2 + $0x98] sm:$0xff] }
 0x1d2   :  { %3330 = vmatprep.mubr.bf16.mxu1 %v2996_v24  ;;  %16622 = vst [vmem:[#allocation78_spill] sm:$0xff] %v11904_v61  ;;  %v11913_v14 = vadd.f32 %v11646_v45, %v1490_v19  ;;  %v1492_v16 = vpop.f32.mrb[87].mxu0  ;;  %v4663_v19 = vsel %vm10361_vm9, 0, %v4662_v50  ;;  %v4665_v50 = vld [vmem:[#allocation2 + $0x240] sm:$0x1]  ;;  %v16673_v61 = vld [vmem:[#allocation13_spill] sm:$0xff] }
 0x1d3   :  { %4664 = vst [vmem:[#allocation2 + $0x228] sm:$0x1] %v4663_v19  ;;  %v11940_v19 = vld [vmem:[#allocation2 + $0x240] sm:$0xff] }
 0x1d4   :  { %v11910_v37 = vpop.f32.mrb[96].mxu1  ;;  %16623 = vst [vmem:[#allocation79_spill] sm:$0xff] %v11913_v14  ;;  %9508 = vmatmul.mubr.bf16.vlgmr.msra.gmra.mrb[192].mxu0 %v11578_v40 }
 0x1d5   :  { %v2315_v51 = vpop.f32.mrb[97].mxu1  ;;  %9511 = vmatprep.mubr.bf16.mxu0 %v11602_v7 }
 0x1d6   :  { %v11915_v17 = vpop.f32.mrb[98].mxu1 }
 0x1d7   :  { %v2318_v57 = vpop.f32.mrb[99].mxu1  ;;  %v1495_v24 = vpop.f32.mrb[88].mxu0 }
 0x1d8   :  { %v11921_v54 = vadd.f32 %v11674_v62, %v1495_v24  ;;  %v1497_v45 = vpop.f32.mrb[89].mxu0 }
 0x1d9   :  { %3331 = vmatmul.mubr.bf16.gmra.mrb[204].mxu1 %v11598_v35  ;;  %v1498_v16 = vpop.f32.mrb[90].mxu0 }
 0x1da   :  { %3338 = vmatprep.mubr.bf16.mxu1 %v2999_v63  ;;  %16624 = vst [vmem:[#allocation80_spill] sm:$0xff] %v11921_v54  ;;  %v11930_v7 = vadd.f32 %v11679_v3, %v1498_v16  ;;  %v1500_v35 = vpop.f32.mrb[91].mxu0  ;;  %v3002_v63 = vld [vmem:[#allocation2 + $0xb0] sm:$0xff]  ;;  %v4666_v16 = vsel %vm10361_vm9, 0, %v4665_v50  ;;  %v4668_v50 = vld [vmem:[#allocation2 + $0x258] sm:$0x1] }
 0x1db   :  { %4667 = vst [vmem:[#allocation2 + $0x240] sm:$0x1] %v4666_v16  ;;  %v11957_v16 = vld [vmem:[#allocation2 + $0x258] sm:$0xff] }
 0x1dc   :  { %v11927_v40 = vpop.f32.mrb[100].mxu1  ;;  %16625 = vst [vmem:[#allocation81_spill] sm:$0xff] %v11930_v7  ;;  %9512 = vmatmul.mubr.bf16.gmra.mrb[196].mxu0 %v11609_v20 }
 0x1dd   :  { %v2323_v51 = vpop.f32.mrb[101].mxu1  ;;  %9515 = vmatprep.mubr.bf16.mxu0 %v11632_v21 }
 0x1de   :  { %v11932_v57 = vpop.f32.mrb[102].mxu1 }
 0x1df   :  { %v2326_v62 = vpop.f32.mrb[103].mxu1  ;;  %v1503_v24 = vpop.f32.mrb[92].mxu0 }
 0x1e0   :  { %v11938_v45 = vadd.f32 %v11664_v29, %v1503_v24  ;;  %v1505_v3 = vpop.f32.mrb[93].mxu0 }
 0x1e1   :  { %3339 = vmatmul.mubr.bf16.gmra.mrb[208].mxu1 %v11628_v60  ;;  %v1506_v35 = vpop.f32.mrb[94].mxu0 }
 0x1e2   :  { %3346 = vmatprep.mubr.bf16.mxu1 %v3002_v63  ;;  %16626 = vst [vmem:[#allocation82_spill] sm:$0xff] %v11938_v45  ;;  %v11947_v21 = vadd.f32 %v11676_v10, %v1506_v35  ;;  %v1508_v60 = vpop.f32.mrb[95].mxu0  ;;  %v3005_v63 = vld [vmem:[#allocation2 + $0xc8] sm:$0xff]  ;;  %v4669_v35 = vsel %vm10361_vm9, 0, %v4668_v50  ;;  %v4671_v50 = vld [vmem:[#allocation2 + $0x270] sm:$0x1] }
 0x1e3   :  { %4670 = vst [vmem:[#allocation2 + $0x258] sm:$0x1] %v4669_v35  ;;  %v11974_v35 = vld [vmem:[#allocation2 + $0x270] sm:$0xff]  ;;  %v3054_v45 = vld [vmem:[#allocation2 + $0x280] sm:$0xff] }
 0x1e4   :  { %v11944_v20 = vpop.f32.mrb[104].mxu1  ;;  %16627 = vst [vmem:[#allocation83_spill] sm:$0xff] %v11947_v21  ;;  %9516 = vmatmul.mubr.bf16.gmra.mrb[200].mxu0 %v11639_v58 }
 0x1e5   :  { %v2331_v51 = vpop.f32.mrb[105].mxu1  ;;  %9519 = vmatprep.mubr.bf16.mxu0 %v11662_v31 }
 0x1e6   :  { %v11949_v62 = vpop.f32.mrb[106].mxu1 }
 0x1e7   :  { %v2334_v29 = vpop.f32.mrb[107].mxu1  ;;  %v1511_v24 = vpop.f32.mrb[96].mxu0 }
 0x1e8   :  { %v11955_v3 = vadd.f32 %v11699_v44, %v1511_v24  ;;  %v1513_v10 = vpop.f32.mrb[97].mxu0 }
 0x1e9   :  { %3347 = vmatmul.mubr.bf16.gmra.mrb[212].mxu1 %v11658_v9  ;;  %v1514_v60 = vpop.f32.mrb[98].mxu0 }
 0x1ea   :  { %3354 = vmatprep.mubr.bf16.mxu1 %v3005_v63  ;;  %16628 = vst [vmem:[#allocation84_spill] sm:$0xff] %v11955_v3  ;;  %v11964_v31 = vadd.f32 %v11704_v32, %v1514_v60  ;;  %v1516_v9 = vpop.f32.mrb[99].mxu0  ;;  %v3008_v63 = vld [vmem:[#allocation2 + $0xe0] sm:$0xff]  ;;  %v4672_v60 = vsel %vm10361_vm9, 0, %v4671_v50  ;;  %v4674_v50 = vld [vmem:[#allocation2 + $0x288] sm:$0x1] }
 0x1eb   :  { %4673 = vst [vmem:[#allocation2 + $0x270] sm:$0x1] %v4672_v60 }
 0x1ec   :  { %v11961_v58 = vpop.f32.mrb[108].mxu1  ;;  %16629 = vst [vmem:[#allocation85_spill] sm:$0xff] %v11964_v31  ;;  %9520 = vmatmul.mubr.bf16.gmra.mrb[204].mxu0 %v11669_v28 }
 0x1ed   :  { %v2339_v51 = vpop.f32.mrb[109].mxu1  ;;  %9523 = vmatprep.mubr.bf16.mxu0 %v11689_v52 }
 0x1ee   :  { %v11966_v29 = vpop.f32.mrb[110].mxu1 }
 0x1ef   :  { %v2342_v44 = vpop.f32.mrb[111].mxu1  ;;  %v1519_v24 = vpop.f32.mrb[100].mxu0 }
 0x1f0   :  { %v11972_v10 = vadd.f32 %v11691_v23, %v1519_v24  ;;  %v1521_v32 = vpop.f32.mrb[101].mxu0 }
 0x1f1   :  { %3355 = vmatmul.mubr.bf16.gmra.mrb[216].mxu1 %v11685_v53  ;;  %v1522_v9 = vpop.f32.mrb[102].mxu0  ;;  %v16632_v32 = vld [vmem:[#allocation38_spill] sm:$0xff] }
 0x1f2   :  { %3362 = vmatprep.mubr.bf16.mxu1 %v3008_v63  ;;  %16630 = vst [vmem:[#allocation86_spill] sm:$0xff] %v11972_v10  ;;  %v11981_v52 = vadd.f32 %v11701_v55, %v1522_v9  ;;  %v1524_v53 = vpop.f32.mrb[103].mxu0  ;;  %v3011_v63 = vld [vmem:[#allocation2 + $0xf8] sm:$0xff]  ;;  %v11991_v9 = vld [vmem:[#allocation2 + $0x288] sm:$0xff] }
 0x1f3   :  { %16634 = vst [vmem:[#allocation88_spill] sm:$0xff] %v11991_v9  ;;  %v4675_v53 = vsel %vm10361_vm9, 0, %v4674_v50 }
 0x1f4   :  { %v11978_v28 = vpop.f32.mrb[112].mxu1  ;;  %16631 = vst [vmem:[#allocation87_spill] sm:$0xff] %v11981_v52  ;;  %9524 = vmatmul.mubr.bf16.gmra.mrb[208].mxu0 %v11696_v13  ;;  %4676 = vst [vmem:[#allocation2 + $0x288] sm:$0x1] %v4675_v53  ;;  %v16639_v53 = vld [vmem:[#allocation35_spill] sm:$0xff] }
 0x1f5   :  { %v2347_v51 = vpop.f32.mrb[113].mxu1  ;;  %9527 = vmatprep.mubr.bf16.mxu0 %v11714_v46 }
 0x1f6   :  { %v11983_v44 = vpop.f32.mrb[114].mxu1 }
 0x1f7   :  { %v2350_v23 = vpop.f32.mrb[115].mxu1  ;;  %v1527_v24 = vpop.f32.mrb[104].mxu0 }
 0x1f8   :  { %v11989_v60 = vadd.f32 %v16632_v32, %v1527_v24  ;;  %v1529_v55 = vpop.f32.mrb[105].mxu0  ;;  %v16635_v23 = vld [vmem:[#allocation40_spill] sm:$0xff] }
 0x1f9   :  { %3363 = vmatmul.mubr.bf16.gmra.mrb[220].mxu1 %v11710_v43  ;;  %v1530_v51 = vpop.f32.mrb[106].mxu0  ;;  %v3014_v32 = vld [vmem:[#allocation2 + $0x110] sm:$0xff]  ;;  %v16638_v55 = vld [vmem:[#allocation42_spill] sm:$0xff] }
 0x1fa   :  { %3370 = vmatprep.mubr.bf16.mxu1 %v3011_v63  ;;  %16633 = vst [vmem:[#allocation38_spill] sm:$0xff] %v11989_v60  ;;  %v11998_v46 = vadd.f32 %v16635_v23, %v1530_v51  ;;  %v1532_v43 = vpop.f32.mrb[107].mxu0  ;;  %v16637_v63 = vld [vmem:[#allocation37_spill] sm:$0xff]  ;;  %v4677_v60 = vld [vmem:[#allocation2 + $0x2a0] sm:$0x1] }
 0x1fb   :  { %v12008_v23 = vld [vmem:[#allocation2 + $0x2a0] sm:$0xff] }
 0x1fc   :  { %v11995_v13 = vpop.f32.mrb[116].mxu1  ;;  %16636 = vst [vmem:[#allocation40_spill] sm:$0xff] %v11998_v46  ;;  %9528 = vmatmul.mubr.bf16.gmra.mrb[212].mxu0 %v16637_v63  ;;  %16641 = vst [vmem:[#allocation42_spill] sm:$0xff] %v12008_v23 }
 0x1fd   :  { %v2355_v31 = vpop.f32.mrb[117].mxu1  ;;  %9531 = vmatprep.mubr.bf16.mxu0 %v11738_v47 }
 0x1fe   :  { %v12000_v52 = vpop.f32.mrb[118].mxu1  ;;  %v4678_v31 = vsel %vm10361_vm9, 0, %v4677_v60 }
 0x1ff   :  { %v2358_v24 = vpop.f32.mrb[119].mxu1  ;;  %v1535_v50 = vpop.f32.mrb[108].mxu0  ;;  %4679 = vst [vmem:[#allocation2 + $0x2a0] sm:$0x1] %v4678_v31  ;;  %v16645_v31 = vld [vmem:[#allocation46_spill] sm:$0xff] }
 0x200   :  { %v12006_v3 = vadd.f32 %v16639_v53, %v1535_v50  ;;  %v1537_v51 = vpop.f32.mrb[109].mxu0  ;;  %v16642_v24 = vld [vmem:[#allocation39_spill] sm:$0xff] }
 0x201   :  { %3371 = vmatmul.mubr.bf16.gmra.mrb[224].mxu1 %v16638_v55  ;;  %v1538_v43 = vpop.f32.mrb[110].mxu0  ;;  %v3017_v53 = vld [vmem:[#allocation2 + $0x128] sm:$0xff]  ;;  %v4680_v51 = vld [vmem:[#allocation2 + $0x2b8] sm:$0x1] }
 0x202   :  { %3378 = vmatprep.mubr.bf16.mxu1 %v3014_v32  ;;  %16640 = vst [vmem:[#allocation37_spill] sm:$0xff] %v12006_v3  ;;  %v12015_v47 = vadd.f32 %v16642_v24, %v1538_v43  ;;  %v1540_v55 = vpop.f32.mrb[111].mxu0  ;;  %v16644_v32 = vld [vmem:[#allocation45_spill] sm:$0xff] }
 0x203   :  { %v12025_v24 = vld [vmem:[#allocation2 + $0x2b8] sm:$0xff] }
 0x204   :  { %v12012_v63 = vpop.f32.mrb[120].mxu1  ;;  %16643 = vst [vmem:[#allocation35_spill] sm:$0xff] %v12015_v47  ;;  %9532 = vmatmul.mubr.bf16.gmra.mrb[216].mxu0 %v16644_v32  ;;  %16647 = vst [vmem:[#allocation45_spill] sm:$0xff] %v12025_v24 }
 0x205   :  { %v2363_v46 = vpop.f32.mrb[121].mxu1  ;;  %9535 = vmatprep.mubr.bf16.mxu0 %v11762_v4 }
 0x206   :  { %v12017_v10 = vpop.f32.mrb[122].mxu1  ;;  %v4681_v46 = vsel %vm10361_vm9, 0, %v4680_v51 }
 0x207   :  { %v2366_v50 = vpop.f32.mrb[123].mxu1  ;;  %v1543_v60 = vpop.f32.mrb[112].mxu0  ;;  %4682 = vst [vmem:[#allocation2 + $0x2b8] sm:$0x1] %v4681_v46  ;;  %v16650_v46 = vld [vmem:[#allocation43_spill] sm:$0xff] }
 0x208   :  { %v12023_v3 = vadd.f32 %v16645_v31, %v1543_v60  ;;  %v1545_v43 = vpop.f32.mrb[113].mxu0  ;;  %v16648_v50 = vld [vmem:[#allocation48_spill] sm:$0xff]  ;;  %v3020_v31 = vld [vmem:[#allocation2 + $0x140] sm:$0xff] }
 0x209   :  { %3379 = vmatmul.mubr.bf16.gmra.mrb[228].mxu1 %v11758_v18  ;;  %v1546_v55 = vpop.f32.mrb[114].mxu0  ;;  %v4683_v43 = vld [vmem:[#allocation2 + $0x2d0] sm:$0x1] }
 0x20a   :  { %3386 = vmatprep.mubr.bf16.mxu1 %v3017_v53  ;;  %16646 = vst [vmem:[#allocation39_spill] sm:$0xff] %v12023_v3  ;;  %v12032_v4 = vadd.f32 %v16648_v50, %v1546_v55  ;;  %v1548_v18 = vpop.f32.mrb[115].mxu0  ;;  %v12036_v53 = vld [vmem:[#allocation2 + $0x10] sm:$0xff]  ;;  %v16653_v3 = vld [vmem:[#allocation47_spill] sm:$0xff] }
 0x20b   :  { %v4684_v18 = vsel %vm10361_vm9, 0, %v4683_v43 }
 0x20c   :  { %v12029_v32 = vpop.f32.mrb[124].mxu1  ;;  %16649 = vst [vmem:[#allocation46_spill] sm:$0xff] %v12032_v4  ;;  %9536 = vmatmul.mubr.bf16.gmra.mrb[220].mxu0 %v12036_v53 }
 0x20d   :  { %v2371_v47 = vpop.f32.mrb[125].mxu1  ;;  %9539 = vmatprep.mubr.bf16.mxu0 %v11783_v34 }
 0x20e   :  { %v12034_v7 = vpop.f32.mrb[126].mxu1  ;;  %v12044_v47 = vld [vmem:[#allocation2 + $0x2d0] sm:$0xff] }
 0x20f   :  { %v2374_v60 = vpop.f32.mrb[127].mxu1  ;;  %v1551_v51 = vpop.f32.mrb[116].mxu0  ;;  %16652 = vst [vmem:[#allocation43_spill] sm:$0xff] %v12044_v47  ;;  %4685 = vst [vmem:[#allocation2 + $0x2d0] sm:$0x1] %v4684_v18  ;;  %v16657_v18 = vld [vmem:[#allocation52_spill] sm:$0xff] }
 0x210   :  { %v12042_v55 = vadd.f32 %v16650_v46, %v1551_v51  ;;  %v1553_v50 = vpop.f32.mrb[117].mxu0  ;;  %v3023_v51 = vld [vmem:[#allocation2 + $0x158] sm:$0xff] }
 0x211   :  { %3387 = vmatmul.mubr.bf16.gmra.mrb[232].mxu1 %v11779_v39  ;;  %v1554_v4 = vpop.f32.mrb[118].mxu0  ;;  %v16655_v46 = vld [vmem:[#allocation61_spill] sm:$0xff]  ;;  %v16656_v50 = vld [vmem:[#allocation60_spill] sm:$0xff] }
 0x212   :  { %3394 = vmatprep.mubr.bf16.mxu1 %v3020_v31  ;;  %16651 = vst [vmem:[#allocation48_spill] sm:$0xff] %v12042_v55  ;;  %v12051_v34 = vadd.f32 %v16653_v3, %v1554_v4  ;;  %v1556_v39 = vpop.f32.mrb[119].mxu0  ;;  %v4686_v55 = vld [vmem:[#allocation2 + $0x2e8] sm:$0x1] }
 0x213   :  { %v12061_v4 = vld [vmem:[#allocation2 + $0x2e8] sm:$0xff] }
 0x214   :  { %v12048_v60 = vpop.f32.mrb[128].mxu1  ;;  %16654 = vst [vmem:[#allocation47_spill] sm:$0xff] %v12051_v34  ;;  %9540 = vmatmul.mubr.bf16.gmra.mrb[224].mxu0 %v11790_v38  ;;  %16659 = vst [vmem:[#allocation60_spill] sm:$0xff] %v12061_v4  ;;  %v3048_v34 = vld [vmem:[#allocation2 + $0x250] sm:$0xff] }
 0x215   :  { %v2379_v24 = vpop.f32.mrb[129].mxu1  ;;  %9543 = vmatprep.mubr.bf16.mxu0 %v16655_v46 }
 0x216   :  { %v12053_v21 = vpop.f32.mrb[130].mxu1  ;;  %v4687_v24 = vsel %vm10361_vm9, 0, %v4686_v55 }
 0x217   :  { %v2382_v31 = vpop.f32.mrb[131].mxu1  ;;  %v1559_v43 = vpop.f32.mrb[120].mxu0  ;;  %4688 = vst [vmem:[#allocation2 + $0x2e8] sm:$0x1] %v4687_v24  ;;  %v16663_v24 = vld [vmem:[#allocation50_spill] sm:$0xff] }
 0x218   :  { %v12059_v47 = vadd.f32 %v16657_v18, %v1559_v43  ;;  %v1561_v3 = vpop.f32.mrb[121].mxu0  ;;  %v16660_v31 = vld [vmem:[#allocation54_spill] sm:$0xff]  ;;  %v16662_v43 = vld [vmem:[#allocation64_spill] sm:$0xff] }
 0x219   :  { %3395 = vmatmul.mubr.bf16.gmra.mrb[236].mxu1 %v16656_v50  ;;  %v1562_v39 = vpop.f32.mrb[122].mxu0  ;;  %v3026_v3 = vld [vmem:[#allocation2 + $0x170] sm:$0xff] }
 0x21a   :  { %3402 = vmatprep.mubr.bf16.mxu1 %v3023_v51  ;;  %16658 = vst [vmem:[#allocation61_spill] sm:$0xff] %v12059_v47  ;;  %v12068_v46 = vadd.f32 %v16660_v31, %v1562_v39  ;;  %v1564_v50 = vpop.f32.mrb[123].mxu0  ;;  %v4689_v47 = vld [vmem:[#allocation2 + $0x300] sm:$0x1] }
 0x21b   :  { %v12077_v31 = vld [vmem:[#allocation2 + $0x300] sm:$0xff] }
 0x21c   :  { %v12065_v38 = vpop.f32.mrb[132].mxu1  ;;  %16661 = vst [vmem:[#allocation52_spill] sm:$0xff] %v12068_v46  ;;  %9544 = vmatmul.mubr.bf16.gmra.mrb[228].mxu0 %v16662_v43  ;;  %16665 = vst [vmem:[#allocation64_spill] sm:$0xff] %v12077_v31  ;;  %v3051_v46 = vld [vmem:[#allocation2 + $0x268] sm:$0xff] }
 0x21d   :  { %v2387_v54 = vpop.f32.mrb[133].mxu1  ;;  %9547 = vmatprep.mubr.bf16.mxu0 %v3048_v34  ;;  %v16666_v34 = vld [vmem:[#allocation53_spill] sm:$0xff] }
 0x21e   :  { %v12070_v51 = vpop.f32.mrb[134].mxu1  ;;  %v4690_v54 = vsel %vm10361_vm9, 0, %v4689_v47  ;;  %16669 = vst [vmem:[#allocation53_spill] sm:$0xff] %v12090_v11 }
 0x21f   :  { %v2390_v18 = vpop.f32.mrb[135].mxu1  ;;  %v1567_v55 = vpop.f32.mrb[124].mxu0  ;;  %4691 = vst [vmem:[#allocation2 + $0x300] sm:$0x1] %v4690_v54  ;;  %v16668_v54 = vld [vmem:[#allocation62_spill] sm:$0xff] }
 0x220   :  { %v12075_v4 = vadd.f32 %v16663_v24, %v1567_v55  ;;  %v1569_v39 = vpop.f32.mrb[125].mxu0  ;;  %v3029_v24 = vld [vmem:[#allocation2 + $0x188] sm:$0xff] }
 0x221   :  { %3403 = vmatmul.mubr.bf16.gmra.mrb[240].mxu1 %v11819_v49  ;;  %v1570_v50 = vpop.f32.mrb[126].mxu0  ;;  %v4692_v39 = vld [vmem:[#allocation2 + $0x318] sm:$0x1] }
 0x222   :  { %3410 = vmatprep.mubr.bf16.mxu1 %v3026_v3  ;;  %16664 = vst [vmem:[#allocation54_spill] sm:$0xff] %v12075_v4  ;;  %v12084_v18 = vadd.f32 %v16666_v34, %v1570_v50  ;;  %v1572_v49 = vpop.f32.mrb[127].mxu0  ;;  %v4693_v50 = vsel %vm10361_vm9, 0, %v4692_v39  ;;  %v16670_v34 = vld [vmem:[#allocation56_spill] sm:$0xff] }
 0x223   :  { %4694 = vst [vmem:[#allocation2 + $0x318] sm:$0x1] %v4693_v50 }
 0x224   :  { %v12081_v43 = vpop.f32.mrb[136].mxu1  ;;  %16667 = vst [vmem:[#allocation50_spill] sm:$0xff] %v12084_v18  ;;  %9548 = vmatmul.mubr.bf16.gmra.mrb[232].mxu0 %v3051_v46  ;;  %v3057_v46 = vld [vmem:[#allocation2 + $0x298] sm:$0xff] }
 0x225   :  { %v2395_v3 = vpop.f32.mrb[137].mxu1  ;;  %9551 = vmatprep.mubr.bf16.mxu0 %v3054_v45  ;;  %v16671_v45 = vld [vmem:[#allocation15_spill] sm:$0xff]  ;;  %v16672_v18 = vld [vmem:[#allocation65_spill] sm:$0xff] }
 0x226   :  { %v12086_v23 = vpop.f32.mrb[138].mxu1 }
 0x227   :  { %v2398_v55 = vpop.f32.mrb[139].mxu1  ;;  %v9429_v47 = vpop.f32.mrb[128].mxu0 }
 0x228   :  { %v2547_v4 = vadd.f32 %v9429_v47, %v16668_v54  ;;  %v2538_v31 = vpop.f32.mrb[129].mxu0  ;;  %v3060_v47 = vld [vmem:[#allocation2 + $0x2b0] sm:$0xff] }
 0x229   :  { %3411 = vmatmul.mubr.bf16.gmra.mrb[244].mxu1 %v11833_v30  ;;  %v2539_v49 = vadd.f32 %v2538_v31, %v16670_v34  ;;  %v9430_v3 = vpop.f32.mrb[130].mxu0  ;;  %v16675_v31 = vld [vmem:[#allocation16_spill] sm:$0xff] }
 0x22a   :  { %3418 = vmatprep.mubr.bf16.mxu1 %v3029_v24  ;;  %v12098_v30 = vadd.f32 %v2547_v4, %v16671_v45  ;;  %v2550_v24 = vadd.f32 %v9430_v3, %v16672_v18  ;;  %v2541_v14 = vpop.f32.mrb[131].mxu0 }
 0x22b   :  { %v12102_v11 = vadd.f32 %v2539_v49, %v16673_v61  ;;  %v2542_v39 = vadd.f32 %v2541_v14, %v16674_v36  ;;  %v16679_v14 = vld [vmem:[#allocation67_spill] sm:$0xff] }
 0x22c   :  { %v12095_v55 = vpop.f32.mrb[140].mxu1  ;;  %v12108_v34 = vadd.f32 %v2550_v24, %v16675_v31  ;;  %9552 = vmatmul.mubr.bf16.gmra.mrb[236].mxu0 %v3057_v46  ;;  %v16680_v46 = vld [vmem:[#allocation20_spill] sm:$0xff]  ;;  %v16681_v31 = vld [vmem:[#allocation18_spill] sm:$0xff] }
 0x22d   :  { %v2403_v54 = vpop.f32.mrb[141].mxu1  ;;  %v12111_v4 = vadd.f32 %v2542_v39, %v16677_v48  ;;  %9555 = vmatprep.mubr.bf16.mxu0 %v3060_v47  ;;  %v3066_v39 = vld [vmem:[#allocation2 + $0x2e0] sm:$0xff] }
 0x22e   :  { %v12105_v9 = vpop.f32.mrb[142].mxu1  ;;  %16676 = vst [vmem:[#allocation62_spill] sm:$0xff] %v12108_v34  ;;  %v3063_v54 = vld [vmem:[#allocation2 + $0x2c8] sm:$0xff] }
 0x22f   :  { %v2406_v50 = vpop.f32.mrb[143].mxu1  ;;  %16678 = vst [vmem:[#allocation56_spill] sm:$0xff] %v12111_v4  ;;  %v9433_v18 = vpop.f32.mrb[132].mxu0  ;;  %v16684_v34 = vld [vmem:[#allocation19_spill] sm:$0xff] }
 0x230   :  { %v2563_v61 = vadd.f32 %v9433_v18, %v11837_v59  ;;  %v2554_v49 = vpop.f32.mrb[133].mxu0 }
 0x231   :  { %3419 = vmatmul.mubr.bf16.gmra.mrb[248].mxu1 %v11849_v25  ;;  %v2555_v3 = vadd.f32 %v2554_v49, %v16679_v14  ;;  %v9434_v45 = vpop.f32.mrb[134].mxu0  ;;  %v16682_v49 = vld [vmem:[#allocation21_spill] sm:$0xff] }
 0x232   :  { %3426 = vmatprep.mubr.bf16.mxu1 %v12036_v53  ;;  %v12120_v36 = vadd.f32 %v2563_v61, %v16680_v46  ;;  %v2566_v48 = vadd.f32 %v9434_v45, %v11842_v41  ;;  %v2557_v47 = vpop.f32.mrb[135].mxu0  ;;  %v3035_v46 = vld [vmem:[#allocation2 + $0x1e8] sm:$0xff] }
 0x233   :  { %v12124_v50 = vadd.f32 %v2555_v3, %v16681_v31  ;;  %v2558_v59 = vadd.f32 %v2557_v47, %v11828_v33 }
 0x234   :  { %v12117_v24 = vpop.f32.mrb[144].mxu1  ;;  %v12130_v14 = vadd.f32 %v2566_v48, %v16682_v49  ;;  %9556 = vmatmul.mubr.bf16.gmra.mrb[240].mxu0 %v3063_v54  ;;  %v16686_v54 = vld [vmem:[#allocation24_spill] sm:$0xff]  ;;  %v16687_v49 = vld [vmem:[#allocation22_spill] sm:$0xff] }
 0x235   :  { %v2411_v25 = vpop.f32.mrb[145].mxu1  ;;  %v12133_v61 = vadd.f32 %v2558_v59, %v16684_v34  ;;  %9559 = vmatprep.mubr.bf16.mxu0 %v3066_v39  ;;  %v3072_v39 = vld [vmem:[#allocation2 + $0x310] sm:$0xff] }
 0x236   :  { %v12127_v18 = vpop.f32.mrb[146].mxu1  ;;  %16683 = vst [vmem:[#allocation15_spill] sm:$0xff] %v12130_v14  ;;  %v3069_v25 = vld [vmem:[#allocation2 + $0x2f8] sm:$0xff]  ;;  %v16690_v14 = vld [vmem:[#allocation23_spill] sm:$0xff] }
 0x237   :  { %v2414_v4 = vpop.f32.mrb[147].mxu1  ;;  %16685 = vst [vmem:[#allocation65_spill] sm:$0xff] %v12133_v61  ;;  %v9437_v41 = vpop.f32.mrb[136].mxu0 }
 0x238   :  { %v2579_v3 = vadd.f32 %v9437_v41, %v11864_v42  ;;  %v2570_v45 = vpop.f32.mrb[137].mxu0 }
 0x239   :  { %3427 = vmatmul.mubr.bf16.gmra.mrb[252].mxu1 %v12036_v53  ;;  %v2571_v33 = vadd.f32 %v2570_v45, %v11853_v56  ;;  %v9438_v47 = vpop.f32.mrb[138].mxu0  ;;  %v16688_v56 = vld [vmem:[#allocation25_spill] sm:$0xff] }
 0x23a   :  { %3434 = vmatprep.mubr.bf16.mxu1 %v3035_v46  ;;  %v12141_v4 = vadd.f32 %v2579_v3, %v16686_v54  ;;  %v2582_v34 = vadd.f32 %v9438_v47, %v11869_v8  ;;  %v2573_v31 = vpop.f32.mrb[139].mxu0  ;;  %v3038_v54 = vld [vmem:[#allocation2 + $0x200] sm:$0xff] }
 0x23b   :  { %v12145_v61 = vadd.f32 %v2571_v33, %v16687_v49  ;;  %v2574_v42 = vadd.f32 %v2573_v31, %v11858_v0 }
 0x23c   :  { %v12138_v48 = vpop.f32.mrb[148].mxu1  ;;  %v12151_v41 = vadd.f32 %v2582_v34, %v16688_v56  ;;  %9560 = vmatmul.mubr.bf16.gmra.mrb[244].mxu0 %v3069_v25  ;;  %v16691_v25 = vld [vmem:[#allocation28_spill] sm:$0xff] }
 0x23d   :  { %v2419_v59 = vpop.f32.mrb[149].mxu1  ;;  %v12154_v3 = vadd.f32 %v2574_v42, %v16690_v14  ;;  %9563 = vmatprep.mubr.bf16.mxu0 %v3072_v39  ;;  %v3078_v39 = vld [vmem:[#allocation2 + $0x340] sm:$0xff] }
 0x23e   :  { %v12148_v46 = vpop.f32.mrb[150].mxu1  ;;  %16689 = vst [vmem:[#allocation13_spill] sm:$0xff] %v12151_v41  ;;  %v3075_v59 = vld [vmem:[#allocation2 + $0x328] sm:$0xff] }
 0x23f   :  { %v2422_v45 = vpop.f32.mrb[151].mxu1  ;;  %v9441_v8 = vpop.f32.mrb[140].mxu0  ;;  %v16694_v41 = vld [vmem:[#allocation27_spill] sm:$0xff] }
 0x240   :  { %v2595_v33 = vadd.f32 %v9441_v8, %v11894_v6  ;;  %v2586_v47 = vpop.f32.mrb[141].mxu0 }
 0x241   :  { %3435 = vmatmul.mubr.bf16.gmra.mrb[0].mxu1 %v11875_v22  ;;  %v2587_v0 = vadd.f32 %v2586_v47, %v11879_v1  ;;  %v9442_v31 = vpop.f32.mrb[142].mxu0  ;;  %v16692_v22 = vld [vmem:[#allocation26_spill] sm:$0xff]  ;;  %v16693_v1 = vld [vmem:[#allocation29_spill] sm:$0xff] }
 0x242   :  { %3442 = vmatprep.mubr.bf16.mxu1 %v3038_v54  ;;  %v12162_v49 = vadd.f32 %v2595_v33, %v16691_v25  ;;  %v2598_v14 = vadd.f32 %v9442_v31, %v11899_v12  ;;  %v2589_v42 = vpop.f32.mrb[143].mxu0  ;;  %v3041_v25 = vld [vmem:[#allocation2 + $0x218] sm:$0xff] }
 0x243   :  { %v12166_v45 = vadd.f32 %v2587_v0, %v16692_v22  ;;  %v2590_v6 = vadd.f32 %v2589_v42, %v11884_v5 }
 0x244   :  { %v12159_v34 = vpop.f32.mrb[152].mxu1  ;;  %v12172_v8 = vadd.f32 %v2598_v14, %v16693_v1  ;;  %9564 = vmatmul.mubr.bf16.gmra.mrb[248].mxu0 %v3075_v59  ;;  %v16695_v14 = vld [vmem:[#allocation32_spill] sm:$0xff] }
 0x245   :  { %v2427_v56 = vpop.f32.mrb[153].mxu1  ;;  %v12175_v33 = vadd.f32 %v2590_v6, %v16694_v41  ;;  %9567 = vmatprep.mubr.bf16.mxu0 %v3078_v39  ;;  %v16696_v39 = vld [vmem:[#allocation30_spill] sm:$0xff] }
 0x246   :  { %v12169_v54 = vpop.f32.mrb[154].mxu1 }
 0x247   :  { %v2430_v47 = vpop.f32.mrb[155].mxu1  ;;  %v9445_v12 = vpop.f32.mrb[144].mxu0 }
 0x248   :  { %v2611_v0 = vadd.f32 %v9445_v12, %v11927_v40  ;;  %v2602_v31 = vpop.f32.mrb[145].mxu0  ;;  %v16697_v40 = vld [vmem:[#allocation33_spill] sm:$0xff]  ;;  %v16699_v12 = vld [vmem:[#allocation31_spill] sm:$0xff] }
 0x249   :  { %3443 = vmatmul.mubr.bf16.gmra.mrb[4].mxu1 %v11890_v15  ;;  %v2603_v5 = vadd.f32 %v2602_v31, %v11910_v37  ;;  %v9446_v42 = vpop.f32.mrb[146].mxu0  ;;  %v3044_v31 = vld [vmem:[#allocation2 + $0x230] sm:$0xff] }
 0x24a   :  { %3450 = vmatprep.mubr.bf16.mxu1 %v3041_v25  ;;  %v12183_v59 = vadd.f32 %v2611_v0, %v16695_v14  ;;  %v2614_v41 = vadd.f32 %v9446_v42, %v11932_v57  ;;  %v2605_v22 = vpop.f32.mrb[147].mxu0 }
 0x24b   :  { %v12187_v1 = vadd.f32 %v2603_v5, %v16696_v39  ;;  %v2606_v15 = vadd.f32 %v2605_v22, %v11915_v17  ;;  %v16700_v22 = vld [vmem:[#allocation41_spill] sm:$0xff] }
 0x24c   :  { %v12180_v56 = vpop.f32.mrb[156].mxu1  ;;  %v12193_v25 = vadd.f32 %v2614_v41, %v16697_v40  ;;  %9568 = vmatmul.mubr.bf16.gmra.mrb[252].mxu0 %v12036_v53 }
 0x24d   :  { %v2435_v6 = vpop.f32.mrb[157].mxu1  ;;  %v12197_v0 = vadd.f32 %v2606_v15, %v16699_v12  ;;  %5658 = vmatprep.mubr.bf16.mxu0 %v12036_v53 }
 0x24e   :  { %v12190_v47 = vpop.f32.mrb[158].mxu1  ;;  %16698 = vst [vmem:[#allocation58_spill] sm:$0xff] %v12193_v25 }
 0x24f   :  { %v2438_v37 = vpop.f32.mrb[159].mxu1  ;;  %v9449_v57 = vpop.f32.mrb[148].mxu0 }
 0x250   :  { %v2627_v17 = vadd.f32 %v9449_v57, %v11961_v58  ;;  %v2618_v5 = vpop.f32.mrb[149].mxu0  ;;  %v16701_v37 = vld [vmem:[#allocation34_spill] sm:$0xff]  ;;  %v16702_v58 = vld [vmem:[#allocation44_spill] sm:$0xff] }
 0x251   :  { %3451 = vmatmul.mubr.bf16.gmra.mrb[8].mxu1 %v11906_v27  ;;  %v2619_v42 = vadd.f32 %v2618_v5, %v11944_v20  ;;  %v9450_v14 = vpop.f32.mrb[150].mxu0  ;;  %v16704_v5 = vld [vmem:[#allocation36_spill] sm:$0xff] }
 0x252   :  { %3458 = vmatprep.mubr.bf16.mxu1 %v3044_v31  ;;  %v12206_v6 = vadd.f32 %v2627_v17, %v16700_v22  ;;  %v2630_v39 = vadd.f32 %v9450_v14, %v11966_v29  ;;  %v2621_v15 = vpop.f32.mrb[151].mxu0  ;;  %v3047_v17 = vld [vmem:[#allocation2 + $0x248] sm:$0xff] }
 0x253   :  { %v12210_v12 = vadd.f32 %v2619_v42, %v16701_v37  ;;  %v2622_v27 = vadd.f32 %v2621_v15, %v11949_v62 }
 0x254   :  { %v12203_v41 = vpop.f32.mrb[160].mxu1  ;;  %v12216_v57 = vadd.f32 %v2630_v39, %v16702_v58 }
 0x255   :  { %v2443_v40 = vpop.f32.mrb[161].mxu1  ;;  %v12219_v25 = vadd.f32 %v2622_v27, %v16704_v5 }
 0x256   :  { %v12213_v31 = vpop.f32.mrb[162].mxu1  ;;  %16703 = vst [vmem:[#allocation16_spill] sm:$0xff] %v12216_v57  ;;  %v16705_v40 = vld [vmem:[#allocation55_spill] sm:$0xff] }
 0x257   :  { %v2446_v20 = vpop.f32.mrb[163].mxu1  ;;  %v9453_v29 = vpop.f32.mrb[152].mxu0 }
 0x258   :  { %v2643_v14 = vadd.f32 %v9453_v29, %v11995_v13  ;;  %v2634_v42 = vpop.f32.mrb[153].mxu0  ;;  %v16706_v20 = vld [vmem:[#allocation49_spill] sm:$0xff] }
 0x259   :  { %3459 = vmatmul.mubr.bf16.gmra.mrb[12].mxu1 %v11923_v2  ;;  %v2635_v22 = vadd.f32 %v2634_v42, %v11978_v28  ;;  %v9454_v62 = vpop.f32.mrb[154].mxu0  ;;  %v16707_v13 = vld [vmem:[#allocation57_spill] sm:$0xff]  ;;  %v16709_v42 = vld [vmem:[#allocation51_spill] sm:$0xff] }
 0x25a   :  { %3466 = vmatprep.mubr.bf16.mxu1 %v3047_v17  ;;  %v12227_v39 = vadd.f32 %v2643_v14, %v16705_v40  ;;  %v2646_v37 = vadd.f32 %v9454_v62, %v12000_v52  ;;  %v2637_v27 = vpop.f32.mrb[155].mxu0  ;;  %v3050_v14 = vld [vmem:[#allocation2 + $0x260] sm:$0xff] }
 0x25b   :  { %v12231_v5 = vadd.f32 %v2635_v22, %v16706_v20  ;;  %v2638_v2 = vadd.f32 %v2637_v27, %v11983_v44 }
 0x25c   :  { %v12224_v15 = vpop.f32.mrb[164].mxu1  ;;  %v12237_v29 = vadd.f32 %v2646_v37, %v16707_v13 }
 0x25d   :  { %v2451_v58 = vpop.f32.mrb[165].mxu1  ;;  %v12240_v57 = vadd.f32 %v2638_v2, %v16709_v42 }
 0x25e   :  { %v12234_v17 = vpop.f32.mrb[166].mxu1  ;;  %16708 = vst [vmem:[#allocation14_spill] sm:$0xff] %v12237_v29  ;;  %v16710_v58 = vld [vmem:[#allocation66_spill] sm:$0xff] }
 0x25f   :  { %v2454_v28 = vpop.f32.mrb[167].mxu1  ;;  %v9457_v52 = vpop.f32.mrb[156].mxu0 }
 0x260   :  { %v2659_v62 = vadd.f32 %v9457_v52, %v12029_v32  ;;  %v2650_v22 = vpop.f32.mrb[157].mxu0  ;;  %v16711_v28 = vld [vmem:[#allocation59_spill] sm:$0xff]  ;;  %v16712_v32 = vld [vmem:[#allocation68_spill] sm:$0xff] }
 0x261   :  { %3467 = vmatmul.mubr.bf16.gmra.mrb[16].mxu1 %v11940_v19  ;;  %v2651_v40 = vadd.f32 %v2650_v22, %v12012_v63  ;;  %v9458_v44 = vpop.f32.mrb[158].mxu0  ;;  %v16714_v22 = vld [vmem:[#allocation63_spill] sm:$0xff] }
 0x262   :  { %3474 = vmatprep.mubr.bf16.mxu1 %v3050_v14  ;;  %v12248_v37 = vadd.f32 %v2659_v62, %v16710_v58  ;;  %v2662_v20 = vadd.f32 %v9458_v44, %v12034_v7  ;;  %v2653_v2 = vpop.f32.mrb[159].mxu0  ;;  %v3053_v62 = vld [vmem:[#allocation2 + $0x278] sm:$0xff] }
 0x263   :  { %v12252_v42 = vadd.f32 %v2651_v40, %v16711_v28  ;;  %v2654_v19 = vadd.f32 %v2653_v2, %v12017_v10 }
 0x264   :  { %v12245_v27 = vpop.f32.mrb[168].mxu1  ;;  %v12258_v52 = vadd.f32 %v2662_v20, %v16712_v32 }
 0x265   :  { %v2459_v13 = vpop.f32.mrb[169].mxu1  ;;  %v12261_v29 = vadd.f32 %v2654_v19, %v16714_v22 }
 0x266   :  { %v12255_v14 = vpop.f32.mrb[170].mxu1  ;;  %16713 = vst [vmem:[#allocation67_spill] sm:$0xff] %v12258_v52  ;;  %v16715_v13 = vld [vmem:[#allocation71_spill] sm:$0xff] }
 0x267   :  { %v2462_v63 = vpop.f32.mrb[171].mxu1  ;;  %v9461_v7 = vpop.f32.mrb[160].mxu0 }
 0x268   :  { %v2675_v44 = vadd.f32 %v9461_v7, %v12065_v38  ;;  %v2666_v40 = vpop.f32.mrb[161].mxu0  ;;  %v16716_v63 = vld [vmem:[#allocation69_spill] sm:$0xff]  ;;  %v16717_v38 = vld [vmem:[#allocation72_spill] sm:$0xff] }
 0x269   :  { %3475 = vmatmul.mubr.bf16.gmra.mrb[20].mxu1 %v11957_v16  ;;  %v2667_v58 = vadd.f32 %v2666_v40, %v12048_v60  ;;  %v9462_v10 = vpop.f32.mrb[162].mxu0  ;;  %v16718_v40 = vld [vmem:[#allocation70_spill] sm:$0xff] }
 0x26a   :  { %3482 = vmatprep.mubr.bf16.mxu1 %v3053_v62  ;;  %v12269_v20 = vadd.f32 %v2675_v44, %v16715_v13  ;;  %v2678_v28 = vadd.f32 %v9462_v10, %v12070_v51  ;;  %v2669_v19 = vpop.f32.mrb[163].mxu0  ;;  %v3056_v44 = vld [vmem:[#allocation2 + $0x290] sm:$0xff] }
 0x26b   :  { %v12273_v22 = vadd.f32 %v2667_v58, %v16716_v63  ;;  %v2670_v16 = vadd.f32 %v2669_v19, %v12053_v21 }
 0x26c   :  { %v12266_v2 = vpop.f32.mrb[172].mxu1  ;;  %v12279_v7 = vadd.f32 %v2678_v28, %v16717_v38  ;;  %v16720_v38 = vld [vmem:[#allocation73_spill] sm:$0xff] }
 0x26d   :  { %v2467_v32 = vpop.f32.mrb[173].mxu1  ;;  %v12282_v52 = vadd.f32 %v2670_v16, %v16718_v40 }
 0x26e   :  { %v12276_v62 = vpop.f32.mrb[174].mxu1 }
 0x26f   :  { %v2470_v60 = vpop.f32.mrb[175].mxu1  ;;  %v9465_v51 = vpop.f32.mrb[164].mxu0 }
 0x270   :  { %v2691_v10 = vadd.f32 %v9465_v51, %v12095_v55  ;;  %v2682_v58 = vpop.f32.mrb[165].mxu0  ;;  %v16721_v55 = vld [vmem:[#allocation75_spill] sm:$0xff]  ;;  %v16723_v51 = vld [vmem:[#allocation74_spill] sm:$0xff] }
 0x271   :  { %3483 = vmatmul.mubr.bf16.gmra.mrb[24].mxu1 %v11974_v35  ;;  %v2683_v13 = vadd.f32 %v2682_v58, %v12081_v43  ;;  %v9466_v21 = vpop.f32.mrb[166].mxu0 }
 0x272   :  { %3490 = vmatprep.mubr.bf16.mxu1 %v3056_v44  ;;  %v12290_v28 = vadd.f32 %v2691_v10, %v11873_v26  ;;  %v2694_v32 = vadd.f32 %v9466_v21, %v12105_v9  ;;  %v2685_v63 = vpop.f32.mrb[167].mxu0  ;;  %v3059_v26 = vld [vmem:[#allocation2 + $0x2a8] sm:$0xff]  ;;  %v16724_v10 = vld [vmem:[#allocation88_spill] sm:$0xff] }
 0x273   :  { %v12294_v60 = vadd.f32 %v2683_v13, %v16720_v38  ;;  %v2686_v35 = vadd.f32 %v2685_v63, %v12086_v23  ;;  %v16725_v38 = vld [vmem:[#allocation78_spill] sm:$0xff] }
 0x274   :  { %v12287_v19 = vpop.f32.mrb[176].mxu1  ;;  %16719 = vst [vmem:[#allocation20_spill] sm:$0xff] %v12290_v28  ;;  %v12300_v44 = vadd.f32 %v2694_v32, %v16721_v55 }
 0x275   :  { %v2475_v16 = vpop.f32.mrb[177].mxu1  ;;  %v12303_v58 = vadd.f32 %v2686_v35, %v16723_v51  ;;  %v16727_v51 = vld [vmem:[#allocation76_spill] sm:$0xff] }
 0x276   :  { %v12297_v40 = vpop.f32.mrb[178].mxu1  ;;  %16722 = vst [vmem:[#allocation18_spill] sm:$0xff] %v12300_v44 }
 0x277   :  { %v2478_v43 = vpop.f32.mrb[179].mxu1  ;;  %v9469_v9 = vpop.f32.mrb[168].mxu0 }
 0x278   :  { %v2707_v21 = vadd.f32 %v9469_v9, %v12138_v48  ;;  %v2698_v13 = vpop.f32.mrb[169].mxu0  ;;  %v16728_v48 = vld [vmem:[#allocation79_spill] sm:$0xff] }
 0x279   :  { %3491 = vmatmul.mubr.bf16.gmra.mrb[28].mxu1 %v16724_v10  ;;  %v2699_v16 = vadd.f32 %v2698_v13, %v12117_v24  ;;  %v9470_v23 = vpop.f32.mrb[170].mxu0  ;;  %v16730_v13 = vld [vmem:[#allocation77_spill] sm:$0xff] }
 0x27a   :  { %3498 = vmatprep.mubr.bf16.mxu1 %v3059_v26  ;;  %v12311_v32 = vadd.f32 %v2707_v21, %v16725_v38  ;;  %v2710_v55 = vadd.f32 %v9470_v23, %v12148_v46  ;;  %v2701_v35 = vpop.f32.mrb[171].mxu0  ;;  %v3062_v21 = vld [vmem:[#allocation2 + $0x2c0] sm:$0xff] }
 0x27b   :  { %v12315_v44 = vadd.f32 %v2699_v16, %v16727_v51  ;;  %v2702_v26 = vadd.f32 %v2701_v35, %v12127_v18  ;;  %v16731_v38 = vld [vmem:[#allocation42_spill] sm:$0xff] }
 0x27c   :  { %v12308_v63 = vpop.f32.mrb[180].mxu1  ;;  %16726 = vst [vmem:[#allocation21_spill] sm:$0xff] %v12311_v32  ;;  %v12321_v9 = vadd.f32 %v2710_v55, %v16728_v48  ;;  %v16732_v51 = vld [vmem:[#allocation82_spill] sm:$0xff] }
 0x27d   :  { %v2483_v43 = vpop.f32.mrb[181].mxu1  ;;  %v12324_v28 = vadd.f32 %v2702_v26, %v16730_v13  ;;  %v16734_v13 = vld [vmem:[#allocation80_spill] sm:$0xff] }
 0x27e   :  { %v12318_v10 = vpop.f32.mrb[182].mxu1  ;;  %16729 = vst [vmem:[#allocation19_spill] sm:$0xff] %v12321_v9 }
 0x27f   :  { %v2486_v24 = vpop.f32.mrb[183].mxu1  ;;  %v9473_v46 = vpop.f32.mrb[172].mxu0 }
 0x280   :  { %v2723_v23 = vadd.f32 %v9473_v46, %v12180_v56  ;;  %v2714_v16 = vpop.f32.mrb[173].mxu0  ;;  %v16735_v56 = vld [vmem:[#allocation83_spill] sm:$0xff] }
 0x281   :  { %3499 = vmatmul.mubr.bf16.gmra.mrb[32].mxu1 %v16731_v38  ;;  %v2715_v43 = vadd.f32 %v2714_v16, %v12159_v34  ;;  %v9474_v18 = vpop.f32.mrb[174].mxu0  ;;  %v16737_v16 = vld [vmem:[#allocation81_spill] sm:$0xff] }
 0x282   :  { %3506 = vmatprep.mubr.bf16.mxu1 %v3062_v21  ;;  %v12332_v55 = vadd.f32 %v2723_v23, %v16732_v51  ;;  %v2726_v48 = vadd.f32 %v9474_v18, %v12190_v47  ;;  %v2717_v26 = vpop.f32.mrb[175].mxu0  ;;  %v3065_v23 = vld [vmem:[#allocation2 + $0x2d8] sm:$0xff] }
 0x283   :  { %v12336_v9 = vadd.f32 %v2715_v43, %v16734_v13  ;;  %v2718_v21 = vadd.f32 %v2717_v26, %v12169_v54  ;;  %v16739_v51 = vld [vmem:[#allocation45_spill] sm:$0xff]  ;;  %v16740_v13 = vld [vmem:[#allocation86_spill] sm:$0xff] }
 0x284   :  { %v12329_v35 = vpop.f32.mrb[184].mxu1  ;;  %16733 = vst [vmem:[#allocation24_spill] sm:$0xff] %v12332_v55  ;;  %v12342_v46 = vadd.f32 %v2726_v48, %v16735_v56 }
 0x285   :  { %v2491_v24 = vpop.f32.mrb[185].mxu1  ;;  %v12345_v32 = vadd.f32 %v2718_v21, %v16737_v16 }
 0x286   :  { %v12339_v38 = vpop.f32.mrb[186].mxu1  ;;  %16736 = vst [vmem:[#allocation22_spill] sm:$0xff] %v12342_v46  ;;  %v16743_v46 = vld [vmem:[#allocation87_spill] sm:$0xff] }
 0x287   :  { %v2494_v34 = vpop.f32.mrb[187].mxu1  ;;  %16738 = vst [vmem:[#allocation25_spill] sm:$0xff] %v12345_v32  ;;  %v9477_v47 = vpop.f32.mrb[176].mxu0  ;;  %v3068_v32 = vld [vmem:[#allocation2 + $0x2f0] sm:$0xff] }
 0x288   :  { %v2739_v18 = vadd.f32 %v9477_v47, %v12224_v15  ;;  %v2730_v43 = vpop.f32.mrb[177].mxu0  ;;  %v16742_v34 = vld [vmem:[#allocation84_spill] sm:$0xff] }
 0x289   :  { %3507 = vmatmul.mubr.bf16.gmra.mrb[36].mxu1 %v16739_v51  ;;  %v2731_v24 = vadd.f32 %v2730_v43, %v12203_v41  ;;  %v9478_v54 = vpop.f32.mrb[178].mxu0  ;;  %v16745_v41 = vld [vmem:[#allocation85_spill] sm:$0xff] }
 0x28a   :  { %3514 = vmatprep.mubr.bf16.mxu1 %v3065_v23  ;;  %v12351_v55 = vadd.f32 %v2739_v18, %v16740_v13  ;;  %v2742_v48 = vadd.f32 %v9478_v54, %v12234_v17  ;;  %v2733_v56 = vpop.f32.mrb[179].mxu0  ;;  %v16746_v18 = vld [vmem:[#allocation43_spill] sm:$0xff] }
 0x28b   :  { %v12355_v16 = vadd.f32 %v2731_v24, %v16742_v34  ;;  %v2734_v51 = vadd.f32 %v2733_v56, %v12213_v31  ;;  %v16747_v56 = vld [vmem:[#allocation37_spill] sm:$0xff] }
 0x28c   :  { %v2497_v26 = vpop.f32.mrb[188].mxu1  ;;  %16741 = vst [vmem:[#allocation23_spill] sm:$0xff] %v12351_v55  ;;  %v12359_v15 = vadd.f32 %v2742_v48, %v16743_v46  ;;  %v3071_v55 = vld [vmem:[#allocation2 + $0x308] sm:$0xff] }
 0x28d   :  { %v2499_v21 = vpop.f32.mrb[189].mxu1  ;;  %v12362_v43 = vadd.f32 %v2734_v51, %v16745_v41 }
 0x28e   :  { %v2500_v23 = vpop.f32.mrb[190].mxu1  ;;  %16744 = vst [vmem:[#allocation28_spill] sm:$0xff] %v12359_v15  ;;  %v16750_v15 = vld [vmem:[#allocation35_spill] sm:$0xff] }
 0x28f   :  { %v2502_v47 = vpop.f32.mrb[191].mxu1  ;;  %v9481_v13 = vpop.f32.mrb[180].mxu0 }
 0x290   :  { %v2755_v17 = vadd.f32 %v9481_v13, %v12266_v2  ;;  %v2746_v54 = vpop.f32.mrb[181].mxu0  ;;  %v16749_v47 = vld [vmem:[#allocation38_spill] sm:$0xff] }
 0x291   :  { %3515 = vmatmul.mubr.bf16.gmra.mrb[40].mxu1 %v16746_v18  ;;  %v2747_v24 = vadd.f32 %v2746_v54, %v12245_v27  ;;  %v9482_v21 = vpop.f32.mrb[182].mxu0  ;;  %v16752_v27 = vld [vmem:[#allocation40_spill] sm:$0xff] }
 0x292   :  { %3522 = vmatprep.mubr.bf16.mxu1 %v3068_v32  ;;  %v12368_v34 = vadd.f32 %v2755_v17, %v16747_v56  ;;  %v2758_v46 = vadd.f32 %v9482_v21, %v12276_v62  ;;  %v2749_v48 = vpop.f32.mrb[183].mxu0  ;;  %v16754_v17 = vld [vmem:[#allocation60_spill] sm:$0xff] }
 0x293   :  { %v12372_v41 = vadd.f32 %v2747_v24, %v16749_v47  ;;  %v2750_v18 = vadd.f32 %v2749_v48, %v12255_v14  ;;  %v16755_v48 = vld [vmem:[#allocation48_spill] sm:$0xff] }
 0x294   :  { %v3308_v31 = vpop.f32.mrb[192].mxu1  ;;  %16748 = vst [vmem:[#allocation26_spill] sm:$0xff] %v12368_v34  ;;  %v12376_v2 = vadd.f32 %v2758_v46, %v16750_v15  ;;  %v3074_v34 = vld [vmem:[#allocation2 + $0x320] sm:$0xff] }
 0x295   :  { %v3310_v51 = vpop.f32.mrb[193].mxu1  ;;  %v12379_v54 = vadd.f32 %v2750_v18, %v16752_v27 }
 0x296   :  { %v3311_v32 = vpop.f32.mrb[194].mxu1  ;;  %16751 = vst [vmem:[#allocation29_spill] sm:$0xff] %v12376_v2  ;;  %v16759_v2 = vld [vmem:[#allocation47_spill] sm:$0xff] }
 0x297   :  { %v3313_v13 = vpop.f32.mrb[195].mxu1  ;;  %16753 = vst [vmem:[#allocation27_spill] sm:$0xff] %v12379_v54  ;;  %v9485_v56 = vpop.f32.mrb[184].mxu0 }
 0x298   :  { %v2771_v62 = vadd.f32 %v9485_v56, %v12308_v63  ;;  %v2762_v21 = vpop.f32.mrb[185].mxu0  ;;  %v16757_v13 = vld [vmem:[#allocation39_spill] sm:$0xff] }
 0x299   :  { %3523 = vmatmul.mubr.bf16.gmra.mrb[44].mxu1 %v16754_v17  ;;  %v2763_v24 = vadd.f32 %v2762_v21, %v12287_v19  ;;  %v9486_v51 = vpop.f32.mrb[186].mxu0  ;;  %v16761_v19 = vld [vmem:[#allocation46_spill] sm:$0xff] }
 0x29a   :  { %3530 = vmatprep.mubr.bf16.mxu1 %v3071_v55  ;;  %v12385_v47 = vadd.f32 %v2771_v62, %v16755_v48  ;;  %v2774_v15 = vadd.f32 %v9486_v51, %v12318_v10  ;;  %v2765_v46 = vpop.f32.mrb[187].mxu0  ;;  %v16763_v62 = vld [vmem:[#allocation64_spill] sm:$0xff] }
 0x29b   :  { %v12389_v27 = vadd.f32 %v2763_v24, %v16757_v13  ;;  %v2766_v17 = vadd.f32 %v2765_v46, %v12297_v40  ;;  %v16764_v40 = vld [vmem:[#allocation54_spill] sm:$0xff] }
 0x29c   :  { %v3316_v14 = vpop.f32.mrb[196].mxu1  ;;  %16756 = vst [vmem:[#allocation32_spill] sm:$0xff] %v12385_v47  ;;  %v12393_v63 = vadd.f32 %v2774_v15, %v16759_v2  ;;  %v16768_v47 = vld [vmem:[#allocation50_spill] sm:$0xff] }
 0x29d   :  { %v3318_v18 = vpop.f32.mrb[197].mxu1  ;;  %16758 = vst [vmem:[#allocation30_spill] sm:$0xff] %v12389_v27  ;;  %v12396_v21 = vadd.f32 %v2766_v17, %v16761_v19 }
 0x29e   :  { %v3319_v55 = vpop.f32.mrb[198].mxu1  ;;  %16760 = vst [vmem:[#allocation33_spill] sm:$0xff] %v12393_v63  ;;  %v16766_v63 = vld [vmem:[#allocation61_spill] sm:$0xff] }
 0x29f   :  { %v3321_v56 = vpop.f32.mrb[199].mxu1  ;;  %16762 = vst [vmem:[#allocation31_spill] sm:$0xff] %v12396_v21  ;;  %v9489_v48 = vpop.f32.mrb[188].mxu0  ;;  %v16772_v21 = vld [vmem:[#allocation53_spill] sm:$0xff] }
 0x2a0   :  { %v2787_v10 = vadd.f32 %v9489_v48, %v2497_v26  ;;  %v2778_v51 = vpop.f32.mrb[189].mxu0  ;;  %v16770_v48 = vld [vmem:[#allocation52_spill] sm:$0xff] }
 0x2a1   :  { %3531 = vmatmul.mubr.bf16.gmra.mrb[48].mxu1 %v16763_v62  ;;  %v2779_v24 = vadd.f32 %v2778_v51, %v12329_v35  ;;  %v9490_v18 = vpop.f32.mrb[190].mxu0  ;;  %v3077_v51 = vld [vmem:[#allocation2 + $0x338] sm:$0xff] }
 0x2a2   :  { %3538 = vmatprep.mubr.bf16.mxu1 %v3074_v34  ;;  %v12401_v46 = vadd.f32 %v2787_v10, %v16764_v40  ;;  %v2790_v2 = vadd.f32 %v9490_v18, %v2500_v23  ;;  %v2781_v15 = vpop.f32.mrb[191].mxu0 }
 0x2a3   :  { %v12404_v17 = vadd.f32 %v2779_v24, %v16766_v63  ;;  %v2782_v19 = vadd.f32 %v2781_v15, %v12339_v38 }
 0x2a4   :  { %v3324_v13 = vpop.f32.mrb[200].mxu1  ;;  %16765 = vst [vmem:[#allocation41_spill] sm:$0xff] %v12401_v46  ;;  %v12408_v34 = vadd.f32 %v2790_v2, %v16768_v47 }
 0x2a5   :  { %v3326_v56 = vpop.f32.mrb[201].mxu1  ;;  %16767 = vst [vmem:[#allocation34_spill] sm:$0xff] %v12404_v17  ;;  %v12411_v35 = vadd.f32 %v2782_v19, %v16770_v48  ;;  %v16775_v48 = vld [vmem:[#allocation62_spill] sm:$0xff] }
 0x2a6   :  { %v3327_v62 = vpop.f32.mrb[202].mxu1  ;;  %16769 = vst [vmem:[#allocation44_spill] sm:$0xff] %v12408_v34 }
 0x2a7   :  { %v3329_v26 = vpop.f32.mrb[203].mxu1  ;;  %16771 = vst [vmem:[#allocation36_spill] sm:$0xff] %v12411_v35  ;;  %v9509_v10 = vpop.f32.mrb[192].mxu0 }
 0x2a8   :  { %v3606_v23 = vadd.f32 %v9509_v10, %v3316_v14  ;;  %v3597_v18 = vpop.f32.mrb[193].mxu0  ;;  %v16777_v14 = vld [vmem:[#allocation56_spill] sm:$0xff] }
 0x2a9   :  { %3539 = vmatmul.mubr.bf16.gmra.mrb[52].mxu1 %v16772_v21  ;;  %v3598_v40 = vadd.f32 %v3597_v18, %v3308_v31  ;;  %v9510_v63 = vpop.f32.mrb[194].mxu0  ;;  %v16779_v31 = vld [vmem:[#allocation17_spill] sm:$0xff] }
 0x2aa   :  { %3546 = vmatprep.mubr.bf16.mxu1 %v3077_v51  ;;  %v12415_v38 = vadd.f32 %v3606_v23, %v12098_v30  ;;  %v3609_v15 = vadd.f32 %v9510_v63, %v3319_v55  ;;  %v3600_v47 = vpop.f32.mrb[195].mxu0 }
 0x2ab   :  { %v12418_v56 = vadd.f32 %v3598_v40, %v12102_v11  ;;  %v3601_v19 = vadd.f32 %v3600_v47, %v3311_v32 }
 0x2ac   :  { %v3332_v24 = vpop.f32.mrb[204].mxu1  ;;  %16773 = vst [vmem:[#allocation55_spill] sm:$0xff] %v12415_v38  ;;  %v12421_v21 = vadd.f32 %v3609_v15, %v16775_v48 }
 0x2ad   :  { %v3334_v2 = vpop.f32.mrb[205].mxu1  ;;  %16774 = vst [vmem:[#allocation49_spill] sm:$0xff] %v12418_v56  ;;  %v12424_v10 = vadd.f32 %v3601_v19, %v16777_v14 }
 0x2ae   :  { %v3335_v26 = vpop.f32.mrb[206].mxu1  ;;  %16776 = vst [vmem:[#allocation57_spill] sm:$0xff] %v12421_v21 }
 0x2af   :  { %v3337_v51 = vpop.f32.mrb[207].mxu1  ;;  %16778 = vst [vmem:[#allocation51_spill] sm:$0xff] %v12424_v10  ;;  %v9513_v18 = vpop.f32.mrb[196].mxu0 }
 0x2b0   :  { %v3622_v30 = vadd.f32 %v9513_v18, %v3332_v24  ;;  %v3613_v55 = vpop.f32.mrb[197].mxu0  ;;  %v16782_v51 = vld [vmem:[#allocation15_spill] sm:$0xff]  ;;  %v16784_v24 = vld [vmem:[#allocation65_spill] sm:$0xff] }
 0x2b1   :  { %3547 = vmatmul.mubr.bf16.gmra.mrb[56].mxu1 %v16779_v31  ;;  %v3614_v23 = vadd.f32 %v3613_v55, %v3324_v13  ;;  %v9514_v63 = vpop.f32.mrb[198].mxu0 }
 0x2b2   :  { %3554 = vmatprep.mubr.bf16.mxu1 %v12036_v53  ;;  %v12429_v32 = vadd.f32 %v3622_v30, %v12120_v36  ;;  %v3625_v40 = vadd.f32 %v9514_v63, %v3335_v26  ;;  %v3616_v15 = vpop.f32.mrb[199].mxu0 }
 0x2b3   :  { %v12432_v2 = vadd.f32 %v3614_v23, %v12124_v50  ;;  %v3617_v19 = vadd.f32 %v3616_v15, %v3327_v62 }
 0x2b4   :  { %v3340_v11 = vpop.f32.mrb[208].mxu1  ;;  %16780 = vst [vmem:[#allocation66_spill] sm:$0xff] %v12429_v32  ;;  %v12435_v14 = vadd.f32 %v3625_v40, %v16782_v51 }
 0x2b5   :  { %v3342_v47 = vpop.f32.mrb[209].mxu1  ;;  %16781 = vst [vmem:[#allocation59_spill] sm:$0xff] %v12432_v2  ;;  %v12438_v18 = vadd.f32 %v3617_v19, %v16784_v24 }
 0x2b6   :  { %v3343_v48 = vpop.f32.mrb[210].mxu1  ;;  %16783 = vst [vmem:[#allocation68_spill] sm:$0xff] %v12435_v14 }
 0x2b7   :  { %v3345_v31 = vpop.f32.mrb[211].mxu1  ;;  %16785 = vst [vmem:[#allocation63_spill] sm:$0xff] %v12438_v18  ;;  %v9517_v13 = vpop.f32.mrb[200].mxu0 }
 0x2b8   :  { %v3629_v36 = vpop.f32.mrb[201].mxu0 }
 0x2b9   :  { %3555 = vmatmul.mubr.bf16.gmra.mrb[60].mxu1 %v12036_v53  ;;  %v3630_v26 = vadd.f32 %v3629_v36, %v3340_v11  ;;  %v9518_v30 = vpop.f32.mrb[202].mxu0  ;;  %v16789_v11 = vld [vmem:[#allocation13_spill] sm:$0xff] }
 0x2ba   :  { %9587 = vmatprep.mubr.bf16.mxu1 %v12036_v53  ;;  %v3632_v50 = vpop.f32.mrb[203].mxu0 }
 0x2bb   :  { %v12443_v63 = vadd.f32 %v3630_v26, %v12145_v61  ;;  %v3633_v15 = vadd.f32 %v3632_v50, %v3343_v48 }
 0x2bc   :  { %v3348_v55 = vpop.f32.mrb[212].mxu1 }
 0x2bd   :  { %v3350_v23 = vpop.f32.mrb[213].mxu1  ;;  %v3638_v62 = vadd.f32 %v9517_v13, %v3348_v55  ;;  %16786 = vst [vmem:[#allocation71_spill] sm:$0xff] %v12443_v63  ;;  %v12449_v31 = vadd.f32 %v3633_v15, %v12154_v3  ;;  %v4179_v3 = vmul.f32 %v12424_v10, %v12424_v10  ;;  %v4178_v15 = vmul.f32 %v12418_v56, %v12418_v56 }
 0x2be   :  { %v3351_v40 = vpop.f32.mrb[214].mxu1 }
 0x2bf   :  { %v3353_v47 = vpop.f32.mrb[215].mxu1  ;;  %v12446_v19 = vadd.f32 %v3638_v62, %v12141_v4  ;;  %v3641_v51 = vadd.f32 %v9518_v30, %v3351_v40  ;;  %16788 = vst [vmem:[#allocation72_spill] sm:$0xff] %v12449_v31  ;;  %v9521_v24 = vpop.f32.mrb[204].mxu0 }
 0x2c0   :  { %v3645_v34 = vpop.f32.mrb[205].mxu0 }
 0x2c1   :  { %16787 = vst [vmem:[#allocation69_spill] sm:$0xff] %v12446_v19  ;;  %v12452_v36 = vadd.f32 %v3641_v51, %v16789_v11  ;;  %v9522_v23 = vpop.f32.mrb[206].mxu0 }
 0x2c2   :  { %v3648_v55 = vpop.f32.mrb[207].mxu0 }
 0x2c3   :  { %16790 = vst [vmem:[#allocation70_spill] sm:$0xff] %v12452_v36 }
 0x2c4   :  { %v3356_v13 = vpop.f32.mrb[216].mxu1 }
 0x2c5   :  { %v3358_v61 = vpop.f32.mrb[217].mxu1  ;;  %v3646_v26 = vadd.f32 %v3645_v34, %v3356_v13  ;;  %v4108_v34 = vadd.f32 %v12424_v10, %v12418_v56 }
 0x2c6   :  { %v3359_v46 = vpop.f32.mrb[218].mxu1 }
 0x2c7   :  { %v3361_v48 = vpop.f32.mrb[219].mxu1  ;;  %v12455_v50 = vadd.f32 %v3646_v26, %v12166_v45  ;;  %v3649_v4 = vadd.f32 %v3648_v55, %v3359_v46  ;;  %v9525_v62 = vpop.f32.mrb[208].mxu0  ;;  %v4242_v45 = vadd.f32 %v4179_v3, %v4178_v15  ;;  %v9890_v55 = vld [vmem:[#allocation4 + $0x80] sm:$0xff]   ;;  %v4109_v26 = vadd.f32 %v4108_v34, %v12415_v38 }
 0x2c8   :  { %v3661_v40 = vpop.f32.mrb[209].mxu0  ;;  %9571 = vmatprep.subr.bf16.mxu1 %v9890_v55  ;;  %v4181_v15 = vmul.f32 %v12421_v21, %v12421_v21 }
 0x2c9   :  { %16791 = vst [vmem:[#allocation73_spill] sm:$0xff] %v12455_v50  ;;  %v12460_v30 = vadd.f32 %v3649_v4, %v12175_v33  ;;  %v9526_v47 = vpop.f32.mrb[210].mxu0  ;;  %v4180_v33 = vmul.f32 %v12415_v38, %v12415_v38  ;;  %9572 = vmatpush3.bf16.msra.mxu1 %v9890_v55  ;;  %v16798_v38 = vld [vmem:[#allocation58_spill] sm:$0xff] }
 0x2ca   :  { %v3664_v11 = vpop.f32.mrb[211].mxu0 }
 0x2cb   :  { %16792 = vst [vmem:[#allocation75_spill] sm:$0xff] %v12460_v30  ;;  %v4243_v10 = vadd.f32 %v4242_v45, %v4180_v33  ;;  %v4182_v45 = vmul.f32 %v12432_v2, %v12432_v2 }
 0x2cc   :  { %v3364_v51 = vpop.f32.mrb[220].mxu1 }
 0x2cd   :  { %v3654_v13 = vadd.f32 %v9521_v24, %v3364_v51  ;;  %v3366_v46 = vpop.f32.mrb[221].mxu1  ;;  %v4110_v51 = vadd.f32 %v4109_v26, %v12421_v21 }
 0x2ce   :  { %v3367_v61 = vpop.f32.mrb[222].mxu1 }
 0x2cf   :  { %v12470_v48 = vadd.f32 %v3654_v13, %v12162_v49  ;;  %v3657_v4 = vadd.f32 %v9522_v23, %v3367_v61  ;;  %v3369_v35 = vpop.f32.mrb[223].mxu1  ;;  %v12475_v24 = vpop.f32.mrb[212].mxu0  ;;  %v9891_v49 = vld [vmem:[#allocation4] sm:$0xff]   ;;  %v4111_v61 = vadd.f32 %v4110_v51, %v12432_v2  ;;  %v9892_v51 = vld [vmem:[#allocation4 + $0x8] sm:$0xff]  }
 0x2d0   :  { %v3677_v3 = vpop.f32.mrb[213].mxu0  ;;  %v4244_v35 = vadd.f32 %v4243_v10, %v4181_v15  ;;  %5627 = vmatpush1.bf16.msra.mxu0 %v9891_v49  ;;  %v4183_v10 = vmul.f32 %v12438_v18, %v12438_v18 }
 0x2d1   :  { %16793 = vst [vmem:[#allocation74_spill] sm:$0xff] %v12470_v48  ;;  %v12473_v56 = vadd.f32 %v3657_v4, %v12172_v8  ;;  %v12480_v34 = vpop.f32.mrb[214].mxu0  ;;  %5628 = vmatprep.subr.bf16.mxu0 %v12036_v53 }
 0x2d2   :  { %v3680_v23 = vpop.f32.mrb[215].mxu0  ;;  %v4245_v21 = vadd.f32 %v4244_v35, %v4182_v45 }
 0x2d3   :  { %16794 = vst [vmem:[#allocation88_spill] sm:$0xff] %v12473_v56 }
 0x2d4   :  { %v3372_v13 = vpop.f32.mrb[224].mxu1  ;;  %5629 = vmatpush1.bf16.msra.mxu0 %v9892_v51 }
 0x2d5   :  { %v3662_v46 = vadd.f32 %v3661_v40, %v3372_v13  ;;  %v3374_v8 = vpop.f32.mrb[225].mxu1  ;;  %v4112_v13 = vadd.f32 %v4111_v61, %v12438_v18  ;;  %5630 = vmatprep.subr.bf16.mxu0 %v12036_v53  ;;  %v4185_v53 = vmul.f32 %v12435_v14, %v12435_v14 }
 0x2d6   :  { %v3375_v55 = vpop.f32.mrb[226].mxu1 }
 0x2d7   :  { %v12487_v33 = vadd.f32 %v3662_v46, %v12187_v1  ;;  %v3665_v26 = vadd.f32 %v3664_v11, %v3375_v55  ;;  %v3377_v4 = vpop.f32.mrb[227].mxu1  ;;  %v12494_v40 = vpop.f32.mrb[216].mxu0  ;;  %v4246_v11 = vadd.f32 %v4245_v21, %v4183_v10 }
 0x2d8   :  { %v12496_v49 = vpop.f32.mrb[217].mxu0 }
 0x2d9   :  { %16795 = vst [vmem:[#allocation78_spill] sm:$0xff] %v12487_v33  ;;  %v12492_v15 = vadd.f32 %v3665_v26, %v12197_v0  ;;  %v12499_v8 = vpop.f32.mrb[218].mxu0  ;;  %v4184_v0 = vmul.f32 %v12429_v32, %v12429_v32  ;;  %v4113_v26 = vadd.f32 %v4112_v13, %v12429_v32  ;;  %v9893_v13 = vld [vmem:[#allocation4 + $0x10] sm:$0xff]  }
 0x2da   :  { %v12501_v46 = vpop.f32.mrb[219].mxu0  ;;  %5631 = vmatpush1.bf16.msra.mxu0 %v9893_v13 }
 0x2db   :  { %16796 = vst [vmem:[#allocation76_spill] sm:$0xff] %v12492_v15  ;;  %v4247_v2 = vadd.f32 %v4246_v11, %v4184_v0  ;;  %v4114_v10 = vadd.f32 %v4113_v26, %v12435_v14 }
 0x2dc   :  { %v3380_v1 = vpop.f32.mrb[228].mxu1 }
 0x2dd   :  { %v3670_v35 = vadd.f32 %v9525_v62, %v3380_v1  ;;  %v3382_v45 = vpop.f32.mrb[229].mxu1 }
 0x2de   :  { %v3383_v55 = vpop.f32.mrb[230].mxu1  ;;  %v12526_v45 = vld [vmem:[#allocation2 + $0x10] sm:$0xff] }
 0x2df   :  { %v12508_v61 = vadd.f32 %v3670_v35, %v12183_v59  ;;  %v3673_v4 = vadd.f32 %v9526_v47, %v3383_v55  ;;  %v3385_v18 = vpop.f32.mrb[231].mxu1  ;;  %v12513_v21 = vpop.f32.mrb[220].mxu0  ;;  %5632 = vmatprep.subr.bf16.mxu0 %v12526_v45  ;;  %v4115_v55 = vadd.f32 %v4114_v10, %v12443_v63  ;;  %v9894_v10 = vld [vmem:[#allocation4 + $0x18] sm:$0xff]  }
 0x2e0   :  { %v12515_v62 = vpop.f32.mrb[221].mxu0  ;;  %v4248_v18 = vadd.f32 %v4247_v2, %v4185_v53  ;;  %v4187_v2 = vmul.f32 %v12449_v31, %v12449_v31  ;;  %5633 = vmatpush1.bf16.msra.mxu0 %v9894_v10 }
 0x2e1   :  { %16797 = vst [vmem:[#allocation79_spill] sm:$0xff] %v12508_v61  ;;  %v12511_v17 = vadd.f32 %v3673_v4, %v16798_v38  ;;  %v12520_v51 = vpop.f32.mrb[222].mxu0  ;;  %v4186_v38 = vmul.f32 %v12443_v63, %v12443_v63  ;;  %5634 = vmatprep.subr.bf16.mxu0 %v12526_v45 }
 0x2e2   :  { %v12522_v1 = vpop.f32.mrb[223].mxu0 }
 0x2e3   :  { %16799 = vst [vmem:[#allocation77_spill] sm:$0xff] %v12511_v17  ;;  %v4249_v14 = vadd.f32 %v4248_v18, %v4186_v38 }
 0x2e4   :  { %v3388_v59 = vpop.f32.mrb[232].mxu1 }
 0x2e5   :  { %v3678_v47 = vadd.f32 %v3677_v3, %v3388_v59  ;;  %v3390_v11 = vpop.f32.mrb[233].mxu1  ;;  %v4116_v59 = vadd.f32 %v4115_v55, %v12449_v31 }
 0x2e6   :  { %v3391_v35 = vpop.f32.mrb[234].mxu1 }
 0x2e7   :  { %v12531_v0 = vadd.f32 %v3678_v47, %v12210_v12  ;;  %v3681_v26 = vadd.f32 %v3680_v23, %v3391_v35  ;;  %v3393_v4 = vpop.f32.mrb[235].mxu1  ;;  %v12538_v53 = vpop.f32.mrb[224].mxu0  ;;  %v4250_v23 = vadd.f32 %v4249_v14, %v4187_v2  ;;  %v9895_v35 = vld [vmem:[#allocation4 + $0x88] sm:$0xff]   ;;  %v4117_v55 = vadd.f32 %v4116_v59, %v12446_v19 }
 0x2e8   :  { %v12540_v13 = vpop.f32.mrb[225].mxu0  ;;  %9573 = vmatprep.subr.bf16.mxu1 %v9895_v35 }
 0x2e9   :  { %16800 = vst [vmem:[#allocation42_spill] sm:$0xff] %v12531_v0  ;;  %v12536_v3 = vadd.f32 %v3681_v26, %v12219_v25  ;;  %v12543_v11 = vpop.f32.mrb[226].mxu0  ;;  %v4188_v26 = vmul.f32 %v12446_v19, %v12446_v19  ;;  %9574 = vmatpush3.bf16.msra.mxu1 %v9895_v35  ;;  %v4118_v59 = vadd.f32 %v4117_v55, %v12452_v36 }
 0x2ea   :  { %v12545_v47 = vpop.f32.mrb[227].mxu0 }
 0x2eb   :  { %16801 = vst [vmem:[#allocation82_spill] sm:$0xff] %v12536_v3  ;;  %v4251_v14 = vadd.f32 %v4250_v23, %v4188_v26 }
 0x2ec   :  { %v3396_v12 = vpop.f32.mrb[236].mxu1 }
 0x2ed   :  { %v3686_v18 = vadd.f32 %v12475_v24, %v3396_v12  ;;  %v3398_v38 = vpop.f32.mrb[237].mxu1  ;;  %v16803_v24 = vld [vmem:[#allocation16_spill] sm:$0xff] }
 0x2ee   :  { %v3399_v25 = vpop.f32.mrb[238].mxu1  ;;  %v4189_v38 = vmul.f32 %v12452_v36, %v12452_v36 }
 0x2ef   :  { %v12553_v4 = vadd.f32 %v3686_v18, %v12206_v6  ;;  %v3689_v31 = vadd.f32 %v12480_v34, %v3399_v25  ;;  %v3401_v63 = vpop.f32.mrb[239].mxu1  ;;  %v12559_v10 = vpop.f32.mrb[228].mxu0  ;;  %v9896_v18 = vld [vmem:[#allocation4 + $0x20] sm:$0xff]  }
 0x2f0   :  { %v12561_v12 = vpop.f32.mrb[229].mxu0  ;;  %v4252_v35 = vadd.f32 %v4251_v14, %v4189_v38  ;;  %5635 = vmatpush1.bf16.msra.mxu0 %v9896_v18  ;;  %v4191_v14 = vmul.f32 %v12460_v30, %v12460_v30 }
 0x2f1   :  { %16802 = vst [vmem:[#allocation80_spill] sm:$0xff] %v12553_v4  ;;  %v12557_v2 = vadd.f32 %v3689_v31, %v16803_v24  ;;  %v12566_v6 = vpop.f32.mrb[230].mxu0  ;;  %v4190_v31 = vmul.f32 %v12455_v50, %v12455_v50  ;;  %5636 = vmatprep.subr.bf16.mxu0 %v12526_v45  ;;  %v4119_v24 = vadd.f32 %v4118_v59, %v12455_v50 }
 0x2f2   :  { %v12568_v63 = vpop.f32.mrb[231].mxu0 }
 0x2f3   :  { %16804 = vst [vmem:[#allocation83_spill] sm:$0xff] %v12557_v2  ;;  %v4253_v32 = vadd.f32 %v4252_v35, %v4190_v31 }
 0x2f4   :  { %v3404_v34 = vpop.f32.mrb[240].mxu1 }
 0x2f5   :  { %v3694_v23 = vadd.f32 %v12496_v49, %v3404_v34  ;;  %v3406_v25 = vpop.f32.mrb[241].mxu1  ;;  %v4120_v34 = vadd.f32 %v4119_v24, %v12460_v30 }
 0x2f6   :  { %v3407_v26 = vpop.f32.mrb[242].mxu1 }
 0x2f7   :  { %v12576_v55 = vadd.f32 %v3694_v23, %v12231_v5  ;;  %v3697_v36 = vadd.f32 %v12501_v46, %v3407_v26  ;;  %v3409_v19 = vpop.f32.mrb[243].mxu1  ;;  %v12584_v49 = vpop.f32.mrb[232].mxu0  ;;  %v9897_v5 = vld [vmem:[#allocation4 + $0x28] sm:$0xff]  }
 0x2f8   :  { %v12586_v18 = vpop.f32.mrb[233].mxu0  ;;  %v4254_v19 = vadd.f32 %v4253_v32, %v4191_v14  ;;  %5637 = vmatpush1.bf16.msra.mxu0 %v9897_v5  ;;  %v16806_v32 = vld [vmem:[#allocation14_spill] sm:$0xff] }
 0x2f9   :  { %v12582_v38 = vadd.f32 %v3697_v36, %v12240_v57  ;;  %v12589_v59 = vpop.f32.mrb[234].mxu0  ;;  %5638 = vmatprep.subr.bf16.mxu0 %v12526_v45  ;;  %v4192_v57 = vmul.f32 %v12470_v48, %v12470_v48  ;;  %v4121_v36 = vadd.f32 %v4120_v34, %v12470_v48 }
 0x2fa   :  { %v12591_v25 = vpop.f32.mrb[235].mxu0 }
 0x2fb   :  { %16805 = vst [vmem:[#allocation81_spill] sm:$0xff] %v12582_v38  ;;  %v4255_v50 = vadd.f32 %v4254_v19, %v4192_v57 }
 0x2fc   :  { %v3412_v23 = vpop.f32.mrb[244].mxu1 }
 0x2fd   :  { %v3702_v46 = vadd.f32 %v12494_v40, %v3412_v23  ;;  %v3414_v35 = vpop.f32.mrb[245].mxu1  ;;  %v4193_v23 = vmul.f32 %v12473_v56, %v12473_v56 }
 0x2fe   :  { %v3415_v31 = vpop.f32.mrb[246].mxu1  ;;  %v4122_v35 = vadd.f32 %v4121_v36, %v12473_v56 }
 0x2ff   :  { %v12599_v26 = vadd.f32 %v3702_v46, %v12227_v39  ;;  %v3705_v24 = vadd.f32 %v12499_v8, %v3415_v31  ;;  %v3417_v30 = vpop.f32.mrb[247].mxu1  ;;  %v12605_v40 = vpop.f32.mrb[236].mxu0  ;;  %v9898_v39 = vld [vmem:[#allocation4 + $0x30] sm:$0xff]   ;;  %v4194_v8 = vmul.f32 %v12487_v33, %v12487_v33 }
 0x300   :  { %v12607_v5 = vpop.f32.mrb[237].mxu0  ;;  %v4256_v30 = vadd.f32 %v4255_v50, %v4193_v23  ;;  %5639 = vmatpush1.bf16.msra.mxu0 %v9898_v39  ;;  %v4195_v50 = vmul.f32 %v12492_v15, %v12492_v15 }
 0x301   :  { %v12603_v14 = vadd.f32 %v3705_v24, %v16806_v32  ;;  %v12612_v34 = vpop.f32.mrb[238].mxu0  ;;  %5640 = vmatprep.subr.bf16.mxu0 %v12526_v45  ;;  %v4123_v24 = vadd.f32 %v4122_v35, %v12487_v33 }
 0x302   :  { %v12614_v48 = vpop.f32.mrb[239].mxu0  ;;  %v4257_v27 = vadd.f32 %v4256_v30, %v4194_v8 }
 0x304   :  { %v3420_v46 = vpop.f32.mrb[248].mxu1  ;;  %v4258_v8 = vadd.f32 %v4257_v27, %v4195_v50  ;;  %v4198_v50 = vmul.f32 %v12531_v0, %v12531_v0 }
 0x305   :  { %v3710_v19 = vadd.f32 %v12515_v62, %v3420_v46  ;;  %v3422_v31 = vpop.f32.mrb[249].mxu1  ;;  %v4124_v46 = vadd.f32 %v4123_v24, %v12492_v15  ;;  %v4197_v15 = vmul.f32 %v12511_v17, %v12511_v17 }
 0x306   :  { %v3423_v57 = vpop.f32.mrb[250].mxu1 }
 0x307   :  { %v12622_v36 = vadd.f32 %v3710_v19, %v12252_v42  ;;  %v3713_v32 = vadd.f32 %v12522_v1, %v3423_v57  ;;  %v3425_v56 = vpop.f32.mrb[251].mxu1  ;;  %v12630_v62 = vpop.f32.mrb[240].mxu0  ;;  %v4196_v42 = vmul.f32 %v12508_v61, %v12508_v61  ;;  %v9899_v1 = vld [vmem:[#allocation4 + $0x38] sm:$0xff]   ;;  %v4125_v19 = vadd.f32 %v4124_v46, %v12508_v61  ;;  %v9900_v57 = vld [vmem:[#allocation4 + $0x90] sm:$0xff]   ;;  %v16807_v46 = vld [vmem:[#allocation67_spill] sm:$0xff] }
 0x308   :  { %v12632_v39 = vpop.f32.mrb[241].mxu0  ;;  %5641 = vmatpush1.bf16.msra.mxu0 %v9899_v1  ;;  %9575 = vmatprep.subr.bf16.mxu1 %v9900_v57 }
 0x309   :  { %v12628_v23 = vadd.f32 %v3713_v32, %v12261_v29  ;;  %v12637_v35 = vpop.f32.mrb[242].mxu0  ;;  %5642 = vmatprep.subr.bf16.mxu0 %v12526_v45  ;;  %v4259_v24 = vadd.f32 %v4258_v8, %v4196_v42  ;;  %9576 = vmatpush3.bf16.msra.mxu1 %v9900_v57 }
 0x30a   :  { %v12639_v30 = vpop.f32.mrb[243].mxu0 }
 0x30b   :  { %v4260_v8 = vadd.f32 %v4259_v24, %v4197_v15  ;;  %v4200_v24 = vmul.f32 %v12553_v4, %v12553_v4 }
 0x30c   :  { %v3428_v56 = vpop.f32.mrb[252].mxu1 }
 0x30d   :  { %v3718_v29 = vadd.f32 %v12513_v21, %v3428_v56  ;;  %v3430_v31 = vpop.f32.mrb[253].mxu1  ;;  %v4126_v21 = vadd.f32 %v4125_v19, %v12511_v17  ;;  %v4261_v19 = vadd.f32 %v4260_v8, %v4198_v50 }
 0x30e   :  { %v3431_v32 = vpop.f32.mrb[254].mxu1 }
 0x30f   :  { %v12647_v33 = vadd.f32 %v3718_v29, %v12248_v37  ;;  %v3721_v54 = vadd.f32 %v12520_v51, %v3431_v32  ;;  %v3433_v27 = vpop.f32.mrb[255].mxu1  ;;  %v12656_v42 = vpop.f32.mrb[244].mxu0  ;;  %v4127_v37 = vadd.f32 %v4126_v21, %v12531_v0  ;;  %v9901_v51 = vld [vmem:[#allocation4 + $0x40] sm:$0xff]   ;;  %v4199_v32 = vmul.f32 %v12536_v3, %v12536_v3 }
 0x310   :  { %v12658_v56 = vpop.f32.mrb[245].mxu0  ;;  %5643 = vmatpush1.bf16.msra.mxu0 %v9901_v51 }
 0x311   :  { %v12654_v1 = vadd.f32 %v3721_v54, %v16807_v46  ;;  %v12661_v29 = vpop.f32.mrb[246].mxu0  ;;  %5644 = vmatprep.subr.bf16.mxu0 %v12526_v45  ;;  %v4128_v15 = vadd.f32 %v4127_v37, %v12536_v3  ;;  %v4262_v0 = vadd.f32 %v4261_v19, %v4199_v32  ;;  %v4202_v19 = vmul.f32 %v12576_v55, %v12576_v55 }
 0x312   :  { %v12663_v57 = vpop.f32.mrb[247].mxu0 }
 0x313   :  { %v4129_v17 = vadd.f32 %v4128_v15, %v12553_v4  ;;  %v4263_v37 = vadd.f32 %v4262_v0, %v4200_v24 }
 0x314   :  { %v3436_v31 = vpop.f32.mrb[0].mxu1 }
 0x315   :  { %v3726_v54 = vadd.f32 %v12540_v13, %v3436_v31  ;;  %v3438_v27 = vpop.f32.mrb[1].mxu1 }
 0x316   :  { %v3439_v46 = vpop.f32.mrb[2].mxu1  ;;  %v4201_v27 = vmul.f32 %v12557_v2, %v12557_v2 }
 0x317   :  { %v12673_v21 = vadd.f32 %v3726_v54, %v12273_v22  ;;  %v3729_v50 = vadd.f32 %v12545_v47, %v3439_v46  ;;  %v3441_v8 = vpop.f32.mrb[3].mxu1  ;;  %v12680_v51 = vpop.f32.mrb[248].mxu0  ;;  %v4130_v47 = vadd.f32 %v4129_v17, %v12557_v2  ;;  %v4203_v17 = vmul.f32 %v12582_v38, %v12582_v38 }
 0x318   :  { %v12682_v31 = vpop.f32.mrb[249].mxu0  ;;  %v4264_v15 = vadd.f32 %v4263_v37, %v4201_v27 }
 0x319   :  { %v12678_v13 = vadd.f32 %v3729_v50, %v12282_v52  ;;  %v12686_v3 = vpop.f32.mrb[250].mxu0  ;;  %v4131_v0 = vadd.f32 %v4130_v47, %v12576_v55 }
 0x31a   :  { %v12688_v54 = vpop.f32.mrb[251].mxu0  ;;  %v4265_v4 = vadd.f32 %v4264_v15, %v4202_v19  ;;  %v4205_v15 = vmul.f32 %v12603_v14, %v12603_v14 }
 0x31b   :  { %v4132_v37 = vadd.f32 %v4131_v0, %v12582_v38 }
 0x31c   :  { %v3444_v22 = vpop.f32.mrb[4].mxu1  ;;  %v4266_v47 = vadd.f32 %v4265_v4, %v4203_v17  ;;  %v4206_v4 = vmul.f32 %v12622_v36, %v12622_v36 }
 0x31d   :  { %v3734_v52 = vadd.f32 %v12538_v53, %v3444_v22  ;;  %v3446_v32 = vpop.f32.mrb[5].mxu1  ;;  %v4133_v19 = vadd.f32 %v4132_v37, %v12599_v26 }
 0x31e   :  { %v3447_v46 = vpop.f32.mrb[6].mxu1 }
 0x31f   :  { %v12696_v24 = vadd.f32 %v3734_v52, %v12269_v20  ;;  %v3737_v50 = vadd.f32 %v12543_v11, %v3447_v46  ;;  %v3449_v8 = vpop.f32.mrb[7].mxu1  ;;  %v12704_v61 = vpop.f32.mrb[252].mxu0  ;;  %v4204_v20 = vmul.f32 %v12599_v26, %v12599_v26  ;;  %v4134_v38 = vadd.f32 %v4133_v19, %v12603_v14 }
 0x320   :  { %v12706_v53 = vpop.f32.mrb[253].mxu0 }
 0x321   :  { %v12702_v2 = vadd.f32 %v3737_v50, %v12279_v7  ;;  %v12711_v27 = vpop.f32.mrb[254].mxu0  ;;  %v4267_v46 = vadd.f32 %v4266_v47, %v4204_v20  ;;  %v4135_v37 = vadd.f32 %v4134_v38, %v12622_v36 }
 0x322   :  { %v12713_v22 = vpop.f32.mrb[255].mxu0 }
 0x323   :  { %v4136_v19 = vadd.f32 %v4135_v37, %v12628_v23 }
 0x324   :  { %v3452_v11 = vpop.f32.mrb[8].mxu1 }
 0x325   :  { %v3742_v7 = vadd.f32 %v12561_v12, %v3452_v11  ;;  %v3454_v52 = vpop.f32.mrb[9].mxu1  ;;  %v4268_v12 = vadd.f32 %v4267_v46, %v4205_v15 }
 0x326   :  { %v3455_v32 = vpop.f32.mrb[10].mxu1  ;;  %v4208_v52 = vmul.f32 %v12647_v33, %v12647_v33 }
 0x327   :  { %v12720_v0 = vadd.f32 %v3742_v7, %v12294_v60  ;;  %v3745_v50 = vadd.f32 %v12568_v63, %v3455_v32  ;;  %v3457_v8 = vpop.f32.mrb[11].mxu1  ;;  %v4269_v11 = vadd.f32 %v4268_v12, %v4206_v4  ;;  %v4207_v60 = vmul.f32 %v12628_v23, %v12628_v23  ;;  %v16808_v32 = vld [vmem:[#allocation20_spill] sm:$0xff] }
 0x328   :  { %v16809_v8 = vld [vmem:[#allocation18_spill] sm:$0xff]  ;;  %v4209_v12 = vmul.f32 %v12654_v1, %v12654_v1 }
 0x329   :  { %v12727_v17 = vadd.f32 %v3745_v50, %v12303_v58  ;;  %v4270_v15 = vadd.f32 %v4269_v11, %v4207_v60  ;;  %v4137_v50 = vadd.f32 %v4136_v19, %v12647_v33 }
 0x32c   :  { %v3460_v20 = vpop.f32.mrb[12].mxu1 }
 0x32d   :  { %v3750_v47 = vadd.f32 %v12559_v10, %v3460_v20  ;;  %v3462_v63 = vpop.f32.mrb[13].mxu1  ;;  %v4271_v10 = vadd.f32 %v4270_v15, %v4208_v52  ;;  %v4138_v20 = vadd.f32 %v4137_v50, %v12654_v1  ;;  %v4212_v50 = vmul.f32 %v12696_v24, %v12696_v24 }
 0x32e   :  { %v3463_v7 = vpop.f32.mrb[14].mxu1 }
 0x32f   :  { %v12737_v58 = vadd.f32 %v3750_v47, %v16808_v32  ;;  %v3753_v46 = vadd.f32 %v12566_v6, %v3463_v7  ;;  %v3465_v38 = vpop.f32.mrb[15].mxu1  ;;  %v4210_v47 = vmul.f32 %v12673_v21, %v12673_v21  ;;  %v4272_v11 = vadd.f32 %v4271_v10, %v4209_v12 }
 0x330   :  { %v4139_v60 = vadd.f32 %v4138_v20, %v12673_v21  ;;  %v4211_v38 = vmul.f32 %v12678_v13, %v12678_v13 }
 0x331   :  { %v12742_v4 = vadd.f32 %v3753_v46, %v16809_v8  ;;  %v4273_v46 = vadd.f32 %v4272_v11, %v4210_v47  ;;  %v4213_v47 = vmul.f32 %v12702_v2, %v12702_v2 }
 0x333   :  { %v4274_v10 = vadd.f32 %v4273_v46, %v4211_v38 }
 0x334   :  { %v3468_v37 = vpop.f32.mrb[16].mxu1 }
 0x335   :  { %v3758_v63 = vadd.f32 %v12586_v18, %v3468_v37  ;;  %v3470_v6 = vpop.f32.mrb[17].mxu1  ;;  %v4140_v18 = vadd.f32 %v4139_v60, %v12678_v13  ;;  %v4275_v20 = vadd.f32 %v4274_v10, %v4212_v50  ;;  %v4214_v60 = vmul.f32 %v12720_v0, %v12720_v0 }
 0x336   :  { %v3471_v7 = vpop.f32.mrb[18].mxu1  ;;  %v4215_v50 = vmul.f32 %v12727_v17, %v12727_v17 }
 0x337   :  { %v12752_v19 = vadd.f32 %v3758_v63, %v12315_v44  ;;  %v3761_v52 = vadd.f32 %v12591_v25, %v3471_v7  ;;  %v3473_v32 = vpop.f32.mrb[19].mxu1  ;;  %v4141_v44 = vadd.f32 %v4140_v18, %v12696_v24  ;;  %v16810_v63 = vld [vmem:[#allocation21_spill] sm:$0xff] }
 0x339   :  { %v12758_v15 = vadd.f32 %v3761_v52, %v12324_v28  ;;  %v4142_v11 = vadd.f32 %v4141_v44, %v12702_v2  ;;  %v16811_v52 = vld [vmem:[#allocation19_spill] sm:$0xff] }
 0x33b   :  { %v4143_v46 = vadd.f32 %v4142_v11, %v12720_v0  ;;  %v4217_v11 = vmul.f32 %v12742_v4, %v12742_v4 }
 0x33c   :  { %v3476_v8 = vpop.f32.mrb[20].mxu1 }
 0x33d   :  { %v3766_v12 = vadd.f32 %v12584_v49, %v3476_v8  ;;  %v3478_v25 = vpop.f32.mrb[21].mxu1  ;;  %v4276_v49 = vadd.f32 %v4275_v20, %v4213_v47  ;;  %v4144_v44 = vadd.f32 %v4143_v46, %v12727_v17 }
 0x33e   :  { %v3479_v37 = vpop.f32.mrb[22].mxu1 }
 0x33f   :  { %v12768_v28 = vadd.f32 %v3766_v12, %v16810_v63  ;;  %v3769_v6 = vadd.f32 %v12589_v59, %v3479_v37  ;;  %v3481_v7 = vpop.f32.mrb[23].mxu1  ;;  %v4277_v18 = vadd.f32 %v4276_v49, %v4214_v60  ;;  %v4216_v12 = vmul.f32 %v12737_v58, %v12737_v58 }
 0x340   :  { %v4145_v63 = vadd.f32 %v4144_v44, %v12737_v58 }
 0x341   :  { %v12775_v32 = vadd.f32 %v3769_v6, %v16811_v52  ;;  %v4278_v47 = vadd.f32 %v4277_v18, %v4215_v50  ;;  %v16812_v6 = vld [vmem:[#allocation25_spill] sm:$0xff]  ;;  %v16813_v50 = vld [vmem:[#allocation24_spill] sm:$0xff] }
 0x342   :  { %v4146_v52 = vadd.f32 %v4145_v63, %v12742_v4 }
 0x344   :  { %v3484_v38 = vpop.f32.mrb[24].mxu1  ;;  %v4147_v18 = vadd.f32 %v4146_v52, %v12752_v19 }
 0x345   :  { %v3774_v8 = vadd.f32 %v12607_v5, %v3484_v38  ;;  %v3486_v59 = vpop.f32.mrb[25].mxu1  ;;  %v4279_v5 = vadd.f32 %v4278_v47, %v4216_v12  ;;  %v4219_v12 = vmul.f32 %v12758_v15, %v12758_v15  ;;  %v4220_v47 = vmul.f32 %v12768_v28, %v12768_v28 }
 0x346   :  { %v3487_v10 = vpop.f32.mrb[26].mxu1 }
 0x347   :  { %v12785_v25 = vadd.f32 %v3774_v8, %v12336_v9  ;;  %v3777_v37 = vadd.f32 %v12614_v48, %v3487_v10  ;;  %v3489_v20 = vpop.f32.mrb[27].mxu1  ;;  %v4218_v9 = vmul.f32 %v12752_v19, %v12752_v19  ;;  %v4280_v38 = vadd.f32 %v4279_v5, %v4217_v11 }
 0x349   :  { %v12790_v7 = vadd.f32 %v3777_v37, %v16812_v6  ;;  %v4281_v44 = vadd.f32 %v4280_v38, %v4218_v9  ;;  %v16814_v37 = vld [vmem:[#allocation22_spill] sm:$0xff]  ;;  %v4221_v9 = vmul.f32 %v12775_v32, %v12775_v32 }
 0x34b   :  { %v4282_v6 = vadd.f32 %v4281_v44, %v4219_v12 }
 0x34c   :  { %v3492_v60 = vpop.f32.mrb[28].mxu1 }
 0x34d   :  { %v3782_v49 = vadd.f32 %v12605_v40, %v3492_v60  ;;  %v3494_v48 = vpop.f32.mrb[29].mxu1  ;;  %v4148_v40 = vadd.f32 %v4147_v18, %v12758_v15  ;;  %v4283_v52 = vadd.f32 %v4282_v6, %v4220_v47  ;;  %v4222_v18 = vmul.f32 %v12785_v25, %v12785_v25 }
 0x34e   :  { %v3495_v46 = vpop.f32.mrb[30].mxu1 }
 0x34f   :  { %v12800_v8 = vadd.f32 %v3782_v49, %v16813_v50  ;;  %v3785_v59 = vadd.f32 %v12612_v34, %v3495_v46  ;;  %v3497_v10 = vpop.f32.mrb[31].mxu1  ;;  %v4149_v5 = vadd.f32 %v4148_v40, %v12768_v28 }
 0x351   :  { %v12806_v20 = vadd.f32 %v3785_v59, %v16814_v37  ;;  %v4150_v38 = vadd.f32 %v4149_v5, %v12775_v32  ;;  %v4224_v47 = vmul.f32 %v12800_v8, %v12800_v8 }
 0x353   :  { %v4151_v59 = vadd.f32 %v4150_v38, %v12785_v25 }
 0x354   :  { %v3500_v63 = vpop.f32.mrb[32].mxu1 }
 0x355   :  { %v3790_v11 = vadd.f32 %v12632_v39, %v3500_v63  ;;  %v3502_v34 = vpop.f32.mrb[33].mxu1  ;;  %v4284_v39 = vadd.f32 %v4283_v52, %v4221_v9  ;;  %v4152_v40 = vadd.f32 %v4151_v59, %v12790_v7  ;;  %v16815_v63 = vld [vmem:[#allocation23_spill] sm:$0xff]  ;;  %v4225_v9 = vmul.f32 %v12806_v20, %v12806_v20 }
 0x356   :  { %v3503_v60 = vpop.f32.mrb[34].mxu1 }
 0x357   :  { %v12816_v49 = vadd.f32 %v3790_v11, %v12355_v16  ;;  %v3793_v48 = vadd.f32 %v12639_v30, %v3503_v60  ;;  %v3505_v46 = vpop.f32.mrb[35].mxu1  ;;  %v4285_v44 = vadd.f32 %v4284_v39, %v4222_v18  ;;  %v4223_v16 = vmul.f32 %v12790_v7, %v12790_v7  ;;  %v16816_v60 = vld [vmem:[#allocation28_spill] sm:$0xff] }
 0x358   :  { %v4153_v34 = vadd.f32 %v4152_v40, %v12800_v8  ;;  %v16817_v40 = vld [vmem:[#allocation27_spill] sm:$0xff] }
 0x359   :  { %v12823_v50 = vadd.f32 %v3793_v48, %v12362_v43  ;;  %v4286_v11 = vadd.f32 %v4285_v44, %v4223_v16  ;;  %v4226_v38 = vmul.f32 %v12816_v49, %v12816_v49 }
 0x35a   :  { %v4154_v46 = vadd.f32 %v4153_v34, %v12806_v20 }
 0x35c   :  { %v3508_v10 = vpop.f32.mrb[36].mxu1 }
 0x35d   :  { %v3798_v12 = vadd.f32 %v12630_v62, %v3508_v10  ;;  %v3510_v30 = vpop.f32.mrb[37].mxu1  ;;  %v4287_v62 = vadd.f32 %v4286_v11, %v4224_v47  ;;  %v4155_v10 = vadd.f32 %v4154_v46, %v12816_v49 }
 0x35e   :  { %v3511_v37 = vpop.f32.mrb[38].mxu1 }
 0x35f   :  { %v12833_v43 = vadd.f32 %v3798_v12, %v16815_v63  ;;  %v3801_v6 = vadd.f32 %v12637_v35, %v3511_v37  ;;  %v3513_v5 = vpop.f32.mrb[39].mxu1  ;;  %v4288_v59 = vadd.f32 %v4287_v62, %v4225_v9  ;;  %v4227_v37 = vmul.f32 %v12823_v50, %v12823_v50  ;;  %v16818_v9 = vld [vmem:[#allocation26_spill] sm:$0xff] }
 0x361   :  { %v12838_v52 = vadd.f32 %v3801_v6, %v16816_v60  ;;  %v4289_v30 = vadd.f32 %v4288_v59, %v4226_v38  ;;  %v4228_v63 = vmul.f32 %v12833_v43, %v12833_v43 }
 0x363   :  { %v4290_v5 = vadd.f32 %v4289_v30, %v4227_v37  ;;  %v4229_v62 = vmul.f32 %v12838_v52, %v12838_v52 }
 0x364   :  { %v3516_v48 = vpop.f32.mrb[40].mxu1 }
 0x365   :  { %v3806_v18 = vadd.f32 %v12658_v56, %v3516_v48  ;;  %v3518_v35 = vpop.f32.mrb[41].mxu1  ;;  %v4156_v56 = vadd.f32 %v4155_v10, %v12823_v50  ;;  %v4291_v60 = vadd.f32 %v4290_v5, %v4228_v63 }
 0x366   :  { %v3519_v39 = vpop.f32.mrb[42].mxu1 }
 0x367   :  { %v12848_v44 = vadd.f32 %v3806_v18, %v12372_v41  ;;  %v3809_v16 = vadd.f32 %v12663_v57, %v3519_v39  ;;  %v3521_v12 = vpop.f32.mrb[43].mxu1  ;;  %v4157_v41 = vadd.f32 %v4156_v56, %v12833_v43  ;;  %v16819_v39 = vld [vmem:[#allocation29_spill] sm:$0xff] }
 0x369   :  { %v12854_v47 = vadd.f32 %v3809_v16, %v16817_v40  ;;  %v4158_v18 = vadd.f32 %v4157_v41, %v12838_v52  ;;  %v4230_v35 = vmul.f32 %v12848_v44, %v12848_v44 }
 0x36b   :  { %v4159_v10 = vadd.f32 %v4158_v18, %v12848_v44  ;;  %v4231_v30 = vmul.f32 %v12854_v47, %v12854_v47 }
 0x36c   :  { %v3524_v6 = vpop.f32.mrb[44].mxu1 }
 0x36d   :  { %v3814_v11 = vadd.f32 %v12656_v42, %v3524_v6  ;;  %v3526_v57 = vpop.f32.mrb[45].mxu1  ;;  %v4292_v42 = vadd.f32 %v4291_v60, %v4229_v62  ;;  %v4160_v56 = vadd.f32 %v4159_v10, %v12854_v47  ;;  %v16820_v6 = vld [vmem:[#allocation30_spill] sm:$0xff]  ;;  %v16821_v60 = vld [vmem:[#allocation31_spill] sm:$0xff] }
 0x36e   :  { %v3527_v34 = vpop.f32.mrb[46].mxu1 }
 0x36f   :  { %v12864_v48 = vadd.f32 %v3814_v11, %v16818_v9  ;;  %v3817_v46 = vadd.f32 %v12661_v29, %v3527_v34  ;;  %v3529_v38 = vpop.f32.mrb[47].mxu1  ;;  %v4293_v12 = vadd.f32 %v4292_v42, %v4230_v35 }
 0x371   :  { %v12871_v59 = vadd.f32 %v3817_v46, %v16819_v39  ;;  %v4232_v63 = vmul.f32 %v12864_v48, %v12864_v48  ;;  %v4294_v57 = vadd.f32 %v4293_v12, %v4231_v30  ;;  %v4161_v34 = vadd.f32 %v4160_v56, %v12864_v48  ;;  %v16823_v56 = vld [vmem:[#allocation33_spill] sm:$0xff] }
 0x373   :  { %v4233_v9 = vmul.f32 %v12871_v59, %v12871_v59  ;;  %v4162_v38 = vadd.f32 %v4161_v34, %v12871_v59 }
 0x374   :  { %v3532_v16 = vpop.f32.mrb[48].mxu1 }
 0x375   :  { %v3822_v37 = vadd.f32 %v12682_v31, %v3532_v16  ;;  %v3534_v29 = vpop.f32.mrb[49].mxu1  ;;  %v4295_v31 = vadd.f32 %v4294_v57, %v4232_v63  ;;  %v16822_v16 = vld [vmem:[#allocation32_spill] sm:$0xff] }
 0x376   :  { %v3535_v40 = vpop.f32.mrb[50].mxu1 }
 0x377   :  { %v12881_v5 = vadd.f32 %v3822_v37, %v16820_v6  ;;  %v3825_v41 = vadd.f32 %v12688_v54, %v3535_v40  ;;  %v3537_v11 = vpop.f32.mrb[51].mxu1  ;;  %v4296_v42 = vadd.f32 %v4295_v31, %v4233_v9 }
 0x379   :  { %v12886_v62 = vadd.f32 %v3825_v41, %v16821_v60  ;;  %v4234_v18 = vmul.f32 %v12881_v5, %v12881_v5  ;;  %v4163_v10 = vadd.f32 %v4162_v38, %v12881_v5 }
 0x37b   :  { %v4297_v29 = vadd.f32 %v4296_v42, %v4234_v18  ;;  %v4235_v40 = vmul.f32 %v12886_v62, %v12886_v62  ;;  %v16825_v42 = vld [vmem:[#allocation36_spill] sm:$0xff] }
 0x37c   :  { %v3540_v46 = vpop.f32.mrb[52].mxu1 }
 0x37d   :  { %v3830_v35 = vadd.f32 %v12680_v51, %v3540_v46  ;;  %v3542_v54 = vpop.f32.mrb[53].mxu1  ;;  %v4164_v51 = vadd.f32 %v4163_v10, %v12886_v62  ;;  %v4298_v11 = vadd.f32 %v4297_v29, %v4235_v40  ;;  %v16824_v46 = vld [vmem:[#allocation34_spill] sm:$0xff] }
 0x37e   :  { %v3543_v39 = vpop.f32.mrb[54].mxu1 }
 0x37f   :  { %v12896_v12 = vadd.f32 %v3830_v35, %v16822_v16  ;;  %v3833_v30 = vadd.f32 %v12686_v3, %v3543_v39  ;;  %v3545_v37 = vpop.f32.mrb[55].mxu1 }
 0x381   :  { %v12902_v63 = vadd.f32 %v3833_v30, %v16823_v56  ;;  %v4236_v6 = vmul.f32 %v12896_v12, %v12896_v12  ;;  %v4165_v57 = vadd.f32 %v4164_v51, %v12896_v12  ;;  %v9902_v30 = vld [vmem:[#allocation4 + $0x48] sm:$0xff]  }
 0x382   :  { %5645 = vmatpush1.bf16.msra.mxu0 %v9902_v30  ;;  %v9906_v30 = vld [vmem:[#allocation4 + $0x60] sm:$0xff]  }
 0x383   :  { %v4299_v31 = vadd.f32 %v4298_v11, %v4236_v6  ;;  %v4237_v9 = vmul.f32 %v12902_v63, %v12902_v63  ;;  %v4166_v54 = vadd.f32 %v4165_v57, %v12902_v63  ;;  %5646 = vmatprep.subr.bf16.mxu0 %v12526_v45 }
 0x384   :  { %v3548_v41 = vpop.f32.mrb[56].mxu1 }
 0x385   :  { %v3838_v34 = vadd.f32 %v12706_v53, %v3548_v41  ;;  %v3550_v3 = vpop.f32.mrb[57].mxu1  ;;  %v4300_v53 = vadd.f32 %v4299_v31, %v4237_v9  ;;  %v16826_v41 = vld [vmem:[#allocation41_spill] sm:$0xff]  ;;  %v16827_v9 = vld [vmem:[#allocation44_spill] sm:$0xff] }
 0x386   :  { %v3551_v60 = vpop.f32.mrb[58].mxu1  ;;  %v9903_v3 = vld [vmem:[#allocation4 + $0x50] sm:$0xff]  }
 0x387   :  { %v12912_v38 = vadd.f32 %v3838_v34, %v16824_v46  ;;  %v3841_v18 = vadd.f32 %v12713_v22, %v3551_v60  ;;  %v3553_v35 = vpop.f32.mrb[59].mxu1  ;;  %5647 = vmatpush1.bf16.msra.mxu0 %v9903_v3 }
 0x388   :  { %5648 = vmatprep.subr.bf16.mxu0 %v12526_v45 }
 0x389   :  { %v4238_v39 = vmul.f32 %v12912_v38, %v12912_v38  ;;  %v12919_v10 = vadd.f32 %v3841_v18, %v16825_v42  ;;  %v4167_v16 = vadd.f32 %v4166_v54, %v12912_v38  ;;  %v9904_v54 = vld [vmem:[#allocation4 + $0x58] sm:$0xff]  }
 0x38b   :  { %v4301_v29 = vadd.f32 %v4300_v53, %v4238_v39  ;;  %v4239_v40 = vmul.f32 %v12919_v10, %v12919_v10  ;;  %v4168_v6 = vadd.f32 %v4167_v16, %v12919_v10  ;;  %5649 = vmatpush1.bf16.msra.mxu0 %v9904_v54  ;;  %v4323_v54 = vlaneseq }
 0x38c   :  { %v3556_v37 = vpop.f32.mrb[60].mxu1  ;;  %5650 = vmatprep.subr.bf16.mxu0 %v12526_v45 }
 0x38d   :  { %v3846_v22 = vadd.f32 %v12704_v61, %v3556_v37  ;;  %v3558_v56 = vpop.f32.mrb[61].mxu1  ;;  %v4302_v60 = vadd.f32 %v4301_v29, %v4239_v40 }
 0x38e   :  { %v3559_v51 = vpop.f32.mrb[62].mxu1  ;;  %v9907_v56 = vld [vmem:[#allocation4 + $0x68] sm:$0xff]  }
 0x38f   :  { %v12928_v11 = vadd.f32 %v3846_v22, %v16826_v41  ;;  %v3849_v57 = vadd.f32 %v12711_v27, %v3559_v51  ;;  %v3561_v34 = vpop.f32.mrb[63].mxu1  ;;  %5651 = vmatpush1.bf16.msra.mxu0 %v9906_v30  ;;  %v9911_v30 = vld [vmem:[#allocation4 + $0x140] sm:$0xff]  }
 0x390   :  { %5652 = vmatprep.subr.bf16.mxu0 %v12526_v45  ;;  %v9908_v34 = vld [vmem:[#allocation4 + $0x70] sm:$0xff]  }
 0x391   :  { %v4169_v31 = vadd.f32 %v4168_v6, %v12928_v11  ;;  %v4240_v61 = vmul.f32 %v12928_v11, %v12928_v11  ;;  %v12935_v46 = vadd.f32 %v3849_v57, %v16827_v9  ;;  %v9909_v9 = vld [vmem:[#allocation4 + $0x78] sm:$0xff]  }
 0x393   :  { %v4303_v18 = vadd.f32 %v4302_v60, %v4240_v61  ;;  %v4170_v35 = vadd.f32 %v4169_v31, %v12935_v46  ;;  %v4241_v27 = vmul.f32 %v12935_v46, %v12935_v46  ;;  %5653 = vmatpush1.bf16.msra.mxu0 %v9907_v56  ;;  %v9913_v56 = vld [vmem:[#allocation4 + $0xb0] sm:$0xff]  }
 0x394   :  { %5654 = vmatprep.subr.bf16.mxu0 %v12526_v45 }
 0x395   :  { %v4171_v39 = vrot.slane %v4170_v35, 4  ;;  %v4304_v42 = vadd.f32 %v4303_v18, %v4241_v27 }
 0x397   :  { %v4172_v53 = vadd.f32 %v4171_v39, %v4170_v35  ;;  %v4305_v16 = vrot.slane %v4304_v42, 4  ;;  %5655 = vmatpush1.bf16.msra.mxu0 %v9908_v34  ;;  %v9905_v39 = vld [vmem:[#allocation4 + $0x98] sm:$0xff]  }
 0x398   :  { %5656 = vmatprep.subr.bf16.mxu0 %v12526_v45  ;;  %9577 = vmatprep.subr.bf16.mxu1 %v9905_v39 }
 0x399   :  { %v4173_v37 = vrot.slane %v4172_v53, 2  ;;  %v4306_v29 = vadd.f32 %v4305_v16, %v4304_v42  ;;  %v4324_v42 = vshrl.u32 %v4323_v54, 7  ;;  %9578 = vmatpush3.bf16.msra.mxu1 %v9905_v39  ;;  %v4315_v16 = vld [vmem:[%s16301_s3] sm:$0x1]  ;;  %v16832_v54 = vld [vmem:[#allocation57_spill] sm:$0xff]  ;;  %v16833_v39 = vld [vmem:[#allocation59_spill] sm:$0xff] }
 0x39b   :  { %v4174_v40 = vadd.f32 %v4173_v37, %v4172_v53  ;;  %v4307_v22 = vrot.slane %v4306_v29, 2  ;;  %5657 = vmatpush1.bf16.msra.mxu0 %v9909_v9  ;;  %v9910_v53 = vld [vmem:[#allocation4 + $0xa0] sm:$0xff]   ;;  %v9912_v37 = vld [vmem:[#allocation4 + $0xa8] sm:$0xff]   ;;  %v9914_v9 = vld [vmem:[#allocation4 + $0xb8] sm:$0xff]  }
 0x39c   :  { %9579 = vmatprep.subr.bf16.mxu1 %v9910_v53  ;;  %9651 = vmatprep.subr.bf16.mxu0 %v9911_v30 }
 0x39d   :  { %v4175_v51 = vrot.slane %v4174_v40, 1  ;;  %v4308_v6 = vadd.f32 %v4307_v22, %v4306_v29  ;;  %v12949_v29 = vsub.s32 0, %v4324_v42  ;;  %9580 = vmatpush3.bf16.msra.mxu1 %v9910_v53  ;;  %v16834_v53 = vld [vmem:[#allocation63_spill] sm:$0xff] }
 0x39e   :  { %5659 = vmatmul.mubr.bf16.vlgmr.msra.gmra.mrb[0].mxu0 %v12526_v45  ;;  %9581 = vmatprep.subr.bf16.mxu1 %v9912_v37 }
 0x39f   :  { %v4176_v41 = vadd.f32 %v4175_v51, %v4174_v40  ;;  %v4309_v57 = vrot.slane %v4308_v6, 1  ;;  %16828 = vst [vmem:[#allocation45_spill] sm:$0xff] %v12949_v29  ;;  %9652 = vmatpush3.bf16.msra.mxu0 %v9911_v30  ;;  %v4319_v51 = vld [vmem:[%s16302_s4] sm:$0x1] }
 0x3a0   :  { %v16835_v30 = vld [vmem:[#allocation66_spill] sm:$0xff] }
 0x3a1   :  { %v4177_v3 = vmul.f32 0.001953125, %v4176_v41  ;;  %v4310_v60 = vadd.f32 %v4309_v57, %v4308_v6  ;;  %9582 = vmatpush3.bf16.msra.mxu1 %v9912_v37 }
 0x3a2   :  { %9583 = vmatprep.subr.bf16.mxu1 %v9913_v56 }
 0x3a3   :  { %v4311_v31 = vmul.f32 0.001953125, %v4310_v60  ;;  %v4312_v61 = vmul.f32 %v4177_v3, %v4177_v3 }
 0x3a5   :  { %v4313_v18 = vsub.f32 %v4311_v31, %v4312_v61  ;;  %v16829_v31 = vld [vmem:[#allocation49_spill] sm:$0xff]  ;;  %9584 = vmatpush3.bf16.msra.mxu1 %v9913_v56 }
 0x3a6   :  { %9585 = vmatprep.subr.bf16.mxu1 %v9914_v9 }
 0x3a7   :  { %v4314_v35 = vmax.f32 %v4313_v18, 0.0  ;;  %v16830_v18 = vld [vmem:[#allocation51_spill] sm:$0xff] }
 0x3a9   :  { %v4316_v27 = vadd.f32 1e-05, %v4314_v35  ;;  %v16831_v35 = vld [vmem:[#allocation55_spill] sm:$0xff]  ;;  %9586 = vmatpush3.bf16.msra.mxu1 %v9914_v9 }
 0x3aa   :  { %6556 = vmatprep.subr.bf16.mxu1 %v12526_v45 }
 0x3ab   :  { %9962 = vrsqrt.f32 %v4316_v27 }
 0x3b5   :  { %v9963_v40 = vpop.eup %9962 }
 0x3b6   :  { %v4318_v22 = vmul.f32 %v9963_v40, %v4315_v16  ;;  %v16836_v40 = vld [vmem:[#allocation68_spill] sm:$0xff] }
 0x3b8   :  { %v4320_v6 = vmul.f32 %v4318_v22, %v4177_v3  ;;  %v12955_v41 = vrot.slane %v4318_v22, %v12949_v29 }
 0x3ba   :  { %v4321_v57 = vsub.f32 %v4319_v51, %v4320_v6  ;;  %v4390_v34 = vmul.f32 %v12955_v41, %v12928_v11  ;;  %v4391_v60 = vmul.f32 %v12955_v41, %v12935_v46  ;;  %v12963_v61 = vmul.f32 %v12955_v41, %v16829_v31  ;;  %v16837_v51 = vld [vmem:[#allocation71_spill] sm:$0xff]  ;;  %v16838_v31 = vld [vmem:[#allocation72_spill] sm:$0xff] }
 0x3bb   :  { %v12967_v3 = vmul.f32 %v12955_v41, %v16830_v18  ;;  %v12971_v27 = vmul.f32 %v12955_v41, %v16831_v35  ;;  %v12975_v11 = vmul.f32 %v12955_v41, %v16832_v54  ;;  %v12979_v46 = vmul.f32 %v12955_v41, %v16833_v39  ;;  %v16840_v18 = vld [vmem:[#allocation69_spill] sm:$0xff]  ;;  %v16842_v54 = vld [vmem:[#allocation70_spill] sm:$0xff] }
 0x3bc   :  { %v12982_v42 = vrot.slane %v4321_v57, %v12949_v29  ;;  %v12986_v16 = vmul.f32 %v12955_v41, %v16834_v53  ;;  %v12990_v37 = vmul.f32 %v12955_v41, %v16835_v30  ;;  %v12994_v22 = vmul.f32 %v12955_v41, %v16836_v40  ;;  %v16844_v40 = vld [vmem:[#allocation73_spill] sm:$0xff]  ;;  %v16846_v29 = vld [vmem:[#allocation75_spill] sm:$0xff] }
 0x3bd   :  { %v12998_v6 = vmul.f32 %v12955_v41, %v16837_v51  ;;  %v13002_v57 = vmul.f32 %v12955_v41, %v16838_v31  ;;  %v13006_v35 = vmul.f32 %v12955_v41, %v16840_v18  ;;  %v13010_v39 = vmul.f32 %v12955_v41, %v16842_v54  ;;  %v16848_v18 = vld [vmem:[#allocation74_spill] sm:$0xff]  ;;  %v16850_v54 = vld [vmem:[#allocation88_spill] sm:$0xff] }
 0x3be   :  { %v4460_v53 = vadd.f32 %v12982_v42, %v4390_v34  ;;  %v4461_v30 = vadd.f32 %v12982_v42, %v4391_v60  ;;  %v13016_v51 = vmul.f32 %v12955_v41, %v16844_v40  ;;  %v13020_v31 = vmul.f32 %v12955_v41, %v16846_v29  ;;  %v16852_v34 = vld [vmem:[#allocation78_spill] sm:$0xff] }
 0x3bf   :  { %16839 = vst [vmem:[#allocation86_spill] sm:$0xff] %v13002_v57  ;;  %16841 = vst [vmem:[#allocation84_spill] sm:$0xff] %v13006_v35  ;;  %v13024_v35 = vmul.f32 %v12955_v41, %v16848_v18  ;;  %v13028_v56 = vmul.f32 %v12955_v41, %v16850_v54  ;;  %v13032_v60 = vmul.f32 %v12955_v41, %v16852_v34  ;;  %v16857_v18 = vld [vmem:[#allocation77_spill] sm:$0xff]  ;;  %v16858_v54 = vld [vmem:[#allocation42_spill] sm:$0xff] }
 0x3c0   :  { %16843 = vst [vmem:[#allocation87_spill] sm:$0xff] %v13010_v39  ;;  %16845 = vst [vmem:[#allocation85_spill] sm:$0xff] %v13016_v51  ;;  %v16854_v39 = vld [vmem:[#allocation76_spill] sm:$0xff]  ;;  %v4524_v51 = vmax.f32 %v4460_v53, 0.0  ;;  %v4525_v29 = vmax.f32 %v4461_v30, 0.0  ;;  %v16860_v34 = vld [vmem:[#allocation82_spill] sm:$0xff]  ;;  %v13081_v9 = vmul.f32 %v12955_v41, %v12622_v36  ;;  %v13093_v45 = vmul.f32 %v12955_v41, %v12654_v1 }
 0x3c1   :  { %16847 = vst [vmem:[#allocation43_spill] sm:$0xff] %v13020_v31  ;;  %16849 = vst [vmem:[#allocation37_spill] sm:$0xff] %v13024_v35  ;;  %v13036_v40 = vmul.f32 %v12955_v41, %v16854_v39  ;;  %v16855_v31 = vld [vmem:[#allocation79_spill] sm:$0xff]  ;;  %v13044_v35 = vmul.f32 %v12955_v41, %v16857_v18  ;;  %v16861_v39 = vld [vmem:[#allocation80_spill] sm:$0xff]  ;;  %v13064_v18 = vmul.f32 %v12955_v41, %v12576_v55 }
 0x3c2   :  { %16851 = vst [vmem:[#allocation38_spill] sm:$0xff] %v13028_v56  ;;  %16853 = vst [vmem:[#allocation35_spill] sm:$0xff] %v13032_v60  ;;  %v13040_v57 = vmul.f32 %v12955_v41, %v16855_v31  ;;  %v13048_v56 = vmul.f32 %v12955_v41, %v16858_v54  ;;  %v13052_v60 = vmul.f32 %v12955_v41, %v16860_v34  ;;  %v16862_v30 = vld [vmem:[#allocation83_spill] sm:$0xff]  ;;  %v16863_v54 = vld [vmem:[#allocation81_spill] sm:$0xff] }
 0x3c3   :  { %v13056_v53 = vmul.f32 %v12955_v41, %v16861_v39  ;;  %v13060_v31 = vmul.f32 %v12955_v41, %v16862_v30  ;;  %v13072_v34 = vmul.f32 %v12955_v41, %v12599_v26  ;;  %v13077_v39 = vmul.f32 %v12955_v41, %v12603_v14  ;;  %v9915_v36 = vld [vmem:[#allocation4 + $0x148] sm:$0xff]  }
 0x3c4   :  { %16856 = vst [vmem:[#allocation40_spill] sm:$0xff] %v13040_v57  ;;  %16859 = vst [vmem:[#allocation60_spill] sm:$0xff] %v13048_v56  ;;  %v4557_v57 = vpack.c.bf16 %v4525_v29, %v4524_v51  ;;  %v13068_v56 = vmul.f32 %v12955_v41, %v16863_v54  ;;  %v13085_v55 = vmul.f32 %v12955_v41, %v12628_v23  ;;  %9653 = vmatprep.subr.bf16.mxu0 %v9915_v36 }
 0x3c5   :  { %v13089_v51 = vmul.f32 %v12955_v41, %v12647_v33  ;;  %v13097_v14 = vmul.f32 %v12955_v41, %v12673_v21  ;;  %v13101_v23 = vmul.f32 %v12955_v41, %v12678_v13  ;;  %v13105_v33 = vmul.f32 %v12955_v41, %v12696_v24  ;;  %v5047_v24 = vld [vmem:[#allocation2 + $0x330] sm:$0xff]  ;;  %9654 = vmatpush3.bf16.msra.mxu0 %v9915_v36 }
 0x3c6   :  { %4601 = vst [vmem:[#allocation2 + $0x338] sm:$0xff] %v4557_v57  ;;  %v4916_v26 = vshrl.u32 %v4557_v57, 16  ;;  %v4919_v29 = vshll.u32 %v4557_v57, 16  ;;  %v13109_v57 = vmul.f32 %v12955_v41, %v12702_v2  ;;  %v13113_v1 = vmul.f32 %v12955_v41, %v12720_v0 }
 0x3c7   :  { %16864 = vst [vmem:[#allocation48_spill] sm:$0xff] %v13105_v33  ;;  %v13117_v54 = vmul.f32 %v12955_v41, %v12727_v17  ;;  %v13121_v13 = vmul.f32 %v12955_v41, %v12737_v58  ;;  %v5239_v33 = vld [vmem:[#allocation2 + $0x340] sm:$0xff]  ;;  %v13125_v2 = vmul.f32 %v12955_v41, %v12742_v4  ;;  %v13129_v0 = vmul.f32 %v12955_v41, %v12752_v19 }
 0x3c8   :  { %16865 = vst [vmem:[#allocation39_spill] sm:$0xff] %v13113_v1  ;;  %v4918_v30 = vrot.slane %v4916_v26, 7  ;;  %v5112_v21 = vrot.slane %v4919_v29, 1  ;;  %v13133_v1 = vmul.f32 %v12955_v41, %v12758_v15  ;;  %v13137_v17 = vmul.f32 %v12955_v41, %v12768_v28 }
 0x3c9   :  { %16866 = vst [vmem:[#allocation47_spill] sm:$0xff] %v13117_v54  ;;  %16867 = vst [vmem:[#allocation46_spill] sm:$0xff] %v13121_v13  ;;  %v13141_v54 = vmul.f32 %v12955_v41, %v12775_v32  ;;  %v13145_v4 = vmul.f32 %v12955_v41, %v12785_v25  ;;  %v13149_v19 = vmul.f32 %v12955_v41, %v12790_v7 }
 0x3ca   :  { %v4921_v58 = vor.u32 %v4919_v29, %v4918_v30  ;;  %v5113_v13 = vor.u32 %v5112_v21, %v4916_v26  ;;  %v13153_v15 = vmul.f32 %v12955_v41, %v12800_v8  ;;  %v13157_v28 = vmul.f32 %v12955_v41, %v12806_v20 }
 0x3cb   :  { %v13161_v32 = vmul.f32 %v12955_v41, %v12816_v49  ;;  %v13169_v7 = vmul.f32 %v12955_v41, %v12823_v50  ;;  %v13173_v8 = vmul.f32 %v12955_v41, %v12833_v43  ;;  %v4379_v20 = vmul.f32 %v12955_v41, %v12838_v52  ;;  %v16883_v29 = vld [vmem:[#allocation40_spill] sm:$0xff] }
 0x3cc   :  { %v5048_v25 = vsel %vm10455_vm11, %v4921_v58, %v5047_v24  ;;  %v5240_v36 = vsel %vm10230_vm3, %v5113_v13, %v5239_v33  ;;  %v4380_v49 = vmul.f32 %v12955_v41, %v12848_v44  ;;  %v4381_v30 = vmul.f32 %v12955_v41, %v12854_v47  ;;  %v16878_v13 = vld [vmem:[#allocation85_spill] sm:$0xff]  ;;  %v16879_v24 = vld [vmem:[#allocation43_spill] sm:$0xff]  ;;  %v16884_v26 = vld [vmem:[#allocation60_spill] sm:$0xff] }
 0x3cd   :  { %5049 = vst [vmem:[#allocation2 + $0x330] sm:$0xff] %v5048_v25  ;;  %5241 = vst [vmem:[#allocation2 + $0x340] sm:$0xff] %v5240_v36  ;;  %v4382_v33 = vmul.f32 %v12955_v41, %v12864_v48  ;;  %v4383_v50 = vmul.f32 %v12955_v41, %v12871_v59  ;;  %v4384_v43 = vmul.f32 %v12955_v41, %v12881_v5  ;;  %v16880_v58 = vld [vmem:[#allocation37_spill] sm:$0xff]  ;;  %v16881_v36 = vld [vmem:[#allocation38_spill] sm:$0xff] }
 0x3ce   :  { %v4385_v21 = vmul.f32 %v12955_v41, %v12886_v62  ;;  %v4386_v52 = vmul.f32 %v12955_v41, %v12896_v12  ;;  %v4387_v44 = vmul.f32 %v12955_v41, %v12902_v63  ;;  %v4388_v47 = vmul.f32 %v12955_v41, %v12912_v38 }
 0x3cf   :  { %v4389_v48 = vmul.f32 %v12955_v41, %v12919_v10  ;;  %v13199_v59 = vadd.f32 %v12982_v42, %v12963_v61  ;;  %v13203_v5 = vadd.f32 %v12982_v42, %v12967_v3  ;;  %v13207_v62 = vadd.f32 %v12982_v42, %v12971_v27  ;;  %v16875_v3 = vld [vmem:[#allocation86_spill] sm:$0xff] }
 0x3d0   :  { %v13211_v12 = vadd.f32 %v12982_v42, %v12975_v11  ;;  %v13215_v63 = vadd.f32 %v12982_v42, %v12979_v46  ;;  %v13219_v38 = vadd.f32 %v12982_v42, %v12986_v16  ;;  %v13223_v10 = vadd.f32 %v12982_v42, %v12990_v37  ;;  %v16876_v11 = vld [vmem:[#allocation84_spill] sm:$0xff]  ;;  %v16877_v16 = vld [vmem:[#allocation87_spill] sm:$0xff] }
 0x3d1   :  { %16870 = vst [vmem:[#allocation64_spill] sm:$0xff] %v13199_v59  ;;  %16871 = vst [vmem:[#allocation54_spill] sm:$0xff] %v13203_v5  ;;  %v13227_v41 = vadd.f32 %v12982_v42, %v12994_v22  ;;  %v13231_v61 = vadd.f32 %v12982_v42, %v12998_v6  ;;  %v13235_v27 = vadd.f32 %v12982_v42, %v16875_v3 }
 0x3d2   :  { %16872 = vst [vmem:[#allocation61_spill] sm:$0xff] %v13207_v62  ;;  %16873 = vst [vmem:[#allocation50_spill] sm:$0xff] %v13211_v12  ;;  %v13239_v46 = vadd.f32 %v12982_v42, %v16876_v11  ;;  %v13243_v37 = vadd.f32 %v12982_v42, %v16877_v16  ;;  %v13247_v22 = vadd.f32 %v12982_v42, %v16878_v13  ;;  %v16882_v11 = vld [vmem:[#allocation35_spill] sm:$0xff]  ;;  %v9916_v12 = vld [vmem:[#allocation4 + $0x150] sm:$0xff]  }
 0x3d3   :  { %16874 = vst [vmem:[#allocation52_spill] sm:$0xff] %v13215_v63  ;;  %v13251_v6 = vadd.f32 %v12982_v42, %v16879_v24  ;;  %v13255_v25 = vadd.f32 %v12982_v42, %v16880_v58  ;;  %v13259_v3 = vadd.f32 %v12982_v42, %v16881_v36  ;;  %v13263_v16 = vadd.f32 %v12982_v42, %v16882_v11 }
 0x3d4   :  { %v13267_v13 = vadd.f32 %v12982_v42, %v13036_v40  ;;  %v13271_v24 = vadd.f32 %v12982_v42, %v16883_v29  ;;  %v13275_v58 = vadd.f32 %v12982_v42, %v13044_v35  ;;  %v13279_v36 = vadd.f32 %v12982_v42, %v16884_v26  ;;  %9655 = vmatprep.subr.bf16.mxu0 %v9916_v12 }
 0x3d5   :  { %v13283_v11 = vadd.f32 %v12982_v42, %v13052_v60  ;;  %v13287_v40 = vadd.f32 %v12982_v42, %v13056_v53  ;;  %v13291_v29 = vadd.f32 %v12982_v42, %v13060_v31  ;;  %v13295_v35 = vadd.f32 %v12982_v42, %v13064_v18  ;;  %9656 = vmatpush3.bf16.msra.mxu0 %v9916_v12 }
 0x3d6   :  { %v13299_v26 = vadd.f32 %v12982_v42, %v13068_v56  ;;  %v13303_v60 = vadd.f32 %v12982_v42, %v13072_v34  ;;  %v13307_v53 = vadd.f32 %v12982_v42, %v13077_v39  ;;  %v13311_v31 = vadd.f32 %v12982_v42, %v13081_v9 }
 0x3d7   :  { %v13315_v18 = vadd.f32 %v12982_v42, %v13085_v55  ;;  %v13319_v56 = vadd.f32 %v12982_v42, %v13089_v51  ;;  %v13323_v34 = vadd.f32 %v12982_v42, %v13093_v45  ;;  %v13327_v39 = vadd.f32 %v12982_v42, %v13097_v14 }
 0x3d8   :  { %16885 = vst [vmem:[#allocation53_spill] sm:$0xff] %v13311_v31  ;;  %v13331_v9 = vadd.f32 %v12982_v42, %v13101_v23  ;;  %v16889_v31 = vld [vmem:[#allocation48_spill] sm:$0xff]  ;;  %v13339_v51 = vadd.f32 %v12982_v42, %v13109_v57  ;;  %v13359_v57 = vadd.f32 %v12982_v42, %v13129_v0  ;;  %v13379_v0 = vadd.f32 %v12982_v42, %v13149_v19 }
 0x3d9   :  { %16886 = vst [vmem:[#allocation62_spill] sm:$0xff] %v13319_v56  ;;  %16887 = vst [vmem:[#allocation56_spill] sm:$0xff] %v13323_v34  ;;  %v13335_v55 = vadd.f32 %v12982_v42, %v16889_v31  ;;  %v16890_v56 = vld [vmem:[#allocation39_spill] sm:$0xff]  ;;  %v13355_v31 = vadd.f32 %v12982_v42, %v13125_v2  ;;  %v13375_v2 = vadd.f32 %v12982_v42, %v13145_v4 }
 0x3da   :  { %16888 = vst [vmem:[#allocation17_spill] sm:$0xff] %v13327_v39  ;;  %v13343_v45 = vadd.f32 %v12982_v42, %v16890_v56  ;;  %v16891_v34 = vld [vmem:[#allocation47_spill] sm:$0xff]  ;;  %v16892_v39 = vld [vmem:[#allocation46_spill] sm:$0xff]  ;;  %v13363_v56 = vadd.f32 %v12982_v42, %v13133_v1  ;;  %16893 = vst [vmem:[#allocation15_spill] sm:$0xff] %v13379_v0  ;;  %v13383_v1 = vadd.f32 %v12982_v42, %v13153_v15 }
 0x3db   :  { %v13347_v14 = vadd.f32 %v12982_v42, %v16891_v34  ;;  %v13351_v23 = vadd.f32 %v12982_v42, %v16892_v39  ;;  %v13367_v34 = vadd.f32 %v12982_v42, %v13137_v17  ;;  %v13371_v39 = vadd.f32 %v12982_v42, %v13141_v54 }
 0x3dc   :  { %v13387_v17 = vadd.f32 %v12982_v42, %v13157_v28  ;;  %v13391_v54 = vadd.f32 %v12982_v42, %v13161_v32  ;;  %v13395_v4 = vadd.f32 %v12982_v42, %v13169_v7  ;;  %v13399_v19 = vadd.f32 %v12982_v42, %v13173_v8 }
 0x3dd   :  { %v13402_v0 = vadd.f32 %v12982_v42, %v4379_v20  ;;  %v13405_v15 = vadd.f32 %v12982_v42, %v4380_v49  ;;  %v13408_v28 = vadd.f32 %v12982_v42, %v4381_v30  ;;  %v13411_v32 = vadd.f32 %v12982_v42, %v4382_v33 }
 0x3de   :  { %16894 = vst [vmem:[#allocation65_spill] sm:$0xff] %v13391_v54  ;;  %v13414_v54 = vadd.f32 %v12982_v42, %v4383_v50  ;;  %v13417_v7 = vadd.f32 %v12982_v42, %v4384_v43  ;;  %v13420_v8 = vadd.f32 %v12982_v42, %v4385_v21  ;;  %v13423_v20 = vadd.f32 %v12982_v42, %v4386_v52 }
 0x3df   :  { %v13426_v49 = vadd.f32 %v12982_v42, %v4387_v44  ;;  %v13429_v30 = vadd.f32 %v12982_v42, %v4388_v47  ;;  %v13432_v33 = vadd.f32 %v12982_v42, %v4389_v48  ;;  %v4468_v44 = vmax.f32 %v13223_v10, 0.0  ;;  %v16900_v50 = vld [vmem:[#allocation53_spill] sm:$0xff] }
 0x3e0   :  { %16895 = vst [vmem:[#allocation13_spill] sm:$0xff] %v13417_v7  ;;  %16896 = vst [vmem:[#allocation58_spill] sm:$0xff] %v13423_v20  ;;  %v4467_v20 = vmax.f32 %v13219_v38, 0.0  ;;  %v4469_v47 = vmax.f32 %v13227_v41, 0.0  ;;  %v4471_v42 = vmax.f32 %v13235_v27, 0.0  ;;  %v4472_v48 = vmax.f32 %v13239_v46, 0.0 }
 0x3e1   :  { %16897 = vst [vmem:[#allocation16_spill] sm:$0xff] %v13426_v49  ;;  %16898 = vst [vmem:[#allocation14_spill] sm:$0xff] %v13429_v30  ;;  %v4470_v30 = vmax.f32 %v13231_v61, 0.0  ;;  %v4473_v43 = vmax.f32 %v13243_v37, 0.0  ;;  %v4474_v7 = vmax.f32 %v13247_v22, 0.0  ;;  %v4475_v21 = vmax.f32 %v13251_v6, 0.0 }
 0x3e2   :  { %16899 = vst [vmem:[#allocation67_spill] sm:$0xff] %v13432_v33  ;;  %v4476_v52 = vmax.f32 %v13255_v25, 0.0  ;;  %v4477_v38 = vmax.f32 %v13259_v3, 0.0  ;;  %v4478_v10 = vmax.f32 %v13263_v16, 0.0  ;;  %v4479_v41 = vmax.f32 %v13267_v13, 0.0  ;;  %v16901_v63 = vld [vmem:[#allocation62_spill] sm:$0xff] }
 0x3e3   :  { %v4480_v61 = vmax.f32 %v13271_v24, 0.0  ;;  %v4481_v27 = vmax.f32 %v13275_v58, 0.0  ;;  %v4482_v46 = vmax.f32 %v13279_v36, 0.0  ;;  %v4483_v37 = vmax.f32 %v13283_v11, 0.0  ;;  %v16902_v11 = vld [vmem:[#allocation56_spill] sm:$0xff] }
 0x3e4   :  { %v4484_v22 = vmax.f32 %v13287_v40, 0.0  ;;  %v4485_v6 = vmax.f32 %v13291_v29, 0.0  ;;  %v4486_v25 = vmax.f32 %v13295_v35, 0.0  ;;  %v4487_v3 = vmax.f32 %v13299_v26, 0.0  ;;  %v16903_v40 = vld [vmem:[#allocation17_spill] sm:$0xff] }
 0x3e5   :  { %v4488_v16 = vmax.f32 %v13303_v60, 0.0  ;;  %v4489_v13 = vmax.f32 %v13307_v53, 0.0  ;;  %v4490_v24 = vmax.f32 %v16900_v50, 0.0  ;;  %v4491_v58 = vmax.f32 %v13315_v18, 0.0  ;;  %v16905_v59 = vld [vmem:[#allocation65_spill] sm:$0xff] }
 0x3e6   :  { %v4492_v36 = vmax.f32 %v16901_v63, 0.0  ;;  %v4493_v62 = vmax.f32 %v16902_v11, 0.0  ;;  %v4494_v5 = vmax.f32 %v16903_v40, 0.0  ;;  %v4495_v29 = vmax.f32 %v13331_v9, 0.0 }
 0x3e7   :  { %v4496_v35 = vmax.f32 %v13335_v55, 0.0  ;;  %v4497_v26 = vmax.f32 %v13339_v51, 0.0  ;;  %v4498_v60 = vmax.f32 %v13343_v45, 0.0  ;;  %v4499_v53 = vmax.f32 %v13347_v14, 0.0  ;;  %v16904_v51 = vld [vmem:[#allocation15_spill] sm:$0xff]  ;;  %v16907_v49 = vld [vmem:[#allocation58_spill] sm:$0xff] }
 0x3e8   :  { %v4500_v50 = vmax.f32 %v13351_v23, 0.0  ;;  %v4501_v63 = vmax.f32 %v13355_v31, 0.0  ;;  %v4502_v18 = vmax.f32 %v13359_v57, 0.0  ;;  %v4503_v11 = vmax.f32 %v13363_v56, 0.0 }
 0x3e9   :  { %v4504_v40 = vmax.f32 %v13367_v34, 0.0  ;;  %v4505_v9 = vmax.f32 %v13371_v39, 0.0  ;;  %v4506_v55 = vmax.f32 %v13375_v2, 0.0  ;;  %v4507_v45 = vmax.f32 %v16904_v51, 0.0  ;;  %v16906_v51 = vld [vmem:[#allocation13_spill] sm:$0xff] }
 0x3ea   :  { %v4508_v14 = vmax.f32 %v13383_v1, 0.0  ;;  %v4509_v23 = vmax.f32 %v13387_v17, 0.0  ;;  %v4510_v33 = vmax.f32 %v16905_v59, 0.0  ;;  %v4511_v31 = vmax.f32 %v13395_v4, 0.0  ;;  %v16908_v4 = vld [vmem:[#allocation16_spill] sm:$0xff] }
 0x3eb   :  { %v4512_v57 = vmax.f32 %v13399_v19, 0.0  ;;  %v4513_v56 = vmax.f32 %v13402_v0, 0.0  ;;  %v4514_v12 = vmax.f32 %v13405_v15, 0.0  ;;  %v4515_v34 = vmax.f32 %v13408_v28, 0.0  ;;  %v16909_v0 = vld [vmem:[#allocation14_spill] sm:$0xff]  ;;  %v16910_v28 = vld [vmem:[#allocation67_spill] sm:$0xff] }
 0x3ec   :  { %v4516_v39 = vmax.f32 %v13411_v32, 0.0  ;;  %v4517_v2 = vmax.f32 %v13414_v54, 0.0  ;;  %v4518_v1 = vmax.f32 %v16906_v51, 0.0  ;;  %v4519_v17 = vmax.f32 %v13420_v8, 0.0  ;;  %v16911_v54 = vld [vmem:[#allocation64_spill] sm:$0xff]  ;;  %v16913_v8 = vld [vmem:[#allocation54_spill] sm:$0xff] }
 0x3ed   :  { %v4520_v59 = vmax.f32 %v16907_v49, 0.0  ;;  %v4521_v19 = vmax.f32 %v16908_v4, 0.0  ;;  %v4522_v15 = vmax.f32 %v16909_v0, 0.0  ;;  %v4523_v32 = vmax.f32 %v16910_v28, 0.0  ;;  %v16916_v0 = vld [vmem:[#allocation61_spill] sm:$0xff] }
 0x3ee   :  { %v16912_v51 = vmax.f32 %v16911_v54, 0.0  ;;  %v16914_v49 = vmax.f32 %v16913_v8, 0.0  ;;  %v16917_v28 = vmax.f32 %v16916_v0, 0.0  ;;  %v16918_v54 = vld [vmem:[#allocation50_spill] sm:$0xff] }
 0x3ef   :  { %v16919_v8 = vmax.f32 %v16918_v54, 0.0  ;;  %v13512_v54 = vpack.c.bf16 %v4469_v47, %v4468_v44  ;;  %v13528_v44 = vpack.c.bf16 %v4483_v37, %v4482_v46  ;;  %v13530_v47 = vpack.c.bf16 %v4485_v6, %v4484_v22 }
 0x3f0   :  { %v13500_v4 = vpack.c.bf16 %v16914_v49, %v16912_v51  ;;  %v16921_v51 = vld [vmem:[#allocation52_spill] sm:$0xff]  ;;  %v13568_v46 = vpack.c.bf16 %v4511_v31, %v4510_v33  ;;  %v13574_v37 = vpack.c.bf16 %v4513_v56, %v4512_v57  ;;  %v13576_v22 = vpack.c.bf16 %v4515_v34, %v4514_v12 }
 0x3f1   :  { %v13506_v49 = vpack.c.bf16 %v16919_v8, %v16917_v28  ;;  %v13514_v8 = vpack.c.bf16 %v4471_v42, %v4470_v30  ;;  %v13516_v28 = vpack.c.bf16 %v4473_v43, %v4472_v48  ;;  %16930 = vst [vmem:[#allocation28_spill] sm:$0xff] %v13528_v44  ;;  %16931 = vst [vmem:[#allocation27_spill] sm:$0xff] %v13530_v47 }
 0x3f2   :  { %16915 = vst [vmem:[#allocation20_spill] sm:$0xff] %v13500_v4  ;;  %v16922_v4 = vmax.f32 %v16921_v51, 0.0  ;;  %v13520_v51 = vpack.c.bf16 %v4477_v38, %v4476_v52  ;;  %v13532_v30 = vpack.c.bf16 %v4487_v3, %v4486_v25  ;;  %4573 = vst [vmem:[#allocation2 + $0x68] sm:$0xff] %v13512_v54  ;;  %v13540_v52 = vpack.c.bf16 %v4491_v58, %v4490_v24 }
 0x3f3   :  { %16920 = vst [vmem:[#allocation18_spill] sm:$0xff] %v13506_v49  ;;  %16924 = vst [vmem:[#allocation19_spill] sm:$0xff] %v13516_v28  ;;  %v13518_v49 = vpack.c.bf16 %v4475_v21, %v4474_v7  ;;  %v13538_v21 = vpack.c.bf16 %v4489_v13, %v4488_v16  ;;  %v13542_v42 = vpack.c.bf16 %v4493_v62, %v4492_v36 }
 0x3f4   :  { %v13510_v0 = vpack.c.bf16 %v4467_v20, %v16922_v4  ;;  %16926 = vst [vmem:[#allocation24_spill] sm:$0xff] %v13520_v51  ;;  %v13522_v4 = vpack.c.bf16 %v4479_v41, %v4478_v10  ;;  %16932 = vst [vmem:[#allocation26_spill] sm:$0xff] %v13532_v30  ;;  %v13544_v48 = vpack.c.bf16 %v4495_v29, %v4494_v5 }
 0x3f5   :  { %16925 = vst [vmem:[#allocation25_spill] sm:$0xff] %v13518_v49  ;;  %4574 = vst [vmem:[#allocation2 + $0x80] sm:$0xff] %v13514_v8  ;;  %v13550_v38 = vpack.c.bf16 %v4497_v26, %v4496_v35  ;;  %v13552_v10 = vpack.c.bf16 %v4499_v53, %v4498_v60  ;;  %v13554_v41 = vpack.c.bf16 %v4501_v63, %v4500_v50  ;;  %v16377_v26 = vshrl.u32 %v13512_v54, 16 }
 0x3f6   :  { %16923 = vst [vmem:[#allocation21_spill] sm:$0xff] %v13510_v0  ;;  %16927 = vst [vmem:[#allocation22_spill] sm:$0xff] %v13522_v4  ;;  %v13526_v0 = vpack.c.bf16 %v4481_v27, %v4480_v61  ;;  %v13556_v61 = vpack.c.bf16 %v4503_v11, %v4502_v18  ;;  %v13562_v5 = vpack.c.bf16 %v4505_v9, %v4504_v40  ;;  %v16398_v60 = vshll.u32 %v13512_v54, 16 }
 0x3f7   :  { %16935 = vst [vmem:[#allocation29_spill] sm:$0xff] %v13538_v21  ;;  %16936 = vst [vmem:[#allocation30_spill] sm:$0xff] %v13540_v52  ;;  %v13564_v62 = vpack.c.bf16 %v4507_v45, %v4506_v55  ;;  %v13566_v27 = vpack.c.bf16 %v4509_v23, %v4508_v14  ;;  %v13578_v6 = vpack.c.bf16 %v4517_v2, %v4516_v39  ;;  %v16376_v53 = vshrl.u32 %v13514_v8, 16 }
 0x3f8   :  { %16929 = vst [vmem:[#allocation23_spill] sm:$0xff] %v13526_v0  ;;  %16937 = vst [vmem:[#allocation31_spill] sm:$0xff] %v13542_v42  ;;  %v13580_v25 = vpack.c.bf16 %v4519_v17, %v4518_v1  ;;  %v13586_v33 = vpack.c.bf16 %v4521_v19, %v4520_v59  ;;  %v13588_v3 = vpack.c.bf16 %v4523_v32, %v4522_v15  ;;  %v16395_v18 = vshll.u32 %v13514_v8, 16 }
 0x3f9   :  { %v16928_v20 = vld [vmem:[#allocation20_spill] sm:$0xff]  ;;  %16938 = vst [vmem:[#allocation32_spill] sm:$0xff] %v13544_v48  ;;  %4575 = vst [vmem:[#allocation2 + $0x98] sm:$0xff] %v13516_v28  ;;  %v16374_v11 = vshrl.u32 %v13516_v28, 16  ;;  %v4722_v9 = vrot.slane %v16377_v26, 7  ;;  %v4729_v55 = vrot.slane %v16376_v53, 7 }
 0x3fa   :  { %4570 = vst [vmem:[#allocation2 + $0x20] sm:$0xff] %v16928_v20  ;;  %5666 = vmatprep.mubr.bf16.mxu0 %v16928_v20  ;;  %v16933_v43 = vld [vmem:[#allocation18_spill] sm:$0xff]  ;;  %4576 = vst [vmem:[#allocation2 + $0xb0] sm:$0xff] %v13518_v49  ;;  %v16386_v16 = vshrl.u32 %v16928_v20, 16  ;;  %v16407_v13 = vshll.u32 %v16928_v20, 16  ;;  %v16392_v45 = vshll.u32 %v13516_v28, 16 }
 0x3fb   :  { %4571 = vst [vmem:[#allocation2 + $0x38] sm:$0xff] %v16933_v43  ;;  %4577 = vst [vmem:[#allocation2 + $0xc8] sm:$0xff] %v13520_v51  ;;  %v16383_v24 = vshrl.u32 %v16933_v43, 16  ;;  %v16404_v58 = vshll.u32 %v16933_v43, 16  ;;  %v4736_v31 = vrot.slane %v16374_v11, 7  ;;  %v16373_v57 = vshrl.u32 %v13518_v49, 16 }
 0x3fc   :  { %4578 = vst [vmem:[#allocation2 + $0xe0] sm:$0xff] %v13522_v4  ;;  %16939 = vst [vmem:[#allocation33_spill] sm:$0xff] %v13550_v38  ;;  %v4701_v35 = vrot.slane %v16386_v16, 7  ;;  %v13639_v56 = vor.u32 %v16398_v60, %v4722_v9  ;;  %v13643_v12 = vor.u32 %v16395_v18, %v4729_v55  ;;  %v16389_v34 = vshll.u32 %v13518_v49, 16 }
 0x3fd   :  { %v16934_v7 = vld [vmem:[#allocation21_spill] sm:$0xff]  ;;  %16940 = vst [vmem:[#allocation34_spill] sm:$0xff] %v13552_v10  ;;  %16941 = vst [vmem:[#allocation36_spill] sm:$0xff] %v13554_v41  ;;  %v4708_v50 = vrot.slane %v16383_v24, 7  ;;  %v16372_v39 = vshrl.u32 %v13520_v51, 16  ;;  %v13649_v2 = vor.u32 %v16392_v45, %v4736_v31  ;;  %v4743_v1 = vrot.slane %v16373_v57, 7 }
 0x3fe   :  { %4572 = vst [vmem:[#allocation2 + $0x50] sm:$0xff] %v16934_v7  ;;  %16942 = vst [vmem:[#allocation41_spill] sm:$0xff] %v13556_v61  ;;  %v16380_v36 = vshrl.u32 %v16934_v7, 16  ;;  %v16399_v29 = vshll.u32 %v16934_v7, 16  ;;  %v13619_v40 = vor.u32 %v16407_v13, %v4701_v35  ;;  %v16379_v17 = vshll.u32 %v13520_v51, 16 }
 0x3ff   :  { %4579 = vst [vmem:[#allocation2 + $0xf8] sm:$0xff] %v13526_v0  ;;  %4580 = vst [vmem:[#allocation2 + $0x110] sm:$0xff] %v13528_v44  ;;  %v13628_v14 = vor.u32 %v16404_v58, %v4708_v50  ;;  %v16375_v59 = vshrl.u32 %v13522_v4, 16  ;;  %v4750_v19 = vrot.slane %v16372_v39, 7  ;;  %v16382_v15 = vshll.u32 %v13522_v4, 16  ;;  %v4996_v4 = vld [vmem:[#allocation2 + $0x168] sm:$0xff] }
 0x400   :  { %4581 = vst [vmem:[#allocation2 + $0x128] sm:$0xff] %v13530_v47  ;;  %4582 = vst [vmem:[#allocation2 + $0x140] sm:$0xff] %v13532_v30  ;;  %v4715_v63 = vrot.slane %v16380_v36, 7  ;;  %v16378_v32 = vshrl.u32 %v13526_v0, 16  ;;  %v16385_v35 = vshll.u32 %v13526_v0, 16  ;;  %v13662_v50 = vor.u32 %v16389_v34, %v4743_v1 }
 0x401   :  { %16943 = vst [vmem:[#allocation44_spill] sm:$0xff] %v13562_v5  ;;  %16944 = vst [vmem:[#allocation49_spill] sm:$0xff] %v13564_v62  ;;  %v16381_v9 = vshrl.u32 %v13528_v44, 16  ;;  %v16388_v55 = vshll.u32 %v13528_v44, 16  ;;  %v13670_v31 = vor.u32 %v16379_v17, %v4750_v19  ;;  %v16384_v57 = vshrl.u32 %v13530_v47, 16 }
 0x402   :  { %16945 = vst [vmem:[#allocation51_spill] sm:$0xff] %v13566_v27  ;;  %16946 = vst [vmem:[#allocation55_spill] sm:$0xff] %v13568_v46  ;;  %v13632_v23 = vor.u32 %v16399_v29, %v4715_v63  ;;  %v4757_v63 = vrot.slane %v16375_v59, 7  ;;  %v4764_v39 = vrot.slane %v16378_v32, 7  ;;  %v16391_v11 = vshll.u32 %v13530_v47, 16  ;;  %v4987_v47 = vld [vmem:[#allocation2 + $0x120] sm:$0xff] }
 0x403   :  { %4583 = vst [vmem:[#allocation2 + $0x158] sm:$0xff] %v13538_v21  ;;  %4584 = vst [vmem:[#allocation2 + $0x170] sm:$0xff] %v13540_v52  ;;  %v4771_v59 = vrot.slane %v16381_v9, 7  ;;  %v16387_v53 = vshrl.u32 %v13532_v30, 16  ;;  %v16393_v26 = vshll.u32 %v13532_v30, 16  ;;  %v4778_v32 = vrot.slane %v16384_v57, 7 }
 0x404   :  { %4585 = vst [vmem:[#allocation2 + $0x188] sm:$0xff] %v13542_v42  ;;  %4586 = vst [vmem:[#allocation2 + $0x1d0] sm:$0xff] %v13544_v48  ;;  %v13678_v1 = vor.u32 %v16382_v15, %v4757_v63  ;;  %v13686_v19 = vor.u32 %v16385_v35, %v4764_v39  ;;  %v16390_v17 = vshrl.u32 %v13538_v21, 16  ;;  %v16396_v36 = vshll.u32 %v13538_v21, 16 }
 0x405   :  { %16947 = vst [vmem:[#allocation57_spill] sm:$0xff] %v13574_v37  ;;  %16948 = vst [vmem:[#allocation59_spill] sm:$0xff] %v13576_v22  ;;  %v13694_v63 = vor.u32 %v16388_v55, %v4771_v59  ;;  %v4785_v9 = vrot.slane %v16387_v53, 7  ;;  %v16394_v15 = vshrl.u32 %v13540_v52, 16  ;;  %v16401_v24 = vshll.u32 %v13540_v52, 16  ;;  %v4978_v52 = vld [vmem:[#allocation2 + $0xd8] sm:$0xff] }
 0x406   :  { %16949 = vst [vmem:[#allocation63_spill] sm:$0xff] %v13578_v6  ;;  %4587 = vst [vmem:[#allocation2 + $0x1e8] sm:$0xff] %v13550_v38  ;;  %v13702_v39 = vor.u32 %v16391_v11, %v4778_v32  ;;  %v4792_v57 = vrot.slane %v16390_v17, 7  ;;  %v16397_v35 = vshrl.u32 %v13542_v42, 16  ;;  %v16403_v16 = vshll.u32 %v13542_v42, 16 }
 0x407   :  { %4588 = vst [vmem:[#allocation2 + $0x200] sm:$0xff] %v13552_v10  ;;  %4589 = vst [vmem:[#allocation2 + $0x218] sm:$0xff] %v13554_v41  ;;  %v13710_v59 = vor.u32 %v16393_v26, %v4785_v9  ;;  %v4799_v53 = vrot.slane %v16394_v15, 7  ;;  %v16400_v55 = vshrl.u32 %v13544_v48, 16  ;;  %v16405_v34 = vshll.u32 %v13544_v48, 16  ;;  %v9921_v9 = vld [vmem:[#allocation4 + $0x158] sm:$0xff]  }
 0x408   :  { %4590 = vst [vmem:[#allocation2 + $0x230] sm:$0xff] %v13556_v61  ;;  %4591 = vst [vmem:[#allocation2 + $0x248] sm:$0xff] %v13562_v5  ;;  %v13718_v32 = vor.u32 %v16396_v36, %v4792_v57  ;;  %v4806_v17 = vrot.slane %v16397_v35, 7  ;;  %v16402_v11 = vshrl.u32 %v13550_v38, 16  ;;  %v16409_v45 = vshll.u32 %v13550_v38, 16  ;;  %9657 = vmatprep.subr.bf16.mxu0 %v9921_v9  ;;  %v4966_v38 = vld [vmem:[#allocation2 + $0x78] sm:$0xff] }
 0x409   :  { %4592 = vst [vmem:[#allocation2 + $0x260] sm:$0xff] %v13564_v62  ;;  %4593 = vst [vmem:[#allocation2 + $0x278] sm:$0xff] %v13566_v27  ;;  %v13726_v26 = vor.u32 %v16401_v24, %v4799_v53  ;;  %v4813_v15 = vrot.slane %v16400_v55, 7  ;;  %v16406_v18 = vshrl.u32 %v13552_v10, 16  ;;  %v16411_v57 = vshll.u32 %v13552_v10, 16  ;;  %9658 = vmatpush3.bf16.msra.mxu0 %v9921_v9 }
 0x40a   :  { %4594 = vst [vmem:[#allocation2 + $0x290] sm:$0xff] %v13568_v46  ;;  %4595 = vst [vmem:[#allocation2 + $0x2a8] sm:$0xff] %v13574_v37  ;;  %v13734_v36 = vor.u32 %v16403_v16, %v4806_v17  ;;  %v4820_v35 = vrot.slane %v16402_v11, 7  ;;  %v16408_v60 = vshrl.u32 %v13554_v41, 16  ;;  %v16412_v29 = vshll.u32 %v13554_v41, 16  ;;  %v4963_v41 = vld [vmem:[#allocation2 + $0x60] sm:$0xff] }
 0x40b   :  { %4596 = vst [vmem:[#allocation2 + $0x2c0] sm:$0xff] %v13576_v22  ;;  %4597 = vst [vmem:[#allocation2 + $0x2d8] sm:$0xff] %v13578_v6  ;;  %v13742_v53 = vor.u32 %v16405_v34, %v4813_v15  ;;  %v4827_v55 = vrot.slane %v16406_v18, 7  ;;  %v16410_v24 = vshrl.u32 %v13556_v61, 16  ;;  %v16416_v17 = vshll.u32 %v13556_v61, 16 }
 0x40c   :  { %4598 = vst [vmem:[#allocation2 + $0x2f0] sm:$0xff] %v13580_v25  ;;  %4599 = vst [vmem:[#allocation2 + $0x308] sm:$0xff] %v13586_v33  ;;  %v13750_v11 = vor.u32 %v16409_v45, %v4820_v35  ;;  %v4834_v16 = vrot.slane %v16408_v60, 7  ;;  %v16413_v58 = vshrl.u32 %v13562_v5, 16  ;;  %v16417_v9 = vshrl.u32 %v13564_v62, 16 }
 0x40d   :  { %4600 = vst [vmem:[#allocation2 + $0x320] sm:$0xff] %v13588_v3  ;;  %v13758_v34 = vor.u32 %v16411_v57, %v4827_v55  ;;  %v4841_v18 = vrot.slane %v16410_v24, 7  ;;  %v16422_v45 = vshrl.u32 %v13566_v27, 16  ;;  %v16427_v57 = vshrl.u32 %v13568_v46, 16 }
 0x40e   :  { %v13766_v35 = vor.u32 %v16412_v29, %v4834_v16  ;;  %v4848_v60 = vrot.slane %v16413_v58, 7  ;;  %v4855_v24 = vrot.slane %v16417_v9, 7  ;;  %v16950_v16 = vshll.u32 %v13562_v5, 16 }
 0x40f   :  { %v13774_v55 = vor.u32 %v16416_v17, %v4841_v18  ;;  %v4862_v58 = vrot.slane %v16422_v45, 7  ;;  %v16436_v15 = vshrl.u32 %v13574_v37, 16  ;;  %v16951_v18 = vshll.u32 %v13564_v62, 16  ;;  %v4960_v62 = vld [vmem:[#allocation2 + $0x48] sm:$0xff] }
 0x410   :  { %v13782_v29 = vor.u32 %v16950_v16, %v4848_v60  ;;  %v4869_v9 = vrot.slane %v16427_v57, 7  ;;  %v4957_v60 = vld [vmem:[#allocation2 + $0x30] sm:$0xff]  ;;  %v4954_v16 = vld [vmem:[#allocation2 + $0x18] sm:$0xff]  ;;  %v16952_v45 = vshll.u32 %v13566_v27, 16  ;;  %v16953_v13 = vshll.u32 %v13568_v46, 16  ;;  %v4975_v27 = vld [vmem:[#allocation2 + $0xc0] sm:$0xff] }
 0x411   :  { %v13790_v17 = vor.u32 %v16951_v18, %v4855_v24  ;;  %v4876_v61 = vrot.slane %v16436_v15, 7  ;;  %v4969_v57 = vld [vmem:[#allocation2 + $0x90] sm:$0xff]  ;;  %v16954_v48 = vshrl.u32 %v13576_v22, 16  ;;  %v4972_v15 = vld [vmem:[#allocation2 + $0xa8] sm:$0xff]  ;;  %v16955_v24 = vshll.u32 %v13574_v37, 16  ;;  %v4990_v37 = vld [vmem:[#allocation2 + $0x138] sm:$0xff] }
 0x412   :  { %v13798_v10 = vor.u32 %v16952_v45, %v4862_v58  ;;  %v13806_v5 = vor.u32 %v16953_v13, %v4869_v9  ;;  %v16956_v21 = vshrl.u32 %v13578_v6, 16  ;;  %v4981_v46 = vld [vmem:[#allocation2 + $0xf0] sm:$0xff]  ;;  %v16957_v58 = vshll.u32 %v13576_v22, 16  ;;  %v5005_v22 = vld [vmem:[#allocation2 + $0x1e0] sm:$0xff] }
 0x413   :  { %v4883_v42 = vrot.slane %v16954_v48, 7  ;;  %v13814_v18 = vor.u32 %v16955_v24, %v4876_v61  ;;  %v4984_v48 = vld [vmem:[#allocation2 + $0x108] sm:$0xff]  ;;  %v16958_v44 = vshrl.u32 %v13580_v25, 16  ;;  %v16959_v13 = vshll.u32 %v13578_v6, 16  ;;  %v4999_v24 = vld [vmem:[#allocation2 + $0x180] sm:$0xff] }
 0x414   :  { %v4890_v30 = vrot.slane %v16956_v21, 7  ;;  %v4993_v21 = vld [vmem:[#allocation2 + $0x150] sm:$0xff]  ;;  %v16960_v51 = vshrl.u32 %v13586_v33, 16  ;;  %v5002_v61 = vld [vmem:[#allocation2 + $0x1c8] sm:$0xff]  ;;  %v16962_v28 = vshll.u32 %v13580_v25, 16 }
 0x415   :  { %v13822_v45 = vor.u32 %v16957_v58, %v4883_v42  ;;  %v4897_v0 = vrot.slane %v16958_v44, 7  ;;  %v4955_v58 = vsel %vm10455_vm11, %v13619_v40, %v4954_v16  ;;  %v13840_v44 = vsel %vm10455_vm11, %v13628_v14, %v4957_v60  ;;  %v5008_v14 = vld [vmem:[#allocation2 + $0x1f8] sm:$0xff] }
 0x416   :  { %v13830_v9 = vor.u32 %v16959_v13, %v4890_v30  ;;  %v4904_v49 = vrot.slane %v16960_v51, 7  ;;  %v16963_v30 = vshrl.u32 %v13588_v3, 16  ;;  %4956 = vst [vmem:[#allocation2 + $0x18] sm:$0xff] %v4955_v58  ;;  %v13851_v51 = vsel %vm10455_vm11, %v13632_v23, %v4960_v62  ;;  %4959 = vst [vmem:[#allocation2 + $0x30] sm:$0xff] %v13840_v44  ;;  %5667 = vmatmul.mubr.bf16.gmra.mrb[4].mxu0 %v4955_v58 }
 0x417   :  { %v13844_v6 = vor.u32 %v16962_v28, %v4897_v0  ;;  %v13856_v40 = vsel %vm10455_vm11, %v13639_v56, %v4963_v41  ;;  %v5011_v0 = vld [vmem:[#allocation2 + $0x210] sm:$0xff]  ;;  %v5014_v28 = vld [vmem:[#allocation2 + $0x228] sm:$0xff]  ;;  %v16964_v60 = vshll.u32 %v13586_v33, 16  ;;  %v13866_v62 = vsel %vm10455_vm11, %v13643_v12, %v4966_v38  ;;  %4962 = vst [vmem:[#allocation2 + $0x48] sm:$0xff] %v13851_v51  ;;  %5674 = vmatprep.mubr.bf16.mxu0 %v16933_v43  ;;  %v5020_v56 = vld [vmem:[#allocation2 + $0x258] sm:$0xff] }
 0x418   :  { %v4911_v13 = vrot.slane %v16963_v30, 7  ;;  %16965 = vst [vmem:[#allocation66_spill] sm:$0xff] %v13866_v62  ;;  %v13871_v41 = vsel %vm10455_vm11, %v13649_v2, %v4969_v57  ;;  %v13876_v23 = vsel %vm10455_vm11, %v13662_v50, %v4972_v15  ;;  %4965 = vst [vmem:[#allocation2 + $0x60] sm:$0xff] %v13856_v40  ;;  %v5023_v38 = vld [vmem:[#allocation2 + $0x270] sm:$0xff]  ;;  %v16968_v12 = vshll.u32 %v13588_v3, 16  ;;  %v5026_v15 = vld [vmem:[#allocation2 + $0x288] sm:$0xff] }
 0x419   :  { %v13861_v16 = vor.u32 %v16964_v60, %v4904_v49  ;;  %16966 = vst [vmem:[#allocation68_spill] sm:$0xff] %v13871_v41  ;;  %16967 = vst [vmem:[#allocation71_spill] sm:$0xff] %v13876_v23  ;;  %v5017_v49 = vld [vmem:[#allocation2 + $0x240] sm:$0xff]  ;;  %v13888_v2 = vsel %vm10455_vm11, %v13670_v31, %v4975_v27  ;;  %v13893_v50 = vsel %vm10455_vm11, %v13678_v1, %v4978_v52  ;;  %v5032_v27 = vld [vmem:[#allocation2 + $0x2b8] sm:$0xff] }
 0x41a   :  { %v13883_v58 = vor.u32 %v16968_v12, %v4911_v13  ;;  %16969 = vst [vmem:[#allocation72_spill] sm:$0xff] %v13888_v2  ;;  %16970 = vst [vmem:[#allocation69_spill] sm:$0xff] %v13893_v50  ;;  %v13898_v57 = vsel %vm10455_vm11, %v13686_v19, %v4981_v46  ;;  %v5029_v30 = vld [vmem:[#allocation2 + $0x2a0] sm:$0xff]  ;;  %v13906_v31 = vsel %vm10455_vm11, %v13694_v63, %v4984_v48  ;;  %v5035_v19 = vld [vmem:[#allocation2 + $0x2d0] sm:$0xff]  ;;  %v16991_v13 = vshll.u32 %v13514_v8, 16 }
 0x41b   :  { %16971 = vst [vmem:[#allocation70_spill] sm:$0xff] %v13898_v57  ;;  %4968 = vst [vmem:[#allocation2 + $0x78] sm:$0xff] %v13866_v62  ;;  %v13911_v52 = vsel %vm10455_vm11, %v13702_v39, %v4987_v47  ;;  %v13916_v46 = vsel %vm10455_vm11, %v13710_v59, %v4990_v37  ;;  %v13921_v1 = vsel %vm10455_vm11, %v13718_v32, %v4993_v21  ;;  %v5038_v63 = vld [vmem:[#allocation2 + $0x2e8] sm:$0xff]  ;;  %v5041_v47 = vld [vmem:[#allocation2 + $0x300] sm:$0xff]  ;;  %v16990_v21 = vshll.u32 %v13512_v54, 16 }
 0x41c   :  { %4971 = vst [vmem:[#allocation2 + $0x90] sm:$0xff] %v13871_v41  ;;  %4974 = vst [vmem:[#allocation2 + $0xa8] sm:$0xff] %v13876_v23  ;;  %v13929_v39 = vsel %vm10455_vm11, %v13726_v26, %v4996_v4  ;;  %v5000_v37 = vsel %vm10455_vm11, %v13734_v36, %v4999_v24  ;;  %v5003_v59 = vsel %vm10455_vm11, %v13742_v53, %v5002_v61  ;;  %v5044_v4 = vld [vmem:[#allocation2 + $0x318] sm:$0xff]  ;;  %v16989_v61 = vshll.u32 %v16934_v7, 16  ;;  %v14176_v23 = vld [vmem:[#allocation2 + $0x160] sm:$0xff] }
 0x41d   :  { %16972 = vst [vmem:[#allocation73_spill] sm:$0xff] %v13906_v31  ;;  %16973 = vst [vmem:[#allocation75_spill] sm:$0xff] %v13911_v52  ;;  %v13940_v32 = vsel %vm10455_vm11, %v13750_v11, %v5005_v22  ;;  %v13949_v36 = vsel %vm10455_vm11, %v13758_v34, %v5008_v14  ;;  %v13954_v22 = vsel %vm10455_vm11, %v13766_v35, %v5011_v0  ;;  %v5056_v42 = vrot.slane %v16990_v21, 1  ;;  %v16992_v0 = vld [vmem:[#allocation19_spill] sm:$0xff]  ;;  %v5191_v62 = vld [vmem:[#allocation2 + $0x190] sm:$0xff] }
 0x41e   :  { %16974 = vst [vmem:[#allocation74_spill] sm:$0xff] %v13916_v46  ;;  %16975 = vst [vmem:[#allocation88_spill] sm:$0xff] %v13921_v1  ;;  %v13959_v26 = vsel %vm10455_vm11, %v13774_v55, %v5014_v28  ;;  %v13964_v11 = vsel %vm10455_vm11, %v13782_v29, %v5017_v49  ;;  %v13971_v34 = vsel %vm10455_vm11, %v13790_v17, %v5020_v56  ;;  %v5054_v24 = vrot.slane %v16989_v61, 1 }
 0x41f   :  { %4977 = vst [vmem:[#allocation2 + $0xc0] sm:$0xff] %v13888_v2  ;;  %4980 = vst [vmem:[#allocation2 + $0xd8] sm:$0xff] %v13893_v50  ;;  %v13976_v53 = vsel %vm10455_vm11, %v13798_v10, %v5023_v38  ;;  %v13981_v35 = vsel %vm10455_vm11, %v13806_v5, %v5026_v15  ;;  %v13986_v29 = vsel %vm10455_vm11, %v13814_v18, %v5029_v30  ;;  %5675 = vmatmul.mubr.bf16.gmra.mrb[8].mxu0 %v13840_v44  ;;  %v5182_v2 = vld [vmem:[#allocation2 + $0x148] sm:$0xff] }
 0x420   :  { %4983 = vst [vmem:[#allocation2 + $0xf0] sm:$0xff] %v13898_v57  ;;  %16976 = vst [vmem:[#allocation78_spill] sm:$0xff] %v13929_v39  ;;  %v13995_v10 = vsel %vm10455_vm11, %v13822_v45, %v5032_v27  ;;  %v5036_v5 = vsel %vm10455_vm11, %v13830_v9, %v5035_v19  ;;  %v5039_v17 = vsel %vm10455_vm11, %v13844_v6, %v5038_v63  ;;  %v16987_v45 = vshll.u32 %v16928_v20, 16  ;;  %v16999_v27 = vld [vmem:[#allocation24_spill] sm:$0xff] }
 0x421   :  { %16977 = vst [vmem:[#allocation76_spill] sm:$0xff] %v13940_v32  ;;  %4986 = vst [vmem:[#allocation2 + $0x108] sm:$0xff] %v13906_v31  ;;  %v5042_v55 = vsel %vm10455_vm11, %v13861_v16, %v5041_v47  ;;  %v5045_v18 = vsel %vm10455_vm11, %v13883_v58, %v5044_v4  ;;  %v16988_v6 = vshll.u32 %v16933_v43, 16  ;;  %v5058_v14 = vrot.slane %v16991_v13, 1  ;;  %v16994_v16 = vld [vmem:[#allocation25_spill] sm:$0xff]  ;;  %5682 = vmatprep.mubr.bf16.mxu0 %v16934_v7  ;;  %v17012_v13 = vld [vmem:[#allocation27_spill] sm:$0xff] }
 0x422   :  { %4989 = vst [vmem:[#allocation2 + $0x120] sm:$0xff] %v13911_v52  ;;  %4992 = vst [vmem:[#allocation2 + $0x138] sm:$0xff] %v13916_v46  ;;  %v5050_v9 = vrot.slane %v16987_v45, 1  ;;  %v16993_v28 = vshll.u32 %v16992_v0, 16  ;;  %v16995_v49 = vshll.u32 %v16994_v16, 16  ;;  %v16996_v38 = vshrl.u32 %v16928_v20, 16 }
 0x423   :  { %4995 = vst [vmem:[#allocation2 + $0x150] sm:$0xff] %v13921_v1  ;;  %5001 = vst [vmem:[#allocation2 + $0x180] sm:$0xff] %v5000_v37  ;;  %v5052_v48 = vrot.slane %v16988_v6, 1  ;;  %v16997_v44 = vshrl.u32 %v16933_v43, 16  ;;  %v16998_v15 = vshrl.u32 %v16934_v7, 16  ;;  %v17000_v19 = vshll.u32 %v16999_v27, 16 }
 0x424   :  { %5004 = vst [vmem:[#allocation2 + $0x1c8] sm:$0xff] %v5003_v59  ;;  %16978 = vst [vmem:[#allocation79_spill] sm:$0xff] %v13949_v36  ;;  %v5060_v60 = vrot.slane %v16993_v28, 1  ;;  %v5062_v56 = vrot.slane %v16995_v49, 1  ;;  %v14032_v12 = vor.u32 %v5050_v9, %v16996_v38  ;;  %v17001_v47 = vshrl.u32 %v13512_v54, 16  ;;  %v17008_v6 = vld [vmem:[#allocation23_spill] sm:$0xff] }
 0x425   :  { %16979 = vst [vmem:[#allocation77_spill] sm:$0xff] %v13954_v22  ;;  %16980 = vst [vmem:[#allocation42_spill] sm:$0xff] %v13959_v26  ;;  %v14036_v58 = vor.u32 %v5052_v48, %v16997_v44  ;;  %v14040_v30 = vor.u32 %v5054_v24, %v16998_v15  ;;  %v5064_v63 = vrot.slane %v17000_v19, 1  ;;  %v17002_v59 = vshrl.u32 %v13514_v8, 16  ;;  %v17010_v24 = vld [vmem:[#allocation28_spill] sm:$0xff]  ;;  %v17016_v38 = vld [vmem:[#allocation29_spill] sm:$0xff] }
 0x426   :  { %16981 = vst [vmem:[#allocation82_spill] sm:$0xff] %v13964_v11  ;;  %4998 = vst [vmem:[#allocation2 + $0x168] sm:$0xff] %v13929_v39  ;;  %v14046_v37 = vor.u32 %v5056_v42, %v17001_v47  ;;  %v17003_v4 = vshrl.u32 %v16992_v0, 16  ;;  %v17009_v48 = vshll.u32 %v17008_v6, 16  ;;  %v17011_v21 = vshll.u32 %v17010_v24, 16  ;;  %v5170_v39 = vld [vmem:[#allocation2 + $0xe8] sm:$0xff] }
 0x427   :  { %5007 = vst [vmem:[#allocation2 + $0x1e0] sm:$0xff] %v13940_v32  ;;  %16982 = vst [vmem:[#allocation80_spill] sm:$0xff] %v13971_v34  ;;  %v14050_v20 = vor.u32 %v5058_v14, %v17002_v59  ;;  %v17013_v14 = vshll.u32 %v17012_v13, 16  ;;  %v17017_v44 = vshll.u32 %v17016_v38, 16  ;;  %5683 = vmatmul.mubr.bf16.gmra.mrb[12].mxu0 %v13851_v51  ;;  %v5164_v32 = vld [vmem:[#allocation2 + $0xb8] sm:$0xff]  ;;  %v17064_v57 = vshll.u32 %v13580_v25, 16 }
 0x428   :  { %16983 = vst [vmem:[#allocation83_spill] sm:$0xff] %v13976_v53  ;;  %16984 = vst [vmem:[#allocation81_spill] sm:$0xff] %v13981_v35  ;;  %v14054_v43 = vor.u32 %v5060_v60, %v17003_v4  ;;  %v5068_v61 = vrot.slane %v17009_v48, 1  ;;  %v5070_v42 = vrot.slane %v17011_v21, 1  ;;  %v17014_v60 = vld [vmem:[#allocation26_spill] sm:$0xff]  ;;  %v17021_v4 = vshrl.u32 %v17008_v6, 16  ;;  %5690 = vmatprep.mubr.bf16.mxu0 %v13512_v54 }
 0x429   :  { %16985 = vst [vmem:[#allocation86_spill] sm:$0xff] %v13986_v29  ;;  %5010 = vst [vmem:[#allocation2 + $0x1f8] sm:$0xff] %v13949_v36  ;;  %v5072_v28 = vrot.slane %v17013_v14, 1  ;;  %v17015_v49 = vshll.u32 %v17014_v60, 16  ;;  %v5076_v15 = vrot.slane %v17017_v44, 1  ;;  %v17023_v48 = vld [vmem:[#allocation31_spill] sm:$0xff] }
 0x42a   :  { %5013 = vst [vmem:[#allocation2 + $0x210] sm:$0xff] %v13954_v22  ;;  %5016 = vst [vmem:[#allocation2 + $0x228] sm:$0xff] %v13959_v26  ;;  %v17024_v21 = vshll.u32 %v17023_v48, 16  ;;  %v9930_v26 = vld [vmem:[#allocation4 + $0x160] sm:$0xff]   ;;  %v5155_v22 = vld [vmem:[#allocation2 + $0x70] sm:$0xff] }
 0x42b   :  { %5019 = vst [vmem:[#allocation2 + $0x240] sm:$0xff] %v13964_v11  ;;  %16986 = vst [vmem:[#allocation84_spill] sm:$0xff] %v13995_v10  ;;  %v5152_v54 = vld [vmem:[#allocation2 + $0x58] sm:$0xff]  ;;  %v5158_v36 = vld [vmem:[#allocation2 + $0x88] sm:$0xff]  ;;  %9659 = vmatprep.subr.bf16.mxu0 %v9930_v26 }
 0x42c   :  { %5022 = vst [vmem:[#allocation2 + $0x258] sm:$0xff] %v13971_v34  ;;  %5025 = vst [vmem:[#allocation2 + $0x270] sm:$0xff] %v13976_v53  ;;  %v5080_v14 = vrot.slane %v17024_v21, 1  ;;  %v17047_v34 = vld [vmem:[#allocation51_spill] sm:$0xff]  ;;  %9660 = vmatpush3.bf16.msra.mxu0 %v9930_v26 }
 0x42d   :  { %5028 = vst [vmem:[#allocation2 + $0x288] sm:$0xff] %v13981_v35  ;;  %5031 = vst [vmem:[#allocation2 + $0x2a0] sm:$0xff] %v13986_v29 }
 0x42e   :  { %5034 = vst [vmem:[#allocation2 + $0x2b8] sm:$0xff] %v13995_v10  ;;  %5037 = vst [vmem:[#allocation2 + $0x2d0] sm:$0xff] %v5036_v5  ;;  %v17004_v5 = vshrl.u32 %v16994_v16, 16  ;;  %v17042_v10 = vld [vmem:[#allocation49_spill] sm:$0xff] }
 0x42f   :  { %5040 = vst [vmem:[#allocation2 + $0x2e8] sm:$0xff] %v5039_v17  ;;  %5043 = vst [vmem:[#allocation2 + $0x300] sm:$0xff] %v5042_v55  ;;  %v17005_v17 = vshrl.u32 %v16999_v27, 16  ;;  %v17018_v27 = vld [vmem:[#allocation30_spill] sm:$0xff]  ;;  %v17043_v29 = vshll.u32 %v17042_v10, 16  ;;  %5691 = vmatmul.mubr.bf16.gmra.mrb[16].mxu0 %v13856_v40 }
 0x430   :  { %5046 = vst [vmem:[#allocation2 + $0x318] sm:$0xff] %v5045_v18  ;;  %v14058_v7 = vor.u32 %v5062_v56, %v17004_v5  ;;  %v17006_v18 = vld [vmem:[#allocation22_spill] sm:$0xff]  ;;  %v5074_v56 = vrot.slane %v17015_v49, 1  ;;  %v17019_v19 = vshll.u32 %v17018_v27, 16  ;;  %v14084_v5 = vor.u32 %v5068_v61, %v17021_v4  ;;  %v17030_v4 = vld [vmem:[#allocation32_spill] sm:$0xff]  ;;  %5698 = vmatprep.mubr.bf16.mxu0 %v13514_v8  ;;  %v5224_v8 = vld [vmem:[#allocation2 + $0x2c8] sm:$0xff] }
 0x431   :  { %v14062_v55 = vor.u32 %v5064_v63, %v17005_v17  ;;  %v17007_v45 = vshll.u32 %v17006_v18, 16  ;;  %v17020_v47 = vshrl.u32 %v17006_v18, 16  ;;  %v17022_v17 = vshrl.u32 %v17010_v24, 16  ;;  %v5215_v40 = vld [vmem:[#allocation2 + $0x280] sm:$0xff] }
 0x432   :  { %v5078_v63 = vrot.slane %v17019_v19, 1  ;;  %v17025_v49 = vshrl.u32 %v17012_v13, 16  ;;  %v17026_v19 = vshrl.u32 %v17014_v60, 16  ;;  %v17028_v61 = vshrl.u32 %v17018_v27, 16 }
 0x433   :  { %v5066_v9 = vrot.slane %v17007_v45, 1  ;;  %v14088_v45 = vor.u32 %v5070_v42, %v17022_v17  ;;  %v17029_v42 = vshrl.u32 %v17023_v48, 16  ;;  %v17031_v13 = vshll.u32 %v17030_v4, 16  ;;  %v17032_v17 = vld [vmem:[#allocation33_spill] sm:$0xff]  ;;  %v17040_v48 = vld [vmem:[#allocation44_spill] sm:$0xff] }
 0x434   :  { %v14094_v44 = vor.u32 %v5072_v28, %v17025_v49  ;;  %v14098_v18 = vor.u32 %v5074_v56, %v17026_v19  ;;  %v14106_v24 = vor.u32 %v5078_v63, %v17028_v61  ;;  %v17033_v21 = vshll.u32 %v17032_v17, 16  ;;  %v17034_v56 = vld [vmem:[#allocation34_spill] sm:$0xff]  ;;  %v17038_v63 = vld [vmem:[#allocation41_spill] sm:$0xff] }
 0x435   :  { %v14080_v59 = vor.u32 %v5066_v9, %v17020_v47  ;;  %v17027_v9 = vshrl.u32 %v17016_v38, 16  ;;  %v14110_v47 = vor.u32 %v5080_v14, %v17029_v42  ;;  %v5082_v28 = vrot.slane %v17031_v13, 1  ;;  %v17036_v38 = vld [vmem:[#allocation36_spill] sm:$0xff] }
 0x436   :  { %v5084_v60 = vrot.slane %v17033_v21, 1  ;;  %v17035_v49 = vshll.u32 %v17034_v56, 16  ;;  %v17041_v14 = vshll.u32 %v17040_v48, 16  ;;  %v5094_v13 = vrot.slane %v17043_v29, 1  ;;  %v5146_v21 = vld [vmem:[#allocation2 + $0x28] sm:$0xff]  ;;  %v5149_v29 = vld [vmem:[#allocation2 + $0x40] sm:$0xff] }
 0x437   :  { %v14102_v6 = vor.u32 %v5076_v15, %v17027_v9  ;;  %v17037_v15 = vshll.u32 %v17036_v38, 16  ;;  %v17039_v9 = vshll.u32 %v17038_v63, 16  ;;  %v17044_v35 = vshrl.u32 %v17030_v4, 16 }
 0x438   :  { %v5086_v19 = vrot.slane %v17035_v49, 1  ;;  %v5092_v42 = vrot.slane %v17041_v14, 1  ;;  %v17045_v51 = vshrl.u32 %v17032_v17, 16  ;;  %v17048_v14 = vshll.u32 %v17047_v34, 16 }
 0x439   :  { %v5088_v27 = vrot.slane %v17037_v15, 1  ;;  %v5090_v61 = vrot.slane %v17039_v9, 1  ;;  %v14130_v49 = vor.u32 %v5082_v28, %v17044_v35  ;;  %v17046_v15 = vshrl.u32 %v17034_v56, 16 }
 0x43a   :  { %v14134_v53 = vor.u32 %v5084_v60, %v17045_v51  ;;  %v5096_v11 = vrot.slane %v17048_v14, 1  ;;  %v17049_v4 = vshrl.u32 %v17036_v38, 16  ;;  %v17050_v28 = vshrl.u32 %v17038_v63, 16  ;;  %v5167_v14 = vld [vmem:[#allocation2 + $0xd0] sm:$0xff] }
 0x43b   :  { %v14138_v9 = vor.u32 %v5086_v19, %v17046_v15  ;;  %v17051_v60 = vshrl.u32 %v17040_v48, 16  ;;  %v17052_v19 = vshrl.u32 %v17042_v10, 16  ;;  %v5161_v15 = vld [vmem:[#allocation2 + $0xa0] sm:$0xff]  ;;  %v17054_v38 = vshrl.u32 %v17047_v34, 16 }
 0x43c   :  { %v14144_v35 = vor.u32 %v5088_v27, %v17049_v4  ;;  %v14148_v17 = vor.u32 %v5090_v61, %v17050_v28  ;;  %v17056_v4 = vld [vmem:[#allocation55_spill] sm:$0xff]  ;;  %v17058_v28 = vld [vmem:[#allocation57_spill] sm:$0xff]  ;;  %v5173_v10 = vld [vmem:[#allocation2 + $0x100] sm:$0xff]  ;;  %v5106_v34 = vrot.slane %v17064_v57, 1  ;;  %v5147_v26 = vsel %vm10230_vm3, %v14032_v12, %v5146_v21 }
 0x43d   :  { %v14152_v56 = vor.u32 %v5092_v42, %v17051_v60  ;;  %v14156_v51 = vor.u32 %v5094_v13, %v17052_v19  ;;  %v14160_v27 = vor.u32 %v5096_v11, %v17054_v38  ;;  %v17057_v63 = vshll.u32 %v17056_v4, 16  ;;  %v17060_v42 = vld [vmem:[#allocation59_spill] sm:$0xff]  ;;  %v5176_v13 = vld [vmem:[#allocation2 + $0x118] sm:$0xff]  ;;  %5148 = vst [vmem:[#allocation2 + $0x28] sm:$0xff] %v5147_v26  ;;  %v5197_v12 = vld [vmem:[#allocation2 + $0x1f0] sm:$0xff] }
 0x43e   :  { %v17059_v1 = vshll.u32 %v17058_v28, 16  ;;  %v17061_v60 = vshll.u32 %v17060_v42, 16  ;;  %v17062_v19 = vld [vmem:[#allocation63_spill] sm:$0xff]  ;;  %v17065_v11 = vshll.u32 %v13586_v33, 16  ;;  %v17069_v57 = vshrl.u32 %v17060_v42, 16  ;;  %v17078_v26 = vld [vmem:[#allocation66_spill] sm:$0xff] }
 0x43f   :  { %17053 = vst [vmem:[#allocation87_spill] sm:$0xff] %v14156_v51  ;;  %17055 = vst [vmem:[#allocation85_spill] sm:$0xff] %v14160_v27  ;;  %v5098_v61 = vrot.slane %v17057_v63, 1  ;;  %v17063_v52 = vshll.u32 %v17062_v19, 16  ;;  %v17066_v63 = vshll.u32 %v13588_v3, 16  ;;  %v5194_v27 = vld [vmem:[#allocation2 + $0x1d8] sm:$0xff]  ;;  %5699 = vmatmul.mubr.bf16.gmra.mrb[20].mxu0 %v17078_v26 }
 0x440   :  { %v5100_v48 = vrot.slane %v17059_v1, 1  ;;  %v5102_v46 = vrot.slane %v17061_v60, 1  ;;  %v5108_v38 = vrot.slane %v17065_v11, 1  ;;  %v5179_v1 = vld [vmem:[#allocation2 + $0x130] sm:$0xff]  ;;  %v17067_v60 = vshrl.u32 %v17056_v4, 16  ;;  %v5200_v21 = vld [vmem:[#allocation2 + $0x208] sm:$0xff] }
 0x441   :  { %v5104_v31 = vrot.slane %v17063_v52, 1  ;;  %v5110_v50 = vrot.slane %v17066_v63, 1  ;;  %v17068_v52 = vshrl.u32 %v17058_v28, 16  ;;  %v5188_v63 = vld [vmem:[#allocation2 + $0x178] sm:$0xff]  ;;  %v17071_v51 = vshrl.u32 %v17062_v19, 16  ;;  %v5212_v19 = vld [vmem:[#allocation2 + $0x268] sm:$0xff] }
 0x442   :  { %v14180_v16 = vor.u32 %v5098_v61, %v17067_v60  ;;  %v14188_v0 = vor.u32 %v5102_v46, %v17069_v57  ;;  %v17072_v61 = vshrl.u32 %v13580_v25, 16  ;;  %v17074_v46 = vshrl.u32 %v13588_v3, 16 }
 0x443   :  { %v14184_v41 = vor.u32 %v5100_v48, %v17068_v52  ;;  %v14195_v4 = vor.u32 %v5104_v31, %v17071_v51  ;;  %v17073_v48 = vshrl.u32 %v13586_v33, 16  ;;  %v5203_v52 = vld [vmem:[#allocation2 + $0x220] sm:$0xff]  ;;  %v5150_v31 = vsel %vm10230_vm3, %v14036_v58, %v5149_v29  ;;  %v5209_v51 = vld [vmem:[#allocation2 + $0x250] sm:$0xff]  ;;  %v5236_v29 = vld [vmem:[#allocation2 + $0x328] sm:$0xff] }
 0x444   :  { %v14199_v28 = vor.u32 %v5106_v34, %v17072_v61  ;;  %v14207_v60 = vor.u32 %v5110_v50, %v17074_v46  ;;  %v5153_v25 = vsel %vm10230_vm3, %v14040_v30, %v5152_v54  ;;  %v5156_v33 = vsel %vm10230_vm3, %v14046_v37, %v5155_v22  ;;  %v5206_v50 = vld [vmem:[#allocation2 + $0x238] sm:$0xff]  ;;  %5151 = vst [vmem:[#allocation2 + $0x40] sm:$0xff] %v5150_v31  ;;  %v9917_v31 = vld [vmem:[#allocation4 + $0xc0] sm:$0xff]  }
 0x445   :  { %v14203_v42 = vor.u32 %v5108_v38, %v17073_v48  ;;  %v5159_v3 = vsel %vm10230_vm3, %v14050_v20, %v5158_v36  ;;  %v5162_v58 = vsel %vm10230_vm3, %v14054_v43, %v5161_v15  ;;  %v5165_v30 = vsel %vm10230_vm3, %v14058_v7, %v5164_v32  ;;  %5154 = vst [vmem:[#allocation2 + $0x58] sm:$0xff] %v5153_v25  ;;  %v5218_v37 = vld [vmem:[#allocation2 + $0x298] sm:$0xff]  ;;  %v5221_v20 = vld [vmem:[#allocation2 + $0x2b0] sm:$0xff] }
 0x446   :  { %v5168_v22 = vsel %vm10230_vm3, %v14062_v55, %v5167_v14  ;;  %v5171_v36 = vsel %vm10230_vm3, %v14080_v59, %v5170_v39  ;;  %5157 = vst [vmem:[#allocation2 + $0x70] sm:$0xff] %v5156_v33  ;;  %5160 = vst [vmem:[#allocation2 + $0x88] sm:$0xff] %v5159_v3  ;;  %v5174_v32 = vsel %vm10230_vm3, %v14084_v5, %v5173_v10  ;;  %v5227_v55 = vld [vmem:[#allocation2 + $0x2e0] sm:$0xff]  ;;  %v5230_v59 = vld [vmem:[#allocation2 + $0x2f8] sm:$0xff] }
 0x447   :  { %v5177_v43 = vsel %vm10230_vm3, %v14088_v45, %v5176_v13  ;;  %v5180_v39 = vsel %vm10230_vm3, %v14094_v44, %v5179_v1  ;;  %v5183_v7 = vsel %vm10230_vm3, %v14098_v18, %v5182_v2  ;;  %5163 = vst [vmem:[#allocation2 + $0xa0] sm:$0xff] %v5162_v58  ;;  %5166 = vst [vmem:[#allocation2 + $0xb8] sm:$0xff] %v5165_v30  ;;  %v5233_v18 = vld [vmem:[#allocation2 + $0x310] sm:$0xff] }
 0x448   :  { %5169 = vst [vmem:[#allocation2 + $0xd0] sm:$0xff] %v5168_v22  ;;  %5172 = vst [vmem:[#allocation2 + $0xe8] sm:$0xff] %v5171_v36  ;;  %v5186_v5 = vsel %vm10230_vm3, %v14102_v6, %v14176_v23  ;;  %v5189_v45 = vsel %vm10230_vm3, %v14106_v24, %v5188_v63  ;;  %v5192_v2 = vsel %vm10230_vm3, %v14110_v47, %v5191_v62  ;;  %v5335_v47 = vld [vmem:[#allocation2 + $0x340] sm:$0x80] }
 0x449   :  { %v5195_v44 = vsel %vm10230_vm3, %v14130_v49, %v5194_v27  ;;  %5175 = vst [vmem:[#allocation2 + $0x100] sm:$0xff] %v5174_v32  ;;  %5178 = vst [vmem:[#allocation2 + $0x118] sm:$0xff] %v5177_v43  ;;  %v5198_v23 = vsel %vm10230_vm3, %v14134_v53, %v5197_v12  ;;  %v5201_v62 = vsel %vm10230_vm3, %v14138_v9, %v5200_v21  ;;  %v17075_v53 = vld [vmem:[#allocation87_spill] sm:$0xff]  ;;  %v17076_v9 = vld [vmem:[#allocation85_spill] sm:$0xff]  ;;  %v5336_v34 = vsel %vm10307_vm6, 0, %v5335_v47 }
 0x44a   :  { %5181 = vst [vmem:[#allocation2 + $0x130] sm:$0xff] %v5180_v39  ;;  %5184 = vst [vmem:[#allocation2 + $0x148] sm:$0xff] %v5183_v7  ;;  %v5204_v6 = vsel %vm10230_vm3, %v14144_v35, %v5203_v52  ;;  %v5207_v24 = vsel %vm10230_vm3, %v14148_v17, %v5206_v50  ;;  %v5210_v49 = vsel %vm10230_vm3, %v14152_v56, %v5209_v51  ;;  %v5242_v27 = vld [vmem:[#allocation2 + $0x28] sm:$0x80]  ;;  %v17080_v7 = vld [vmem:[#allocation68_spill] sm:$0xff] }
 0x44b   :  { %5193 = vst [vmem:[#allocation2 + $0x190] sm:$0xff] %v5192_v2  ;;  %5196 = vst [vmem:[#allocation2 + $0x1d8] sm:$0xff] %v5195_v44  ;;  %v5213_v54 = vsel %vm10230_vm3, %v17075_v53, %v5212_v19  ;;  %v5216_v15 = vsel %vm10230_vm3, %v17076_v9, %v5215_v40  ;;  %v5219_v35 = vsel %vm10230_vm3, %v14180_v16, %v5218_v37  ;;  %v5243_v13 = vsel %vm10307_vm6, 0, %v5242_v27  ;;  %v5245_v38 = vld [vmem:[#allocation2 + $0x40] sm:$0x80]  ;;  %v9918_v44 = vld [vmem:[#allocation4 + $0xc8] sm:$0xff]  }
 0x44c   :  { %5187 = vst [vmem:[#allocation2 + $0x160] sm:$0xff] %v5186_v5  ;;  %5190 = vst [vmem:[#allocation2 + $0x178] sm:$0xff] %v5189_v45  ;;  %v5222_v17 = vsel %vm10230_vm3, %v14184_v41, %v5221_v20  ;;  %v5225_v56 = vsel %vm10230_vm3, %v14188_v0, %v5224_v8  ;;  %v5228_v14 = vsel %vm10230_vm3, %v14195_v4, %v5227_v55  ;;  %v5248_v1 = vld [vmem:[#allocation2 + $0x58] sm:$0x80]  ;;  %v5246_v11 = vsel %vm10307_vm6, 0, %v5245_v38  ;;  %v10023_v38 = vld [vmem:[#allocation2 + $0xc8] sm:$0xff] }
 0x44d   :  { %5199 = vst [vmem:[#allocation2 + $0x1f0] sm:$0xff] %v5198_v23  ;;  %5202 = vst [vmem:[#allocation2 + $0x208] sm:$0xff] %v5201_v62  ;;  %v5231_v16 = vsel %vm10230_vm3, %v14199_v28, %v5230_v59  ;;  %v5234_v41 = vsel %vm10230_vm3, %v14203_v42, %v5233_v18  ;;  %v5237_v0 = vsel %vm10230_vm3, %v14207_v60, %v5236_v29  ;;  %v5251_v57 = vld [vmem:[#allocation2 + $0x70] sm:$0x80]  ;;  %v5249_v63 = vsel %vm10307_vm6, 0, %v5248_v1  ;;  %v17079_v28 = vld [vmem:[#allocation19_spill] sm:$0xff] }
 0x44e   :  { %5205 = vst [vmem:[#allocation2 + $0x220] sm:$0xff] %v5204_v6  ;;  %5208 = vst [vmem:[#allocation2 + $0x238] sm:$0xff] %v5207_v24  ;;  %v5252_v4 = vsel %vm10307_vm6, 0, %v5251_v57  ;;  %v5254_v61 = vld [vmem:[#allocation2 + $0x88] sm:$0x80]  ;;  %5706 = vmatprep.mubr.bf16.mxu0 %v17079_v28  ;;  %v17081_v45 = vld [vmem:[#allocation25_spill] sm:$0xff] }
 0x44f   :  { %5211 = vst [vmem:[#allocation2 + $0x250] sm:$0xff] %v5210_v49  ;;  %5214 = vst [vmem:[#allocation2 + $0x268] sm:$0xff] %v5213_v54  ;;  %v5255_v48 = vsel %vm10307_vm6, 0, %v5254_v61  ;;  %v5257_v42 = vld [vmem:[#allocation2 + $0xa0] sm:$0x80]  ;;  %5707 = vmatmul.mubr.bf16.gmra.mrb[24].mxu0 %v17080_v7  ;;  %v14350_v29 = vld [vmem:[#allocation2 + $0x10] sm:$0xff] }
 0x450   :  { %5217 = vst [vmem:[#allocation2 + $0x280] sm:$0xff] %v5216_v15  ;;  %5220 = vst [vmem:[#allocation2 + $0x298] sm:$0xff] %v5219_v35  ;;  %v5260_v46 = vld [vmem:[#allocation2 + $0xb8] sm:$0x80]  ;;  %v5258_v60 = vsel %vm10307_vm6, 0, %v5257_v42  ;;  %5714 = vmatprep.mubr.bf16.mxu0 %v17081_v45  ;;  %v9919_v15 = vld [vmem:[#allocation4 + $0xd0] sm:$0xff]  }
 0x451   :  { %5223 = vst [vmem:[#allocation2 + $0x2b0] sm:$0xff] %v5222_v17  ;;  %5226 = vst [vmem:[#allocation2 + $0x2c8] sm:$0xff] %v5225_v56  ;;  %v5261_v12 = vsel %vm10307_vm6, 0, %v5260_v46  ;;  %v5263_v21 = vld [vmem:[#allocation2 + $0xd0] sm:$0x80]  ;;  %v9920_v1 = vld [vmem:[#allocation4 + $0xd8] sm:$0xff]  }
 0x452   :  { %5229 = vst [vmem:[#allocation2 + $0x2e0] sm:$0xff] %v5228_v14  ;;  %5232 = vst [vmem:[#allocation2 + $0x2f8] sm:$0xff] %v5231_v16  ;;  %v5266_v52 = vld [vmem:[#allocation2 + $0xe8] sm:$0x80]  ;;  %v5264_v25 = vsel %vm10307_vm6, 0, %v5263_v21  ;;  %v9922_v46 = vld [vmem:[#allocation4 + $0xe0] sm:$0xff]  }
 0x453   :  { %5244 = vst [vmem:[#allocation2 + $0x28] sm:$0x80] %v5243_v13  ;;  %5235 = vst [vmem:[#allocation2 + $0x310] sm:$0xff] %v5234_v41  ;;  %v5267_v33 = vsel %vm10307_vm6, 0, %v5266_v52  ;;  %v5269_v3 = vld [vmem:[#allocation2 + $0x100] sm:$0x80] }
 0x454   :  { %5238 = vst [vmem:[#allocation2 + $0x328] sm:$0xff] %v5237_v0  ;;  %5337 = vst [vmem:[#allocation2 + $0x340] sm:$0x80] %v5336_v34  ;;  %v5272_v50 = vld [vmem:[#allocation2 + $0x118] sm:$0x80]  ;;  %v5270_v51 = vsel %vm10307_vm6, 0, %v5269_v3 }
 0x455   :  { %5247 = vst [vmem:[#allocation2 + $0x40] sm:$0x80] %v5246_v11  ;;  %5250 = vst [vmem:[#allocation2 + $0x58] sm:$0x80] %v5249_v63  ;;  %v5273_v19 = vsel %vm10307_vm6, 0, %v5272_v50  ;;  %v17082_v41 = vld [vmem:[#allocation71_spill] sm:$0xff] }
 0x456   :  { %5253 = vst [vmem:[#allocation2 + $0x70] sm:$0x80] %v5252_v4  ;;  %5256 = vst [vmem:[#allocation2 + $0x88] sm:$0x80] %v5255_v48  ;;  %v5275_v58 = vld [vmem:[#allocation2 + $0x130] sm:$0x80] }
 0x457   :  { %5259 = vst [vmem:[#allocation2 + $0xa0] sm:$0x80] %v5258_v60  ;;  %5262 = vst [vmem:[#allocation2 + $0xb8] sm:$0x80] %v5261_v12  ;;  %v5278_v30 = vld [vmem:[#allocation2 + $0x148] sm:$0x80]  ;;  %5715 = vmatmul.mubr.bf16.gmra.mrb[28].mxu0 %v17082_v41 }
 0x458   :  { %5265 = vst [vmem:[#allocation2 + $0xd0] sm:$0x80] %v5264_v25  ;;  %5268 = vst [vmem:[#allocation2 + $0xe8] sm:$0x80] %v5267_v33  ;;  %v5276_v22 = vsel %vm10307_vm6, 0, %v5275_v58  ;;  %v5279_v36 = vsel %vm10307_vm6, 0, %v5278_v30  ;;  %5722 = vmatprep.mubr.bf16.mxu0 %v10023_v38 }
 0x459   :  { %5271 = vst [vmem:[#allocation2 + $0x100] sm:$0x80] %v5270_v51  ;;  %5274 = vst [vmem:[#allocation2 + $0x118] sm:$0x80] %v5273_v19  ;;  %v5281_v40 = vld [vmem:[#allocation2 + $0x160] sm:$0x80] }
 0x45a   :  { %v5284_v37 = vld [vmem:[#allocation2 + $0x178] sm:$0x80]  ;;  %v14332_v20 = vld [vmem:[#allocation2 + $0x28] sm:$0xff]  ;;  %5277 = vst [vmem:[#allocation2 + $0x130] sm:$0x80] %v5276_v22  ;;  %v5282_v32 = vsel %vm10307_vm6, 0, %v5281_v40 }
 0x45b   :  { %5280 = vst [vmem:[#allocation2 + $0x148] sm:$0x80] %v5279_v36  ;;  %v5285_v43 = vsel %vm10307_vm6, 0, %v5284_v37  ;;  %v5290_v39 = vld [vmem:[#allocation2 + $0x1d8] sm:$0x80]  ;;  %9588 = vmatmul.mubr.bf16.vlgmr.msra.gmra.mrb[64].mxu1 %v14332_v20  ;;  %v9935_v28 = vld [vmem:[#allocation4 + $0x168] sm:$0xff]  }
 0x45c   :  { %5283 = vst [vmem:[#allocation2 + $0x160] sm:$0x80] %v5282_v32  ;;  %5286 = vst [vmem:[#allocation2 + $0x178] sm:$0x80] %v5285_v43  ;;  %v5291_v8 = vsel %vm10307_vm6, 0, %v5290_v39  ;;  %v14342_v5 = vld [vmem:[#allocation2 + $0x40] sm:$0xff]  ;;  %6557 = vmatpush1.bf16.msra.mxu1 %v9917_v31  ;;  %9661 = vmatprep.subr.bf16.mxu0 %v9935_v28 }
 0x45d   :  { %v5293_v55 = vld [vmem:[#allocation2 + $0x1f0] sm:$0x80]  ;;  %v5296_v59 = vld [vmem:[#allocation2 + $0x208] sm:$0x80]  ;;  %5292 = vst [vmem:[#allocation2 + $0x1d8] sm:$0x80] %v5291_v8  ;;  %9591 = vmatprep.mubr.bf16.mxu1 %v14342_v5  ;;  %6558 = vmatprep.subr.bf16.mxu1 %v14350_v29 }
 0x45e   :  { %v5294_v2 = vsel %vm10307_vm6, 0, %v5293_v55  ;;  %v5297_v18 = vsel %vm10307_vm6, 0, %v5296_v59  ;;  %v5299_v23 = vld [vmem:[#allocation2 + $0x220] sm:$0x80]  ;;  %v5302_v62 = vld [vmem:[#allocation2 + $0x238] sm:$0x80]  ;;  %9662 = vmatpush3.bf16.msra.mxu0 %v9935_v28 }
 0x45f   :  { %5295 = vst [vmem:[#allocation2 + $0x1f0] sm:$0x80] %v5294_v2  ;;  %5298 = vst [vmem:[#allocation2 + $0x208] sm:$0x80] %v5297_v18  ;;  %v5300_v6 = vsel %vm10307_vm6, 0, %v5299_v23  ;;  %v5303_v24 = vsel %vm10307_vm6, 0, %v5302_v62 }
 0x460   :  { %v5305_v47 = vld [vmem:[#allocation2 + $0x250] sm:$0x80]  ;;  %5301 = vst [vmem:[#allocation2 + $0x220] sm:$0x80] %v5300_v6  ;;  %5304 = vst [vmem:[#allocation2 + $0x238] sm:$0x80] %v5303_v24  ;;  %6559 = vmatpush1.bf16.msra.mxu1 %v9918_v44 }
 0x461   :  { %v5306_v49 = vsel %vm10307_vm6, 0, %v5305_v47  ;;  %v5308_v53 = vld [vmem:[#allocation2 + $0x268] sm:$0x80]  ;;  %v5311_v9 = vld [vmem:[#allocation2 + $0x280] sm:$0x80]  ;;  %6560 = vmatprep.subr.bf16.mxu1 %v14350_v29  ;;  %v14364_v56 = vld [vmem:[#allocation2 + $0x58] sm:$0xff] }
 0x462   :  { %5307 = vst [vmem:[#allocation2 + $0x250] sm:$0x80] %v5306_v49  ;;  %v5309_v54 = vsel %vm10307_vm6, 0, %v5308_v53  ;;  %v5312_v35 = vsel %vm10307_vm6, 0, %v5311_v9  ;;  %v5314_v17 = vld [vmem:[#allocation2 + $0x298] sm:$0x80] }
 0x463   :  { %5310 = vst [vmem:[#allocation2 + $0x268] sm:$0x80] %v5309_v54  ;;  %5313 = vst [vmem:[#allocation2 + $0x280] sm:$0x80] %v5312_v35  ;;  %v5315_v14 = vsel %vm10307_vm6, 0, %v5314_v17  ;;  %9592 = vmatmul.mubr.bf16.gmra.mrb[68].mxu1 %v14364_v56  ;;  %v14369_v27 = vld [vmem:[#allocation2 + $0x70] sm:$0xff] }
 0x464   :  { %v5317_v16 = vld [vmem:[#allocation2 + $0x2b0] sm:$0x80]  ;;  %5316 = vst [vmem:[#allocation2 + $0x298] sm:$0x80] %v5315_v14  ;;  %v5320_v13 = vld [vmem:[#allocation2 + $0x2c8] sm:$0x80]  ;;  %9595 = vmatprep.mubr.bf16.mxu1 %v14369_v27  ;;  %6561 = vmatpush1.bf16.msra.mxu1 %v9919_v15 }
 0x465   :  { %v5318_v0 = vsel %vm10307_vm6, 0, %v5317_v16  ;;  %v5323_v34 = vld [vmem:[#allocation2 + $0x2e0] sm:$0x80]  ;;  %v5321_v57 = vsel %vm10307_vm6, 0, %v5320_v13  ;;  %v5326_v11 = vld [vmem:[#allocation2 + $0x2f8] sm:$0x80]  ;;  %6562 = vmatprep.subr.bf16.mxu1 %v14350_v29 }
 0x466   :  { %5319 = vst [vmem:[#allocation2 + $0x2b0] sm:$0x80] %v5318_v0  ;;  %v5324_v26 = vsel %vm10307_vm6, 0, %v5323_v34  ;;  %5322 = vst [vmem:[#allocation2 + $0x2c8] sm:$0x80] %v5321_v57  ;;  %v5327_v63 = vsel %vm10307_vm6, 0, %v5326_v11 }
 0x467   :  { %5325 = vst [vmem:[#allocation2 + $0x2e0] sm:$0x80] %v5324_v26  ;;  %v5329_v4 = vld [vmem:[#allocation2 + $0x310] sm:$0x80]  ;;  %v5332_v61 = vld [vmem:[#allocation2 + $0x328] sm:$0x80] }
 0x468   :  { %5328 = vst [vmem:[#allocation2 + $0x2f8] sm:$0x80] %v5327_v63  ;;  %v5330_v48 = vsel %vm10307_vm6, 0, %v5329_v4  ;;  %v5333_v42 = vsel %vm10307_vm6, 0, %v5332_v61  ;;  %6563 = vmatpush1.bf16.msra.mxu1 %v9920_v1  ;;  %v5287_v60 = vld [vmem:[#allocation2 + $0x190] sm:$0x80] }
 0x469   :  { %5331 = vst [vmem:[#allocation2 + $0x310] sm:$0x80] %v5330_v48  ;;  %5334 = vst [vmem:[#allocation2 + $0x328] sm:$0x80] %v5333_v42  ;;  %v14386_v12 = vld [vmem:[#allocation2 + $0x88] sm:$0xff]  ;;  %6564 = vmatprep.subr.bf16.mxu1 %v14350_v29  ;;  %v5288_v21 = vsel %vm10307_vm6, 0, %v5287_v60 }
 0x46a   :  { %v14392_v52 = vld [vmem:[#allocation2 + $0xa0] sm:$0xff]  ;;  %v17083_v31 = vld [vmem:[#allocation72_spill] sm:$0xff]  ;;  %5289 = vst [vmem:[#allocation2 + $0x190] sm:$0x80] %v5288_v21  ;;  %v9923_v33 = vld [vmem:[#allocation4 + $0xe8] sm:$0xff]  }
 0x46b   :  { %9596 = vmatmul.mubr.bf16.gmra.mrb[72].mxu1 %v14386_v12  ;;  %5723 = vmatmul.mubr.bf16.gmra.mrb[32].mxu0 %v17083_v31  ;;  %v10024_v25 = vld [vmem:[#allocation2 + $0xe0] sm:$0xff]  ;;  %v9924_v3 = vld [vmem:[#allocation4 + $0xf0] sm:$0xff]   ;;  %v14397_v50 = vld [vmem:[#allocation2 + $0xb8] sm:$0xff] }
 0x46c   :  { %9599 = vmatprep.mubr.bf16.mxu1 %v14392_v52  ;;  %5730 = vmatprep.mubr.bf16.mxu0 %v10024_v25  ;;  %v14401_v10 = vld [vmem:[#allocation2 + $0xd0] sm:$0xff]  ;;  %v17084_v51 = vld [vmem:[#allocation69_spill] sm:$0xff]  ;;  %v9926_v30 = vld [vmem:[#allocation4 + $0x100] sm:$0xff]  }
 0x46d   :  { %6565 = vmatpush1.bf16.msra.mxu1 %v9922_v46  ;;  %v14404_v19 = vld [vmem:[#allocation2 + $0xf8] sm:$0xff]  ;;  %v14409_v22 = vld [vmem:[#allocation2 + $0xe8] sm:$0xff]  ;;  %v5370_v36 = vld [vmem:[#allocation2 + $0x100] sm:$0xff] }
 0x46e   :  { %6566 = vmatprep.subr.bf16.mxu1 %v14350_v29  ;;  %v9925_v58 = vld [vmem:[#allocation4 + $0xf8] sm:$0xff]   ;;  %v17085_v40 = vld [vmem:[#allocation70_spill] sm:$0xff]  ;;  %v14414_v37 = vld [vmem:[#allocation2 + $0x110] sm:$0xff] }
 0x46f   :  { %v9927_v32 = vld [vmem:[#allocation4 + $0x108] sm:$0xff]   ;;  %v9928_v43 = vld [vmem:[#allocation4 + $0x110] sm:$0xff]   ;;  %v5373_v39 = vld [vmem:[#allocation2 + $0x118] sm:$0xff] }
 0x470   :  { %v5376_v7 = vld [vmem:[#allocation2 + $0x130] sm:$0xff]  ;;  %v17086_v8 = vld [vmem:[#allocation73_spill] sm:$0xff]  ;;  %v14420_v55 = vld [vmem:[#allocation2 + $0x128] sm:$0xff] }
 0x471   :  { %6567 = vmatpush1.bf16.msra.mxu1 %v9923_v33  ;;  %v9936_v59 = vld [vmem:[#allocation4 + $0x170] sm:$0xff]   ;;  %v9929_v45 = vld [vmem:[#allocation4 + $0x118] sm:$0xff]   ;;  %v9931_v2 = vld [vmem:[#allocation4 + $0x120] sm:$0xff]   ;;  %v14440_v14 = vpop.f32.mrb[0].mxu0 }
 0x472   :  { %6568 = vmatprep.subr.bf16.mxu1 %v14350_v29  ;;  %9663 = vmatprep.subr.bf16.mxu0 %v9936_v59  ;;  %v5379_v44 = vld [vmem:[#allocation2 + $0x148] sm:$0xff]  ;;  %v5382_v18 = vld [vmem:[#allocation2 + $0x160] sm:$0xff]  ;;  %v9933_v24 = vld [vmem:[#allocation4 + $0x130] sm:$0xff]   ;;  %v5662_v16 = vpop.f32.mrb[1].mxu0 }
 0x473   :  { %9600 = vmatmul.mubr.bf16.gmra.mrb[76].mxu1 %v14397_v50  ;;  %5731 = vmatmul.mubr.bf16.gmra.mrb[36].mxu0 %v17084_v51  ;;  %v17087_v23 = vld [vmem:[#allocation75_spill] sm:$0xff]  ;;  %v14426_v62 = vld [vmem:[#allocation2 + $0x140] sm:$0xff]  ;;  %v5385_v47 = vld [vmem:[#allocation2 + $0x178] sm:$0xff]  ;;  %v14443_v41 = vpop.f32.mrb[2].mxu0 }
 0x474   :  { %9603 = vmatprep.mubr.bf16.mxu1 %v14401_v10  ;;  %5738 = vmatprep.mubr.bf16.mxu0 %v14404_v19  ;;  %v9932_v6 = vld [vmem:[#allocation4 + $0x128] sm:$0xff]   ;;  %v17088_v49 = vld [vmem:[#allocation74_spill] sm:$0xff]  ;;  %v14432_v53 = vld [vmem:[#allocation2 + $0x158] sm:$0xff]  ;;  %v5665_v0 = vpop.f32.mrb[3].mxu0 }
 0x475   :  { %6569 = vmatpush1.bf16.msra.mxu1 %v9924_v3  ;;  %9664 = vmatpush3.bf16.msra.mxu0 %v9936_v59  ;;  %v9934_v54 = vld [vmem:[#allocation4 + $0x138] sm:$0xff]   ;;  %v5394_v15 = vld [vmem:[#allocation2 + $0x1f0] sm:$0xff]  ;;  %v5397_v13 = vld [vmem:[#allocation2 + $0x208] sm:$0xff] }
 0x476   :  { %6570 = vmatprep.subr.bf16.mxu1 %v14350_v29  ;;  %v5391_v9 = vld [vmem:[#allocation2 + $0x1d8] sm:$0xff]  ;;  %v17089_v35 = vld [vmem:[#allocation88_spill] sm:$0xff]  ;;  %v5400_v34 = vld [vmem:[#allocation2 + $0x220] sm:$0xff] }
 0x477   :  { %v14438_v17 = vld [vmem:[#allocation2 + $0x170] sm:$0xff]  ;;  %v17090_v38 = vld [vmem:[#allocation78_spill] sm:$0xff]  ;;  %v9937_v1 = vld [vmem:[#allocation4 + $0x178] sm:$0xff]  }
 0x478   :  { %9665 = vmatprep.subr.bf16.mxu0 %v9937_v1  ;;  %v5403_v57 = vld [vmem:[#allocation2 + $0x238] sm:$0xff]  ;;  %v5406_v26 = vld [vmem:[#allocation2 + $0x250] sm:$0xff]  ;;  %v5409_v63 = vld [vmem:[#allocation2 + $0x268] sm:$0xff] }
 0x479   :  { %6571 = vmatpush1.bf16.msra.mxu1 %v9925_v58  ;;  %9666 = vmatpush3.bf16.msra.mxu0 %v9937_v1  ;;  %v14449_v11 = vld [vmem:[#allocation2 + $0x1d0] sm:$0xff]  ;;  %v14452_v4 = vld [vmem:[#allocation2 + $0x1c8] sm:$0xff]  ;;  %v5412_v61 = vld [vmem:[#allocation2 + $0x280] sm:$0xff] }
 0x47a   :  { %6572 = vmatprep.subr.bf16.mxu1 %v14350_v29  ;;  %7614 = vmatprep.subr.bf16.mxu0 %v14350_v29  ;;  %v14455_v28 = vld [vmem:[#allocation2 + $0x1e8] sm:$0xff]  ;;  %v5415_v48 = vld [vmem:[#allocation2 + $0x298] sm:$0xff]  ;;  %v5418_v42 = vld [vmem:[#allocation2 + $0x2b0] sm:$0xff] }
 0x47b   :  { %9604 = vmatmul.mubr.bf16.gmra.mrb[80].mxu1 %v14409_v22  ;;  %5739 = vmatmul.mubr.bf16.gmra.mrb[40].mxu0 %v17085_v40  ;;  %v17091_v46 = vld [vmem:[#allocation76_spill] sm:$0xff]  ;;  %v14459_v60 = vld [vmem:[#allocation2 + $0x200] sm:$0xff]  ;;  %v5421_v21 = vld [vmem:[#allocation2 + $0x2c8] sm:$0xff] }
 0x47c   :  { %9607 = vmatprep.mubr.bf16.mxu1 %v5370_v36  ;;  %5746 = vmatprep.mubr.bf16.mxu0 %v14414_v37  ;;  %v5424_v31 = vld [vmem:[#allocation2 + $0x2e0] sm:$0xff]  ;;  %v17092_v25 = vld [vmem:[#allocation79_spill] sm:$0xff]  ;;  %v14463_v33 = vld [vmem:[#allocation2 + $0x218] sm:$0xff] }
 0x47d   :  { %6573 = vmatpush1.bf16.msra.mxu1 %v9926_v30  ;;  %v9938_v3 = vld [vmem:[#allocation4 + $0x200] sm:$0xff]   ;;  %v5427_v51 = vld [vmem:[#allocation2 + $0x2f8] sm:$0xff]  ;;  %v5430_v58 = vld [vmem:[#allocation2 + $0x310] sm:$0xff] }
 0x47e   :  { %6574 = vmatprep.subr.bf16.mxu1 %v14350_v29  ;;  %v17093_v30 = vld [vmem:[#allocation77_spill] sm:$0xff]  ;;  %v14467_v36 = vld [vmem:[#allocation2 + $0x230] sm:$0xff]  ;;  %v5433_v40 = vld [vmem:[#allocation2 + $0x328] sm:$0xff] }
 0x47f   :  { %v17095_v59 = vld [vmem:[#allocation82_spill] sm:$0xff]  ;;  %v14487_v16 = vld [vmem:[#allocation2 + $0x2a8] sm:$0xff]  ;;  %v10028_v0 = vld [vmem:[#allocation2 + $0x78] sm:$0xff] }
 0x480   :  { %v10029_v1 = vld [vmem:[#allocation2 + $0x90] sm:$0xff] }
 0x481   :  { %6575 = vmatpush1.bf16.msra.mxu1 %v9927_v32  ;;  %v6269_v32 = vld [vmem:[#allocation2 + $0x20] sm:$0xff] }
 0x482   :  { %6576 = vmatprep.subr.bf16.mxu1 %v14350_v29 }
 0x483   :  { %9608 = vmatmul.mubr.bf16.gmra.mrb[84].mxu1 %v5373_v39  ;;  %5747 = vmatmul.mubr.bf16.gmra.mrb[44].mxu0 %v17086_v8  ;;  %v14471_v39 = vld [vmem:[#allocation2 + $0x248] sm:$0xff]  ;;  %v6272_v8 = vld [vmem:[#allocation2 + $0x38] sm:$0xff] }
 0x484   :  { %9611 = vmatprep.mubr.bf16.mxu1 %v5376_v7  ;;  %5754 = vmatprep.mubr.bf16.mxu0 %v14420_v55  ;;  %v6268_v7 = vld [vmem:[#allocation2 + $0x18] sm:$0xff] }
 0x485   :  { %6577 = vmatpush1.bf16.msra.mxu1 %v9928_v43  ;;  %v17094_v43 = vld [vmem:[#allocation42_spill] sm:$0xff] }
 0x486   :  { %6578 = vmatprep.subr.bf16.mxu1 %v14350_v29 }
 0x489   :  { %6579 = vmatpush1.bf16.msra.mxu1 %v9929_v45  ;;  %v14475_v45 = vld [vmem:[#allocation2 + $0x260] sm:$0xff] }
 0x48a   :  { %6580 = vmatprep.subr.bf16.mxu1 %v14350_v29 }
 0x48b   :  { %9612 = vmatmul.mubr.bf16.gmra.mrb[88].mxu1 %v5379_v44  ;;  %5755 = vmatmul.mubr.bf16.gmra.mrb[48].mxu0 %v17087_v23  ;;  %v6275_v44 = vld [vmem:[#allocation2 + $0x50] sm:$0xff]  ;;  %v14479_v23 = vld [vmem:[#allocation2 + $0x278] sm:$0xff] }
 0x48c   :  { %9615 = vmatprep.mubr.bf16.mxu1 %v5382_v18  ;;  %5762 = vmatprep.mubr.bf16.mxu0 %v14426_v62  ;;  %v17096_v18 = vld [vmem:[#allocation80_spill] sm:$0xff] }
 0x48d   :  { %6581 = vmatpush1.bf16.msra.mxu1 %v9931_v2  ;;  %v10025_v2 = vld [vmem:[#allocation2 + $0x30] sm:$0xff] }
 0x48e   :  { %6582 = vmatprep.subr.bf16.mxu1 %v14350_v29 }
 0x491   :  { %6583 = vmatpush1.bf16.msra.mxu1 %v9932_v6  ;;  %v9943_v6 = vld [vmem:[#allocation4 + $0x208] sm:$0xff]  }
 0x492   :  { %6584 = vmatprep.subr.bf16.mxu1 %v14350_v29 }
 0x493   :  { %9616 = vmatmul.mubr.bf16.gmra.mrb[92].mxu1 %v5385_v47  ;;  %5763 = vmatmul.mubr.bf16.gmra.mrb[52].mxu0 %v17088_v49  ;;  %v6278_v47 = vld [vmem:[#allocation2 + $0x68] sm:$0xff] }
 0x494   :  { %9619 = vmatprep.mubr.bf16.mxu1 %v14350_v29  ;;  %5770 = vmatprep.mubr.bf16.mxu0 %v14432_v53  ;;  %v17097_v49 = vld [vmem:[#allocation83_spill] sm:$0xff] }
 0x495   :  { %6585 = vmatpush1.bf16.msra.mxu1 %v9933_v24  ;;  %v10026_v24 = vld [vmem:[#allocation2 + $0x48] sm:$0xff] }
 0x496   :  { %6586 = vmatprep.subr.bf16.mxu1 %v14350_v29 }
 0x499   :  { %6587 = vmatpush1.bf16.msra.mxu1 %v9934_v54  ;;  %v14483_v54 = vld [vmem:[#allocation2 + $0x290] sm:$0xff] }
 0x49a   :  { %9731 = vmatprep.subr.bf16.mxu1 %v9938_v3 }
 0x49b   :  { %9620 = vmatmul.mubr.bf16.gmra.mrb[96].mxu1 %v5391_v9  ;;  %5771 = vmatmul.mubr.bf16.gmra.mrb[56].mxu0 %v17089_v35  ;;  %v10027_v9 = vld [vmem:[#allocation2 + $0x60] sm:$0xff]  ;;  %v17098_v35 = vld [vmem:[#allocation81_spill] sm:$0xff] }
 0x49c   :  { %9623 = vmatprep.mubr.bf16.mxu1 %v5394_v15  ;;  %5778 = vmatprep.mubr.bf16.mxu0 %v14438_v17  ;;  %v6281_v15 = vld [vmem:[#allocation2 + $0x80] sm:$0xff] }
 0x4a3   :  { %9624 = vmatmul.mubr.bf16.gmra.mrb[100].mxu1 %v5397_v13  ;;  %5779 = vmatmul.mubr.bf16.gmra.mrb[60].mxu0 %v17090_v38  ;;  %v6284_v13 = vld [vmem:[#allocation2 + $0x98] sm:$0xff]  ;;  %v14491_v38 = vld [vmem:[#allocation2 + $0x2c0] sm:$0xff] }
 0x4a4   :  { %9627 = vmatprep.mubr.bf16.mxu1 %v5400_v34  ;;  %5786 = vmatprep.mubr.bf16.mxu0 %v14350_v29  ;;  %v17099_v34 = vld [vmem:[#allocation86_spill] sm:$0xff] }
 0x4ab   :  { %9628 = vmatmul.mubr.bf16.gmra.mrb[104].mxu1 %v5403_v57  ;;  %5787 = vmatmul.mubr.bf16.gmra.mrb[64].mxu0 %v14350_v29  ;;  %v6287_v57 = vld [vmem:[#allocation2 + $0xb0] sm:$0xff] }
 0x4ac   :  { %9631 = vmatprep.mubr.bf16.mxu1 %v5406_v26  ;;  %5794 = vmatprep.mubr.bf16.mxu0 %v14449_v11  ;;  %v17100_v26 = vld [vmem:[#allocation84_spill] sm:$0xff] }
 0x4b3   :  { %9632 = vmatmul.mubr.bf16.gmra.mrb[108].mxu1 %v5409_v63  ;;  %5795 = vmatmul.mubr.bf16.gmra.mrb[68].mxu0 %v14452_v4  ;;  %v14495_v63 = vld [vmem:[#allocation2 + $0x2d8] sm:$0xff] }
 0x4b4   :  { %9635 = vmatprep.mubr.bf16.mxu1 %v5412_v61  ;;  %5802 = vmatprep.mubr.bf16.mxu0 %v14455_v28  ;;  %v9948_v61 = vld [vmem:[#allocation4 + $0x210] sm:$0xff]  }
 0x4bb   :  { %9636 = vmatmul.mubr.bf16.gmra.mrb[112].mxu1 %v5415_v48  ;;  %5803 = vmatmul.mubr.bf16.gmra.mrb[72].mxu0 %v17091_v46 }
 0x4bc   :  { %9639 = vmatprep.mubr.bf16.mxu1 %v5418_v42  ;;  %5810 = vmatprep.mubr.bf16.mxu0 %v14459_v60 }
 0x4c3   :  { %9640 = vmatmul.mubr.bf16.gmra.mrb[116].mxu1 %v5421_v21  ;;  %5811 = vmatmul.mubr.bf16.gmra.mrb[76].mxu0 %v17092_v25  ;;  %v10030_v25 = vld [vmem:[#allocation2 + $0xa8] sm:$0xff] }
 0x4c4   :  { %9643 = vmatprep.mubr.bf16.mxu1 %v5424_v31  ;;  %5818 = vmatprep.mubr.bf16.mxu0 %v14463_v33  ;;  %v14502_v31 = vld [vmem:[#allocation2 + $0x2d0] sm:$0xff] }
 0x4cb   :  { %9644 = vmatmul.mubr.bf16.gmra.mrb[120].mxu1 %v5427_v51  ;;  %5819 = vmatmul.mubr.bf16.gmra.mrb[80].mxu0 %v17093_v30  ;;  %v14505_v51 = vld [vmem:[#allocation2 + $0x2f0] sm:$0xff] }
 0x4cc   :  { %9647 = vmatprep.mubr.bf16.mxu1 %v5430_v58  ;;  %5826 = vmatprep.mubr.bf16.mxu0 %v14467_v36 }
 0x4d3   :  { %9648 = vmatmul.mubr.bf16.gmra.mrb[124].mxu1 %v5433_v40  ;;  %5827 = vmatmul.mubr.bf16.gmra.mrb[84].mxu0 %v17094_v43  ;;  %v14512_v43 = vld [vmem:[#allocation2 + $0x2e8] sm:$0xff] }
 0x4d4   :  { %6588 = vmatprep.mubr.bf16.mxu1 %v6269_v32  ;;  %5834 = vmatprep.mubr.bf16.mxu0 %v14471_v39 }
 0x4db   :  { %6589 = vmatmul.mubr.bf16.vlgmr.msra.gmra.mrb[128].mxu1 %v6268_v7  ;;  %5835 = vmatmul.mubr.bf16.gmra.mrb[88].mxu0 %v17095_v59  ;;  %v10031_v7 = vld [vmem:[#allocation2 + $0xc0] sm:$0xff]  ;;  %v14515_v59 = vld [vmem:[#allocation2 + $0x308] sm:$0xff] }
 0x4dc   :  { %6596 = vmatprep.mubr.bf16.mxu1 %v6272_v8  ;;  %5842 = vmatprep.mubr.bf16.mxu0 %v14475_v45  ;;  %v6293_v8 = vld [vmem:[#allocation2 + $0xe0] sm:$0xff] }
 0x4dd   :  { %9732 = vmatpush3.bf16.msra.mxu1 %v9938_v3  ;;  %v6290_v3 = vld [vmem:[#allocation2 + $0xc8] sm:$0xff] }
 0x4de   :  { %9733 = vmatprep.subr.bf16.mxu1 %v9943_v6 }
 0x4e1   :  { %9734 = vmatpush3.bf16.msra.mxu1 %v9943_v6 }
 0x4e2   :  { %9735 = vmatprep.subr.bf16.mxu1 %v9948_v61 }
 0x4e3   :  { %6597 = vmatmul.mubr.bf16.gmra.mrb[132].mxu1 %v10025_v2  ;;  %5843 = vmatmul.mubr.bf16.gmra.mrb[92].mxu0 %v17096_v18 }
 0x4e4   :  { %6604 = vmatprep.mubr.bf16.mxu1 %v6275_v44  ;;  %5850 = vmatprep.mubr.bf16.mxu0 %v14479_v23 }
 0x4e5   :  { %9736 = vmatpush3.bf16.msra.mxu1 %v9948_v61 }
 0x4e9   :  { %v14498_v48 = vpop.f32.mrb[4].mxu0 }
 0x4ea   :  { %v5670_v42 = vpop.f32.mrb[5].mxu0 }
 0x4eb   :  { %6605 = vmatmul.mubr.bf16.gmra.mrb[136].mxu1 %v10026_v24  ;;  %5851 = vmatmul.mubr.bf16.gmra.mrb[96].mxu0 %v17097_v49  ;;  %v14500_v46 = vpop.f32.mrb[6].mxu0  ;;  %v6292_v24 = vld [vmem:[#allocation2 + $0xd8] sm:$0xff]  ;;  %v14523_v49 = vld [vmem:[#allocation2 + $0x320] sm:$0xff] }
 0x4ec   :  { %6612 = vmatprep.mubr.bf16.mxu1 %v6278_v47  ;;  %5858 = vmatprep.mubr.bf16.mxu0 %v14483_v54  ;;  %v5673_v21 = vpop.f32.mrb[7].mxu0  ;;  %v14520_v47 = vld [vmem:[#allocation2 + $0x300] sm:$0xff] }
 0x4ed   :  { %v9939_v42 = vld [vmem:[#allocation4 + $0x180] sm:$0xff]   ;;  %v6298_v21 = vld [vmem:[#allocation2 + $0x108] sm:$0xff] }
 0x4f2   :  { %v14508_v58 = vpop.f32.mrb[8].mxu0 }
 0x4f3   :  { %6613 = vmatmul.mubr.bf16.gmra.mrb[140].mxu1 %v10027_v9  ;;  %5859 = vmatmul.mubr.bf16.gmra.mrb[100].mxu0 %v17098_v35  ;;  %v5678_v30 = vpop.f32.mrb[9].mxu0 }
 0x4f4   :  { %6620 = vmatprep.mubr.bf16.mxu1 %v6281_v15  ;;  %5866 = vmatprep.mubr.bf16.mxu0 %v14487_v16  ;;  %v14510_v40 = vpop.f32.mrb[10].mxu0 }
 0x4f5   :  { %v5681_v32 = vpop.f32.mrb[11].mxu0 }
 0x4fa   :  { %v5684_v2 = vpop.f32.mrb[12].mxu0 }
 0x4fb   :  { %6621 = vmatmul.mubr.bf16.gmra.mrb[144].mxu1 %v10028_v0  ;;  %5867 = vmatmul.mubr.bf16.gmra.mrb[104].mxu0 %v17099_v34  ;;  %v5686_v44 = vpop.f32.mrb[13].mxu0  ;;  %v14531_v34 = vld [vmem:[#allocation2 + $0x318] sm:$0xff] }
 0x4fc   :  { %6628 = vmatprep.mubr.bf16.mxu1 %v6284_v13  ;;  %5874 = vmatprep.mubr.bf16.mxu0 %v14491_v38  ;;  %v14518_v18 = vpop.f32.mrb[14].mxu0  ;;  %v6295_v13 = vld [vmem:[#allocation2 + $0xf0] sm:$0xff] }
 0x4fd   :  { %v5689_v6 = vpop.f32.mrb[15].mxu0 }
 0x4fe   :  { %v9941_v6 = vld [vmem:[#allocation4 + $0x190] sm:$0xff]  }
 0x502   :  { %v14527_v9 = vpop.f32.mrb[16].mxu0 }
 0x503   :  { %6629 = vmatmul.mubr.bf16.gmra.mrb[148].mxu1 %v10029_v1  ;;  %5875 = vmatmul.mubr.bf16.gmra.mrb[108].mxu0 %v17100_v26  ;;  %v5694_v15 = vpop.f32.mrb[17].mxu0  ;;  %v9953_v1 = vld [vmem:[#allocation4 + $0x218] sm:$0xff]  }
 0x504   :  { %6636 = vmatprep.mubr.bf16.mxu1 %v6287_v57  ;;  %5882 = vmatprep.mubr.bf16.mxu0 %v14495_v63  ;;  %v14529_v35 = vpop.f32.mrb[18].mxu0 }
 0x505   :  { %v5697_v0 = vpop.f32.mrb[19].mxu0  ;;  %9737 = vmatprep.subr.bf16.mxu1 %v9953_v1 }
 0x506   :  { %9738 = vmatpush3.bf16.msra.mxu1 %v9953_v1 }
 0x50b   :  { %6637 = vmatmul.mubr.bf16.gmra.mrb[152].mxu1 %v10030_v25  ;;  %5883 = vmatmul.mubr.bf16.gmra.mrb[112].mxu0 %v14502_v31 }
 0x50c   :  { %6644 = vmatprep.mubr.bf16.mxu1 %v6290_v3  ;;  %5890 = vmatprep.mubr.bf16.mxu0 %v14505_v51 }
 0x513   :  { %6645 = vmatmul.mubr.bf16.gmra.mrb[156].mxu1 %v10031_v7  ;;  %5891 = vmatmul.mubr.bf16.gmra.mrb[116].mxu0 %v14512_v43 }
 0x514   :  { %6652 = vmatprep.mubr.bf16.mxu1 %v6293_v8  ;;  %5898 = vmatprep.mubr.bf16.mxu0 %v14515_v59 }
 0x51b   :  { %6653 = vmatmul.mubr.bf16.gmra.mrb[160].mxu1 %v6292_v24  ;;  %5899 = vmatmul.mubr.bf16.gmra.mrb[120].mxu0 %v14520_v47 }
 0x51c   :  { %6660 = vmatprep.mubr.bf16.mxu1 %v14404_v19  ;;  %5906 = vmatprep.mubr.bf16.mxu0 %v14523_v49  ;;  %v14536_v19 = vpop.f32.mrb[20].mxu0 }
 0x51d   :  { %v5702_v57 = vpop.f32.mrb[21].mxu0 }
 0x51e   :  { %v14538_v26 = vpop.f32.mrb[22].mxu0 }
 0x51f   :  { %v5705_v61 = vpop.f32.mrb[23].mxu0 }
 0x522   :  { %v14543_v25 = vpop.f32.mrb[24].mxu0 }
 0x523   :  { %6661 = vmatmul.mubr.bf16.gmra.mrb[164].mxu1 %v6295_v13  ;;  %5907 = vmatmul.mubr.bf16.gmra.mrb[124].mxu0 %v14531_v34  ;;  %v5710_v32 = vpop.f32.mrb[25].mxu0 }
 0x524   :  { %6668 = vmatprep.mubr.bf16.mxu1 %v14414_v37  ;;  %9667 = vmatprep.mubr.bf16.mxu0 %v14332_v20  ;;  %v9940_v20 = vld [vmem:[#allocation4 + $0x188] sm:$0xff]   ;;  %v14552_v8 = vpop.f32.mrb[26].mxu0 }
 0x525   :  { %v5713_v44 = vpop.f32.mrb[27].mxu0 }
 0x526   :  { %v9946_v44 = vld [vmem:[#allocation4 + $0x1b0] sm:$0xff]  }
 0x52a   :  { %v5716_v15 = vpop.f32.mrb[28].mxu0 }
 0x52b   :  { %6669 = vmatmul.mubr.bf16.gmra.mrb[168].mxu1 %v6298_v21  ;;  %9668 = vmatmul.mubr.bf16.vlgmr.msra.gmra.mrb[128].mxu0 %v14342_v5  ;;  %v5718_v13 = vpop.f32.mrb[29].mxu0 }
 0x52c   :  { %6676 = vmatprep.mubr.bf16.mxu1 %v14420_v55  ;;  %9671 = vmatprep.mubr.bf16.mxu0 %v14364_v56  ;;  %v5719_v61 = vpop.f32.mrb[30].mxu0 }
 0x52d   :  { %7615 = vmatpush1.bf16.msra.mxu0 %v9939_v42  ;;  %v9944_v42 = vld [vmem:[#allocation4 + $0x1a0] sm:$0xff]  }
 0x52e   :  { %v9589_v37 = vpop.f32.mrb[64].mxu1  ;;  %7616 = vmatprep.subr.bf16.mxu0 %v14350_v29 }
 0x52f   :  { %v14547_v3 = vadd.f32 %v9589_v37, %v14498_v48  ;;  %v5949_v30 = vpop.f32.mrb[65].mxu1  ;;  %v6301_v48 = vld [vmem:[#allocation2 + $0x120] sm:$0xff] }
 0x530   :  { %v14550_v7 = vadd.f32 %v5949_v30, %v14440_v14  ;;  %v9590_v5 = vpop.f32.mrb[66].mxu1  ;;  %v9942_v14 = vld [vmem:[#allocation4 + $0x198] sm:$0xff]  }
 0x531   :  { %v14555_v56 = vadd.f32 %v9590_v5, %v14500_v46  ;;  %v5952_v55 = vpop.f32.mrb[67].mxu1  ;;  %7617 = vmatpush1.bf16.msra.mxu0 %v9940_v20  ;;  %v6304_v20 = vld [vmem:[#allocation2 + $0x138] sm:$0xff] }
 0x532   :  { %v14558_v24 = vadd.f32 %v5952_v55, %v14443_v41  ;;  %7618 = vmatprep.subr.bf16.mxu0 %v14350_v29 }
 0x533   :  { %6677 = vmatmul.mubr.bf16.gmra.mrb[172].mxu1 %v6301_v48  ;;  %9672 = vmatmul.mubr.bf16.gmra.mrb[132].mxu0 %v14369_v27  ;;  %v6307_v48 = vld [vmem:[#allocation2 + $0x150] sm:$0xff] }
 0x534   :  { %6684 = vmatprep.mubr.bf16.mxu1 %v14426_v62  ;;  %9675 = vmatprep.mubr.bf16.mxu0 %v14386_v12  ;;  %v5721_v12 = vpop.f32.mrb[31].mxu0 }
 0x535   :  { %7619 = vmatpush1.bf16.msra.mxu0 %v9941_v6  ;;  %v9949_v12 = vld [vmem:[#allocation4 + $0x1c0] sm:$0xff]  }
 0x536   :  { %v9593_v46 = vpop.f32.mrb[68].mxu1  ;;  %7620 = vmatprep.subr.bf16.mxu0 %v14350_v29 }
 0x537   :  { %v14565_v0 = vadd.f32 %v9593_v46, %v5684_v2  ;;  %v5965_v41 = vpop.f32.mrb[69].mxu1 }
 0x538   :  { %v14568_v1 = vadd.f32 %v5965_v41, %v14508_v58  ;;  %v9594_v57 = vpop.f32.mrb[70].mxu1  ;;  %v9945_v58 = vld [vmem:[#allocation4 + $0x1a8] sm:$0xff]  }
 0x539   :  { %v14571_v27 = vadd.f32 %v9594_v57, %v14518_v18  ;;  %v5968_v62 = vpop.f32.mrb[71].mxu1  ;;  %7621 = vmatpush1.bf16.msra.mxu0 %v9942_v14 }
 0x53a   :  { %v14574_v21 = vadd.f32 %v5968_v62, %v14510_v40  ;;  %7622 = vmatprep.subr.bf16.mxu0 %v14350_v29 }
 0x53b   :  { %6685 = vmatmul.mubr.bf16.gmra.mrb[176].mxu1 %v6304_v20  ;;  %9676 = vmatmul.mubr.bf16.gmra.mrb[136].mxu0 %v14392_v52 }
 0x53c   :  { %6692 = vmatprep.mubr.bf16.mxu1 %v14432_v53  ;;  %9679 = vmatprep.mubr.bf16.mxu0 %v14397_v50 }
 0x53d   :  { %7623 = vmatpush1.bf16.msra.mxu0 %v9944_v42  ;;  %v6310_v42 = vld [vmem:[#allocation2 + $0x168] sm:$0xff] }
 0x53e   :  { %v9597_v2 = vpop.f32.mrb[72].mxu1  ;;  %v5724_v18 = vpop.f32.mrb[32].mxu0  ;;  %7624 = vmatprep.subr.bf16.mxu0 %v14350_v29 }
 0x53f   :  { %v5981_v37 = vpop.f32.mrb[73].mxu1  ;;  %v14582_v40 = vadd.f32 %v9597_v2, %v14536_v19  ;;  %v5726_v30 = vpop.f32.mrb[33].mxu0  ;;  %v9947_v19 = vld [vmem:[#allocation4 + $0x1b8] sm:$0xff]  }
 0x540   :  { %v14585_v32 = vadd.f32 %v5981_v37, %v14527_v9  ;;  %v9598_v5 = vpop.f32.mrb[74].mxu1  ;;  %v5727_v52 = vpop.f32.mrb[34].mxu0  ;;  %v9958_v9 = vld [vmem:[#allocation4 + $0x220] sm:$0xff]  }
 0x541   :  { %v5984_v55 = vpop.f32.mrb[75].mxu1  ;;  %v14588_v53 = vadd.f32 %v9598_v5, %v14538_v26  ;;  %v5729_v50 = vpop.f32.mrb[35].mxu0  ;;  %7625 = vmatpush1.bf16.msra.mxu0 %v9945_v58  ;;  %9739 = vmatprep.subr.bf16.mxu1 %v9958_v9  ;;  %v14608_v58 = vld [vmem:[#allocation2 + $0x100] sm:$0xff] }
 0x542   :  { %v14591_v6 = vadd.f32 %v5984_v55, %v14529_v35  ;;  %7626 = vmatprep.subr.bf16.mxu0 %v14350_v29  ;;  %9740 = vmatpush3.bf16.msra.mxu1 %v9958_v9  ;;  %v9959_v55 = vld [vmem:[#allocation4 + $0x228] sm:$0xff]  }
 0x543   :  { %6693 = vmatmul.mubr.bf16.gmra.mrb[180].mxu1 %v6307_v48  ;;  %9680 = vmatmul.mubr.bf16.gmra.mrb[140].mxu0 %v14401_v10 }
 0x544   :  { %6700 = vmatprep.mubr.bf16.mxu1 %v14438_v17  ;;  %9683 = vmatprep.mubr.bf16.mxu0 %v14409_v22 }
 0x545   :  { %7627 = vmatpush1.bf16.msra.mxu0 %v9946_v44  ;;  %9741 = vmatprep.subr.bf16.mxu1 %v9959_v55 }
 0x546   :  { %v9601_v26 = vpop.f32.mrb[76].mxu1  ;;  %v5732_v14 = vpop.f32.mrb[36].mxu0  ;;  %7628 = vmatprep.subr.bf16.mxu0 %v14350_v29  ;;  %9742 = vmatpush3.bf16.msra.mxu1 %v9959_v55 }
 0x547   :  { %v5997_v35 = vpop.f32.mrb[77].mxu1  ;;  %v14598_v46 = vadd.f32 %v9601_v26, %v5716_v15  ;;  %v5734_v41 = vpop.f32.mrb[37].mxu0  ;;  %v6314_v15 = vld [vmem:[#allocation2 + $0x188] sm:$0xff] }
 0x548   :  { %v9602_v13 = vpop.f32.mrb[78].mxu1  ;;  %v14601_v10 = vadd.f32 %v5997_v35, %v14543_v25  ;;  %v5735_v17 = vpop.f32.mrb[38].mxu0  ;;  %v14612_v25 = vld [vmem:[#allocation2 + $0x118] sm:$0xff]  ;;  %v9951_v35 = vld [vmem:[#allocation4 + $0x1d0] sm:$0xff]   ;;  %v6313_v41 = vld [vmem:[#allocation2 + $0x180] sm:$0xff] }
 0x549   :  { %v6000_v57 = vpop.f32.mrb[79].mxu1  ;;  %v14603_v22 = vadd.f32 %v9602_v13, %v5719_v61  ;;  %v5737_v62 = vpop.f32.mrb[39].mxu0  ;;  %7629 = vmatpush1.bf16.msra.mxu0 %v9947_v19  ;;  %v9950_v61 = vld [vmem:[#allocation4 + $0x1c8] sm:$0xff]  }
 0x54a   :  { %v14606_v20 = vadd.f32 %v6000_v57, %v14552_v8  ;;  %7630 = vmatprep.subr.bf16.mxu0 %v14350_v29  ;;  %v14624_v57 = vld [vmem:[#allocation2 + $0x130] sm:$0xff] }
 0x54b   :  { %17101 = vst [vmem:[#allocation43_spill] sm:$0xff] %v14603_v22  ;;  %6701 = vmatmul.mubr.bf16.gmra.mrb[184].mxu1 %v6310_v42  ;;  %9684 = vmatmul.mubr.bf16.gmra.mrb[144].mxu0 %v14608_v58 }
 0x54c   :  { %17102 = vst [vmem:[#allocation37_spill] sm:$0xff] %v14606_v20  ;;  %6708 = vmatprep.mubr.bf16.mxu1 %v6314_v15  ;;  %9687 = vmatprep.mubr.bf16.mxu0 %v14612_v25  ;;  %v7330_v20 = vld [vmem:[#allocation2 + $0x50] sm:$0xff] }
 0x54d   :  { %7631 = vmatpush1.bf16.msra.mxu0 %v9949_v12 }
 0x54e   :  { %v9605_v2 = vpop.f32.mrb[80].mxu1  ;;  %v5740_v37 = vpop.f32.mrb[40].mxu0  ;;  %7632 = vmatprep.subr.bf16.mxu0 %v14350_v29 }
 0x54f   :  { %v6013_v8 = vpop.f32.mrb[81].mxu1  ;;  %v14616_v30 = vadd.f32 %v9605_v2, %v5732_v14  ;;  %v5742_v5 = vpop.f32.mrb[41].mxu0  ;;  %v9960_v14 = vld [vmem:[#allocation4 + $0x230] sm:$0xff]  }
 0x550   :  { %v9606_v50 = vpop.f32.mrb[82].mxu1  ;;  %v14618_v44 = vadd.f32 %v6013_v8, %v5724_v18  ;;  %v5743_v48 = vpop.f32.mrb[42].mxu0  ;;  %v14628_v18 = vld [vmem:[#allocation2 + $0x148] sm:$0xff]  ;;  %9743 = vmatprep.subr.bf16.mxu1 %v9960_v14 }
 0x551   :  { %17103 = vst [vmem:[#allocation38_spill] sm:$0xff] %v14616_v30  ;;  %v6016_v9 = vpop.f32.mrb[83].mxu1  ;;  %v14620_v19 = vadd.f32 %v9606_v50, %v5735_v17  ;;  %v5745_v26 = vpop.f32.mrb[43].mxu0  ;;  %7633 = vmatpush1.bf16.msra.mxu0 %v9950_v61  ;;  %v9952_v17 = vld [vmem:[#allocation4 + $0x1d8] sm:$0xff]   ;;  %9744 = vmatpush3.bf16.msra.mxu1 %v9960_v14 }
 0x552   :  { %17104 = vst [vmem:[#allocation35_spill] sm:$0xff] %v14618_v44  ;;  %v14622_v13 = vadd.f32 %v6016_v9, %v5727_v52  ;;  %7634 = vmatprep.subr.bf16.mxu0 %v14350_v29  ;;  %v9961_v61 = vld [vmem:[#allocation4 + $0x238] sm:$0xff]   ;;  %v9954_v9 = vld [vmem:[#allocation4 + $0x1e0] sm:$0xff]   ;;  %v14772_v44 = vld [vmem:[#allocation2 + $0x328] sm:$0xff] }
 0x553   :  { %17105 = vst [vmem:[#allocation40_spill] sm:$0xff] %v14620_v19  ;;  %6709 = vmatmul.mubr.bf16.gmra.mrb[188].mxu1 %v6313_v41  ;;  %9688 = vmatmul.mubr.bf16.gmra.mrb[148].mxu0 %v14624_v57  ;;  %v9955_v41 = vld [vmem:[#allocation4 + $0x1e8] sm:$0xff]   ;;  %v6334_v19 = vld [vmem:[#allocation2 + $0x258] sm:$0xff]  ;;  %17138 = vst [vmem:[#allocation30_spill] sm:$0xff] %v14772_v44 }
 0x554   :  { %17106 = vst [vmem:[#allocation60_spill] sm:$0xff] %v14622_v13  ;;  %6716 = vmatprep.mubr.bf16.mxu1 %v14449_v11  ;;  %9691 = vmatprep.mubr.bf16.mxu0 %v14628_v18  ;;  %v7327_v30 = vld [vmem:[#allocation2 + $0x38] sm:$0xff] }
 0x555   :  { %7635 = vmatpush1.bf16.msra.mxu0 %v9951_v35  ;;  %9745 = vmatprep.subr.bf16.mxu1 %v9961_v61  ;;  %v14641_v35 = vld [vmem:[#allocation2 + $0x160] sm:$0xff] }
 0x556   :  { %v9609_v52 = vpop.f32.mrb[84].mxu1  ;;  %v5748_v62 = vpop.f32.mrb[44].mxu0  ;;  %7636 = vmatprep.subr.bf16.mxu0 %v14350_v29  ;;  %9746 = vmatpush3.bf16.msra.mxu1 %v9961_v61 }
 0x557   :  { %v6029_v12 = vpop.f32.mrb[85].mxu1  ;;  %v14633_v42 = vadd.f32 %v9609_v52, %v5748_v62  ;;  %v5750_v15 = vpop.f32.mrb[45].mxu0 }
 0x558   :  { %v9610_v2 = vpop.f32.mrb[86].mxu1  ;;  %v14635_v8 = vadd.f32 %v6029_v12, %v5740_v37  ;;  %v5751_v5 = vpop.f32.mrb[46].mxu0  ;;  %v14646_v37 = vld [vmem:[#allocation2 + $0x178] sm:$0xff] }
 0x559   :  { %17107 = vst [vmem:[#allocation48_spill] sm:$0xff] %v14633_v42  ;;  %v6032_v11 = vpop.f32.mrb[87].mxu1  ;;  %v14637_v55 = vadd.f32 %v9610_v2, %v5751_v5  ;;  %v5753_v50 = vpop.f32.mrb[47].mxu0  ;;  %7637 = vmatpush1.bf16.msra.mxu0 %v9952_v17  ;;  %v9956_v2 = vld [vmem:[#allocation4 + $0x1f0] sm:$0xff]   ;;  %v6319_v5 = vld [vmem:[#allocation2 + $0x1e0] sm:$0xff] }
 0x55a   :  { %17108 = vst [vmem:[#allocation39_spill] sm:$0xff] %v14635_v8  ;;  %v14639_v26 = vadd.f32 %v6032_v11, %v5743_v48  ;;  %7638 = vmatprep.subr.bf16.mxu0 %v14350_v29  ;;  %v14655_v11 = vld [vmem:[#allocation2 + $0x190] sm:$0xff]  ;;  %v6318_v50 = vld [vmem:[#allocation2 + $0x1d8] sm:$0xff]  ;;  %v6328_v8 = vld [vmem:[#allocation2 + $0x228] sm:$0xff] }
 0x55b   :  { %17109 = vst [vmem:[#allocation47_spill] sm:$0xff] %v14637_v55  ;;  %6717 = vmatmul.mubr.bf16.gmra.mrb[192].mxu1 %v14452_v4  ;;  %9692 = vmatmul.mubr.bf16.gmra.mrb[152].mxu0 %v14641_v35  ;;  %v14691_v42 = vld [vmem:[#allocation2 + $0x250] sm:$0xff] }
 0x55c   :  { %17110 = vst [vmem:[#allocation46_spill] sm:$0xff] %v14639_v26  ;;  %6724 = vmatprep.mubr.bf16.mxu1 %v14455_v28  ;;  %9695 = vmatprep.mubr.bf16.mxu0 %v14646_v37  ;;  %v6322_v26 = vld [vmem:[#allocation2 + $0x1f8] sm:$0xff]  ;;  %17121 = vst [vmem:[#allocation67_spill] sm:$0xff] %v14691_v42 }
 0x55d   :  { %7639 = vmatpush1.bf16.msra.mxu0 %v9954_v9  ;;  %v9957_v9 = vld [vmem:[#allocation4 + $0x1f8] sm:$0xff]  }
 0x55e   :  { %v9613_v14 = vpop.f32.mrb[88].mxu1  ;;  %v5756_v48 = vpop.f32.mrb[48].mxu0  ;;  %7640 = vmatprep.subr.bf16.mxu0 %v14350_v29 }
 0x55f   :  { %v6045_v17 = vpop.f32.mrb[89].mxu1  ;;  %v5758_v52 = vpop.f32.mrb[49].mxu0 }
 0x560   :  { %v9614_v62 = vpop.f32.mrb[90].mxu1  ;;  %v14651_v12 = vadd.f32 %v6045_v17, %v5756_v48  ;;  %v5759_v4 = vpop.f32.mrb[50].mxu0 }
 0x561   :  { %v6048_v15 = vpop.f32.mrb[91].mxu1  ;;  %v5761_v61 = vpop.f32.mrb[51].mxu0  ;;  %7641 = vmatpush1.bf16.msra.mxu0 %v9955_v41 }
 0x562   :  { %17111 = vst [vmem:[#allocation53_spill] sm:$0xff] %v14651_v12  ;;  %v14653_v28 = vadd.f32 %v6048_v15, %v5759_v4  ;;  %7642 = vmatprep.subr.bf16.mxu0 %v14350_v29 }
 0x563   :  { %6725 = vmatmul.mubr.bf16.gmra.mrb[196].mxu1 %v6319_v5  ;;  %9696 = vmatmul.mubr.bf16.gmra.mrb[156].mxu0 %v14655_v11 }
 0x564   :  { %17112 = vst [vmem:[#allocation62_spill] sm:$0xff] %v14653_v28  ;;  %6732 = vmatprep.mubr.bf16.mxu1 %v14459_v60  ;;  %9699 = vmatprep.mubr.bf16.mxu0 %v6318_v50  ;;  %v14665_v60 = vld [vmem:[#allocation2 + $0x1f0] sm:$0xff] }
 0x565   :  { %7643 = vmatpush1.bf16.msra.mxu0 %v9956_v2  ;;  %v14668_v2 = vld [vmem:[#allocation2 + $0x208] sm:$0xff] }
 0x566   :  { %v9617_v48 = vpop.f32.mrb[92].mxu1  ;;  %v5764_v17 = vpop.f32.mrb[52].mxu0  ;;  %7644 = vmatprep.subr.bf16.mxu0 %v14350_v29 }
 0x567   :  { %v6061_v41 = vpop.f32.mrb[93].mxu1  ;;  %v14661_v52 = vadd.f32 %v9613_v14, %v5764_v17  ;;  %v5766_v4 = vpop.f32.mrb[53].mxu0 }
 0x568   :  { %v9618_v15 = vpop.f32.mrb[94].mxu1  ;;  %v5767_v61 = vpop.f32.mrb[54].mxu0 }
 0x569   :  { %17113 = vst [vmem:[#allocation56_spill] sm:$0xff] %v14661_v52  ;;  %v6064_v28 = vpop.f32.mrb[95].mxu1  ;;  %v14663_v5 = vadd.f32 %v9614_v62, %v5767_v61  ;;  %v5769_v12 = vpop.f32.mrb[55].mxu0  ;;  %7645 = vmatpush1.bf16.msra.mxu0 %v9957_v9  ;;  %v14676_v52 = vld [vmem:[#allocation2 + $0x220] sm:$0xff] }
 0x56a   :  { %17117 = vst [vmem:[#allocation13_spill] sm:$0xff] %v14676_v52 }
 0x56b   :  { %17114 = vst [vmem:[#allocation17_spill] sm:$0xff] %v14663_v5  ;;  %6733 = vmatmul.mubr.bf16.gmra.mrb[200].mxu1 %v6322_v26  ;;  %9700 = vmatmul.mubr.bf16.gmra.mrb[160].mxu0 %v14665_v60  ;;  %v6325_v5 = vld [vmem:[#allocation2 + $0x210] sm:$0xff] }
 0x56c   :  { %6740 = vmatprep.mubr.bf16.mxu1 %v14463_v33  ;;  %9703 = vmatprep.mubr.bf16.mxu0 %v14668_v2  ;;  %v14679_v33 = vld [vmem:[#allocation2 + $0x238] sm:$0xff] }
 0x56d   :  { %17118 = vst [vmem:[#allocation58_spill] sm:$0xff] %v14679_v33 }
 0x56e   :  { %v9621_v29 = vpop.f32.mrb[96].mxu1  ;;  %v5772_v14 = vpop.f32.mrb[56].mxu0 }
 0x56f   :  { %v6077_v50 = vpop.f32.mrb[97].mxu1  ;;  %v14672_v17 = vadd.f32 %v6061_v41, %v5772_v14  ;;  %v5774_v62 = vpop.f32.mrb[57].mxu0 }
 0x570   :  { %v9622_v12 = vpop.f32.mrb[98].mxu1  ;;  %v5775_v9 = vpop.f32.mrb[58].mxu0 }
 0x571   :  { %17115 = vst [vmem:[#allocation15_spill] sm:$0xff] %v14672_v17  ;;  %v6080_v4 = vpop.f32.mrb[99].mxu1  ;;  %v14674_v61 = vadd.f32 %v6064_v28, %v5775_v9  ;;  %v5777_v26 = vpop.f32.mrb[59].mxu0 }
 0x573   :  { %17116 = vst [vmem:[#allocation65_spill] sm:$0xff] %v14674_v61  ;;  %6741 = vmatmul.mubr.bf16.gmra.mrb[204].mxu1 %v6325_v5  ;;  %9704 = vmatmul.mubr.bf16.gmra.mrb[164].mxu0 %v14676_v52 }
 0x574   :  { %6748 = vmatprep.mubr.bf16.mxu1 %v14467_v36  ;;  %9707 = vmatprep.mubr.bf16.mxu0 %v14679_v33  ;;  %v14694_v36 = vld [vmem:[#allocation2 + $0x268] sm:$0xff]  ;;  %v6337_v33 = vld [vmem:[#allocation2 + $0x270] sm:$0xff] }
 0x575   :  { %17122 = vst [vmem:[#allocation64_spill] sm:$0xff] %v14694_v36 }
 0x576   :  { %v14683_v41 = vpop.f32.mrb[100].mxu1  ;;  %v5780_v14 = vpop.f32.mrb[60].mxu0 }
 0x577   :  { %v6093_v62 = vpop.f32.mrb[101].mxu1  ;;  %v14685_v17 = vadd.f32 %v9617_v48, %v5780_v14  ;;  %v5782_v28 = vpop.f32.mrb[61].mxu0 }
 0x578   :  { %v14687_v9 = vpop.f32.mrb[102].mxu1  ;;  %v5783_v26 = vpop.f32.mrb[62].mxu0 }
 0x579   :  { %17119 = vst [vmem:[#allocation16_spill] sm:$0xff] %v14685_v17  ;;  %v6096_v61 = vpop.f32.mrb[103].mxu1  ;;  %v14689_v5 = vadd.f32 %v9618_v15, %v5783_v26  ;;  %v5785_v55 = vpop.f32.mrb[63].mxu0 }
 0x57b   :  { %17120 = vst [vmem:[#allocation14_spill] sm:$0xff] %v14689_v5  ;;  %6749 = vmatmul.mubr.bf16.gmra.mrb[208].mxu1 %v6328_v8  ;;  %9708 = vmatmul.mubr.bf16.gmra.mrb[168].mxu0 %v14691_v42  ;;  %v6331_v42 = vld [vmem:[#allocation2 + $0x240] sm:$0xff] }
 0x57c   :  { %6756 = vmatprep.mubr.bf16.mxu1 %v14471_v39  ;;  %9711 = vmatprep.mubr.bf16.mxu0 %v14694_v36  ;;  %v14710_v39 = vld [vmem:[#allocation2 + $0x280] sm:$0xff]  ;;  %v14713_v36 = vld [vmem:[#allocation2 + $0x298] sm:$0xff] }
 0x57d   :  { %17125 = vst [vmem:[#allocation50_spill] sm:$0xff] %v14710_v39  ;;  %17126 = vst [vmem:[#allocation52_spill] sm:$0xff] %v14713_v36 }
 0x57e   :  { %v14698_v48 = vpop.f32.mrb[104].mxu1  ;;  %v5788_v14 = vpop.f32.mrb[64].mxu0 }
 0x57f   :  { %v14700_v28 = vpop.f32.mrb[105].mxu1  ;;  %v14702_v15 = vadd.f32 %v6077_v50, %v5788_v14  ;;  %v5790_v55 = vpop.f32.mrb[65].mxu0 }
 0x580   :  { %v14704_v26 = vpop.f32.mrb[106].mxu1  ;;  %v5791_v5 = vpop.f32.mrb[66].mxu0 }
 0x581   :  { %17123 = vst [vmem:[#allocation54_spill] sm:$0xff] %v14702_v15  ;;  %v14706_v8 = vpop.f32.mrb[107].mxu1  ;;  %v14708_v17 = vadd.f32 %v6080_v4, %v5791_v5  ;;  %v5793_v13 = vpop.f32.mrb[67].mxu0 }
 0x583   :  { %17124 = vst [vmem:[#allocation61_spill] sm:$0xff] %v14708_v17  ;;  %6757 = vmatmul.mubr.bf16.gmra.mrb[212].mxu1 %v6331_v42  ;;  %9712 = vmatmul.mubr.bf16.gmra.mrb[172].mxu0 %v14710_v39 }
 0x584   :  { %6764 = vmatprep.mubr.bf16.mxu1 %v14475_v45  ;;  %9715 = vmatprep.mubr.bf16.mxu0 %v14713_v36  ;;  %v14729_v45 = vld [vmem:[#allocation2 + $0x2b0] sm:$0xff]  ;;  %v14732_v36 = vld [vmem:[#allocation2 + $0x2c8] sm:$0xff] }
 0x585   :  { %17129 = vst [vmem:[#allocation21_spill] sm:$0xff] %v14729_v45  ;;  %17130 = vst [vmem:[#allocation12_spill] sm:$0xff] %v14732_v36 }
 0x586   :  { %v14717_v50 = vpop.f32.mrb[108].mxu1  ;;  %v5796_v14 = vpop.f32.mrb[68].mxu0 }
 0x587   :  { %v14719_v55 = vpop.f32.mrb[109].mxu1  ;;  %v14721_v4 = vadd.f32 %v9621_v29, %v5796_v14  ;;  %v5798_v13 = vpop.f32.mrb[69].mxu0 }
 0x588   :  { %v14723_v5 = vpop.f32.mrb[110].mxu1  ;;  %v5799_v17 = vpop.f32.mrb[70].mxu0 }
 0x589   :  { %17127 = vst [vmem:[#allocation20_spill] sm:$0xff] %v14721_v4  ;;  %v14725_v42 = vpop.f32.mrb[111].mxu1  ;;  %v14727_v15 = vadd.f32 %v9622_v12, %v5799_v17  ;;  %v5801_v39 = vpop.f32.mrb[71].mxu0 }
 0x58b   :  { %17128 = vst [vmem:[#allocation18_spill] sm:$0xff] %v14727_v15  ;;  %6765 = vmatmul.mubr.bf16.gmra.mrb[216].mxu1 %v6334_v19  ;;  %9716 = vmatmul.mubr.bf16.gmra.mrb[176].mxu0 %v14729_v45 }
 0x58c   :  { %6772 = vmatprep.mubr.bf16.mxu1 %v14479_v23  ;;  %9719 = vmatprep.mubr.bf16.mxu0 %v14732_v36  ;;  %v14748_v23 = vld [vmem:[#allocation2 + $0x2e0] sm:$0xff]  ;;  %v14751_v36 = vld [vmem:[#allocation2 + $0x2f8] sm:$0xff] }
 0x58d   :  { %17133 = vst [vmem:[#allocation23_spill] sm:$0xff] %v14748_v23  ;;  %17134 = vst [vmem:[#allocation28_spill] sm:$0xff] %v14751_v36 }
 0x58e   :  { %v14736_v29 = vpop.f32.mrb[112].mxu1  ;;  %v5804_v14 = vpop.f32.mrb[72].mxu0 }
 0x58f   :  { %v14738_v13 = vpop.f32.mrb[113].mxu1  ;;  %v14740_v17 = vadd.f32 %v6093_v62, %v5804_v14  ;;  %v5806_v12 = vpop.f32.mrb[73].mxu0 }
 0x590   :  { %v14742_v39 = vpop.f32.mrb[114].mxu1  ;;  %v5807_v15 = vpop.f32.mrb[74].mxu0 }
 0x591   :  { %17131 = vst [vmem:[#allocation24_spill] sm:$0xff] %v14740_v17  ;;  %v14744_v19 = vpop.f32.mrb[115].mxu1  ;;  %v14746_v4 = vadd.f32 %v6096_v61, %v5807_v15  ;;  %v5809_v45 = vpop.f32.mrb[75].mxu0 }
 0x593   :  { %17132 = vst [vmem:[#allocation22_spill] sm:$0xff] %v14746_v4  ;;  %6773 = vmatmul.mubr.bf16.gmra.mrb[220].mxu1 %v6337_v33  ;;  %9720 = vmatmul.mubr.bf16.gmra.mrb[180].mxu0 %v14748_v23  ;;  %v6340_v23 = vld [vmem:[#allocation2 + $0x288] sm:$0xff] }
 0x594   :  { %6780 = vmatprep.mubr.bf16.mxu1 %v14483_v54  ;;  %9723 = vmatprep.mubr.bf16.mxu0 %v14751_v36  ;;  %v14769_v36 = vld [vmem:[#allocation2 + $0x310] sm:$0xff] }
 0x595   :  { %17137 = vst [vmem:[#allocation29_spill] sm:$0xff] %v14769_v36 }
 0x596   :  { %v14755_v62 = vpop.f32.mrb[116].mxu1  ;;  %v5812_v14 = vpop.f32.mrb[76].mxu0 }
 0x597   :  { %v14757_v12 = vpop.f32.mrb[117].mxu1  ;;  %v14760_v61 = vadd.f32 %v14683_v41, %v5812_v14  ;;  %v5814_v15 = vpop.f32.mrb[77].mxu0 }
 0x598   :  { %v14762_v45 = vpop.f32.mrb[118].mxu1  ;;  %v5815_v33 = vpop.f32.mrb[78].mxu0 }
 0x599   :  { %17135 = vst [vmem:[#allocation27_spill] sm:$0xff] %v14760_v61  ;;  %v14764_v4 = vpop.f32.mrb[119].mxu1  ;;  %v14767_v17 = vadd.f32 %v14687_v9, %v5815_v33  ;;  %v5817_v54 = vpop.f32.mrb[79].mxu0 }
 0x59b   :  { %17136 = vst [vmem:[#allocation26_spill] sm:$0xff] %v14767_v17  ;;  %6781 = vmatmul.mubr.bf16.gmra.mrb[224].mxu1 %v6340_v23  ;;  %9724 = vmatmul.mubr.bf16.gmra.mrb[184].mxu0 %v14769_v36  ;;  %v6343_v36 = vld [vmem:[#allocation2 + $0x2a0] sm:$0xff] }
 0x59c   :  { %6788 = vmatprep.mubr.bf16.mxu1 %v14487_v16  ;;  %9727 = vmatprep.mubr.bf16.mxu0 %v14772_v44  ;;  %v14790_v44 = vld [vmem:[#allocation2 + $0x340] sm:$0xff] }
 0x59d   :  { %17141 = vst [vmem:[#allocation33_spill] sm:$0xff] %v14790_v44 }
 0x59e   :  { %v14776_v41 = vpop.f32.mrb[120].mxu1  ;;  %v5820_v14 = vpop.f32.mrb[80].mxu0 }
 0x59f   :  { %v14778_v15 = vpop.f32.mrb[121].mxu1  ;;  %v14781_v9 = vadd.f32 %v14700_v28, %v5820_v14  ;;  %v5822_v33 = vpop.f32.mrb[81].mxu0 }
 0x5a0   :  { %v14783_v54 = vpop.f32.mrb[122].mxu1  ;;  %v5823_v23 = vpop.f32.mrb[82].mxu0 }
 0x5a1   :  { %17139 = vst [vmem:[#allocation31_spill] sm:$0xff] %v14781_v9  ;;  %v14785_v17 = vpop.f32.mrb[123].mxu1  ;;  %v14788_v61 = vadd.f32 %v14706_v8, %v5823_v23  ;;  %v5825_v16 = vpop.f32.mrb[83].mxu0 }
 0x5a3   :  { %17140 = vst [vmem:[#allocation32_spill] sm:$0xff] %v14788_v61  ;;  %6789 = vmatmul.mubr.bf16.gmra.mrb[228].mxu1 %v6343_v36  ;;  %9728 = vmatmul.mubr.bf16.gmra.mrb[188].mxu0 %v14790_v44 }
 0x5a4   :  { %6796 = vmatprep.mubr.bf16.mxu1 %v14491_v38  ;;  %7646 = vmatprep.mubr.bf16.mxu0 %v7327_v30  ;;  %v6346_v38 = vld [vmem:[#allocation2 + $0x2b8] sm:$0xff]  ;;  %v7326_v30 = vld [vmem:[#allocation2 + $0x30] sm:$0xff] }
 0x5a6   :  { %v14794_v28 = vpop.f32.mrb[124].mxu1  ;;  %v5828_v14 = vpop.f32.mrb[84].mxu0 }
 0x5a7   :  { %v14796_v33 = vpop.f32.mrb[125].mxu1  ;;  %v14799_v9 = vadd.f32 %v14698_v48, %v5828_v14  ;;  %v5830_v8 = vpop.f32.mrb[85].mxu0 }
 0x5a8   :  { %v14801_v23 = vpop.f32.mrb[126].mxu1  ;;  %v5831_v16 = vpop.f32.mrb[86].mxu0 }
 0x5a9   :  { %17142 = vst [vmem:[#allocation34_spill] sm:$0xff] %v14799_v9  ;;  %v14803_v61 = vpop.f32.mrb[127].mxu1  ;;  %v14806_v36 = vadd.f32 %v14704_v26, %v5831_v16  ;;  %v5833_v44 = vpop.f32.mrb[87].mxu0 }
 0x5ab   :  { %6797 = vmatmul.mubr.bf16.gmra.mrb[232].mxu1 %v6346_v38  ;;  %7647 = vmatmul.mubr.bf16.vlgmr.msra.gmra.mrb[192].mxu0 %v7326_v30  ;;  %v7329_v30 = vld [vmem:[#allocation2 + $0x48] sm:$0xff] }
 0x5ac   :  { %6804 = vmatprep.mubr.bf16.mxu1 %v14495_v63  ;;  %7654 = vmatprep.mubr.bf16.mxu0 %v7330_v20  ;;  %v7333_v63 = vld [vmem:[#allocation2 + $0x68] sm:$0xff] }
 0x5ae   :  { %v14809_v48 = vpop.f32.mrb[128].mxu1  ;;  %v5836_v14 = vpop.f32.mrb[88].mxu0 }
 0x5af   :  { %v6592_v8 = vpop.f32.mrb[129].mxu1  ;;  %v14812_v9 = vadd.f32 %v14719_v55, %v5836_v14  ;;  %v5838_v52 = vpop.f32.mrb[89].mxu0 }
 0x5b0   :  { %v14814_v22 = vpop.f32.mrb[130].mxu1  ;;  %v5839_v26 = vpop.f32.mrb[90].mxu0 }
 0x5b1   :  { %v6595_v44 = vpop.f32.mrb[131].mxu1  ;;  %v14817_v16 = vadd.f32 %v14725_v42, %v5839_v26  ;;  %v5841_v38 = vpop.f32.mrb[91].mxu0 }
 0x5b3   :  { %6805 = vmatmul.mubr.bf16.gmra.mrb[236].mxu1 %v14502_v31  ;;  %7655 = vmatmul.mubr.bf16.gmra.mrb[196].mxu0 %v7329_v30  ;;  %v7332_v30 = vld [vmem:[#allocation2 + $0x60] sm:$0xff] }
 0x5b4   :  { %6812 = vmatprep.mubr.bf16.mxu1 %v14505_v51  ;;  %7662 = vmatprep.mubr.bf16.mxu0 %v7333_v63  ;;  %v7336_v51 = vld [vmem:[#allocation2 + $0x80] sm:$0xff] }
 0x5b6   :  { %v14821_v20 = vpop.f32.mrb[132].mxu1  ;;  %v5844_v55 = vpop.f32.mrb[92].mxu0 }
 0x5b7   :  { %v6600_v52 = vpop.f32.mrb[133].mxu1  ;;  %v14824_v14 = vadd.f32 %v14717_v50, %v5844_v55  ;;  %v5846_v8 = vpop.f32.mrb[93].mxu0 }
 0x5b8   :  { %v14826_v44 = vpop.f32.mrb[134].mxu1  ;;  %v5847_v42 = vpop.f32.mrb[94].mxu0 }
 0x5b9   :  { %v6603_v26 = vpop.f32.mrb[135].mxu1  ;;  %v14829_v38 = vadd.f32 %v14723_v5, %v5847_v42  ;;  %v5849_v31 = vpop.f32.mrb[95].mxu0 }
 0x5bb   :  { %6813 = vmatmul.mubr.bf16.gmra.mrb[240].mxu1 %v14512_v43  ;;  %7663 = vmatmul.mubr.bf16.gmra.mrb[200].mxu0 %v7332_v30  ;;  %v7335_v30 = vld [vmem:[#allocation2 + $0x78] sm:$0xff] }
 0x5bc   :  { %6820 = vmatprep.mubr.bf16.mxu1 %v14515_v59  ;;  %7670 = vmatprep.mubr.bf16.mxu0 %v7336_v51  ;;  %v7339_v59 = vld [vmem:[#allocation2 + $0x98] sm:$0xff] }
 0x5be   :  { %v14833_v63 = vpop.f32.mrb[136].mxu1  ;;  %v5852_v50 = vpop.f32.mrb[96].mxu0 }
 0x5bf   :  { %v6608_v55 = vpop.f32.mrb[137].mxu1  ;;  %v14836_v52 = vadd.f32 %v14738_v13, %v5852_v50  ;;  %v5854_v8 = vpop.f32.mrb[97].mxu0 }
 0x5c0   :  { %v14838_v26 = vpop.f32.mrb[138].mxu1  ;;  %v5855_v5 = vpop.f32.mrb[98].mxu0 }
 0x5c1   :  { %v6611_v42 = vpop.f32.mrb[139].mxu1  ;;  %v14841_v31 = vadd.f32 %v14744_v19, %v5855_v5  ;;  %v5857_v43 = vpop.f32.mrb[99].mxu0 }
 0x5c3   :  { %6821 = vmatmul.mubr.bf16.gmra.mrb[244].mxu1 %v14520_v47  ;;  %7671 = vmatmul.mubr.bf16.gmra.mrb[204].mxu0 %v7335_v30  ;;  %v7338_v30 = vld [vmem:[#allocation2 + $0x90] sm:$0xff] }
 0x5c4   :  { %6828 = vmatprep.mubr.bf16.mxu1 %v14523_v49  ;;  %7678 = vmatprep.mubr.bf16.mxu0 %v7339_v59  ;;  %v6362_v49 = vld [vmem:[#allocation2 + $0x338] sm:$0xff]  ;;  %v7342_v59 = vld [vmem:[#allocation2 + $0xb0] sm:$0xff] }
 0x5c6   :  { %v14845_v51 = vpop.f32.mrb[140].mxu1  ;;  %v5860_v13 = vpop.f32.mrb[100].mxu0 }
 0x5c7   :  { %v6616_v50 = vpop.f32.mrb[141].mxu1  ;;  %v14848_v55 = vadd.f32 %v14736_v29, %v5860_v13  ;;  %v5862_v8 = vpop.f32.mrb[101].mxu0 }
 0x5c8   :  { %v14850_v42 = vpop.f32.mrb[142].mxu1  ;;  %v5863_v19 = vpop.f32.mrb[102].mxu0 }
 0x5c9   :  { %17143 = vst [vmem:[#allocation36_spill] sm:$0xff] %v14848_v55  ;;  %v6619_v5 = vpop.f32.mrb[143].mxu1  ;;  %v14853_v43 = vadd.f32 %v14742_v39, %v5863_v19  ;;  %v5865_v47 = vpop.f32.mrb[103].mxu0 }
 0x5cb   :  { %17144 = vst [vmem:[#allocation41_spill] sm:$0xff] %v14853_v43  ;;  %6829 = vmatmul.mubr.bf16.gmra.mrb[248].mxu1 %v14531_v34  ;;  %7679 = vmatmul.mubr.bf16.gmra.mrb[208].mxu0 %v7338_v30  ;;  %v6361_v30 = vld [vmem:[#allocation2 + $0x330] sm:$0xff]  ;;  %v7341_v43 = vld [vmem:[#allocation2 + $0xa8] sm:$0xff] }
 0x5cc   :  { %6836 = vmatprep.mubr.bf16.mxu1 %v6362_v49  ;;  %7686 = vmatprep.mubr.bf16.mxu0 %v7342_v59  ;;  %v7328_v49 = vld [vmem:[#allocation2 + $0x40] sm:$0xff]  ;;  %v7345_v59 = vld [vmem:[#allocation2 + $0xc8] sm:$0xff] }
 0x5ce   :  { %v14856_v50 = vpop.f32.mrb[144].mxu1  ;;  %v5868_v29 = vpop.f32.mrb[104].mxu0 }
 0x5cf   :  { %v6624_v13 = vpop.f32.mrb[145].mxu1  ;;  %v14859_v8 = vadd.f32 %v14757_v12, %v5868_v29  ;;  %v5870_v5 = vpop.f32.mrb[105].mxu0 }
 0x5d0   :  { %v14861_v55 = vpop.f32.mrb[146].mxu1  ;;  %v5871_v39 = vpop.f32.mrb[106].mxu0 }
 0x5d1   :  { %17145 = vst [vmem:[#allocation44_spill] sm:$0xff] %v14859_v8  ;;  %v6627_v19 = vpop.f32.mrb[147].mxu1  ;;  %v14864_v47 = vadd.f32 %v14764_v4, %v5871_v39  ;;  %v5873_v34 = vpop.f32.mrb[107].mxu0 }
 0x5d3   :  { %17146 = vst [vmem:[#allocation49_spill] sm:$0xff] %v14864_v47  ;;  %6837 = vmatmul.mubr.bf16.gmra.mrb[252].mxu1 %v6361_v30  ;;  %7687 = vmatmul.mubr.bf16.gmra.mrb[212].mxu0 %v7341_v43  ;;  %v7331_v43 = vld [vmem:[#allocation2 + $0x58] sm:$0xff]  ;;  %v7344_v47 = vld [vmem:[#allocation2 + $0xc0] sm:$0xff] }
 0x5d4   :  { %9747 = vmatprep.mubr.bf16.mxu1 %v7328_v49  ;;  %7694 = vmatprep.mubr.bf16.mxu0 %v7345_v59  ;;  %v7334_v49 = vld [vmem:[#allocation2 + $0x70] sm:$0xff]  ;;  %v7348_v59 = vld [vmem:[#allocation2 + $0xe0] sm:$0xff] }
 0x5d6   :  { %v14866_v13 = vpop.f32.mrb[148].mxu1  ;;  %v5876_v12 = vpop.f32.mrb[108].mxu0 }
 0x5d7   :  { %v6632_v29 = vpop.f32.mrb[149].mxu1  ;;  %v14869_v5 = vadd.f32 %v14755_v62, %v5876_v12  ;;  %v5878_v19 = vpop.f32.mrb[109].mxu0 }
 0x5d8   :  { %v14871_v8 = vpop.f32.mrb[150].mxu1  ;;  %v5879_v4 = vpop.f32.mrb[110].mxu0 }
 0x5d9   :  { %17147 = vst [vmem:[#allocation51_spill] sm:$0xff] %v14869_v5  ;;  %v6635_v39 = vpop.f32.mrb[151].mxu1  ;;  %v14874_v34 = vadd.f32 %v14762_v45, %v5879_v4  ;;  %v5881_v30 = vpop.f32.mrb[111].mxu0 }
 0x5db   :  { %17148 = vst [vmem:[#allocation55_spill] sm:$0xff] %v14874_v34  ;;  %9748 = vmatmul.mubr.bf16.vlgmr.msra.gmra.mrb[0].mxu1 %v7331_v43  ;;  %7695 = vmatmul.mubr.bf16.gmra.mrb[216].mxu0 %v7344_v47  ;;  %v7337_v47 = vld [vmem:[#allocation2 + $0x88] sm:$0xff]  ;;  %v7347_v34 = vld [vmem:[#allocation2 + $0xd8] sm:$0xff] }
 0x5dc   :  { %9751 = vmatprep.mubr.bf16.mxu1 %v7334_v49  ;;  %7702 = vmatprep.mubr.bf16.mxu0 %v7348_v59  ;;  %v7340_v49 = vld [vmem:[#allocation2 + $0xa0] sm:$0xff]  ;;  %v7351_v59 = vld [vmem:[#allocation2 + $0xf8] sm:$0xff] }
 0x5de   :  { %v14876_v29 = vpop.f32.mrb[152].mxu1  ;;  %v5884_v62 = vpop.f32.mrb[112].mxu0 }
 0x5df   :  { %v6640_v12 = vpop.f32.mrb[153].mxu1  ;;  %v14879_v19 = vadd.f32 %v14778_v15, %v5884_v62  ;;  %v5886_v39 = vpop.f32.mrb[113].mxu0 }
 0x5e0   :  { %v14881_v5 = vpop.f32.mrb[154].mxu1  ;;  %v5887_v45 = vpop.f32.mrb[114].mxu0 }
 0x5e1   :  { %17149 = vst [vmem:[#allocation57_spill] sm:$0xff] %v14879_v19  ;;  %v6643_v4 = vpop.f32.mrb[155].mxu1  ;;  %v14884_v30 = vadd.f32 %v14785_v17, %v5887_v45  ;;  %v5889_v43 = vpop.f32.mrb[115].mxu0 }
 0x5e3   :  { %17150 = vst [vmem:[#allocation59_spill] sm:$0xff] %v14884_v30  ;;  %9752 = vmatmul.mubr.bf16.gmra.mrb[4].mxu1 %v7337_v47  ;;  %7703 = vmatmul.mubr.bf16.gmra.mrb[220].mxu0 %v7347_v34  ;;  %v7343_v34 = vld [vmem:[#allocation2 + $0xb8] sm:$0xff]  ;;  %v7350_v30 = vld [vmem:[#allocation2 + $0xf0] sm:$0xff] }
 0x5e4   :  { %9755 = vmatprep.mubr.bf16.mxu1 %v7340_v49  ;;  %7710 = vmatprep.mubr.bf16.mxu0 %v7351_v59  ;;  %v7346_v49 = vld [vmem:[#allocation2 + $0xd0] sm:$0xff] }
 0x5e5   :  { %v7354_v59 = vld [vmem:[#allocation2 + $0x110] sm:$0xff] }
 0x5e6   :  { %v14886_v12 = vpop.f32.mrb[156].mxu1  ;;  %v5892_v15 = vpop.f32.mrb[116].mxu0 }
 0x5e7   :  { %v6648_v62 = vpop.f32.mrb[157].mxu1  ;;  %v14889_v39 = vadd.f32 %v14776_v41, %v5892_v15  ;;  %v5894_v4 = vpop.f32.mrb[117].mxu0 }
 0x5e8   :  { %v14891_v19 = vpop.f32.mrb[158].mxu1  ;;  %v5895_v17 = vpop.f32.mrb[118].mxu0 }
 0x5e9   :  { %17151 = vst [vmem:[#allocation63_spill] sm:$0xff] %v14889_v39  ;;  %v6651_v45 = vpop.f32.mrb[159].mxu1  ;;  %v14894_v43 = vadd.f32 %v14783_v54, %v5895_v17  ;;  %v5897_v47 = vpop.f32.mrb[119].mxu0 }
 0x5eb   :  { %17152 = vst [vmem:[#allocation10_spill] sm:$0xff] %v14894_v43  ;;  %9756 = vmatmul.mubr.bf16.gmra.mrb[8].mxu1 %v7343_v34  ;;  %7711 = vmatmul.mubr.bf16.gmra.mrb[224].mxu0 %v7350_v30  ;;  %v7349_v30 = vld [vmem:[#allocation2 + $0xe8] sm:$0xff] }
 0x5ec   :  { %9759 = vmatprep.mubr.bf16.mxu1 %v7346_v49  ;;  %7718 = vmatprep.mubr.bf16.mxu0 %v7354_v59  ;;  %v7353_v43 = vld [vmem:[#allocation2 + $0x108] sm:$0xff] }
 0x5ed   :  { %v7357_v49 = vld [vmem:[#allocation2 + $0x128] sm:$0xff] }
 0x5ee   :  { %v14896_v62 = vpop.f32.mrb[160].mxu1  ;;  %v5900_v41 = vpop.f32.mrb[120].mxu0 }
 0x5ef   :  { %v6656_v15 = vpop.f32.mrb[161].mxu1  ;;  %v14899_v4 = vadd.f32 %v14796_v33, %v5900_v41  ;;  %v5902_v45 = vpop.f32.mrb[121].mxu0 }
 0x5f0   :  { %v14901_v39 = vpop.f32.mrb[162].mxu1  ;;  %v5903_v54 = vpop.f32.mrb[122].mxu0 }
 0x5f1   :  { %v6659_v17 = vpop.f32.mrb[163].mxu1  ;;  %v14904_v47 = vadd.f32 %v14803_v61, %v5903_v54  ;;  %v5905_v34 = vpop.f32.mrb[123].mxu0 }
 0x5f3   :  { %9760 = vmatmul.mubr.bf16.gmra.mrb[12].mxu1 %v7349_v30  ;;  %7719 = vmatmul.mubr.bf16.gmra.mrb[228].mxu0 %v7353_v43  ;;  %v7356_v30 = vld [vmem:[#allocation2 + $0x120] sm:$0xff] }
 0x5f4   :  { %9763 = vmatprep.mubr.bf16.mxu1 %v14608_v58  ;;  %7726 = vmatprep.mubr.bf16.mxu0 %v7357_v49  ;;  %v7360_v58 = vld [vmem:[#allocation2 + $0x140] sm:$0xff] }
 0x5f6   :  { %v14907_v59 = vpop.f32.mrb[164].mxu1  ;;  %v5908_v33 = vpop.f32.mrb[124].mxu0 }
 0x5f7   :  { %v6664_v41 = vpop.f32.mrb[165].mxu1  ;;  %v14910_v15 = vadd.f32 %v14794_v28, %v5908_v33  ;;  %v5910_v45 = vpop.f32.mrb[125].mxu0 }
 0x5f8   :  { %v14912_v17 = vpop.f32.mrb[166].mxu1  ;;  %v5911_v61 = vpop.f32.mrb[126].mxu0 }
 0x5f9   :  { %v6667_v54 = vpop.f32.mrb[167].mxu1  ;;  %v14915_v34 = vadd.f32 %v14801_v23, %v5911_v61  ;;  %v5913_v43 = vpop.f32.mrb[127].mxu0 }
 0x5fb   :  { %17153 = vst [vmem:[#allocation87_spill] sm:$0xff] %v14915_v34  ;;  %9764 = vmatmul.mubr.bf16.gmra.mrb[16].mxu1 %v14612_v25  ;;  %7727 = vmatmul.mubr.bf16.gmra.mrb[232].mxu0 %v7356_v30  ;;  %v7359_v34 = vld [vmem:[#allocation2 + $0x138] sm:$0xff] }
 0x5fc   :  { %9767 = vmatprep.mubr.bf16.mxu1 %v14624_v57  ;;  %7734 = vmatprep.mubr.bf16.mxu0 %v7360_v58 }
 0x5fe   :  { %v14919_v49 = vpop.f32.mrb[168].mxu1  ;;  %v9669_v28 = vpop.f32.mrb[128].mxu0 }
 0x5ff   :  { %v6672_v33 = vpop.f32.mrb[169].mxu1  ;;  %v6888_v41 = vadd.f32 %v9669_v28, %v14821_v20  ;;  %v6879_v45 = vpop.f32.mrb[129].mxu0 }
 0x600   :  { %v14922_v54 = vpop.f32.mrb[170].mxu1  ;;  %v6880_v23 = vadd.f32 %v6879_v45, %v14809_v48  ;;  %v9670_v61 = vpop.f32.mrb[130].mxu0  ;;  %v7363_v48 = vld [vmem:[#allocation2 + $0x158] sm:$0xff] }
 0x601   :  { %v6675_v43 = vpop.f32.mrb[171].mxu1  ;;  %v14926_v25 = vadd.f32 %v6888_v41, %v14547_v3  ;;  %v6891_v30 = vadd.f32 %v9670_v61, %v14826_v44  ;;  %v6882_v57 = vpop.f32.mrb[131].mxu0 }
 0x602   :  { %v14930_v58 = vadd.f32 %v6880_v23, %v14550_v7  ;;  %v6883_v33 = vadd.f32 %v6882_v57, %v14814_v22 }
 0x603   :  { %9768 = vmatmul.mubr.bf16.gmra.mrb[20].mxu1 %v14628_v18  ;;  %v14935_v20 = vadd.f32 %v6891_v30, %v14555_v56  ;;  %7735 = vmatmul.mubr.bf16.gmra.mrb[236].mxu0 %v7359_v34  ;;  %v7362_v30 = vld [vmem:[#allocation2 + $0x150] sm:$0xff] }
 0x604   :  { %9771 = vmatprep.mubr.bf16.mxu1 %v14641_v35  ;;  %v14939_v3 = vadd.f32 %v6883_v33, %v14558_v24  ;;  %7742 = vmatprep.mubr.bf16.mxu0 %v7363_v48 }
 0x606   :  { %v14941_v44 = vpop.f32.mrb[172].mxu1  ;;  %v9673_v7 = vpop.f32.mrb[132].mxu0 }
 0x607   :  { %v6680_v28 = vpop.f32.mrb[173].mxu1  ;;  %v6904_v22 = vadd.f32 %v9673_v7, %v14845_v51  ;;  %v6895_v41 = vpop.f32.mrb[133].mxu0 }
 0x608   :  { %v14944_v45 = vpop.f32.mrb[174].mxu1  ;;  %v6896_v56 = vadd.f32 %v6895_v41, %v14833_v63  ;;  %v9674_v18 = vpop.f32.mrb[134].mxu0  ;;  %v7366_v63 = vld [vmem:[#allocation2 + $0x170] sm:$0xff] }
 0x609   :  { %v6683_v34 = vpop.f32.mrb[175].mxu1  ;;  %v14948_v23 = vadd.f32 %v6904_v22, %v14565_v0  ;;  %v6907_v24 = vadd.f32 %v9674_v18, %v14850_v42  ;;  %v6898_v35 = vpop.f32.mrb[135].mxu0  ;;  %v7369_v18 = vld [vmem:[#allocation2 + $0x188] sm:$0xff] }
 0x60a   :  { %v14952_v61 = vadd.f32 %v6896_v56, %v14568_v1  ;;  %v6899_v43 = vadd.f32 %v6898_v35, %v14838_v26  ;;  %v7365_v56 = vld [vmem:[#allocation2 + $0x168] sm:$0xff] }
 0x60b   :  { %9772 = vmatmul.mubr.bf16.gmra.mrb[24].mxu1 %v14646_v37  ;;  %v14957_v51 = vadd.f32 %v6907_v24, %v14571_v27  ;;  %7743 = vmatmul.mubr.bf16.gmra.mrb[240].mxu0 %v7362_v30 }
 0x60c   :  { %9775 = vmatprep.mubr.bf16.mxu1 %v14655_v11  ;;  %v14961_v0 = vadd.f32 %v6899_v43, %v14574_v21  ;;  %7750 = vmatprep.mubr.bf16.mxu0 %v7366_v63 }
 0x60e   :  { %v14963_v42 = vpop.f32.mrb[176].mxu1  ;;  %v9677_v1 = vpop.f32.mrb[136].mxu0 }
 0x60f   :  { %v6688_v57 = vpop.f32.mrb[177].mxu1  ;;  %v6920_v26 = vadd.f32 %v9677_v1, %v14866_v13  ;;  %v6911_v33 = vpop.f32.mrb[137].mxu0  ;;  %v14977_v13 = vld [vmem:[#allocation2 + $0x10] sm:$0xff] }
 0x610   :  { %v14966_v48 = vpop.f32.mrb[178].mxu1  ;;  %v6912_v27 = vadd.f32 %v6911_v33, %v14856_v50  ;;  %v9678_v37 = vpop.f32.mrb[138].mxu0 }
 0x611   :  { %v6691_v7 = vpop.f32.mrb[179].mxu1  ;;  %v14970_v28 = vadd.f32 %v6920_v26, %v14582_v40  ;;  %v6923_v21 = vadd.f32 %v9678_v37, %v14871_v8  ;;  %v6914_v11 = vpop.f32.mrb[139].mxu0  ;;  %v7368_v26 = vld [vmem:[#allocation2 + $0x180] sm:$0xff] }
 0x612   :  { %v14974_v22 = vadd.f32 %v6912_v27, %v14585_v32  ;;  %v6915_v41 = vadd.f32 %v6914_v11, %v14861_v55  ;;  %v17156_v27 = vld [vmem:[#allocation37_spill] sm:$0xff] }
 0x613   :  { %9776 = vmatmul.mubr.bf16.gmra.mrb[28].mxu1 %v14977_v13  ;;  %v14981_v50 = vadd.f32 %v6923_v21, %v14588_v53  ;;  %7751 = vmatmul.mubr.bf16.gmra.mrb[244].mxu0 %v7365_v56  ;;  %v17157_v56 = vld [vmem:[#allocation38_spill] sm:$0xff] }
 0x614   :  { %9779 = vmatprep.mubr.bf16.mxu1 %v14665_v60  ;;  %v14985_v40 = vadd.f32 %v6915_v41, %v14591_v6  ;;  %7758 = vmatprep.mubr.bf16.mxu0 %v7369_v18 }
 0x616   :  { %v14987_v32 = vpop.f32.mrb[180].mxu1  ;;  %v9681_v8 = vpop.f32.mrb[140].mxu0 }
 0x617   :  { %v6696_v55 = vpop.f32.mrb[181].mxu1  ;;  %v6936_v34 = vadd.f32 %v9681_v8, %v14886_v12  ;;  %v6927_v24 = vpop.f32.mrb[141].mxu0  ;;  %v17154_v12 = vld [vmem:[#allocation43_spill] sm:$0xff] }
 0x618   :  { %v14990_v35 = vpop.f32.mrb[182].mxu1  ;;  %v6928_v53 = vadd.f32 %v6927_v24, %v14876_v29  ;;  %v9682_v43 = vpop.f32.mrb[142].mxu0  ;;  %v17155_v29 = vld [vmem:[#allocation13_spill] sm:$0xff] }
 0x619   :  { %v6699_v30 = vpop.f32.mrb[183].mxu1  ;;  %v14994_v63 = vadd.f32 %v6936_v34, %v14598_v46  ;;  %v6939_v6 = vadd.f32 %v9682_v43, %v14891_v19  ;;  %v6930_v60 = vpop.f32.mrb[143].mxu0  ;;  %v17158_v34 = vld [vmem:[#allocation35_spill] sm:$0xff]  ;;  %v17159_v43 = vld [vmem:[#allocation58_spill] sm:$0xff] }
 0x61a   :  { %v14998_v1 = vadd.f32 %v6928_v53, %v14601_v10  ;;  %v6931_v57 = vadd.f32 %v6930_v60, %v14881_v5  ;;  %v17162_v60 = vld [vmem:[#allocation60_spill] sm:$0xff] }
 0x61b   :  { %9780 = vmatmul.mubr.bf16.gmra.mrb[32].mxu1 %v14668_v2  ;;  %v15003_v33 = vadd.f32 %v6939_v6, %v17154_v12  ;;  %7759 = vmatmul.mubr.bf16.gmra.mrb[248].mxu0 %v7368_v26  ;;  %v17161_v6 = vld [vmem:[#allocation67_spill] sm:$0xff] }
 0x61c   :  { %9783 = vmatprep.mubr.bf16.mxu1 %v17155_v29  ;;  %v15007_v46 = vadd.f32 %v6931_v57, %v17156_v27  ;;  %7766 = vmatprep.mubr.bf16.mxu0 %v14977_v13 }
 0x61e   :  { %v15010_v19 = vpop.f32.mrb[184].mxu1  ;;  %v9685_v10 = vpop.f32.mrb[144].mxu0 }
 0x61f   :  { %v6704_v37 = vpop.f32.mrb[185].mxu1  ;;  %v6952_v5 = vadd.f32 %v9685_v10, %v14907_v59  ;;  %v6943_v7 = vpop.f32.mrb[145].mxu0  ;;  %v17160_v59 = vld [vmem:[#allocation40_spill] sm:$0xff] }
 0x620   :  { %v15013_v21 = vpop.f32.mrb[186].mxu1  ;;  %v6944_v2 = vadd.f32 %v6943_v7, %v14896_v62  ;;  %v9686_v11 = vpop.f32.mrb[146].mxu0  ;;  %v7375_v62 = vld [vmem:[#allocation2 + $0x1e8] sm:$0xff]  ;;  %v17163_v7 = vld [vmem:[#allocation48_spill] sm:$0xff] }
 0x621   :  { %v6707_v41 = vpop.f32.mrb[187].mxu1  ;;  %v15017_v18 = vadd.f32 %v6952_v5, %v17157_v56  ;;  %v6955_v8 = vadd.f32 %v9686_v11, %v14912_v17  ;;  %v6946_v55 = vpop.f32.mrb[147].mxu0  ;;  %v17164_v56 = vld [vmem:[#allocation39_spill] sm:$0xff] }
 0x622   :  { %v15021_v24 = vadd.f32 %v6944_v2, %v17158_v34  ;;  %v6947_v53 = vadd.f32 %v6946_v55, %v14901_v39  ;;  %v7374_v34 = vld [vmem:[#allocation2 + $0x1e0] sm:$0xff] }
 0x623   :  { %9784 = vmatmul.mubr.bf16.gmra.mrb[36].mxu1 %v17159_v43  ;;  %v15026_v30 = vadd.f32 %v6955_v8, %v17160_v59  ;;  %7767 = vmatmul.mubr.bf16.gmra.mrb[252].mxu0 %v14977_v13  ;;  %v17167_v59 = vld [vmem:[#allocation50_spill] sm:$0xff] }
 0x624   :  { %9787 = vmatprep.mubr.bf16.mxu1 %v17161_v6  ;;  %v15031_v57 = vadd.f32 %v6947_v53, %v17162_v60  ;;  %7774 = vmatprep.mubr.bf16.mxu0 %v7375_v62  ;;  %v17165_v53 = vld [vmem:[#allocation64_spill] sm:$0xff]  ;;  %v17168_v62 = vld [vmem:[#allocation46_spill] sm:$0xff] }
 0x626   :  { %v6710_v17 = vpop.f32.mrb[188].mxu1  ;;  %v9689_v26 = vpop.f32.mrb[148].mxu0 }
 0x627   :  { %v6712_v12 = vpop.f32.mrb[189].mxu1  ;;  %v6968_v29 = vadd.f32 %v9689_v26, %v14941_v44  ;;  %v6959_v39 = vpop.f32.mrb[149].mxu0  ;;  %v17166_v44 = vld [vmem:[#allocation47_spill] sm:$0xff] }
 0x628   :  { %v6713_v27 = vpop.f32.mrb[190].mxu1  ;;  %v6960_v10 = vadd.f32 %v6959_v39, %v14919_v49  ;;  %v9690_v37 = vpop.f32.mrb[150].mxu0  ;;  %v7378_v49 = vld [vmem:[#allocation2 + $0x200] sm:$0xff] }
 0x629   :  { %v6715_v5 = vpop.f32.mrb[191].mxu1  ;;  %v15036_v2 = vadd.f32 %v6968_v29, %v17163_v7  ;;  %v6971_v11 = vadd.f32 %v9690_v37, %v14944_v45  ;;  %v6962_v41 = vpop.f32.mrb[151].mxu0 }
 0x62a   :  { %v15040_v8 = vadd.f32 %v6960_v10, %v17164_v56  ;;  %v6963_v55 = vadd.f32 %v6962_v41, %v14922_v54  ;;  %v17169_v5 = vld [vmem:[#allocation56_spill] sm:$0xff]  ;;  %v17170_v56 = vld [vmem:[#allocation53_spill] sm:$0xff] }
 0x62b   :  { %9788 = vmatmul.mubr.bf16.gmra.mrb[40].mxu1 %v17165_v53  ;;  %v15045_v43 = vadd.f32 %v6971_v11, %v17166_v44  ;;  %7775 = vmatmul.mubr.bf16.gmra.mrb[0].mxu0 %v7374_v34  ;;  %v7377_v53 = vld [vmem:[#allocation2 + $0x1f8] sm:$0xff]  ;;  %v17171_v44 = vld [vmem:[#allocation52_spill] sm:$0xff] }
 0x62c   :  { %9791 = vmatprep.mubr.bf16.mxu1 %v17167_v59  ;;  %v15049_v6 = vadd.f32 %v6963_v55, %v17168_v62  ;;  %7782 = vmatprep.mubr.bf16.mxu0 %v7378_v49  ;;  %v17173_v59 = vld [vmem:[#allocation21_spill] sm:$0xff]  ;;  %v17174_v62 = vld [vmem:[#allocation62_spill] sm:$0xff] }
 0x62e   :  { %v6718_v45 = vpop.f32.mrb[192].mxu1  ;;  %v9693_v60 = vpop.f32.mrb[152].mxu0 }
 0x62f   :  { %v6720_v26 = vpop.f32.mrb[193].mxu1  ;;  %v6984_v12 = vadd.f32 %v9693_v60, %v14987_v32  ;;  %v6975_v54 = vpop.f32.mrb[153].mxu0  ;;  %v17172_v32 = vld [vmem:[#allocation17_spill] sm:$0xff] }
 0x630   :  { %v6721_v29 = vpop.f32.mrb[194].mxu1  ;;  %v6976_v39 = vadd.f32 %v6975_v54, %v14963_v42  ;;  %v9694_v10 = vpop.f32.mrb[154].mxu0  ;;  %v7381_v42 = vld [vmem:[#allocation2 + $0x218] sm:$0xff] }
 0x631   :  { %v6723_v37 = vpop.f32.mrb[195].mxu1  ;;  %v15054_v7 = vadd.f32 %v6984_v12, %v17169_v5  ;;  %v6987_v11 = vadd.f32 %v9694_v10, %v14990_v35  ;;  %v6978_v41 = vpop.f32.mrb[155].mxu0 }
 0x632   :  { %v15058_v55 = vadd.f32 %v6976_v39, %v17170_v56  ;;  %v6979_v34 = vadd.f32 %v6978_v41, %v14966_v48 }
 0x633   :  { %9792 = vmatmul.mubr.bf16.gmra.mrb[44].mxu1 %v17171_v44  ;;  %v15063_v49 = vadd.f32 %v6987_v11, %v17172_v32  ;;  %7783 = vmatmul.mubr.bf16.gmra.mrb[4].mxu0 %v7377_v53  ;;  %v17175_v11 = vld [vmem:[#allocation16_spill] sm:$0xff]  ;;  %v17177_v44 = vld [vmem:[#allocation15_spill] sm:$0xff] }
 0x634   :  { %9795 = vmatprep.mubr.bf16.mxu1 %v17173_v59  ;;  %v15067_v60 = vadd.f32 %v6979_v34, %v17174_v62  ;;  %7790 = vmatprep.mubr.bf16.mxu0 %v7381_v42  ;;  %v7380_v42 = vld [vmem:[#allocation2 + $0x210] sm:$0xff] }
 0x635   :  { %v17178_v59 = vld [vmem:[#allocation12_spill] sm:$0xff] }
 0x636   :  { %v6726_v35 = vpop.f32.mrb[196].mxu1  ;;  %v9697_v26 = vpop.f32.mrb[156].mxu0 }
 0x637   :  { %v6728_v12 = vpop.f32.mrb[197].mxu1  ;;  %v7000_v54 = vadd.f32 %v9697_v26, %v6710_v17  ;;  %v6991_v39 = vpop.f32.mrb[157].mxu0  ;;  %v17179_v17 = vld [vmem:[#allocation14_spill] sm:$0xff]  ;;  %v17181_v26 = vld [vmem:[#allocation23_spill] sm:$0xff] }
 0x638   :  { %v6729_v48 = vpop.f32.mrb[198].mxu1  ;;  %v6992_v10 = vadd.f32 %v6991_v39, %v15010_v19  ;;  %v9698_v37 = vpop.f32.mrb[158].mxu0  ;;  %v7384_v19 = vld [vmem:[#allocation2 + $0x230] sm:$0xff]  ;;  %v17182_v12 = vld [vmem:[#allocation65_spill] sm:$0xff] }
 0x639   :  { %v6731_v5 = vpop.f32.mrb[199].mxu1  ;;  %v15071_v41 = vadd.f32 %v7000_v54, %v17175_v11  ;;  %v7003_v56 = vadd.f32 %v9698_v37, %v6713_v27  ;;  %v6994_v53 = vpop.f32.mrb[159].mxu0 }
 0x63a   :  { %v15074_v32 = vadd.f32 %v6992_v10, %v17177_v44  ;;  %v6995_v34 = vadd.f32 %v6994_v53, %v15013_v21 }
 0x63b   :  { %17176 = vst [vmem:[#allocation85_spill] sm:$0xff] %v15071_v41  ;;  %9796 = vmatmul.mubr.bf16.gmra.mrb[48].mxu1 %v17178_v59  ;;  %v15079_v62 = vadd.f32 %v7003_v56, %v17179_v17  ;;  %7791 = vmatmul.mubr.bf16.gmra.mrb[8].mxu0 %v7380_v42  ;;  %v17184_v59 = vld [vmem:[#allocation20_spill] sm:$0xff]  ;;  %v17189_v41 = vld [vmem:[#allocation18_spill] sm:$0xff] }
 0x63c   :  { %9799 = vmatprep.mubr.bf16.mxu1 %v17181_v26  ;;  %v15083_v54 = vadd.f32 %v6995_v34, %v17182_v12  ;;  %7798 = vmatprep.mubr.bf16.mxu0 %v7384_v19  ;;  %v7383_v12 = vld [vmem:[#allocation2 + $0x228] sm:$0xff]  ;;  %v17188_v19 = vld [vmem:[#allocation28_spill] sm:$0xff] }
 0x63d   :  { %17180 = vst [vmem:[#allocation11_spill] sm:$0xff] %v15079_v62  ;;  %v17186_v62 = vld [vmem:[#allocation54_spill] sm:$0xff] }
 0x63e   :  { %17183 = vst [vmem:[#allocation66_spill] sm:$0xff] %v15083_v54  ;;  %v6734_v27 = vpop.f32.mrb[200].mxu1  ;;  %v9701_v39 = vpop.f32.mrb[160].mxu0 }
 0x63f   :  { %v6736_v10 = vpop.f32.mrb[201].mxu1  ;;  %v7016_v37 = vadd.f32 %v9701_v39, %v6726_v35  ;;  %v7007_v5 = vpop.f32.mrb[161].mxu0  ;;  %v7387_v35 = vld [vmem:[#allocation2 + $0x248] sm:$0xff]  ;;  %v17192_v39 = vld [vmem:[#allocation61_spill] sm:$0xff] }
 0x640   :  { %v6737_v21 = vpop.f32.mrb[202].mxu1  ;;  %v7008_v11 = vadd.f32 %v7007_v5, %v6718_v45  ;;  %v9702_v53 = vpop.f32.mrb[162].mxu0  ;;  %v17191_v45 = vld [vmem:[#allocation29_spill] sm:$0xff] }
 0x641   :  { %v6739_v44 = vpop.f32.mrb[203].mxu1  ;;  %v15086_v56 = vadd.f32 %v7016_v37, %v17184_v59  ;;  %v7019_v42 = vadd.f32 %v9702_v53, %v6729_v48  ;;  %v7010_v17 = vpop.f32.mrb[163].mxu0 }
 0x642   :  { %v15089_v26 = vadd.f32 %v7008_v11, %v17186_v62  ;;  %v7011_v34 = vadd.f32 %v7010_v17, %v6721_v29 }
 0x643   :  { %17185 = vst [vmem:[#allocation19_spill] sm:$0xff] %v15086_v56  ;;  %9800 = vmatmul.mubr.bf16.gmra.mrb[52].mxu1 %v17188_v19  ;;  %v15093_v10 = vadd.f32 %v7019_v42, %v17189_v41  ;;  %7799 = vmatmul.mubr.bf16.gmra.mrb[12].mxu0 %v7383_v12  ;;  %v17194_v19 = vld [vmem:[#allocation27_spill] sm:$0xff]  ;;  %v17199_v56 = vld [vmem:[#allocation26_spill] sm:$0xff] }
 0x644   :  { %17187 = vst [vmem:[#allocation68_spill] sm:$0xff] %v15089_v26  ;;  %9803 = vmatprep.mubr.bf16.mxu1 %v17191_v45  ;;  %v15097_v5 = vadd.f32 %v7011_v34, %v17192_v39  ;;  %7806 = vmatprep.mubr.bf16.mxu0 %v7387_v35  ;;  %v7386_v39 = vld [vmem:[#allocation2 + $0x240] sm:$0xff] }
 0x645   :  { %17190 = vst [vmem:[#allocation25_spill] sm:$0xff] %v15093_v10  ;;  %v17196_v10 = vld [vmem:[#allocation24_spill] sm:$0xff]  ;;  %v17198_v35 = vld [vmem:[#allocation30_spill] sm:$0xff] }
 0x646   :  { %17193 = vst [vmem:[#allocation71_spill] sm:$0xff] %v15097_v5  ;;  %v6742_v48 = vpop.f32.mrb[204].mxu1  ;;  %v9705_v37 = vpop.f32.mrb[164].mxu0 }
 0x647   :  { %v6744_v53 = vpop.f32.mrb[205].mxu1  ;;  %v7032_v62 = vadd.f32 %v9705_v37, %v6742_v48  ;;  %v7023_v11 = vpop.f32.mrb[165].mxu0  ;;  %v7390_v48 = vld [vmem:[#allocation2 + $0x260] sm:$0xff] }
 0x648   :  { %v6745_v29 = vpop.f32.mrb[206].mxu1  ;;  %v7024_v44 = vadd.f32 %v7023_v11, %v6734_v27  ;;  %v9706_v59 = vpop.f32.mrb[166].mxu0  ;;  %v17201_v27 = vld [vmem:[#allocation33_spill] sm:$0xff]  ;;  %v17202_v37 = vld [vmem:[#allocation22_spill] sm:$0xff] }
 0x649   :  { %v6747_v17 = vpop.f32.mrb[207].mxu1  ;;  %v15100_v41 = vadd.f32 %v7032_v62, %v17194_v19  ;;  %v7035_v42 = vadd.f32 %v9706_v59, %v6745_v29  ;;  %v7026_v12 = vpop.f32.mrb[167].mxu0 }
 0x64a   :  { %v15103_v45 = vadd.f32 %v7024_v44, %v17196_v10  ;;  %v7027_v34 = vadd.f32 %v7026_v12, %v6737_v21 }
 0x64b   :  { %17195 = vst [vmem:[#allocation72_spill] sm:$0xff] %v15100_v41  ;;  %9804 = vmatmul.mubr.bf16.gmra.mrb[56].mxu1 %v17198_v35  ;;  %v15107_v53 = vadd.f32 %v7035_v42, %v17199_v56  ;;  %7807 = vmatmul.mubr.bf16.gmra.mrb[16].mxu0 %v7386_v39  ;;  %v17204_v35 = vld [vmem:[#allocation31_spill] sm:$0xff]  ;;  %v7389_v39 = vld [vmem:[#allocation2 + $0x258] sm:$0xff] }
 0x64c   :  { %17197 = vst [vmem:[#allocation69_spill] sm:$0xff] %v15103_v45  ;;  %9807 = vmatprep.mubr.bf16.mxu1 %v17201_v27  ;;  %v15111_v11 = vadd.f32 %v7027_v34, %v17202_v37  ;;  %7814 = vmatprep.mubr.bf16.mxu0 %v7390_v48  ;;  %v7393_v27 = vld [vmem:[#allocation2 + $0x278] sm:$0xff]  ;;  %v17206_v34 = vld [vmem:[#allocation32_spill] sm:$0xff] }
 0x64d   :  { %17200 = vst [vmem:[#allocation70_spill] sm:$0xff] %v15107_v53 }
 0x64e   :  { %17203 = vst [vmem:[#allocation73_spill] sm:$0xff] %v15111_v11  ;;  %v6750_v62 = vpop.f32.mrb[208].mxu1  ;;  %v9709_v29 = vpop.f32.mrb[168].mxu0 }
 0x64f   :  { %v6752_v59 = vpop.f32.mrb[209].mxu1  ;;  %v7039_v10 = vpop.f32.mrb[169].mxu0 }
 0x650   :  { %v6753_v44 = vpop.f32.mrb[210].mxu1  ;;  %v7040_v21 = vadd.f32 %v7039_v10, %v6750_v62  ;;  %v9710_v17 = vpop.f32.mrb[170].mxu0 }
 0x651   :  { %v6755_v19 = vpop.f32.mrb[211].mxu1  ;;  %v7042_v12 = vpop.f32.mrb[171].mxu0 }
 0x652   :  { %v15114_v56 = vadd.f32 %v7040_v21, %v17204_v35  ;;  %v7043_v42 = vadd.f32 %v7042_v12, %v6753_v44  ;;  %v17208_v21 = vld [vmem:[#allocation34_spill] sm:$0xff] }
 0x653   :  { %7815 = vmatmul.mubr.bf16.gmra.mrb[20].mxu0 %v7389_v39  ;;  %9808 = vmatmul.mubr.bf16.gmra.mrb[60].mxu1 %v14977_v13  ;;  %v7392_v39 = vld [vmem:[#allocation2 + $0x270] sm:$0xff] }
 0x654   :  { %17205 = vst [vmem:[#allocation75_spill] sm:$0xff] %v15114_v56  ;;  %v15118_v48 = vadd.f32 %v7043_v42, %v17206_v34  ;;  %7822 = vmatprep.mubr.bf16.mxu0 %v7393_v27  ;;  %v7396_v42 = vld [vmem:[#allocation2 + $0x290] sm:$0xff] }
 0x656   :  { %17207 = vst [vmem:[#allocation74_spill] sm:$0xff] %v15118_v48  ;;  %v6758_v37 = vpop.f32.mrb[212].mxu1  ;;  %v9713_v59 = vpop.f32.mrb[172].mxu0 }
 0x657   :  { %v6760_v53 = vpop.f32.mrb[213].mxu1  ;;  %v7048_v62 = vadd.f32 %v9709_v29, %v6758_v37  ;;  %v7055_v10 = vpop.f32.mrb[173].mxu0 }
 0x658   :  { %v6761_v19 = vpop.f32.mrb[214].mxu1  ;;  %v9714_v41 = vpop.f32.mrb[174].mxu0 }
 0x659   :  { %v6763_v11 = vpop.f32.mrb[215].mxu1  ;;  %v15121_v35 = vadd.f32 %v7048_v62, %v17208_v21  ;;  %v7051_v44 = vadd.f32 %v9710_v17, %v6761_v19  ;;  %v7058_v12 = vpop.f32.mrb[175].mxu0  ;;  %v7395_v21 = vld [vmem:[#allocation2 + $0x288] sm:$0xff] }
 0x65b   :  { %17209 = vst [vmem:[#allocation88_spill] sm:$0xff] %v15121_v35  ;;  %v15124_v56 = vadd.f32 %v7051_v44, %v14806_v36  ;;  %7823 = vmatmul.mubr.bf16.gmra.mrb[24].mxu0 %v7392_v39  ;;  %v7399_v44 = vld [vmem:[#allocation2 + $0x2a8] sm:$0xff] }
 0x65c   :  { %7830 = vmatprep.mubr.bf16.mxu0 %v7396_v42 }
 0x65d   :  { %17210 = vst [vmem:[#allocation78_spill] sm:$0xff] %v15124_v56 }
 0x65e   :  { %v6766_v27 = vpop.f32.mrb[216].mxu1  ;;  %v9717_v34 = vpop.f32.mrb[176].mxu0 }
 0x65f   :  { %v6768_v53 = vpop.f32.mrb[217].mxu1  ;;  %v7056_v29 = vadd.f32 %v7055_v10, %v6766_v27  ;;  %v7071_v37 = vpop.f32.mrb[177].mxu0 }
 0x660   :  { %v6769_v48 = vpop.f32.mrb[218].mxu1  ;;  %v9718_v45 = vpop.f32.mrb[178].mxu0 }
 0x661   :  { %v6771_v11 = vpop.f32.mrb[219].mxu1  ;;  %v15127_v62 = vadd.f32 %v7056_v29, %v14812_v9  ;;  %v7059_v17 = vadd.f32 %v7058_v12, %v6769_v48  ;;  %v7074_v19 = vpop.f32.mrb[179].mxu0 }
 0x663   :  { %17211 = vst [vmem:[#allocation76_spill] sm:$0xff] %v15127_v62  ;;  %v15130_v36 = vadd.f32 %v7059_v17, %v14817_v16  ;;  %7831 = vmatmul.mubr.bf16.gmra.mrb[28].mxu0 %v7395_v21  ;;  %v7398_v16 = vld [vmem:[#allocation2 + $0x2a0] sm:$0xff] }
 0x664   :  { %7838 = vmatprep.mubr.bf16.mxu0 %v7399_v44  ;;  %v7402_v21 = vld [vmem:[#allocation2 + $0x2c0] sm:$0xff] }
 0x665   :  { %17212 = vst [vmem:[#allocation79_spill] sm:$0xff] %v15130_v36 }
 0x666   :  { %v6774_v39 = vpop.f32.mrb[220].mxu1  ;;  %v15132_v42 = vpop.f32.mrb[180].mxu0 }
 0x667   :  { %v6776_v10 = vpop.f32.mrb[221].mxu1  ;;  %v7064_v27 = vadd.f32 %v9713_v59, %v6774_v39  ;;  %v7087_v53 = vpop.f32.mrb[181].mxu0 }
 0x668   :  { %v6777_v56 = vpop.f32.mrb[222].mxu1  ;;  %v15134_v11 = vpop.f32.mrb[182].mxu0 }
 0x669   :  { %v6779_v9 = vpop.f32.mrb[223].mxu1  ;;  %v15137_v48 = vadd.f32 %v7064_v27, %v14824_v14  ;;  %v7067_v12 = vadd.f32 %v9714_v41, %v6777_v56  ;;  %v7090_v29 = vpop.f32.mrb[183].mxu0 }
 0x66b   :  { %17213 = vst [vmem:[#allocation77_spill] sm:$0xff] %v15137_v48  ;;  %v15140_v17 = vadd.f32 %v7067_v12, %v14829_v38  ;;  %7839 = vmatmul.mubr.bf16.gmra.mrb[32].mxu0 %v7398_v16  ;;  %v7401_v38 = vld [vmem:[#allocation2 + $0x2b8] sm:$0xff] }
 0x66c   :  { %7846 = vmatprep.mubr.bf16.mxu0 %v7402_v21  ;;  %v7405_v16 = vld [vmem:[#allocation2 + $0x2d8] sm:$0xff] }
 0x66d   :  { %17214 = vst [vmem:[#allocation42_spill] sm:$0xff] %v15140_v17 }
 0x66e   :  { %v6782_v44 = vpop.f32.mrb[224].mxu1  ;;  %v15142_v10 = vpop.f32.mrb[184].mxu0 }
 0x66f   :  { %v6784_v59 = vpop.f32.mrb[225].mxu1  ;;  %v7072_v39 = vadd.f32 %v7071_v37, %v6782_v44  ;;  %v7103_v36 = vpop.f32.mrb[185].mxu0 }
 0x670   :  { %v6785_v62 = vpop.f32.mrb[226].mxu1  ;;  %v15144_v9 = vpop.f32.mrb[186].mxu0 }
 0x671   :  { %v6787_v14 = vpop.f32.mrb[227].mxu1  ;;  %v15147_v41 = vadd.f32 %v7072_v39, %v14836_v52  ;;  %v7075_v56 = vadd.f32 %v7074_v19, %v6785_v62  ;;  %v7106_v27 = vpop.f32.mrb[187].mxu0  ;;  %v17217_v62 = vld [vmem:[#allocation36_spill] sm:$0xff] }
 0x673   :  { %17215 = vst [vmem:[#allocation82_spill] sm:$0xff] %v15147_v41  ;;  %v15150_v12 = vadd.f32 %v7075_v56, %v14841_v31  ;;  %7847 = vmatmul.mubr.bf16.gmra.mrb[36].mxu0 %v7401_v38  ;;  %v7404_v56 = vld [vmem:[#allocation2 + $0x2d0] sm:$0xff]  ;;  %v17219_v38 = vld [vmem:[#allocation41_spill] sm:$0xff] }
 0x674   :  { %7854 = vmatprep.mubr.bf16.mxu0 %v7405_v16 }
 0x675   :  { %17216 = vst [vmem:[#allocation80_spill] sm:$0xff] %v15150_v12  ;;  %v7408_v12 = vld [vmem:[#allocation2 + $0x2f0] sm:$0xff] }
 0x676   :  { %v6790_v21 = vpop.f32.mrb[228].mxu1  ;;  %v15152_v59 = vpop.f32.mrb[188].mxu0 }
 0x677   :  { %v6792_v37 = vpop.f32.mrb[229].mxu1  ;;  %v7080_v44 = vadd.f32 %v9717_v34, %v6790_v21  ;;  %v15154_v17 = vpop.f32.mrb[189].mxu0 }
 0x678   :  { %v6793_v14 = vpop.f32.mrb[230].mxu1  ;;  %v15156_v48 = vpop.f32.mrb[190].mxu0 }
 0x679   :  { %v6795_v52 = vpop.f32.mrb[231].mxu1  ;;  %v15159_v19 = vadd.f32 %v7080_v44, %v17217_v62  ;;  %v7083_v39 = vadd.f32 %v9718_v45, %v6793_v14  ;;  %v15161_v31 = vpop.f32.mrb[191].mxu0  ;;  %v17221_v45 = vld [vmem:[#allocation44_spill] sm:$0xff] }
 0x67b   :  { %17218 = vst [vmem:[#allocation83_spill] sm:$0xff] %v15159_v19  ;;  %v15164_v16 = vadd.f32 %v7083_v39, %v17219_v38  ;;  %7855 = vmatmul.mubr.bf16.gmra.mrb[40].mxu0 %v7404_v56  ;;  %v7407_v39 = vld [vmem:[#allocation2 + $0x2e8] sm:$0xff]  ;;  %v17223_v38 = vld [vmem:[#allocation49_spill] sm:$0xff] }
 0x67c   :  { %7862 = vmatprep.mubr.bf16.mxu0 %v7408_v12  ;;  %v7411_v12 = vld [vmem:[#allocation2 + $0x308] sm:$0xff] }
 0x67d   :  { %17220 = vst [vmem:[#allocation81_spill] sm:$0xff] %v15164_v16 }
 0x67e   :  { %v6798_v34 = vpop.f32.mrb[232].mxu1  ;;  %v15166_v21 = vpop.f32.mrb[192].mxu0 }
 0x67f   :  { %v6800_v37 = vpop.f32.mrb[233].mxu1  ;;  %v7088_v41 = vadd.f32 %v7087_v53, %v6798_v34  ;;  %v7650_v35 = vpop.f32.mrb[193].mxu0 }
 0x680   :  { %v6801_v52 = vpop.f32.mrb[234].mxu1  ;;  %v15168_v5 = vpop.f32.mrb[194].mxu0 }
 0x681   :  { %v6803_v44 = vpop.f32.mrb[235].mxu1  ;;  %v15171_v14 = vadd.f32 %v7088_v41, %v17221_v45  ;;  %v7091_v62 = vadd.f32 %v7090_v29, %v6801_v52  ;;  %v7653_v19 = vpop.f32.mrb[195].mxu0  ;;  %v17225_v41 = vld [vmem:[#allocation51_spill] sm:$0xff] }
 0x683   :  { %17222 = vst [vmem:[#allocation86_spill] sm:$0xff] %v15171_v14  ;;  %v15174_v56 = vadd.f32 %v7091_v62, %v17223_v38  ;;  %7863 = vmatmul.mubr.bf16.gmra.mrb[44].mxu0 %v7407_v39  ;;  %v7410_v62 = vld [vmem:[#allocation2 + $0x300] sm:$0xff]  ;;  %v17227_v39 = vld [vmem:[#allocation55_spill] sm:$0xff] }
 0x684   :  { %7870 = vmatprep.mubr.bf16.mxu0 %v7411_v12  ;;  %v7414_v12 = vld [vmem:[#allocation2 + $0x320] sm:$0xff] }
 0x685   :  { %17224 = vst [vmem:[#allocation84_spill] sm:$0xff] %v15174_v56 }
 0x686   :  { %v6806_v16 = vpop.f32.mrb[236].mxu1  ;;  %v15176_v37 = vpop.f32.mrb[196].mxu0 }
 0x687   :  { %v7096_v35 = vadd.f32 %v15132_v42, %v6806_v16  ;;  %v6808_v53 = vpop.f32.mrb[237].mxu1  ;;  %v7658_v34 = vpop.f32.mrb[197].mxu0 }
 0x688   :  { %v6809_v44 = vpop.f32.mrb[238].mxu1  ;;  %v15179_v26 = vpop.f32.mrb[198].mxu0 }
 0x689   :  { %v15182_v29 = vadd.f32 %v7096_v35, %v17225_v41  ;;  %v7099_v19 = vadd.f32 %v15134_v11, %v6809_v44  ;;  %v6811_v52 = vpop.f32.mrb[239].mxu1  ;;  %v7661_v45 = vpop.f32.mrb[199].mxu0  ;;  %v17229_v41 = vld [vmem:[#allocation57_spill] sm:$0xff] }
 0x68b   :  { %17226 = vst [vmem:[#allocation43_spill] sm:$0xff] %v15182_v29  ;;  %v15186_v38 = vadd.f32 %v7099_v19, %v17227_v39  ;;  %7871 = vmatmul.mubr.bf16.gmra.mrb[48].mxu0 %v7410_v62  ;;  %v7413_v19 = vld [vmem:[#allocation2 + $0x318] sm:$0xff]  ;;  %v17230_v39 = vld [vmem:[#allocation59_spill] sm:$0xff] }
 0x68c   :  { %7878 = vmatprep.mubr.bf16.mxu0 %v7414_v12  ;;  %v7417_v12 = vld [vmem:[#allocation2 + $0x338] sm:$0xff] }
 0x68d   :  { %17228 = vst [vmem:[#allocation13_spill] sm:$0xff] %v15186_v38 }
 0x68e   :  { %v6814_v42 = vpop.f32.mrb[240].mxu1  ;;  %v15188_v16 = vpop.f32.mrb[200].mxu0 }
 0x68f   :  { %v7104_v53 = vadd.f32 %v7103_v36, %v6814_v42  ;;  %v6816_v34 = vpop.f32.mrb[241].mxu1  ;;  %v7666_v56 = vpop.f32.mrb[201].mxu0 }
 0x690   :  { %v6817_v14 = vpop.f32.mrb[242].mxu1  ;;  %v15190_v35 = vpop.f32.mrb[202].mxu0 }
 0x691   :  { %v15193_v11 = vadd.f32 %v7104_v53, %v17229_v41  ;;  %v7107_v44 = vadd.f32 %v7106_v27, %v6817_v14  ;;  %v6819_v52 = vpop.f32.mrb[243].mxu1  ;;  %v7669_v45 = vpop.f32.mrb[203].mxu0  ;;  %v17231_v53 = vld [vmem:[#allocation63_spill] sm:$0xff] }
 0x692   :  { %v17232_v45 = vld [vmem:[#allocation10_spill] sm:$0xff] }
 0x693   :  { %v15196_v62 = vadd.f32 %v7107_v44, %v17230_v39  ;;  %7879 = vmatmul.mubr.bf16.gmra.mrb[52].mxu0 %v7413_v19  ;;  %v7416_v44 = vld [vmem:[#allocation2 + $0x330] sm:$0xff] }
 0x694   :  { %7886 = vmatprep.mubr.bf16.mxu0 %v7417_v12 }
 0x696   :  { %v6822_v38 = vpop.f32.mrb[244].mxu1  ;;  %v7672_v36 = vpop.f32.mrb[204].mxu0 }
 0x697   :  { %v7112_v56 = vadd.f32 %v15142_v10, %v6822_v38  ;;  %v6824_v42 = vpop.f32.mrb[245].mxu1  ;;  %v7674_v34 = vpop.f32.mrb[205].mxu0 }
 0x698   :  { %v6825_v29 = vpop.f32.mrb[246].mxu1  ;;  %v7675_v54 = vpop.f32.mrb[206].mxu0 }
 0x699   :  { %v15200_v41 = vadd.f32 %v7112_v56, %v17231_v53  ;;  %v7115_v27 = vadd.f32 %v15144_v9, %v6825_v29  ;;  %v6827_v14 = vpop.f32.mrb[247].mxu1  ;;  %v7677_v52 = vpop.f32.mrb[207].mxu0 }
 0x69b   :  { %v15204_v19 = vadd.f32 %v7115_v27, %v17232_v45  ;;  %7887 = vmatmul.mubr.bf16.gmra.mrb[56].mxu0 %v7416_v44 }
 0x69c   :  { %7894 = vmatprep.mubr.bf16.mxu0 %v14977_v13 }
 0x69e   :  { %v6830_v39 = vpop.f32.mrb[248].mxu1  ;;  %v15207_v10 = vpop.f32.mrb[208].mxu0 }
 0x69f   :  { %v7120_v38 = vadd.f32 %v15154_v17, %v6830_v39  ;;  %v6832_v12 = vpop.f32.mrb[249].mxu1  ;;  %v7682_v42 = vpop.f32.mrb[209].mxu0 }
 0x6a0   :  { %v6833_v56 = vpop.f32.mrb[250].mxu1  ;;  %v15210_v34 = vpop.f32.mrb[210].mxu0 }
 0x6a1   :  { %v15213_v9 = vadd.f32 %v7120_v38, %v14899_v4  ;;  %v7123_v29 = vadd.f32 %v15161_v31, %v6833_v56  ;;  %v6835_v53 = vpop.f32.mrb[251].mxu1  ;;  %v7685_v27 = vpop.f32.mrb[211].mxu0 }
 0x6a2   :  { %v17234_v53 = vld [vmem:[#allocation87_spill] sm:$0xff] }
 0x6a3   :  { %v15217_v14 = vadd.f32 %v7123_v29, %v14904_v47  ;;  %7895 = vmatmul.mubr.bf16.gmra.mrb[60].mxu0 %v14977_v13 }
 0x6a5   :  { %17233 = vst [vmem:[#allocation37_spill] sm:$0xff] %v15217_v14 }
 0x6a6   :  { %v6838_v52 = vpop.f32.mrb[252].mxu1  ;;  %v7688_v44 = vpop.f32.mrb[212].mxu0 }
 0x6a7   :  { %v7128_v17 = vadd.f32 %v15152_v59, %v6838_v52  ;;  %v6840_v45 = vpop.f32.mrb[253].mxu1  ;;  %v7690_v39 = vpop.f32.mrb[213].mxu0 }
 0x6a8   :  { %v6841_v12 = vpop.f32.mrb[254].mxu1  ;;  %v7691_v42 = vpop.f32.mrb[214].mxu0 }
 0x6a9   :  { %v15222_v4 = vadd.f32 %v7128_v17, %v14910_v15  ;;  %v7131_v31 = vadd.f32 %v15156_v48, %v6841_v12  ;;  %v6843_v38 = vpop.f32.mrb[255].mxu1  ;;  %v7693_v56 = vpop.f32.mrb[215].mxu0 }
 0x6ab   :  { %v15226_v47 = vadd.f32 %v7131_v31, %v17234_v53 }
 0x6ae   :  { %v9749_v29 = vpop.f32.mrb[0].mxu1  ;;  %v15228_v13 = vpop.f32.mrb[216].mxu0 }
 0x6af   :  { %v7946_v27 = vadd.f32 %v9749_v29, %v15176_v37  ;;  %v7937_v59 = vpop.f32.mrb[1].mxu1  ;;  %v7698_v52 = vpop.f32.mrb[217].mxu0 }
 0x6b0   :  { %v7938_v45 = vadd.f32 %v7937_v59, %v15166_v21  ;;  %v9750_v39 = vpop.f32.mrb[2].mxu1  ;;  %v15232_v14 = vpop.f32.mrb[218].mxu0 }
 0x6b1   :  { %v15235_v15 = vadd.f32 %v7946_v27, %v14926_v25  ;;  %v7949_v48 = vadd.f32 %v9750_v39, %v15179_v26  ;;  %v7940_v17 = vpop.f32.mrb[3].mxu1  ;;  %v7701_v12 = vpop.f32.mrb[219].mxu0 }
 0x6b2   :  { %v15239_v31 = vadd.f32 %v7938_v45, %v14930_v58  ;;  %v7941_v38 = vadd.f32 %v7940_v17, %v15168_v5 }
 0x6b3   :  { %v15243_v37 = vadd.f32 %v7949_v48, %v14935_v20 }
 0x6b4   :  { %v15246_v21 = vadd.f32 %v7941_v38, %v14939_v3  ;;  %v8518_v5 = vmul.f32 %v15239_v31, %v15239_v31 }
 0x6b6   :  { %v9753_v56 = vpop.f32.mrb[4].mxu1  ;;  %v7704_v53 = vpop.f32.mrb[220].mxu0  ;;  %v8519_v25 = vmul.f32 %v15246_v21, %v15246_v21  ;;  %v8448_v20 = vadd.f32 %v15246_v21, %v15239_v31 }
 0x6b7   :  { %v7962_v29 = vadd.f32 %v9753_v56, %v7672_v36  ;;  %v7953_v26 = vpop.f32.mrb[5].mxu1  ;;  %v7706_v27 = vpop.f32.mrb[221].mxu0  ;;  %v8520_v56 = vmul.f32 %v15235_v15, %v15235_v15 }
 0x6b8   :  { %v7954_v59 = vadd.f32 %v7953_v26, %v15188_v16  ;;  %v9754_v58 = vpop.f32.mrb[6].mxu1  ;;  %v7707_v52 = vpop.f32.mrb[222].mxu0  ;;  %v8582_v16 = vadd.f32 %v8519_v25, %v8518_v5 }
 0x6b9   :  { %v15256_v3 = vadd.f32 %v7962_v29, %v14948_v23  ;;  %v7965_v45 = vadd.f32 %v9754_v58, %v7675_v54  ;;  %v7956_v39 = vpop.f32.mrb[7].mxu1  ;;  %v7709_v48 = vpop.f32.mrb[223].mxu0  ;;  %v8449_v23 = vadd.f32 %v8448_v20, %v15235_v15 }
 0x6ba   :  { %v15259_v36 = vadd.f32 %v7954_v59, %v14952_v61  ;;  %v7957_v17 = vadd.f32 %v7956_v39, %v15190_v35  ;;  %v8583_v26 = vadd.f32 %v8582_v16, %v8520_v56 }
 0x6bb   :  { %v15263_v12 = vadd.f32 %v7965_v45, %v14957_v51  ;;  %v8521_v51 = vmul.f32 %v15243_v37, %v15243_v37 }
 0x6bc   :  { %v15266_v38 = vadd.f32 %v7957_v17, %v14961_v0  ;;  %v8450_v0 = vadd.f32 %v8449_v23, %v15243_v37 }
 0x6bd   :  { %v8584_v17 = vadd.f32 %v8583_v26, %v8521_v51 }
 0x6be   :  { %v9757_v54 = vpop.f32.mrb[8].mxu1  ;;  %v7712_v29 = vpop.f32.mrb[224].mxu0 }
 0x6bf   :  { %v7969_v27 = vpop.f32.mrb[9].mxu1  ;;  %v7978_v61 = vadd.f32 %v9757_v54, %v7688_v44  ;;  %v7714_v59 = vpop.f32.mrb[225].mxu0 }
 0x6c0   :  { %v7970_v35 = vadd.f32 %v7969_v27, %v15207_v10  ;;  %v9758_v25 = vpop.f32.mrb[10].mxu1  ;;  %v7715_v58 = vpop.f32.mrb[226].mxu0  ;;  %v8522_v10 = vmul.f32 %v15259_v36, %v15259_v36 }
 0x6c1   :  { %v7972_v5 = vpop.f32.mrb[11].mxu1  ;;  %v15276_v45 = vadd.f32 %v7978_v61, %v14970_v28  ;;  %v7981_v20 = vadd.f32 %v9758_v25, %v7691_v42  ;;  %v7717_v39 = vpop.f32.mrb[227].mxu0  ;;  %v8451_v28 = vadd.f32 %v8450_v0, %v15259_v36 }
 0x6c2   :  { %v15279_v48 = vadd.f32 %v7970_v35, %v14974_v22  ;;  %v7973_v44 = vadd.f32 %v7972_v5, %v15210_v34  ;;  %v8585_v54 = vadd.f32 %v8584_v17, %v8522_v10  ;;  %v8523_v22 = vmul.f32 %v15266_v38, %v15266_v38 }
 0x6c3   :  { %v15285_v16 = vadd.f32 %v7981_v20, %v14981_v50  ;;  %v8452_v50 = vadd.f32 %v8451_v28, %v15266_v38 }
 0x6c4   :  { %v15288_v56 = vadd.f32 %v7973_v44, %v14985_v40  ;;  %v8586_v39 = vadd.f32 %v8585_v54, %v8523_v22  ;;  %v8524_v44 = vmul.f32 %v15256_v3, %v15256_v3 }
 0x6c6   :  { %v9761_v23 = vpop.f32.mrb[12].mxu1  ;;  %v7720_v42 = vpop.f32.mrb[228].mxu0  ;;  %v8587_v10 = vadd.f32 %v8586_v39, %v8524_v44 }
 0x6c7   :  { %v7985_v27 = vpop.f32.mrb[13].mxu1  ;;  %v7994_v34 = vadd.f32 %v9761_v23, %v7704_v53  ;;  %v7722_v26 = vpop.f32.mrb[229].mxu0 }
 0x6c8   :  { %v9762_v61 = vpop.f32.mrb[14].mxu1  ;;  %v7986_v59 = vadd.f32 %v7985_v27, %v15228_v13  ;;  %v7723_v35 = vpop.f32.mrb[230].mxu0 }
 0x6c9   :  { %v7988_v25 = vpop.f32.mrb[15].mxu1  ;;  %v15296_v40 = vadd.f32 %v7994_v34, %v14994_v63  ;;  %v7997_v51 = vadd.f32 %v9762_v61, %v7707_v52  ;;  %v7725_v0 = vpop.f32.mrb[231].mxu0  ;;  %v8453_v63 = vadd.f32 %v8452_v50, %v15256_v3 }
 0x6ca   :  { %v15299_v5 = vadd.f32 %v7986_v59, %v14998_v1  ;;  %v7989_v20 = vadd.f32 %v7988_v25, %v15232_v14 }
 0x6cb   :  { %17235 = vst [vmem:[#allocation38_spill] sm:$0xff] %v15296_v40  ;;  %v15303_v53 = vadd.f32 %v7997_v51, %v15003_v33  ;;  %v8525_v33 = vmul.f32 %v15263_v12, %v15263_v12 }
 0x6cc   :  { %17236 = vst [vmem:[#allocation35_spill] sm:$0xff] %v15299_v5  ;;  %v15306_v13 = vadd.f32 %v7989_v20, %v15007_v46  ;;  %v8454_v46 = vadd.f32 %v8453_v63, %v15263_v12 }
 0x6cd   :  { %17237 = vst [vmem:[#allocation58_spill] sm:$0xff] %v15303_v53 }
 0x6ce   :  { %17238 = vst [vmem:[#allocation40_spill] sm:$0xff] %v15306_v13  ;;  %v9765_v17 = vpop.f32.mrb[16].mxu1  ;;  %v7728_v52 = vpop.f32.mrb[232].mxu0  ;;  %v8455_v0 = vadd.f32 %v8454_v46, %v15279_v48 }
 0x6cf   :  { %v8001_v28 = vpop.f32.mrb[17].mxu1  ;;  %v8010_v1 = vadd.f32 %v9765_v17, %v7720_v42  ;;  %v7730_v23 = vpop.f32.mrb[233].mxu0  ;;  %v8588_v42 = vadd.f32 %v8587_v10, %v8525_v33 }
 0x6d0   :  { %v9766_v27 = vpop.f32.mrb[18].mxu1  ;;  %v8002_v14 = vadd.f32 %v8001_v28, %v7712_v29  ;;  %v7731_v54 = vpop.f32.mrb[234].mxu0  ;;  %v8526_v29 = vmul.f32 %v15279_v48, %v15279_v48 }
 0x6d1   :  { %v8004_v22 = vpop.f32.mrb[19].mxu1  ;;  %v15315_v34 = vadd.f32 %v8010_v1, %v15017_v18  ;;  %v8013_v26 = vadd.f32 %v9766_v27, %v7723_v35  ;;  %v7733_v61 = vpop.f32.mrb[235].mxu0 }
 0x6d2   :  { %v15318_v59 = vadd.f32 %v8002_v14, %v15021_v24  ;;  %v8005_v50 = vadd.f32 %v8004_v22, %v7715_v58  ;;  %v8589_v35 = vadd.f32 %v8588_v42, %v8526_v29  ;;  %v8527_v24 = vmul.f32 %v15288_v56, %v15288_v56 }
 0x6d3   :  { %17239 = vst [vmem:[#allocation67_spill] sm:$0xff] %v15315_v34  ;;  %v15323_v25 = vadd.f32 %v8013_v26, %v15026_v30  ;;  %v8456_v30 = vadd.f32 %v8455_v0, %v15288_v56  ;;  %v8528_v26 = vmul.f32 %v15276_v45, %v15276_v45 }
 0x6d4   :  { %17240 = vst [vmem:[#allocation60_spill] sm:$0xff] %v15318_v59  ;;  %v15326_v51 = vadd.f32 %v8005_v50, %v15031_v57  ;;  %v8590_v33 = vadd.f32 %v8589_v35, %v8527_v24 }
 0x6d5   :  { %17241 = vst [vmem:[#allocation48_spill] sm:$0xff] %v15323_v25 }
 0x6d6   :  { %17242 = vst [vmem:[#allocation39_spill] sm:$0xff] %v15326_v51  ;;  %v9769_v18 = vpop.f32.mrb[20].mxu1  ;;  %v7736_v20 = vpop.f32.mrb[236].mxu0  ;;  %v8591_v50 = vadd.f32 %v8590_v33, %v8528_v26  ;;  %v8532_v26 = vmul.f32 %v15296_v40, %v15296_v40 }
 0x6d7   :  { %v8017_v39 = vpop.f32.mrb[21].mxu1  ;;  %v8026_v58 = vadd.f32 %v9769_v18, %v7736_v20  ;;  %v7738_v44 = vpop.f32.mrb[237].mxu0 }
 0x6d8   :  { %v9770_v63 = vpop.f32.mrb[22].mxu1  ;;  %v8018_v17 = vadd.f32 %v8017_v39, %v7728_v52  ;;  %v7739_v10 = vpop.f32.mrb[238].mxu0  ;;  %v8457_v52 = vadd.f32 %v8456_v30, %v15276_v45 }
 0x6d9   :  { %v8020_v28 = vpop.f32.mrb[23].mxu1  ;;  %v15333_v57 = vadd.f32 %v8026_v58, %v15036_v2  ;;  %v8029_v1 = vadd.f32 %v9770_v63, %v7739_v10  ;;  %v7741_v23 = vpop.f32.mrb[239].mxu0  ;;  %v8530_v58 = vmul.f32 %v15299_v5, %v15299_v5 }
 0x6da   :  { %v15336_v27 = vadd.f32 %v8018_v17, %v15040_v8  ;;  %v8021_v14 = vadd.f32 %v8020_v28, %v7731_v54  ;;  %v8458_v18 = vadd.f32 %v8457_v52, %v15285_v16  ;;  %v8531_v28 = vmul.f32 %v15306_v13, %v15306_v13 }
 0x6db   :  { %17243 = vst [vmem:[#allocation64_spill] sm:$0xff] %v15333_v57  ;;  %v15339_v46 = vadd.f32 %v8029_v1, %v15045_v43  ;;  %v8529_v43 = vmul.f32 %v15285_v16, %v15285_v16 }
 0x6dc   :  { %17244 = vst [vmem:[#allocation47_spill] sm:$0xff] %v15336_v27  ;;  %v15342_v22 = vadd.f32 %v8021_v14, %v15049_v6  ;;  %v8459_v63 = vadd.f32 %v8458_v18, %v15299_v5  ;;  %v8533_v18 = vmul.f32 %v15303_v53, %v15303_v53 }
 0x6dd   :  { %17245 = vst [vmem:[#allocation50_spill] sm:$0xff] %v15339_v46  ;;  %v8592_v39 = vadd.f32 %v8591_v50, %v8529_v43 }
 0x6de   :  { %17246 = vst [vmem:[#allocation46_spill] sm:$0xff] %v15342_v22  ;;  %v9773_v2 = vpop.f32.mrb[24].mxu1  ;;  %v7744_v61 = vpop.f32.mrb[240].mxu0  ;;  %v8460_v52 = vadd.f32 %v8459_v63, %v15306_v13 }
 0x6df   :  { %v8033_v42 = vpop.f32.mrb[25].mxu1  ;;  %v7746_v29 = vpop.f32.mrb[241].mxu0  ;;  %v8593_v30 = vadd.f32 %v8592_v39, %v8530_v58 }
 0x6e0   :  { %v9774_v8 = vpop.f32.mrb[26].mxu1  ;;  %v8034_v0 = vadd.f32 %v8033_v42, %v7744_v61  ;;  %v7747_v54 = vpop.f32.mrb[242].mxu0 }
 0x6e1   :  { %v8036_v6 = vpop.f32.mrb[27].mxu1  ;;  %v7749_v20 = vpop.f32.mrb[243].mxu0  ;;  %v8594_v29 = vadd.f32 %v8593_v30, %v8531_v28 }
 0x6e2   :  { %v15351_v35 = vadd.f32 %v8034_v0, %v15058_v55  ;;  %v8037_v24 = vadd.f32 %v8036_v6, %v7747_v54  ;;  %v8461_v0 = vadd.f32 %v8460_v52, %v15296_v40  ;;  %v8535_v52 = vmul.f32 %v15326_v51, %v15326_v51 }
 0x6e4   :  { %17247 = vst [vmem:[#allocation56_spill] sm:$0xff] %v15351_v35  ;;  %v15356_v44 = vadd.f32 %v8037_v24, %v15067_v60  ;;  %v8462_v20 = vadd.f32 %v8461_v0, %v15303_v53 }
 0x6e6   :  { %17248 = vst [vmem:[#allocation53_spill] sm:$0xff] %v15356_v44  ;;  %v9777_v17 = vpop.f32.mrb[28].mxu1  ;;  %v7752_v10 = vpop.f32.mrb[244].mxu0 }
 0x6e7   :  { %v8049_v1 = vpop.f32.mrb[29].mxu1  ;;  %v8042_v23 = vadd.f32 %v9773_v2, %v7752_v10  ;;  %v7754_v55 = vpop.f32.mrb[245].mxu0  ;;  %v8595_v2 = vadd.f32 %v8594_v29, %v8532_v26  ;;  %v8463_v10 = vadd.f32 %v8462_v20, %v15318_v59  ;;  %v17252_v26 = vld [vmem:[#allocation66_spill] sm:$0xff] }
 0x6e8   :  { %v9778_v14 = vpop.f32.mrb[30].mxu1  ;;  %v7755_v33 = vpop.f32.mrb[246].mxu0 }
 0x6e9   :  { %v8052_v60 = vpop.f32.mrb[31].mxu1  ;;  %v15365_v61 = vadd.f32 %v8042_v23, %v15054_v7  ;;  %v8045_v50 = vadd.f32 %v9774_v8, %v7755_v33  ;;  %v7757_v42 = vpop.f32.mrb[247].mxu0  ;;  %v8534_v7 = vmul.f32 %v15318_v59, %v15318_v59 }
 0x6ea   :  { %v8536_v42 = vmul.f32 %v15315_v34, %v15315_v34 }
 0x6eb   :  { %17249 = vst [vmem:[#allocation52_spill] sm:$0xff] %v15365_v61  ;;  %v15369_v54 = vadd.f32 %v8045_v50, %v15063_v49  ;;  %v8596_v49 = vadd.f32 %v8595_v2, %v8533_v18 }
 0x6ed   :  { %17250 = vst [vmem:[#allocation17_spill] sm:$0xff] %v15369_v54  ;;  %v8597_v33 = vadd.f32 %v8596_v49, %v8534_v7  ;;  %v17254_v49 = vld [vmem:[#allocation85_spill] sm:$0xff] }
 0x6ee   :  { %v15373_v43 = vpop.f32.mrb[32].mxu1  ;;  %v7760_v6 = vpop.f32.mrb[248].mxu0 }
 0x6ef   :  { %v8065_v8 = vpop.f32.mrb[33].mxu1  ;;  %v8050_v24 = vadd.f32 %v8049_v1, %v7760_v6  ;;  %v7762_v39 = vpop.f32.mrb[249].mxu0  ;;  %v8464_v1 = vadd.f32 %v8463_v10, %v15326_v51  ;;  %v8598_v2 = vadd.f32 %v8597_v33, %v8535_v52  ;;  %v8538_v52 = vmul.f32 %v15336_v27, %v15336_v27 }
 0x6f0   :  { %v15378_v58 = vpop.f32.mrb[34].mxu1  ;;  %v7763_v63 = vpop.f32.mrb[250].mxu0  ;;  %v8537_v39 = vmul.f32 %v15323_v25, %v15323_v25 }
 0x6f1   :  { %v8068_v30 = vpop.f32.mrb[35].mxu1  ;;  %v15382_v28 = vadd.f32 %v8050_v24, %v15074_v32  ;;  %v8053_v23 = vadd.f32 %v8052_v60, %v7763_v63  ;;  %v7765_v55 = vpop.f32.mrb[251].mxu0  ;;  %v8465_v32 = vadd.f32 %v8464_v1, %v15315_v34  ;;  %v8599_v24 = vadd.f32 %v8598_v2, %v8536_v42 }
 0x6f3   :  { %17251 = vst [vmem:[#allocation21_spill] sm:$0xff] %v15382_v28  ;;  %v15387_v50 = vadd.f32 %v8053_v23, %v17252_v26  ;;  %v8466_v33 = vadd.f32 %v8465_v32, %v15323_v25  ;;  %v8600_v1 = vadd.f32 %v8599_v24, %v8537_v39  ;;  %v8540_v24 = vmul.f32 %v15333_v57, %v15333_v57 }
 0x6f5   :  { %17253 = vst [vmem:[#allocation62_spill] sm:$0xff] %v15387_v50  ;;  %v8467_v42 = vadd.f32 %v8466_v33, %v15336_v27  ;;  %v17258_v33 = vld [vmem:[#allocation68_spill] sm:$0xff] }
 0x6f6   :  { %v15392_v29 = vpop.f32.mrb[36].mxu1  ;;  %v7768_v0 = vpop.f32.mrb[252].mxu0 }
 0x6f7   :  { %v8081_v60 = vpop.f32.mrb[37].mxu1  ;;  %v8058_v18 = vadd.f32 %v9777_v17, %v7768_v0  ;;  %v7770_v6 = vpop.f32.mrb[253].mxu0  ;;  %v17256_v17 = vld [vmem:[#allocation11_spill] sm:$0xff] }
 0x6f8   :  { %v15395_v20 = vpop.f32.mrb[38].mxu1  ;;  %v7771_v7 = vpop.f32.mrb[254].mxu0  ;;  %v8601_v6 = vadd.f32 %v8600_v1, %v8538_v52 }
 0x6f9   :  { %v8084_v63 = vpop.f32.mrb[39].mxu1  ;;  %v15400_v10 = vadd.f32 %v8058_v18, %v17254_v49  ;;  %v8061_v23 = vadd.f32 %v9778_v14, %v7771_v7  ;;  %v7773_v55 = vpop.f32.mrb[255].mxu0  ;;  %v8539_v18 = vmul.f32 %v15342_v22, %v15342_v22 }
 0x6fb   :  { %17255 = vst [vmem:[#allocation16_spill] sm:$0xff] %v15400_v10  ;;  %v15406_v26 = vadd.f32 %v8061_v23, %v17256_v17  ;;  %v8468_v23 = vadd.f32 %v8467_v42, %v15342_v22  ;;  %v8602_v27 = vadd.f32 %v8601_v6, %v8539_v18  ;;  %v8541_v42 = vmul.f32 %v15339_v46, %v15339_v46 }
 0x6fd   :  { %17257 = vst [vmem:[#allocation15_spill] sm:$0xff] %v15406_v26  ;;  %v8469_v25 = vadd.f32 %v8468_v23, %v15333_v57  ;;  %v8543_v57 = vmul.f32 %v15356_v44, %v15356_v44 }
 0x6fe   :  { %v15409_v0 = vpop.f32.mrb[40].mxu1  ;;  %v7776_v2 = vpop.f32.mrb[0].mxu0 }
 0x6ff   :  { %v15413_v14 = vpop.f32.mrb[41].mxu1  ;;  %v8066_v7 = vadd.f32 %v8065_v8, %v7776_v2  ;;  %v7778_v32 = vpop.f32.mrb[1].mxu0  ;;  %v17260_v8 = vld [vmem:[#allocation71_spill] sm:$0xff]  ;;  %v8470_v51 = vadd.f32 %v8469_v25, %v15339_v46 }
 0x700   :  { %v15415_v49 = vpop.f32.mrb[42].mxu1  ;;  %v7779_v55 = vpop.f32.mrb[2].mxu0  ;;  %v8603_v32 = vadd.f32 %v8602_v27, %v8540_v24 }
 0x701   :  { %v15420_v39 = vpop.f32.mrb[43].mxu1  ;;  %v15423_v17 = vadd.f32 %v8066_v7, %v17258_v33  ;;  %v8069_v52 = vadd.f32 %v8068_v30, %v7779_v55  ;;  %v7781_v1 = vpop.f32.mrb[3].mxu0  ;;  %v8542_v7 = vmul.f32 %v15351_v35, %v15351_v35  ;;  %v8471_v24 = vadd.f32 %v8470_v51, %v15351_v35 }
 0x702   :  { %v8604_v27 = vadd.f32 %v8603_v32, %v8541_v42  ;;  %v8544_v51 = vmul.f32 %v15365_v61, %v15365_v61 }
 0x703   :  { %17259 = vst [vmem:[#allocation12_spill] sm:$0xff] %v15423_v17  ;;  %v15427_v2 = vadd.f32 %v8069_v52, %v17260_v8  ;;  %v17262_v52 = vld [vmem:[#allocation19_spill] sm:$0xff] }
 0x704   :  { %v8605_v46 = vadd.f32 %v8604_v27, %v8542_v7 }
 0x705   :  { %17261 = vst [vmem:[#allocation14_spill] sm:$0xff] %v15427_v2 }
 0x706   :  { %v15431_v22 = vpop.f32.mrb[44].mxu1  ;;  %v7784_v34 = vpop.f32.mrb[4].mxu0 }
 0x707   :  { %v15436_v30 = vpop.f32.mrb[45].mxu1  ;;  %v8074_v6 = vadd.f32 %v15373_v43, %v7784_v34  ;;  %v7786_v18 = vpop.f32.mrb[5].mxu0  ;;  %v17264_v34 = vld [vmem:[#allocation25_spill] sm:$0xff] }
 0x708   :  { %v15439_v55 = vpop.f32.mrb[46].mxu1  ;;  %v7787_v23 = vpop.f32.mrb[6].mxu0  ;;  %v8472_v18 = vadd.f32 %v8471_v24, %v15356_v44  ;;  %v8545_v24 = vmul.f32 %v15369_v54, %v15369_v54  ;;  %v17266_v44 = vld [vmem:[#allocation69_spill] sm:$0xff] }
 0x709   :  { %v15442_v33 = vpop.f32.mrb[47].mxu1  ;;  %v15445_v1 = vadd.f32 %v8074_v6, %v17262_v52  ;;  %v8077_v25 = vadd.f32 %v15378_v58, %v7787_v23  ;;  %v7789_v8 = vpop.f32.mrb[7].mxu0  ;;  %v8606_v6 = vadd.f32 %v8605_v46, %v8543_v57 }
 0x70a   :  { %v8473_v52 = vadd.f32 %v8472_v18, %v15365_v61  ;;  %v17267_v18 = vld [vmem:[#allocation73_spill] sm:$0xff] }
 0x70b   :  { %17263 = vst [vmem:[#allocation23_spill] sm:$0xff] %v15445_v1  ;;  %v15451_v43 = vadd.f32 %v8077_v25, %v17264_v34  ;;  %v8607_v25 = vadd.f32 %v8606_v6, %v8544_v51 }
 0x70c   :  { %v8474_v46 = vadd.f32 %v8473_v52, %v15369_v54 }
 0x70d   :  { %17265 = vst [vmem:[#allocation65_spill] sm:$0xff] %v15451_v43 }
 0x70e   :  { %v15456_v32 = vpop.f32.mrb[48].mxu1  ;;  %v7792_v42 = vpop.f32.mrb[8].mxu0  ;;  %v8475_v51 = vadd.f32 %v8474_v46, %v15382_v28  ;;  %v17268_v46 = vld [vmem:[#allocation72_spill] sm:$0xff] }
 0x70f   :  { %v15459_v58 = vpop.f32.mrb[49].mxu1  ;;  %v8082_v7 = vadd.f32 %v8081_v60, %v7792_v42  ;;  %v7794_v23 = vpop.f32.mrb[9].mxu0  ;;  %v8546_v60 = vmul.f32 %v15382_v28, %v15382_v28 }
 0x710   :  { %v15461_v27 = vpop.f32.mrb[50].mxu1  ;;  %v7795_v8 = vpop.f32.mrb[10].mxu0  ;;  %v8608_v23 = vadd.f32 %v8607_v25, %v8545_v24  ;;  %v8548_v25 = vmul.f32 %v15400_v10, %v15400_v10 }
 0x711   :  { %v15465_v34 = vpop.f32.mrb[51].mxu1  ;;  %v15468_v35 = vadd.f32 %v8082_v7, %v17266_v44  ;;  %v8085_v59 = vadd.f32 %v8084_v63, %v7795_v8  ;;  %v7797_v57 = vpop.f32.mrb[11].mxu0  ;;  %v8547_v44 = vmul.f32 %v15387_v50, %v15387_v50 }
 0x712   :  { %v8609_v53 = vadd.f32 %v8608_v23, %v8546_v60 }
 0x713   :  { %v15474_v42 = vadd.f32 %v8085_v59, %v17267_v18  ;;  %v8476_v59 = vadd.f32 %v8475_v51, %v15387_v50  ;;  %v8549_v51 = vmul.f32 %v15406_v26, %v15406_v26 }
 0x714   :  { %v8610_v28 = vadd.f32 %v8609_v53, %v8547_v44 }
 0x716   :  { %v15477_v6 = vpop.f32.mrb[52].mxu1  ;;  %v7800_v61 = vpop.f32.mrb[12].mxu0  ;;  %v8611_v54 = vadd.f32 %v8610_v28, %v8548_v25 }
 0x717   :  { %v15481_v63 = vpop.f32.mrb[53].mxu1  ;;  %v8090_v52 = vadd.f32 %v15392_v29, %v7800_v61  ;;  %v7802_v7 = vpop.f32.mrb[13].mxu0  ;;  %v8477_v61 = vadd.f32 %v8476_v59, %v15400_v10  ;;  %v17269_v29 = vld [vmem:[#allocation70_spill] sm:$0xff]  ;;  %v8551_v10 = vmul.f32 %v15427_v2, %v15427_v2 }
 0x718   :  { %v15484_v8 = vpop.f32.mrb[54].mxu1  ;;  %v7803_v57 = vpop.f32.mrb[14].mxu0  ;;  %v8612_v28 = vadd.f32 %v8611_v54, %v8549_v51 }
 0x719   :  { %v15489_v24 = vpop.f32.mrb[55].mxu1  ;;  %v15492_v60 = vadd.f32 %v8090_v52, %v17268_v46  ;;  %v8093_v18 = vadd.f32 %v15395_v20, %v7803_v57  ;;  %v7805_v23 = vpop.f32.mrb[15].mxu0  ;;  %v8478_v13 = vadd.f32 %v8477_v61, %v15406_v26  ;;  %v8550_v52 = vmul.f32 %v15423_v17, %v15423_v17 }
 0x71b   :  { %v15497_v7 = vadd.f32 %v8093_v18, %v17269_v29  ;;  %v8479_v25 = vadd.f32 %v8478_v13, %v15423_v17  ;;  %v17271_v18 = vld [vmem:[#allocation75_spill] sm:$0xff]  ;;  %v8613_v26 = vadd.f32 %v8612_v28, %v8550_v52  ;;  %v8552_v13 = vmul.f32 %v15445_v1, %v15445_v1 }
 0x71d   :  { %17270 = vst [vmem:[#allocation20_spill] sm:$0xff] %v15497_v7 }
 0x71e   :  { %v15501_v50 = vpop.f32.mrb[56].mxu1  ;;  %v7808_v40 = vpop.f32.mrb[16].mxu0 }
 0x71f   :  { %v15506_v20 = vpop.f32.mrb[57].mxu1  ;;  %v8098_v53 = vadd.f32 %v15413_v14, %v7808_v40  ;;  %v7810_v44 = vpop.f32.mrb[17].mxu0  ;;  %v17272_v40 = vld [vmem:[#allocation74_spill] sm:$0xff] }
 0x720   :  { %v15509_v57 = vpop.f32.mrb[58].mxu1  ;;  %v7811_v59 = vpop.f32.mrb[18].mxu0  ;;  %v8480_v44 = vadd.f32 %v8479_v25, %v15427_v2  ;;  %v8553_v25 = vmul.f32 %v15451_v43, %v15451_v43 }
 0x721   :  { %v15512_v46 = vpop.f32.mrb[59].mxu1  ;;  %v15515_v23 = vadd.f32 %v8098_v53, %v17271_v18  ;;  %v8101_v61 = vadd.f32 %v15420_v39, %v7811_v59  ;;  %v7813_v29 = vpop.f32.mrb[19].mxu0  ;;  %v8614_v53 = vadd.f32 %v8613_v26, %v8551_v10 }
 0x722   :  { %v8481_v18 = vadd.f32 %v8480_v44, %v15445_v1  ;;  %v8554_v44 = vmul.f32 %v15468_v35, %v15468_v35 }
 0x723   :  { %v15521_v14 = vadd.f32 %v8101_v61, %v17272_v40  ;;  %v8615_v61 = vadd.f32 %v8614_v53, %v8552_v13  ;;  %v17273_v40 = vld [vmem:[#allocation88_spill] sm:$0xff] }
 0x725   :  { %v8616_v13 = vadd.f32 %v8615_v61, %v8553_v25 }
 0x726   :  { %v7816_v54 = vpop.f32.mrb[20].mxu0  ;;  %v15526_v51 = vpop.f32.mrb[60].mxu1 }
 0x727   :  { %v8106_v39 = vadd.f32 %v15409_v0, %v7816_v54  ;;  %v7818_v52 = vpop.f32.mrb[21].mxu0  ;;  %v15530_v59 = vpop.f32.mrb[61].mxu1  ;;  %v8482_v0 = vadd.f32 %v8481_v18, %v15451_v43  ;;  %v17274_v54 = vld [vmem:[#allocation78_spill] sm:$0xff]  ;;  %v8617_v5 = vadd.f32 %v8616_v13, %v8554_v44  ;;  %v17275_v43 = vld [vmem:[#allocation76_spill] sm:$0xff] }
 0x728   :  { %v7819_v28 = vpop.f32.mrb[22].mxu0  ;;  %v15532_v29 = vpop.f32.mrb[62].mxu1 }
 0x729   :  { %v15537_v2 = vadd.f32 %v8106_v39, %v17273_v40  ;;  %v8109_v17 = vadd.f32 %v15415_v49, %v7819_v28  ;;  %v7821_v10 = vpop.f32.mrb[23].mxu0  ;;  %v15540_v26 = vpop.f32.mrb[63].mxu1  ;;  %v8483_v53 = vadd.f32 %v8482_v0, %v15468_v35  ;;  %v8555_v39 = vmul.f32 %v15474_v42, %v15474_v42 }
 0x72a   :  { %v8556_v10 = vmul.f32 %v15492_v60, %v15492_v60 }
 0x72b   :  { %v15546_v52 = vadd.f32 %v8109_v17, %v17274_v54  ;;  %v8484_v18 = vadd.f32 %v8483_v53, %v15474_v42  ;;  %v8618_v0 = vadd.f32 %v8617_v5, %v8555_v39  ;;  %v17276_v54 = vld [vmem:[#allocation79_spill] sm:$0xff] }
 0x72d   :  { %v8485_v44 = vadd.f32 %v8484_v18, %v15492_v60  ;;  %v17277_v18 = vld [vmem:[#allocation77_spill] sm:$0xff] }
 0x72e   :  { %v7824_v1 = vpop.f32.mrb[24].mxu0 }
 0x72f   :  { %v8114_v49 = vadd.f32 %v15436_v30, %v7824_v1  ;;  %v7826_v28 = vpop.f32.mrb[25].mxu0  ;;  %v8619_v30 = vadd.f32 %v8618_v0, %v8556_v10  ;;  %v8557_v1 = vmul.f32 %v15497_v7, %v15497_v7 }
 0x730   :  { %v7827_v40 = vpop.f32.mrb[26].mxu0  ;;  %v8486_v28 = vadd.f32 %v8485_v44, %v15497_v7  ;;  %v8559_v44 = vmul.f32 %v15521_v14, %v15521_v14 }
 0x731   :  { %v15556_v17 = vadd.f32 %v8114_v49, %v17275_v43  ;;  %v8117_v61 = vadd.f32 %v15442_v33, %v7827_v40  ;;  %v7829_v25 = vpop.f32.mrb[27].mxu0  ;;  %v8558_v43 = vmul.f32 %v15515_v23, %v15515_v23  ;;  %v8620_v5 = vadd.f32 %v8619_v30, %v8557_v1 }
 0x732   :  { %v8487_v39 = vadd.f32 %v8486_v28, %v15515_v23  ;;  %v8560_v30 = vmul.f32 %v15537_v2, %v15537_v2 }
 0x733   :  { %v15561_v13 = vadd.f32 %v8117_v61, %v17276_v54  ;;  %v8621_v0 = vadd.f32 %v8620_v5, %v8558_v43  ;;  %v17278_v54 = vld [vmem:[#allocation42_spill] sm:$0xff] }
 0x734   :  { %v17279_v5 = vld [vmem:[#allocation82_spill] sm:$0xff] }
 0x736   :  { %v7832_v53 = vpop.f32.mrb[28].mxu0 }
 0x737   :  { %v8122_v49 = vadd.f32 %v15431_v22, %v7832_v53  ;;  %v7834_v33 = vpop.f32.mrb[29].mxu0  ;;  %v8488_v22 = vadd.f32 %v8487_v39, %v15521_v14  ;;  %v8622_v53 = vadd.f32 %v8621_v0, %v8559_v44  ;;  %v8562_v0 = vmul.f32 %v15556_v17, %v15556_v17  ;;  %v17280_v44 = vld [vmem:[#allocation80_spill] sm:$0xff] }
 0x738   :  { %v7835_v40 = vpop.f32.mrb[30].mxu0 }
 0x739   :  { %v15571_v61 = vadd.f32 %v8122_v49, %v17277_v18  ;;  %v8125_v10 = vadd.f32 %v15439_v55, %v7835_v40  ;;  %v7837_v25 = vpop.f32.mrb[31].mxu0  ;;  %v8489_v28 = vadd.f32 %v8488_v22, %v15537_v2  ;;  %v8623_v43 = vadd.f32 %v8622_v53, %v8560_v30 }
 0x73a   :  { %v8561_v40 = vmul.f32 %v15546_v52, %v15546_v52  ;;  %v8563_v53 = vmul.f32 %v15561_v13, %v15561_v13 }
 0x73b   :  { %v15577_v7 = vadd.f32 %v8125_v10, %v17278_v54  ;;  %v8490_v25 = vadd.f32 %v8489_v28, %v15546_v52 }
 0x73d   :  { %v8491_v22 = vadd.f32 %v8490_v25, %v15556_v17 }
 0x73e   :  { %v7840_v1 = vpop.f32.mrb[32].mxu0 }
 0x73f   :  { %v8130_v49 = vadd.f32 %v15459_v58, %v7840_v1  ;;  %v7842_v55 = vpop.f32.mrb[33].mxu0  ;;  %v8624_v58 = vadd.f32 %v8623_v43, %v8561_v40  ;;  %v8492_v28 = vadd.f32 %v8491_v22, %v15561_v13 }
 0x740   :  { %v7843_v33 = vpop.f32.mrb[34].mxu0 }
 0x741   :  { %v15587_v18 = vadd.f32 %v8130_v49, %v17279_v5  ;;  %v8133_v39 = vadd.f32 %v15465_v34, %v7843_v33  ;;  %v7845_v10 = vpop.f32.mrb[35].mxu0  ;;  %v8625_v1 = vadd.f32 %v8624_v58, %v8562_v0  ;;  %v8564_v33 = vmul.f32 %v15571_v61, %v15571_v61  ;;  %v17281_v5 = vld [vmem:[#allocation83_spill] sm:$0xff]  ;;  %v17282_v0 = vld [vmem:[#allocation81_spill] sm:$0xff] }
 0x742   :  { %v8493_v25 = vadd.f32 %v8492_v28, %v15571_v61  ;;  %v8565_v58 = vmul.f32 %v15577_v7, %v15577_v7  ;;  %v17283_v28 = vld [vmem:[#allocation86_spill] sm:$0xff] }
 0x743   :  { %v15594_v54 = vadd.f32 %v8133_v39, %v17280_v44  ;;  %v8626_v10 = vadd.f32 %v8625_v1, %v8563_v53 }
 0x746   :  { %v7848_v30 = vpop.f32.mrb[36].mxu0 }
 0x747   :  { %v8138_v49 = vadd.f32 %v15456_v32, %v7848_v30  ;;  %v7850_v34 = vpop.f32.mrb[37].mxu0  ;;  %v8627_v32 = vadd.f32 %v8626_v10, %v8564_v33  ;;  %v8494_v30 = vadd.f32 %v8493_v25, %v15577_v7  ;;  %v8567_v10 = vmul.f32 %v15594_v54, %v15594_v54  ;;  %v17284_v25 = vld [vmem:[#allocation84_spill] sm:$0xff] }
 0x748   :  { %v7851_v55 = vpop.f32.mrb[38].mxu0 }
 0x749   :  { %v15604_v39 = vadd.f32 %v8138_v49, %v17281_v5  ;;  %v8141_v43 = vadd.f32 %v15461_v27, %v7851_v55  ;;  %v7853_v40 = vpop.f32.mrb[39].mxu0  ;;  %v8566_v49 = vmul.f32 %v15587_v18, %v15587_v18  ;;  %v8628_v1 = vadd.f32 %v8627_v32, %v8565_v58 }
 0x74a   :  { %v8495_v53 = vadd.f32 %v8494_v30, %v15587_v18 }
 0x74b   :  { %v15609_v44 = vadd.f32 %v8141_v43, %v17282_v0  ;;  %v8629_v40 = vadd.f32 %v8628_v1, %v8566_v49  ;;  %v8568_v32 = vmul.f32 %v15604_v39, %v15604_v39  ;;  %v17285_v1 = vld [vmem:[#allocation43_spill] sm:$0xff] }
 0x74e   :  { %v7856_v22 = vpop.f32.mrb[40].mxu0 }
 0x74f   :  { %v8146_v34 = vadd.f32 %v15481_v63, %v7856_v22  ;;  %v7858_v27 = vpop.f32.mrb[41].mxu0  ;;  %v8496_v63 = vadd.f32 %v8495_v53, %v15594_v54  ;;  %v8630_v22 = vadd.f32 %v8629_v40, %v8567_v10  ;;  %v17286_v10 = vld [vmem:[#allocation13_spill] sm:$0xff] }
 0x750   :  { %v7859_v55 = vpop.f32.mrb[42].mxu0 }
 0x751   :  { %v15619_v5 = vadd.f32 %v8146_v34, %v17283_v28  ;;  %v8149_v33 = vadd.f32 %v15489_v24, %v7859_v55  ;;  %v7861_v43 = vpop.f32.mrb[43].mxu0  ;;  %v8497_v30 = vadd.f32 %v8496_v63, %v15604_v39  ;;  %v8631_v49 = vadd.f32 %v8630_v22, %v8568_v32 }
 0x752   :  { %v8569_v55 = vmul.f32 %v15609_v44, %v15609_v44 }
 0x753   :  { %v15625_v0 = vadd.f32 %v8149_v33, %v17284_v25  ;;  %v8498_v43 = vadd.f32 %v8497_v30, %v15609_v44  ;;  %v8570_v40 = vmul.f32 %v15619_v5, %v15619_v5 }
 0x755   :  { %v8499_v63 = vadd.f32 %v8498_v43, %v15619_v5  ;;  %v8571_v22 = vmul.f32 %v15625_v0, %v15625_v0 }
 0x756   :  { %v7864_v58 = vpop.f32.mrb[44].mxu0 }
 0x757   :  { %v8154_v34 = vadd.f32 %v15477_v6, %v7864_v58  ;;  %v7866_v24 = vpop.f32.mrb[45].mxu0  ;;  %v8632_v6 = vadd.f32 %v8631_v49, %v8569_v55  ;;  %v8500_v30 = vadd.f32 %v8499_v63, %v15625_v0 }
 0x758   :  { %v7867_v27 = vpop.f32.mrb[46].mxu0 }
 0x759   :  { %v15635_v28 = vadd.f32 %v8154_v34, %v17285_v1  ;;  %v8157_v53 = vadd.f32 %v15484_v8, %v7867_v27  ;;  %v7869_v33 = vpop.f32.mrb[47].mxu0  ;;  %v8633_v58 = vadd.f32 %v8632_v6, %v8570_v40 }
 0x75b   :  { %v15642_v25 = vadd.f32 %v8157_v53, %v17286_v10  ;;  %v8572_v27 = vmul.f32 %v15635_v28, %v15635_v28  ;;  %v8634_v53 = vadd.f32 %v8633_v58, %v8571_v22  ;;  %v8501_v33 = vadd.f32 %v8500_v30, %v15635_v28 }
 0x75d   :  { %v8573_v40 = vmul.f32 %v15642_v25, %v15642_v25  ;;  %v8502_v6 = vadd.f32 %v8501_v33, %v15642_v25 }
 0x75e   :  { %v7872_v32 = vpop.f32.mrb[48].mxu0 }
 0x75f   :  { %v8162_v34 = vadd.f32 %v15506_v20, %v7872_v32  ;;  %v7874_v8 = vpop.f32.mrb[49].mxu0  ;;  %v8635_v20 = vadd.f32 %v8634_v53, %v8572_v27 }
 0x760   :  { %v7875_v24 = vpop.f32.mrb[50].mxu0 }
 0x761   :  { %v15652_v1 = vadd.f32 %v8162_v34, %v15193_v11  ;;  %v8165_v49 = vadd.f32 %v15512_v46, %v7875_v24  ;;  %v7877_v55 = vpop.f32.mrb[51].mxu0  ;;  %v8636_v58 = vadd.f32 %v8635_v20, %v8573_v40 }
 0x763   :  { %v15657_v43 = vadd.f32 %v8165_v49, %v15196_v62  ;;  %v8574_v11 = vmul.f32 %v15652_v1, %v15652_v1  ;;  %v8503_v22 = vadd.f32 %v8502_v6, %v15652_v1 }
 0x765   :  { %v8637_v24 = vadd.f32 %v8636_v58, %v8574_v11  ;;  %v8575_v30 = vmul.f32 %v15657_v43, %v15657_v43 }
 0x766   :  { %v7880_v10 = vpop.f32.mrb[52].mxu0 }
 0x767   :  { %v8170_v63 = vadd.f32 %v15501_v50, %v7880_v10  ;;  %v7882_v46 = vpop.f32.mrb[53].mxu0  ;;  %v8504_v50 = vadd.f32 %v8503_v22, %v15657_v43  ;;  %v8638_v53 = vadd.f32 %v8637_v24, %v8575_v30 }
 0x768   :  { %v7883_v32 = vpop.f32.mrb[54].mxu0 }
 0x769   :  { %v15667_v62 = vadd.f32 %v8170_v63, %v15200_v41  ;;  %v8173_v34 = vadd.f32 %v15509_v57, %v7883_v32  ;;  %v7885_v8 = vpop.f32.mrb[55].mxu0  ;;  %v17287_v32 = vld [vmem:[#allocation37_spill] sm:$0xff] }
 0x76b   :  { %v15673_v27 = vadd.f32 %v8173_v34, %v15204_v19  ;;  %v8576_v49 = vmul.f32 %v15667_v62, %v15667_v62  ;;  %v8505_v41 = vadd.f32 %v8504_v50, %v15667_v62 }
 0x76d   :  { %v8639_v40 = vadd.f32 %v8638_v53, %v8576_v49  ;;  %v8577_v10 = vmul.f32 %v15673_v27, %v15673_v27  ;;  %v8506_v63 = vadd.f32 %v8505_v41, %v15673_v27 }
 0x76e   :  { %v7888_v55 = vpop.f32.mrb[56].mxu0 }
 0x76f   :  { %v8178_v33 = vadd.f32 %v15530_v59, %v7888_v55  ;;  %v7890_v57 = vpop.f32.mrb[57].mxu0  ;;  %v8640_v59 = vadd.f32 %v8639_v40, %v8577_v10 }
 0x770   :  { %v7891_v20 = vpop.f32.mrb[58].mxu0 }
 0x771   :  { %v15683_v19 = vadd.f32 %v8178_v33, %v15213_v9  ;;  %v8181_v6 = vadd.f32 %v15540_v26, %v7891_v20  ;;  %v7893_v11 = vpop.f32.mrb[59].mxu0 }
 0x773   :  { %v8578_v46 = vmul.f32 %v15683_v19, %v15683_v19  ;;  %v15690_v58 = vadd.f32 %v8181_v6, %v17287_v32  ;;  %v8507_v22 = vadd.f32 %v8506_v63, %v15683_v19 }
 0x775   :  { %v8641_v8 = vadd.f32 %v8640_v59, %v8578_v46  ;;  %v8579_v9 = vmul.f32 %v15690_v58, %v15690_v58  ;;  %v8508_v50 = vadd.f32 %v8507_v22, %v15690_v58 }
 0x776   :  { %v7896_v34 = vpop.f32.mrb[60].mxu0 }
 0x777   :  { %v8186_v24 = vadd.f32 %v15526_v51, %v7896_v34  ;;  %v7898_v26 = vpop.f32.mrb[61].mxu0  ;;  %v8642_v41 = vadd.f32 %v8641_v8, %v8579_v9 }
 0x778   :  { %v7899_v30 = vpop.f32.mrb[62].mxu0 }
 0x779   :  { %v15698_v49 = vadd.f32 %v8186_v24, %v15222_v4  ;;  %v8189_v55 = vadd.f32 %v15532_v29, %v7899_v30  ;;  %v7901_v53 = vpop.f32.mrb[63].mxu0 }
 0x77b   :  { %v8509_v33 = vadd.f32 %v8508_v50, %v15698_v49  ;;  %v8580_v57 = vmul.f32 %v15698_v49, %v15698_v49  ;;  %v8319_v20 = vadd.f32 %v8189_v55, %v15226_v47 }
 0x77d   :  { %v8643_v40 = vadd.f32 %v8642_v41, %v8580_v57  ;;  %v8510_v51 = vadd.f32 %v8509_v33, %v8319_v20  ;;  %v8581_v10 = vmul.f32 %v8319_v20, %v8319_v20  ;;  %v8655_v41 = vld [vmem:[%s16303_s5] sm:$0x1]  ;;  %s10091_s5 = smov [#allocation7]  }
 0x77f   :  { %v8511_v6 = vrot.slane %v8510_v51, 4  ;;  %v8644_v11 = vadd.f32 %v8643_v40, %v8581_v10  ;;  %v8659_v40 = vld [vmem:[%s16304_s6] sm:$0x1]  ;;  %v17288_v10 = vld [vmem:[#allocation45_spill] sm:$0xff]  ;;  %s8935_s6 = sshll.u32 %s10091_s5, 4  ;;  %s8936_s6 = int_to_ptr.vmem [resolvable:$true] %s8935_s6 }
 0x780   :  { %s10061_s26 = scalar_lea.vmem %s8936_s6, 8192  ;;  %p10066_p9 = scmp.lt.s32.totalorder %s8936_s6, %s8936_s6 }
 0x781   :  { %v8512_v63 = vadd.f32 %v8511_v6, %v8510_v51  ;;  %v8645_v46 = vrot.slane %v8644_v11, 4  ;;  %p10062_p8 = scmp.ne.s32.totalorder %s8936_s6, %s10061_s26  ;;  %p10067_p10 = scmp.lt.s32.totalorder %s10061_s26, %s10061_s26 }
 0x783   :  { %v8513_v4 = vrot.slane %v8512_v63, 2  ;;  %v8646_v32 = vadd.f32 %v8645_v46, %v8644_v11  ;;  %p10068_p11 = por %p10067_p10, %p10066_p9 }
 0x785   :  { %v8514_v59 = vadd.f32 %v8513_v4, %v8512_v63  ;;  %v8647_v29 = vrot.slane %v8646_v32, 2  ;;  %p10069_p12 = pnand %p10068_p11, %p10062_p8 }
 0x787   :  { %v8515_v22 = vrot.slane %v8514_v59, 1  ;;  %v8648_v34 = vadd.f32 %v8647_v29, %v8646_v32 }
 0x789   :  { %v8516_v8 = vadd.f32 %v8515_v22, %v8514_v59  ;;  %v8649_v9 = vrot.slane %v8648_v34, 1  ;;  %v17289_v22 = vld [vmem:[#allocation35_spill] sm:$0xff] }
 0x78b   :  { %v8517_v24 = vmul.f32 0.001953125, %v8516_v8  ;;  %v8650_v26 = vadd.f32 %v8649_v9, %v8648_v34 }
 0x78d   :  { %v8651_v30 = vmul.f32 0.001953125, %v8650_v26  ;;  %v8652_v50 = vmul.f32 %v8517_v24, %v8517_v24 }
 0x78f   :  { %v8653_v47 = vsub.f32 %v8651_v30, %v8652_v50  ;;  %v17294_v30 = vld [vmem:[#allocation39_spill] sm:$0xff] }
 0x791   :  { %v8654_v55 = vmax.f32 %v8653_v47, 0.0  ;;  %v17295_v47 = vld [vmem:[#allocation67_spill] sm:$0xff] }
 0x793   :  { %v8656_v53 = vadd.f32 1e-05, %v8654_v55 }
 0x795   :  { %9964 = vrsqrt.f32 %v8656_v53  ;;  %v17296_v53 = vld [vmem:[#allocation48_spill] sm:$0xff] }
 0x79f   :  { %v9965_v33 = vpop.eup %9964 }
 0x7a0   :  { %v8658_v57 = vmul.f32 %v9965_v33, %v8655_v41 }
 0x7a2   :  { %v8660_v51 = vmul.f32 %v8658_v57, %v8517_v24  ;;  %v15712_v6 = vrot.slane %v8658_v57, %v17288_v10  ;;  %v17297_v57 = vld [vmem:[#allocation47_spill] sm:$0xff] }
 0x7a4   :  { %v8661_v11 = vsub.f32 %v8659_v40, %v8660_v51  ;;  %v8731_v63 = vmul.f32 %v15712_v6, %v8319_v20  ;;  %v15717_v46 = vmul.f32 %v15712_v6, %v15239_v31  ;;  %v15721_v4 = vmul.f32 %v15712_v6, %v15246_v21  ;;  %v17298_v51 = vld [vmem:[#allocation46_spill] sm:$0xff] }
 0x7a5   :  { %v15725_v32 = vmul.f32 %v15712_v6, %v15235_v15  ;;  %v15729_v59 = vmul.f32 %v15712_v6, %v15243_v37  ;;  %v15733_v29 = vmul.f32 %v15712_v6, %v15259_v36  ;;  %v15737_v31 = vmul.f32 %v15712_v6, %v15266_v38 }
 0x7a6   :  { %v15740_v20 = vrot.slane %v8661_v11, %v17288_v10  ;;  %v15744_v21 = vmul.f32 %v15712_v6, %v15256_v3  ;;  %v15748_v15 = vmul.f32 %v15712_v6, %v15263_v12  ;;  %v15752_v37 = vmul.f32 %v15712_v6, %v15279_v48  ;;  %v17290_v48 = vld [vmem:[#allocation40_spill] sm:$0xff] }
 0x7a7   :  { %v15756_v36 = vmul.f32 %v15712_v6, %v15288_v56  ;;  %v15760_v38 = vmul.f32 %v15712_v6, %v15276_v45  ;;  %v15764_v3 = vmul.f32 %v15712_v6, %v15285_v16  ;;  %v15768_v12 = vmul.f32 %v15712_v6, %v17289_v22  ;;  %v17291_v56 = vld [vmem:[#allocation38_spill] sm:$0xff]  ;;  %v17293_v16 = vld [vmem:[#allocation60_spill] sm:$0xff] }
 0x7a8   :  { %v8801_v34 = vadd.f32 %v15740_v20, %v8731_v63  ;;  %v15773_v8 = vmul.f32 %v15712_v6, %v17290_v48  ;;  %v15777_v9 = vmul.f32 %v15712_v6, %v17291_v56  ;;  %v17292_v45 = vld [vmem:[#allocation58_spill] sm:$0xff]  ;;  %v15785_v26 = vmul.f32 %v15712_v6, %v17293_v16  ;;  %v17299_v11 = vld [vmem:[#allocation64_spill] sm:$0xff] }
 0x7a9   :  { %v15781_v24 = vmul.f32 %v15712_v6, %v17292_v45  ;;  %v15789_v50 = vmul.f32 %v15712_v6, %v17294_v30  ;;  %v15793_v55 = vmul.f32 %v15712_v6, %v17295_v47  ;;  %v15797_v41 = vmul.f32 %v15712_v6, %v17296_v53  ;;  %v17300_v22 = vld [vmem:[#allocation50_spill] sm:$0xff]  ;;  %v17301_v56 = vld [vmem:[#allocation56_spill] sm:$0xff]  ;;  %v17306_v53 = vld [vmem:[#allocation17_spill] sm:$0xff] }
 0x7aa   :  { %v8865_v33 = vmax.f32 %v8801_v34, 0.0  ;;  %v15801_v40 = vmul.f32 %v15712_v6, %v17297_v57  ;;  %v15805_v10 = vmul.f32 %v15712_v6, %v17298_v51  ;;  %v15809_v63 = vmul.f32 %v15712_v6, %v17299_v11  ;;  %v17303_v34 = vld [vmem:[#allocation53_spill] sm:$0xff]  ;;  %v17305_v30 = vld [vmem:[#allocation52_spill] sm:$0xff] }
 0x7ab   :  { %v15813_v48 = vmul.f32 %v15712_v6, %v17300_v22  ;;  %v15817_v45 = vmul.f32 %v15712_v6, %v17301_v56  ;;  %v15821_v16 = vmul.f32 %v15712_v6, %v17303_v34  ;;  %v15825_v47 = vmul.f32 %v15712_v6, %v17305_v30  ;;  %v17308_v51 = vld [vmem:[#allocation21_spill] sm:$0xff]  ;;  %v17310_v22 = vld [vmem:[#allocation62_spill] sm:$0xff] }
 0x7ac   :  { %8929 = vst [vmem:[#allocation7 + $0x1f8] sm:$0xff] %v8865_v33  ;;  %v15829_v57 = vmul.f32 %v15712_v6, %v17306_v53  ;;  %v15833_v11 = vmul.f32 %v15712_v6, %v17308_v51  ;;  %v15837_v56 = vmul.f32 %v15712_v6, %v17310_v22  ;;  %v17314_v33 = vld [vmem:[#allocation12_spill] sm:$0xff] }
 0x7ad   :  { %17302 = vst [vmem:[#allocation54_spill] sm:$0xff] %v15817_v45  ;;  %17304 = vst [vmem:[#allocation28_spill] sm:$0xff] %v15821_v16  ;;  %v17312_v45 = vld [vmem:[#allocation16_spill] sm:$0xff]  ;;  %v17313_v16 = vld [vmem:[#allocation15_spill] sm:$0xff]  ;;  %v15849_v53 = vmul.f32 %v15712_v6, %v17314_v33  ;;  %v15869_v33 = vmul.f32 %v15712_v6, %v15474_v42  ;;  %v15889_v42 = vmul.f32 %v15712_v6, %v15537_v2 }
 0x7ae   :  { %17307 = vst [vmem:[#allocation18_spill] sm:$0xff] %v15829_v57  ;;  %17309 = vst [vmem:[#allocation29_spill] sm:$0xff] %v15833_v11  ;;  %v15841_v34 = vmul.f32 %v15712_v6, %v17312_v45  ;;  %v15845_v30 = vmul.f32 %v15712_v6, %v17313_v16  ;;  %v17315_v57 = vld [vmem:[#allocation14_spill] sm:$0xff]  ;;  %v17317_v11 = vld [vmem:[#allocation23_spill] sm:$0xff]  ;;  %v15865_v16 = vmul.f32 %v15712_v6, %v15468_v35 }
 0x7af   :  { %17311 = vst [vmem:[#allocation61_spill] sm:$0xff] %v15837_v56  ;;  %v15853_v51 = vmul.f32 %v15712_v6, %v17315_v57  ;;  %v15857_v22 = vmul.f32 %v15712_v6, %v17317_v11  ;;  %v17318_v56 = vld [vmem:[#allocation65_spill] sm:$0xff]  ;;  %v15873_v57 = vmul.f32 %v15712_v6, %v15492_v60  ;;  %v15885_v35 = vmul.f32 %v15712_v6, %v15521_v14 }
 0x7b0   :  { %v15861_v45 = vmul.f32 %v15712_v6, %v17318_v56  ;;  %v15881_v56 = vmul.f32 %v15712_v6, %v15515_v23  ;;  %v15893_v60 = vmul.f32 %v15712_v6, %v15546_v52  ;;  %v15901_v23 = vmul.f32 %v15712_v6, %v15561_v13 }
 0x7b1   :  { %17316 = vst [vmem:[#allocation27_spill] sm:$0xff] %v15853_v51  ;;  %v17319_v51 = vld [vmem:[#allocation20_spill] sm:$0xff]  ;;  %v15905_v14 = vmul.f32 %v15712_v6, %v15571_v61  ;;  %v15909_v2 = vmul.f32 %v15712_v6, %v15577_v7  ;;  %v15913_v52 = vmul.f32 %v15712_v6, %v15587_v18  ;;  %v15921_v13 = vmul.f32 %v15712_v6, %v15604_v39 }
 0x7b2   :  { %v15877_v11 = vmul.f32 %v15712_v6, %v17319_v51  ;;  %v15897_v51 = vmul.f32 %v15712_v6, %v15556_v17  ;;  %v15917_v17 = vmul.f32 %v15712_v6, %v15594_v54  ;;  %v15925_v61 = vmul.f32 %v15712_v6, %v15609_v44 }
 0x7b3   :  { %v15929_v7 = vmul.f32 %v15712_v6, %v15619_v5  ;;  %v15933_v18 = vmul.f32 %v15712_v6, %v15625_v0  ;;  %v15937_v54 = vmul.f32 %v15712_v6, %v15635_v28  ;;  %v15941_v39 = vmul.f32 %v15712_v6, %v15642_v25 }
 0x7b4   :  { %v15945_v44 = vmul.f32 %v15712_v6, %v15652_v1  ;;  %v15949_v5 = vmul.f32 %v15712_v6, %v15657_v43  ;;  %v15953_v0 = vmul.f32 %v15712_v6, %v15667_v62  ;;  %v15957_v28 = vmul.f32 %v15712_v6, %v15673_v27 }
 0x7b5   :  { %v15961_v25 = vmul.f32 %v15712_v6, %v15683_v19  ;;  %v15965_v1 = vmul.f32 %v15712_v6, %v15690_v58  ;;  %v15969_v43 = vmul.f32 %v15712_v6, %v15698_v49  ;;  %v15973_v62 = vadd.f32 %v15740_v20, %v15717_v46 }
 0x7b6   :  { %v15977_v27 = vadd.f32 %v15740_v20, %v15721_v4  ;;  %v15981_v19 = vadd.f32 %v15740_v20, %v15725_v32  ;;  %v15985_v58 = vadd.f32 %v15740_v20, %v15729_v59  ;;  %v15989_v49 = vadd.f32 %v15740_v20, %v15733_v29 }
 0x7b7   :  { %v15993_v6 = vadd.f32 %v15740_v20, %v15737_v31  ;;  %v15997_v46 = vadd.f32 %v15740_v20, %v15744_v21  ;;  %v16001_v4 = vadd.f32 %v15740_v20, %v15748_v15  ;;  %v16005_v32 = vadd.f32 %v15740_v20, %v15752_v37 }
 0x7b8   :  { %v16009_v59 = vadd.f32 %v15740_v20, %v15756_v36  ;;  %v16013_v29 = vadd.f32 %v15740_v20, %v15760_v38  ;;  %v16017_v31 = vadd.f32 %v15740_v20, %v15764_v3  ;;  %v16021_v21 = vadd.f32 %v15740_v20, %v15768_v12 }
 0x7b9   :  { %v16025_v15 = vadd.f32 %v15740_v20, %v15773_v8  ;;  %v16029_v37 = vadd.f32 %v15740_v20, %v15777_v9  ;;  %v16033_v36 = vadd.f32 %v15740_v20, %v15781_v24  ;;  %v16037_v38 = vadd.f32 %v15740_v20, %v15785_v26 }
 0x7ba   :  { %v16041_v3 = vadd.f32 %v15740_v20, %v15789_v50  ;;  %v16045_v12 = vadd.f32 %v15740_v20, %v15793_v55  ;;  %v16049_v8 = vadd.f32 %v15740_v20, %v15797_v41  ;;  %v16053_v9 = vadd.f32 %v15740_v20, %v15801_v40  ;;  %v17324_v55 = vld [vmem:[#allocation54_spill] sm:$0xff] }
 0x7bb   :  { %v16057_v24 = vadd.f32 %v15740_v20, %v15805_v10  ;;  %v16061_v26 = vadd.f32 %v15740_v20, %v15809_v63  ;;  %v16065_v50 = vadd.f32 %v15740_v20, %v15813_v48  ;;  %v16069_v41 = vadd.f32 %v15740_v20, %v17324_v55 }
 0x7bc   :  { %17320 = vst [vmem:[#allocation24_spill] sm:$0xff] %v16049_v8  ;;  %v17325_v8 = vld [vmem:[#allocation28_spill] sm:$0xff]  ;;  %v16077_v10 = vadd.f32 %v15740_v20, %v15825_v47  ;;  %v16097_v47 = vadd.f32 %v15740_v20, %v15845_v30  ;;  %v16117_v30 = vadd.f32 %v15740_v20, %v15865_v16  ;;  %v16137_v16 = vadd.f32 %v15740_v20, %v15885_v35 }
 0x7bd   :  { %17321 = vst [vmem:[#allocation30_spill] sm:$0xff] %v16057_v24  ;;  %17322 = vst [vmem:[#allocation26_spill] sm:$0xff] %v16061_v26  ;;  %v16073_v40 = vadd.f32 %v15740_v20, %v17325_v8  ;;  %v17326_v24 = vld [vmem:[#allocation18_spill] sm:$0xff]  ;;  %v17328_v26 = vld [vmem:[#allocation29_spill] sm:$0xff]  ;;  %v16093_v8 = vadd.f32 %v15740_v20, %v15841_v34  ;;  %v16113_v34 = vadd.f32 %v15740_v20, %v15861_v45 }
 0x7be   :  { %17323 = vst [vmem:[#allocation33_spill] sm:$0xff] %v16065_v50  ;;  %v16081_v63 = vadd.f32 %v15740_v20, %v17326_v24  ;;  %v16085_v48 = vadd.f32 %v15740_v20, %v17328_v26  ;;  %v17329_v50 = vld [vmem:[#allocation61_spill] sm:$0xff]  ;;  %v16101_v24 = vadd.f32 %v15740_v20, %v15849_v53  ;;  %v16121_v53 = vadd.f32 %v15740_v20, %v15869_v33 }
 0x7bf   :  { %v16089_v55 = vadd.f32 %v15740_v20, %v17329_v50  ;;  %v16109_v50 = vadd.f32 %v15740_v20, %v15857_v22  ;;  %v16129_v22 = vadd.f32 %v15740_v20, %v15877_v11  ;;  %v16133_v45 = vadd.f32 %v15740_v20, %v15881_v56 }
 0x7c0   :  { %17327 = vst [vmem:[#allocation22_spill] sm:$0xff] %v16081_v63  ;;  %v17330_v63 = vld [vmem:[#allocation27_spill] sm:$0xff]  ;;  %v16141_v33 = vadd.f32 %v15740_v20, %v15889_v42  ;;  %v16149_v11 = vadd.f32 %v15740_v20, %v15897_v51  ;;  %v16153_v56 = vadd.f32 %v15740_v20, %v15901_v23  ;;  %v16157_v35 = vadd.f32 %v15740_v20, %v15905_v14 }
 0x7c1   :  { %v16105_v26 = vadd.f32 %v15740_v20, %v17330_v63  ;;  %v16125_v63 = vadd.f32 %v15740_v20, %v15873_v57  ;;  %v16145_v57 = vadd.f32 %v15740_v20, %v15893_v60  ;;  %v16161_v42 = vadd.f32 %v15740_v20, %v15909_v2 }
 0x7c2   :  { %v16165_v60 = vadd.f32 %v15740_v20, %v15913_v52  ;;  %v16169_v51 = vadd.f32 %v15740_v20, %v15917_v17  ;;  %v16173_v23 = vadd.f32 %v15740_v20, %v15921_v13  ;;  %v16177_v14 = vadd.f32 %v15740_v20, %v15925_v61 }
 0x7c3   :  { %v16181_v2 = vadd.f32 %v15740_v20, %v15929_v7  ;;  %v16185_v52 = vadd.f32 %v15740_v20, %v15933_v18  ;;  %v16189_v17 = vadd.f32 %v15740_v20, %v15937_v54  ;;  %v16193_v13 = vadd.f32 %v15740_v20, %v15941_v39 }
 0x7c4   :  { %v16197_v61 = vadd.f32 %v15740_v20, %v15945_v44  ;;  %v16201_v7 = vadd.f32 %v15740_v20, %v15949_v5  ;;  %v16205_v18 = vadd.f32 %v15740_v20, %v15953_v0  ;;  %v16209_v54 = vadd.f32 %v15740_v20, %v15957_v28 }
 0x7c5   :  { %v16213_v39 = vadd.f32 %v15740_v20, %v15961_v25  ;;  %v16217_v44 = vadd.f32 %v15740_v20, %v15965_v1  ;;  %v16221_v5 = vadd.f32 %v15740_v20, %v15969_v43  ;;  %v8803_v0 = vmax.f32 %v15977_v27, 0.0 }
 0x7c6   :  { %17331 = vst [vmem:[#allocation31_spill] sm:$0xff] %v16201_v7  ;;  %17332 = vst [vmem:[#allocation32_spill] sm:$0xff] %v16205_v18  ;;  %v8802_v7 = vmax.f32 %v15973_v62, 0.0  ;;  %v8804_v18 = vmax.f32 %v15981_v19, 0.0  ;;  %v8805_v28 = vmax.f32 %v15985_v58, 0.0  ;;  %v8807_v25 = vmax.f32 %v15993_v6, 0.0 }
 0x7c7   :  { %17333 = vst [vmem:[#allocation34_spill] sm:$0xff] %v16209_v54  ;;  %17334 = vst [vmem:[#allocation36_spill] sm:$0xff] %v16213_v39  ;;  %v8806_v54 = vmax.f32 %v15989_v49, 0.0  ;;  %v8808_v39 = vmax.f32 %v15997_v46, 0.0  ;;  %v8809_v1 = vmax.f32 %v16001_v4, 0.0  ;;  %v8811_v20 = vmax.f32 %v16009_v59, 0.0 }
 0x7c8   :  { %17335 = vst [vmem:[#allocation41_spill] sm:$0xff] %v16217_v44  ;;  %v8810_v44 = vmax.f32 %v16005_v32, 0.0  ;;  %8866 = vst [vmem:[#allocation7] sm:$0xff] %v8802_v7  ;;  %v8812_v43 = vmax.f32 %v16013_v29, 0.0  ;;  %v8813_v62 = vmax.f32 %v16017_v31, 0.0  ;;  %v8814_v27 = vmax.f32 %v16021_v21, 0.0 }
 0x7c9   :  { %8867 = vst [vmem:[#allocation7 + $0x8] sm:$0xff] %v8803_v0  ;;  %8868 = vst [vmem:[#allocation7 + $0x10] sm:$0xff] %v8804_v18  ;;  %v8815_v19 = vmax.f32 %v16025_v15, 0.0  ;;  %v8816_v58 = vmax.f32 %v16029_v37, 0.0  ;;  %v8817_v49 = vmax.f32 %v16033_v36, 0.0  ;;  %v8818_v6 = vmax.f32 %v16037_v38, 0.0 }
 0x7ca   :  { %8869 = vst [vmem:[#allocation7 + $0x18] sm:$0xff] %v8805_v28  ;;  %8870 = vst [vmem:[#allocation7 + $0x20] sm:$0xff] %v8806_v54  ;;  %v8819_v46 = vmax.f32 %v16041_v3, 0.0  ;;  %v8820_v4 = vmax.f32 %v16045_v12, 0.0  ;;  %v17336_v32 = vld [vmem:[#allocation24_spill] sm:$0xff]  ;;  %v8822_v29 = vmax.f32 %v16053_v9, 0.0 }
 0x7cb   :  { %8871 = vst [vmem:[#allocation7 + $0x28] sm:$0xff] %v8807_v25  ;;  %8872 = vst [vmem:[#allocation7 + $0x30] sm:$0xff] %v8808_v39  ;;  %v8821_v59 = vmax.f32 %v17336_v32, 0.0  ;;  %v17337_v31 = vld [vmem:[#allocation30_spill] sm:$0xff]  ;;  %v17339_v36 = vld [vmem:[#allocation33_spill] sm:$0xff]  ;;  %v8826_v7 = vmax.f32 %v16069_v41, 0.0 }
 0x7cc   :  { %8873 = vst [vmem:[#allocation7 + $0x38] sm:$0xff] %v8809_v1  ;;  %8874 = vst [vmem:[#allocation7 + $0x40] sm:$0xff] %v8810_v44  ;;  %v8823_v21 = vmax.f32 %v17337_v31, 0.0  ;;  %v17338_v15 = vld [vmem:[#allocation26_spill] sm:$0xff]  ;;  %v8825_v38 = vmax.f32 %v17339_v36, 0.0  ;;  %v8827_v3 = vmax.f32 %v16073_v40, 0.0 }
 0x7cd   :  { %8875 = vst [vmem:[#allocation7 + $0x48] sm:$0xff] %v8811_v20  ;;  %8876 = vst [vmem:[#allocation7 + $0x50] sm:$0xff] %v8812_v43  ;;  %v8824_v37 = vmax.f32 %v17338_v15, 0.0  ;;  %v8828_v12 = vmax.f32 %v16077_v10, 0.0  ;;  %v17340_v9 = vld [vmem:[#allocation22_spill] sm:$0xff]  ;;  %v8830_v54 = vmax.f32 %v16085_v48, 0.0 }
 0x7ce   :  { %8877 = vst [vmem:[#allocation7 + $0x58] sm:$0xff] %v8813_v62  ;;  %8878 = vst [vmem:[#allocation7 + $0x60] sm:$0xff] %v8814_v27  ;;  %v8829_v18 = vmax.f32 %v17340_v9, 0.0  ;;  %v8831_v39 = vmax.f32 %v16089_v55, 0.0  ;;  %v8832_v41 = vmax.f32 %v16093_v8, 0.0  ;;  %v8833_v44 = vmax.f32 %v16097_v47, 0.0 }
 0x7cf   :  { %8879 = vst [vmem:[#allocation7 + $0x68] sm:$0xff] %v8815_v19  ;;  %8880 = vst [vmem:[#allocation7 + $0x70] sm:$0xff] %v8816_v58  ;;  %v8834_v0 = vmax.f32 %v16101_v24, 0.0  ;;  %v8835_v40 = vmax.f32 %v16105_v26, 0.0  ;;  %v8836_v10 = vmax.f32 %v16109_v50, 0.0  ;;  %v8837_v48 = vmax.f32 %v16113_v34, 0.0 }
 0x7d0   :  { %8881 = vst [vmem:[#allocation7 + $0x78] sm:$0xff] %v8817_v49  ;;  %8882 = vst [vmem:[#allocation7 + $0x80] sm:$0xff] %v8818_v6  ;;  %v8838_v28 = vmax.f32 %v16117_v30, 0.0  ;;  %v8839_v55 = vmax.f32 %v16121_v53, 0.0  ;;  %v8840_v8 = vmax.f32 %v16125_v63, 0.0  ;;  %v8841_v47 = vmax.f32 %v16129_v22, 0.0 }
 0x7d1   :  { %8883 = vst [vmem:[#allocation7 + $0x88] sm:$0xff] %v8819_v46  ;;  %8884 = vst [vmem:[#allocation7 + $0x90] sm:$0xff] %v8820_v4  ;;  %v8842_v24 = vmax.f32 %v16133_v45, 0.0  ;;  %v8843_v26 = vmax.f32 %v16137_v16, 0.0  ;;  %v8844_v50 = vmax.f32 %v16141_v33, 0.0  ;;  %v8845_v34 = vmax.f32 %v16145_v57, 0.0 }
 0x7d2   :  { %8885 = vst [vmem:[#allocation7 + $0x98] sm:$0xff] %v8821_v59  ;;  %8886 = vst [vmem:[#allocation7 + $0xa0] sm:$0xff] %v8822_v29  ;;  %v8846_v30 = vmax.f32 %v16149_v11, 0.0  ;;  %v8847_v53 = vmax.f32 %v16153_v56, 0.0  ;;  %v8848_v63 = vmax.f32 %v16157_v35, 0.0  ;;  %v8849_v22 = vmax.f32 %v16161_v42, 0.0 }
 0x7d3   :  { %8887 = vst [vmem:[#allocation7 + $0xa8] sm:$0xff] %v8823_v21  ;;  %8888 = vst [vmem:[#allocation7 + $0xb0] sm:$0xff] %v8824_v37  ;;  %v8850_v45 = vmax.f32 %v16165_v60, 0.0  ;;  %v8851_v16 = vmax.f32 %v16169_v51, 0.0  ;;  %v8852_v33 = vmax.f32 %v16173_v23, 0.0  ;;  %v8853_v57 = vmax.f32 %v16177_v14, 0.0 }
 0x7d4   :  { %8889 = vst [vmem:[#allocation7 + $0xb8] sm:$0xff] %v8825_v38  ;;  %8890 = vst [vmem:[#allocation7 + $0xc0] sm:$0xff] %v8826_v7  ;;  %v8854_v11 = vmax.f32 %v16181_v2, 0.0  ;;  %v8855_v56 = vmax.f32 %v16185_v52, 0.0  ;;  %v8856_v35 = vmax.f32 %v16189_v17, 0.0  ;;  %v8857_v42 = vmax.f32 %v16193_v13, 0.0 }
 0x7d5   :  { %8891 = vst [vmem:[#allocation7 + $0xc8] sm:$0xff] %v8827_v3  ;;  %8892 = vst [vmem:[#allocation7 + $0xd0] sm:$0xff] %v8828_v12  ;;  %v8858_v60 = vmax.f32 %v16197_v61, 0.0  ;;  %v17341_v51 = vld [vmem:[#allocation31_spill] sm:$0xff]  ;;  %v17342_v14 = vld [vmem:[#allocation32_spill] sm:$0xff]  ;;  %v8864_v13 = vmax.f32 %v16221_v5, 0.0 }
 0x7d6   :  { %8893 = vst [vmem:[#allocation7 + $0xd8] sm:$0xff] %v8829_v18  ;;  %8894 = vst [vmem:[#allocation7 + $0xe0] sm:$0xff] %v8830_v54  ;;  %v8859_v23 = vmax.f32 %v17341_v51, 0.0  ;;  %v8860_v2 = vmax.f32 %v17342_v14, 0.0  ;;  %v17343_v25 = vld [vmem:[#allocation34_spill] sm:$0xff]  ;;  %v17344_v20 = vld [vmem:[#allocation36_spill] sm:$0xff] }
 0x7d7   :  { %8895 = vst [vmem:[#allocation7 + $0xe8] sm:$0xff] %v8831_v39  ;;  %8896 = vst [vmem:[#allocation7 + $0xf0] sm:$0xff] %v8832_v41  ;;  %v8861_v1 = vmax.f32 %v17343_v25, 0.0  ;;  %v8862_v43 = vmax.f32 %v17344_v20, 0.0  ;;  %v17345_v52 = vld [vmem:[#allocation41_spill] sm:$0xff] }
 0x7d8   :  { %8897 = vst [vmem:[#allocation7 + $0xf8] sm:$0xff] %v8833_v44  ;;  %8898 = vst [vmem:[#allocation7 + $0x100] sm:$0xff] %v8834_v0  ;;  %v8863_v17 = vmax.f32 %v17345_v52, 0.0 }
 0x7d9   :  { %8899 = vst [vmem:[#allocation7 + $0x108] sm:$0xff] %v8835_v40  ;;  %8900 = vst [vmem:[#allocation7 + $0x110] sm:$0xff] %v8836_v10 }
 0x7da   :  { %8901 = vst [vmem:[#allocation7 + $0x118] sm:$0xff] %v8837_v48  ;;  %8902 = vst [vmem:[#allocation7 + $0x120] sm:$0xff] %v8838_v28 }
 0x7db   :  { %8903 = vst [vmem:[#allocation7 + $0x128] sm:$0xff] %v8839_v55  ;;  %8904 = vst [vmem:[#allocation7 + $0x130] sm:$0xff] %v8840_v8 }
 0x7dc   :  { %8905 = vst [vmem:[#allocation7 + $0x138] sm:$0xff] %v8841_v47  ;;  %8906 = vst [vmem:[#allocation7 + $0x140] sm:$0xff] %v8842_v24 }
 0x7dd   :  { %8907 = vst [vmem:[#allocation7 + $0x148] sm:$0xff] %v8843_v26  ;;  %8908 = vst [vmem:[#allocation7 + $0x150] sm:$0xff] %v8844_v50 }
 0x7de   :  { %8909 = vst [vmem:[#allocation7 + $0x158] sm:$0xff] %v8845_v34  ;;  %8910 = vst [vmem:[#allocation7 + $0x160] sm:$0xff] %v8846_v30 }
 0x7df   :  { %8911 = vst [vmem:[#allocation7 + $0x168] sm:$0xff] %v8847_v53  ;;  %8912 = vst [vmem:[#allocation7 + $0x170] sm:$0xff] %v8848_v63 }
 0x7e0   :  { %8913 = vst [vmem:[#allocation7 + $0x178] sm:$0xff] %v8849_v22  ;;  %8914 = vst [vmem:[#allocation7 + $0x180] sm:$0xff] %v8850_v45 }
 0x7e1   :  { %8915 = vst [vmem:[#allocation7 + $0x188] sm:$0xff] %v8851_v16  ;;  %8916 = vst [vmem:[#allocation7 + $0x190] sm:$0xff] %v8852_v33 }
 0x7e2   :  { %8917 = vst [vmem:[#allocation7 + $0x198] sm:$0xff] %v8853_v57  ;;  %8918 = vst [vmem:[#allocation7 + $0x1a0] sm:$0xff] %v8854_v11 }
 0x7e3   :  { %8919 = vst [vmem:[#allocation7 + $0x1a8] sm:$0xff] %v8855_v56  ;;  %8920 = vst [vmem:[#allocation7 + $0x1b0] sm:$0xff] %v8856_v35 }
 0x7e4   :  { %8921 = vst [vmem:[#allocation7 + $0x1b8] sm:$0xff] %v8857_v42  ;;  %8922 = vst [vmem:[#allocation7 + $0x1c0] sm:$0xff] %v8858_v60 }
 0x7e5   :  { %8923 = vst [vmem:[#allocation7 + $0x1c8] sm:$0xff] %v8859_v23  ;;  %8924 = vst [vmem:[#allocation7 + $0x1d0] sm:$0xff] %v8860_v2 }
 0x7e6   :  { %8925 = vst [vmem:[#allocation7 + $0x1d8] sm:$0xff] %v8861_v1  ;;  %8926 = vst [vmem:[#allocation7 + $0x1e0] sm:$0xff] %v8862_v43 }
 0x7e7   :  { %8927 = vst [vmem:[#allocation7 + $0x1e8] sm:$0xff] %v8863_v17  ;;  %8928 = vst [vmem:[#allocation7 + $0x1f0] sm:$0xff] %v8864_v13 }
 0x7e8   :  { %10072 = shalt.err (!%p10069_p12)
}
 0x7e9   :  { %s10073_s29 = scalar_lea.hbm %s16305_s7, 8192 }
 0x7ea   :  { %p10074_p13 = scmp.ne.s32.totalorder %s16305_s7, %s10073_s29  ;;  %p10077_p0 = scmp.lt.u32.totalorder %s10073_s29, %s16305_s7 }
 0x7ec   :  { %p10079_p1 = pnand %p10077_p0, %p10074_p13 }
 0x7ee   :  { %10082 = shalt.err (!%p10079_p1)
}
 0x7ef   :  { %s10092_s10 = smov 128   ;;  %s10093_s11 = smov 8  }
 0x7f0   :  { %8941 = dma.vmem_to_hbm [thread:$0]  %s8936_s6, 8192, %s16305_s7, [#allocation6], %s10092_s10, %s10092_s10, %s10093_s11  }
 0x7f1   :  { %10085 = dma.done.wait [#allocation6], 8192  }
 0x7f2   :  { %10086 = vsyncadd [#allocation6], 4294959104 }
 0x7f3   :  { %8945 = vsyncpa [#allocation5], 1 }
 0x7f4   :  { %8946 = vsyncpa [#allocation6], 1 }

</bundles_post_ra>
